<compile_context>
chip_gen: v7x
topology: tpu7x:2x2x1
jax: 0.10.0
libtpu: 0.0.40
codegen_flags: <defaults>
</compile_context>

<pallas_src>
import functools
import numpy as np
import jax
import jax.numpy as jnp
from jax.experimental import pallas as pl
from jax.experimental.pallas import tpu as pltpu

DELTA = 1e-6
INV = float(np.log(np.exp(1.0 - DELTA) - 1.0))
LOG100 = float(np.log(100.0))
LOG1MDELTA = float(np.log(1.0 - DELTA))


# ---- math helpers (mirroring the PyTorch lambdas) -------------------------
def _logf(x):
    # log = lambda x: torch.log(x * 100.0) - np.log(100.0)
    return jnp.log(x * 100.0) - LOG100


def _logsigmoid(x):
    # logsigmoid = lambda x: -softplus(-x); softplus = softplus_(x) + delta
    return -(jax.nn.softplus(-x) + DELTA)


def _round8(n):
    return ((n + 7) // 8) * 8


def _ds_layout(block_dims):
    """Sublane-aligned row offsets for each block's (a, b, w_off, u_off) sub-chunk."""
    offsets = []
    cur = 0
    for (I, H, O) in block_dims:
        o_a = cur; cur += _round8(H)
        o_b = cur; cur += _round8(H)
        o_w = cur; cur += _round8(H)
        o_u = cur; cur += _round8(I)
        offsets.append((o_a, o_b, o_w, o_u))
    return tuple(offsets), cur


# ---- Pallas kernel: full DDSF stack for one tile of TM elements -----------
def ddsf_kernel(x_ref, ds_ref, *refs, block_dims, block_offsets):
    n_blocks = len(block_dims)
    param_refs = refs[: 2 * n_blocks]
    xout_ref = refs[2 * n_blocks]
    ld_ref = refs[2 * n_blocks + 1]

    x = x_ref[...]                                  # (1, TM): scalar per element
    tm = x.shape[-1]
    logdet = jnp.zeros((1, tm), jnp.float32)        # (I_prev, TM) in log-space (= log 1)

    for bi, (I, H, O) in enumerate(block_dims):
        u_p = param_refs[2 * bi][...]               # (H, I)
        w_p = param_refs[2 * bi + 1][...]           # (O, H)
        o_a, o_b, o_w, o_u = block_offsets[bi]      # static, 8-aligned

        a_raw = ds_ref[o_a:o_a + H, :]              # (H, TM)
        b = ds_ref[o_b:o_b + H, :]                  # (H, TM)
        dsw = ds_ref[o_w:o_w + H, :]                # (H, TM)
        dsu = ds_ref[o_u:o_u + I, :]                # (I, TM)

        a = jax.nn.softplus(a_raw + INV)            # (H, TM)
        log_a = _logf(a)

        pre_w = w_p[:, :, None] + dsw[None, :, :]   # (O, H, TM)
        pre_u = u_p[:, :, None] + dsu[None, :, :]   # (H, I, TM)

        # softmax + log_softmax of pre_w from a single exp pass
        mw = jnp.max(pre_w, axis=1, keepdims=True)  # (O, 1, TM)
        sw = pre_w - mw
        ew = jnp.exp(sw)
        sum_w = jnp.sum(ew, axis=1, keepdims=True)  # (O, 1, TM)
        w = ew * (1.0 / sum_w)                      # softmax over hidden
        lsm_w = sw - jnp.log(sum_w)                 # log_softmax over hidden

        # softmax of pre_u; its log_softmax is no longer needed (fusion below)
        mu = jnp.max(pre_u, axis=1, keepdims=True)  # (H, 1, TM)
        eu = jnp.exp(pre_u - mu)
        sum_u = jnp.sum(eu, axis=1, keepdims=True)
        u = eu * (1.0 / sum_u)                      # (H, I, TM)

        # forward map
        pre_sigm = jnp.sum(u * a[:, None, :] * x[None, :, :], axis=1) + b   # (H, TM)
        sp_neg = jax.nn.softplus(-pre_sigm)         # softplus_(-pre_sigm)
        sp_pos = pre_sigm + sp_neg                  # softplus_(pre_sigm), exact identity
        sigm = jnp.exp(-sp_neg)                     # sigmoid(pre_sigm)

        x_pre = jnp.sum(w * sigm[None, :, :], axis=1)        # (O, TM)
        xpc = x_pre * (1.0 - DELTA) + DELTA * 0.5
        log_xpc = _logf(xpc)
        log_1mxpc = _logf(1.0 - xpc)
        x_new = log_xpc - log_1mxpc                           # (O, TM)

        # log-Jacobian over (O, H); torch logsigmoid(x) = -(softplus_(-x)+DELTA)
        logj = lsm_w + (-(sp_neg + DELTA) - (sp_pos + DELTA) + log_a)[None, :, :]

        # Fused double logsumexp (h over hidden, i over in_dim) of
        #   logj[o,h] + log_softmax(pre_u)[h,i] + C[o] + logdet_prev[i]
        # rewritten as positive-domain contractions with u and exp(logdet_prev);
        # all shifted exps are <= 1, so no overflow.
        m_o = jnp.max(logj, axis=1, keepdims=True)            # (O, 1, TM)
        J = jnp.exp(logj - m_o)                               # (O, H, TM)
        md = jnp.max(logdet, axis=0, keepdims=True)           # (1, TM)
        D = jnp.exp(logdet - md)                              # (I, TM)
        uD = jnp.sum(u * D[None, :, :], axis=1)               # (H, TM)  sum_i u*D
        S = jnp.sum(J * uD[None, :, :], axis=1)               # (O, TM)  sum_h J*uD
        C = LOG1MDELTA - (log_xpc + log_1mxpc)                # (O, TM)
        logdet = C + m_o[:, 0, :] + md + jnp.log(S)           # (O, TM)

        x = x_new                                             # next block input

    xout_ref[...] = x                    # (O_last, TM)
    # Reference takes _logdet[:, :, 0, 0]; after each block the trailing in_dim
    # axis is already reduced away, so row o=0 of the (O, TM) logdet is exactly
    # that element.  (Keep this invariant in mind if block_dims changes.)
    ld_ref[...] = logdet[0:1, :]


# ---- wrapper ---------------------------------------------------------------
def pack_dsparams(dsparams, block_dims, Mp):
    """(B0, B1, P) -> sublane-aligned (Pp, Mp) layout expected by the kernel."""
    # TODO(synk): in production, produce dsparams directly in this (Pp, M)
    # layout upstream; the transpose/pad here costs extra HBM passes.
    B0, B1, P = dsparams.shape
    M = B0 * B1
    ds_t = jnp.transpose(dsparams.reshape(M, P))              # (P, M)
    offsets, Pp = _ds_layout(block_dims)
    pieces = []
    start = 0
    for (I, H, O) in block_dims:
        for n in (H, H, H, I):
            chunk = ds_t[start:start + n]                     # (n, M)
            start += n
            pieces.append(jnp.pad(chunk, ((0, _round8(n) - n), (0, Mp - M))))
    return jnp.concatenate(pieces, axis=0), offsets, Pp


def ddsf_forward(x, dsparams, params, block_dims, tm=256):
    """x: (B0, B1) f32; dsparams: (B0, B1, P_total) f32."""
    assert tm % 128 == 0
    B0, B1 = x.shape
    M = B0 * B1
    Mp = ((M + tm - 1) // tm) * tm

    x_pad = jnp.zeros((1, Mp), jnp.float32).at[0, :M].set(x.reshape(M))
    ds_pad, block_offsets, Pp = pack_dsparams(dsparams, block_dims, Mp)

    O_last = block_dims[-1][2]

    in_specs = [pl.BlockSpec((1, tm), lambda i: (0, i)),
                pl.BlockSpec((Pp, tm), lambda i: (0, i))]
    param_inputs = []
    for (I, H, O), (u_p, w_p) in zip(block_dims, params):
        in_specs.append(pl.BlockSpec((H, I), lambda i: (0, 0)))
        in_specs.append(pl.BlockSpec((O, H), lambda i: (0, 0)))
        param_inputs += [u_p, w_p]

    out_shape = (jax.ShapeDtypeStruct((O_last, Mp), jnp.float32),
                 jax.ShapeDtypeStruct((1, Mp), jnp.float32))
    out_specs = (pl.BlockSpec((O_last, tm), lambda i: (0, i)),
                 pl.BlockSpec((1, tm), lambda i: (0, i)))

    kernel = functools.partial(ddsf_kernel, block_dims=tuple(block_dims),
                               block_offsets=block_offsets)
    xout, ld = pl.pallas_call(
        kernel,
        out_shape=out_shape,
        grid=(Mp // tm,),
        in_specs=in_specs,
        out_specs=out_specs,
        compiler_params=pltpu.CompilerParams(dimension_semantics=("parallel",)),
    )(x_pad, ds_pad, *param_inputs)

    xout = jnp.transpose(xout[:, :M]).reshape(B0, B1, O_last)
    if O_last == 1:
        xout = xout[..., 0]                 # matches torch .squeeze(-1)
    logdet = jnp.sum(ld[0, :M].reshape(B0, B1), axis=1)       # (B0,)
    return xout, logdet


# ---- pure-JAX reference (direct PyTorch translation, for verification) -----
def _dsf_ref(x, dsp, u_, w_, I, H, O, logdet=None):
    if x.ndim == 2:
        x = x[..., None]
    a = jax.nn.softplus(dsp[:, :, 0:H] + INV)
    b = dsp[:, :, H:2 * H]
    pre_w = w_[None, None] + dsp[:, :, 2 * H:3 * H][:, :, None, :]
    pre_u = u_[None, None] + dsp[:, :, 3 * H:3 * H + I][:, :, None, :]
    w = jax.nn.softmax(pre_w, axis=3)
    u = jax.nn.softmax(pre_u, axis=3)
    pre_sigm = jnp.sum(u * a[:, :, :, None] * x[:, :, None, :], axis=3) + b
    sigm = jax.nn.sigmoid(pre_sigm)
    x_pre = jnp.sum(w * sigm[:, :, None, :], axis=3)
    xpc = x_pre * (1 - DELTA) + DELTA * 0.5
    x_ = _logf(xpc) - _logf(1 - xpc)
    logj = (jax.nn.log_softmax(pre_w, axis=3)
            + _logsigmoid(pre_sigm)[:, :, None, :]
            + _logsigmoid(-pre_sigm)[:, :, None, :]
            + _logf(a)[:, :, None, :])
    logj = logj[:, :, :, :, None] + jax.nn.log_softmax(pre_u, axis=3)[:, :, None, :, :]
    logj = jax.scipy.special.logsumexp(logj, axis=3)
    logdet_ = logj + LOG1MDELTA - (_logf(xpc) + _logf(1 - xpc))[:, :, :, None]
    if logdet is None:
        logdet = jnp.zeros(logdet_.shape[:2] + (1, 1), jnp.float32)
    logdet = jax.scipy.special.logsumexp(
        logdet_[:, :, :, :, None] + logdet[:, :, None, :, :], axis=3)
    if x_.shape[-1] == 1:
        x_ = x_[..., 0]
    return x_, logdet


def ddsf_reference(x, dsparams, params, block_dims):
    x = x.reshape(-1, x.shape[-1])
    logdet = None
    start = 0
    for (I, H, O), (u_, w_) in zip(block_dims, params):
        npar = 3 * H + I
        x, logdet = _dsf_ref(x, dsparams[:, :, start:start + npar], u_, w_, I, H, O, logdet)
        start += npar
    return x, logdet[:, :, 0, 0].sum(1)


if __name__ == "__main__":
    key = jax.random.PRNGKey(0)
    n_layers, in_dim, hidden_dim, out_dim = 3, 1, 8, 1
    B0, B1 = 4, 128          # M = 512 -> grid of 2 parallel TM=256 tiles

    block_dims = [(in_dim, hidden_dim, hidden_dim)]
    for _ in range(n_layers - 2):
        block_dims.append((hidden_dim, hidden_dim, hidden_dim))
    block_dims.append((hidden_dim, hidden_dim, out_dim))
    num_params_total = sum(3 * H + I for (I, H, O) in block_dims)

    keys = jax.random.split(key, 2 * len(block_dims) + 2)
    params = []
    for bi, (I, H, O) in enumerate(block_dims):
        u_ = jax.random.uniform(keys[2 * bi], (H, I), jnp.float32, -0.001, 0.001)
        w_ = jax.random.uniform(keys[2 * bi + 1], (O, H), jnp.float32, -0.001, 0.001)
        params.append((u_, w_))

    x = jax.random.normal(keys[-2], (B0, B1), jnp.float32)
    dsparams = 0.1 * jax.random.normal(keys[-1], (B0, B1, num_params_total), jnp.float32)

    xout, logdet = ddsf_forward(x, dsparams, params, block_dims)
    jax.block_until_ready((xout, logdet))

    xr, lr = ddsf_reference(x, dsparams, params, block_dims)
    assert jnp.allclose(xout, xr, atol=1e-4, rtol=1e-4), float(jnp.max(jnp.abs(xout - xr)))
    assert jnp.allclose(logdet, lr, atol=1e-3, rtol=1e-4), float(jnp.max(jnp.abs(logdet - lr)))
    print("KERNEL_OK")
</pallas_src>

<mosaic_0001>
module attributes {stable_mosaic.version = 11 : i64} {
  func.func @ddsf_kernel(%arg0: i32, %arg1: memref<1x256xf32, #tpu.memory_space<vmem>>, %arg2: memref<96x256xf32, #tpu.memory_space<vmem>>, %arg3: memref<8x1xf32, #tpu.memory_space<vmem>>, %arg4: memref<8x8xf32, #tpu.memory_space<vmem>>, %arg5: memref<8x8xf32, #tpu.memory_space<vmem>>, %arg6: memref<8x8xf32, #tpu.memory_space<vmem>>, %arg7: memref<8x8xf32, #tpu.memory_space<vmem>>, %arg8: memref<1x8xf32, #tpu.memory_space<vmem>>, %arg9: memref<1x256xf32, #tpu.memory_space<vmem>>, %arg10: memref<1x256xf32, #tpu.memory_space<vmem>>) attributes {dimension_semantics = [#tpu.dimension_semantics<parallel>], iteration_bounds = array<i64: 2>, scalar_prefetch = 0 : i64, scratch_operands = 0 : i64, tpu.core_type = #tpu.core_type<tc>, window_params = [{transform_indices = @transform_0, window_bounds = array<i64: 1, 256>}, {transform_indices = @transform_1, window_bounds = array<i64: 96, 256>}, {pipeline_mode = #tpu.pipeline_mode<synchronous>, transform_indices = @transform_2, window_bounds = array<i64: 8, 1>}, {pipeline_mode = #tpu.pipeline_mode<synchronous>, transform_indices = @transform_3, window_bounds = array<i64: 8, 8>}, {pipeline_mode = #tpu.pipeline_mode<synchronous>, transform_indices = @transform_4, window_bounds = array<i64: 8, 8>}, {pipeline_mode = #tpu.pipeline_mode<synchronous>, transform_indices = @transform_5, window_bounds = array<i64: 8, 8>}, {pipeline_mode = #tpu.pipeline_mode<synchronous>, transform_indices = @transform_6, window_bounds = array<i64: 8, 8>}, {pipeline_mode = #tpu.pipeline_mode<synchronous>, transform_indices = @transform_7, window_bounds = array<i64: 1, 8>}, {transform_indices = @transform_8, window_bounds = array<i64: 1, 256>}, {transform_indices = @transform_9, window_bounds = array<i64: 1, 256>}]} {
    %c0 = arith.constant 0 : index
    %c0_0 = arith.constant 0 : index
    %0 = vector.load %arg1[%c0, %c0_0] : memref<1x256xf32, #tpu.memory_space<vmem>>, vector<1x256xf32>
    %cst = arith.constant 0.000000e+00 : f32
    %1 = vector.broadcast %cst : f32 to vector<1x256xf32>
    %c0_1 = arith.constant 0 : index
    %c0_2 = arith.constant 0 : index
    %2 = vector.load %arg3[%c0_1, %c0_2] : memref<8x1xf32, #tpu.memory_space<vmem>>, vector<8x1xf32>
    %c0_3 = arith.constant 0 : index
    %c0_4 = arith.constant 0 : index
    %3 = vector.load %arg4[%c0_3, %c0_4] : memref<8x8xf32, #tpu.memory_space<vmem>>, vector<8x8xf32>
    %c0_5 = arith.constant 0 : index
    %c0_6 = arith.constant 0 : index
    %4 = vector.load %arg2[%c0_5, %c0_6] : memref<96x256xf32, #tpu.memory_space<vmem>>, vector<8x256xf32>
    %c8 = arith.constant 8 : index
    %c0_7 = arith.constant 0 : index
    %5 = vector.load %arg2[%c8, %c0_7] : memref<96x256xf32, #tpu.memory_space<vmem>>, vector<8x256xf32>
    %c16 = arith.constant 16 : index
    %c0_8 = arith.constant 0 : index
    %6 = vector.load %arg2[%c16, %c0_8] : memref<96x256xf32, #tpu.memory_space<vmem>>, vector<8x256xf32>
    %c24 = arith.constant 24 : index
    %c0_9 = arith.constant 0 : index
    %7 = vector.load %arg2[%c24, %c0_9] : memref<96x256xf32, #tpu.memory_space<vmem>>, vector<1x256xf32>
    %cst_10 = arith.constant 0.541323245 : f32
    %8 = vector.broadcast %cst_10 : f32 to vector<8x256xf32>
    %9 = arith.addf %4, %8 : vector<8x256xf32>
    %cst_11 = arith.constant 0.000000e+00 : f32
    %10 = vector.broadcast %cst_11 : f32 to vector<8x256xf32>
    %11 = arith.maximumf %9, %10 : vector<8x256xf32>
    %12 = vector.broadcast %cst_11 : f32 to vector<8x256xf32>
    %13 = arith.subf %9, %12 : vector<8x256xf32>
    %14 = arith.cmpf one, %13, %13 : vector<8x256xf32>
    %15 = vector.broadcast %cst_11 : f32 to vector<8x256xf32>
    %16 = arith.addf %9, %15 : vector<8x256xf32>
    %17 = math.absf %13 : vector<8x256xf32>
    %cst_12 = arith.constant 0.000000e+00 : f32
    %18 = vector.broadcast %cst_12 : f32 to vector<8x256xf32>
    %19 = arith.subf %18, %17 : vector<8x256xf32>
    %20 = math.exp %19 : vector<8x256xf32>
    %21 = math.log1p %20 : vector<8x256xf32>
    %22 = arith.addf %11, %21 : vector<8x256xf32>
    %23 = arith.select %14, %16, %22 : vector<8x256xi1>, vector<8x256xf32>
    %cst_13 = arith.constant 1.000000e+02 : f32
    %24 = vector.broadcast %cst_13 : f32 to vector<8x256xf32>
    %25 = arith.mulf %23, %24 : vector<8x256xf32>
    %26 = math.log %25 : vector<8x256xf32>
    %cst_14 = arith.constant 4.60517025 : f32
    %27 = vector.broadcast %cst_14 : f32 to vector<8x256xf32>
    %28 = arith.subf %26, %27 : vector<8x256xf32>
    %29 = vector.shape_cast %3 : vector<8x8xf32> to vector<8x8x1xf32>
    %30 = vector.shape_cast %6 : vector<8x256xf32> to vector<1x8x256xf32>
    %31 = vector.broadcast %29 : vector<8x8x1xf32> to vector<8x8x256xf32>
    %32 = vector.broadcast %30 : vector<1x8x256xf32> to vector<8x8x256xf32>
    %33 = arith.addf %31, %32 : vector<8x8x256xf32>
    %34 = vector.shape_cast %2 : vector<8x1xf32> to vector<8x1x1xf32>
    %35 = vector.shape_cast %7 : vector<1x256xf32> to vector<1x1x256xf32>
    %36 = vector.broadcast %34 : vector<8x1x1xf32> to vector<8x1x256xf32>
    %37 = vector.broadcast %35 : vector<1x1x256xf32> to vector<8x1x256xf32>
    %38 = arith.addf %36, %37 : vector<8x1x256xf32>
    %cst_15 = arith.constant dense<0xFF800000> : vector<8x256xf32>
    %39 = vector.multi_reduction <maximumf>, %33, %cst_15 [1] : vector<8x8x256xf32> to vector<8x256xf32>
    %40 = vector.shape_cast %39 : vector<8x256xf32> to vector<8x1x256xf32>
    %41 = vector.broadcast %40 : vector<8x1x256xf32> to vector<8x8x256xf32>
    %42 = arith.subf %33, %41 : vector<8x8x256xf32>
    %43 = math.exp %42 : vector<8x8x256xf32>
    %cst_16 = arith.constant dense<0.000000e+00> : vector<8x256xf32>
    %44 = vector.multi_reduction <add>, %43, %cst_16 [1] : vector<8x8x256xf32> to vector<8x256xf32>
    %45 = vector.shape_cast %44 : vector<8x256xf32> to vector<8x1x256xf32>
    %cst_17 = arith.constant 1.000000e+00 : f32
    %46 = vector.broadcast %cst_17 : f32 to vector<8x1x256xf32>
    %47 = arith.divf %46, %45 : vector<8x1x256xf32>
    %48 = vector.broadcast %47 : vector<8x1x256xf32> to vector<8x8x256xf32>
    %49 = arith.mulf %43, %48 : vector<8x8x256xf32>
    %50 = math.log %45 : vector<8x1x256xf32>
    %51 = vector.broadcast %50 : vector<8x1x256xf32> to vector<8x8x256xf32>
    %52 = arith.subf %42, %51 : vector<8x8x256xf32>
    %cst_18 = arith.constant dense<0xFF800000> : vector<8x256xf32>
    %53 = vector.multi_reduction <maximumf>, %38, %cst_18 [1] : vector<8x1x256xf32> to vector<8x256xf32>
    %54 = vector.shape_cast %53 : vector<8x256xf32> to vector<8x1x256xf32>
    %55 = arith.subf %38, %54 : vector<8x1x256xf32>
    %56 = math.exp %55 : vector<8x1x256xf32>
    %cst_19 = arith.constant dense<0.000000e+00> : vector<8x256xf32>
    %57 = vector.multi_reduction <add>, %56, %cst_19 [1] : vector<8x1x256xf32> to vector<8x256xf32>
    %58 = vector.shape_cast %57 : vector<8x256xf32> to vector<8x1x256xf32>
    %cst_20 = arith.constant 1.000000e+00 : f32
    %59 = vector.broadcast %cst_20 : f32 to vector<8x1x256xf32>
    %60 = arith.divf %59, %58 : vector<8x1x256xf32>
    %61 = arith.mulf %56, %60 : vector<8x1x256xf32>
    %62 = vector.shape_cast %23 : vector<8x256xf32> to vector<8x1x256xf32>
    %63 = arith.mulf %61, %62 : vector<8x1x256xf32>
    %64 = vector.shape_cast %0 : vector<1x256xf32> to vector<1x1x256xf32>
    %65 = vector.broadcast %64 : vector<1x1x256xf32> to vector<8x1x256xf32>
    %66 = arith.mulf %63, %65 : vector<8x1x256xf32>
    %cst_21 = arith.constant dense<0.000000e+00> : vector<8x256xf32>
    %67 = vector.multi_reduction <add>, %66, %cst_21 [1] : vector<8x1x256xf32> to vector<8x256xf32>
    %68 = arith.addf %67, %5 : vector<8x256xf32>
    %cst_22 = arith.constant 0.000000e+00 : f32
    %69 = vector.broadcast %cst_22 : f32 to vector<8x256xf32>
    %70 = arith.subf %69, %68 : vector<8x256xf32>
    %cst_23 = arith.constant 0.000000e+00 : f32
    %71 = vector.broadcast %cst_23 : f32 to vector<8x256xf32>
    %72 = arith.maximumf %70, %71 : vector<8x256xf32>
    %73 = vector.broadcast %cst_23 : f32 to vector<8x256xf32>
    %74 = arith.subf %70, %73 : vector<8x256xf32>
    %75 = arith.cmpf one, %74, %74 : vector<8x256xf32>
    %76 = vector.broadcast %cst_23 : f32 to vector<8x256xf32>
    %77 = arith.addf %70, %76 : vector<8x256xf32>
    %78 = math.absf %74 : vector<8x256xf32>
    %cst_24 = arith.constant 0.000000e+00 : f32
    %79 = vector.broadcast %cst_24 : f32 to vector<8x256xf32>
    %80 = arith.subf %79, %78 : vector<8x256xf32>
    %81 = math.exp %80 : vector<8x256xf32>
    %82 = math.log1p %81 : vector<8x256xf32>
    %83 = arith.addf %72, %82 : vector<8x256xf32>
    %84 = arith.select %75, %77, %83 : vector<8x256xi1>, vector<8x256xf32>
    %85 = arith.addf %68, %84 : vector<8x256xf32>
    %cst_25 = arith.constant 0.000000e+00 : f32
    %86 = vector.broadcast %cst_25 : f32 to vector<8x256xf32>
    %87 = arith.subf %86, %84 : vector<8x256xf32>
    %88 = math.exp %87 : vector<8x256xf32>
    %89 = vector.shape_cast %88 : vector<8x256xf32> to vector<1x8x256xf32>
    %90 = vector.broadcast %89 : vector<1x8x256xf32> to vector<8x8x256xf32>
    %91 = arith.mulf %49, %90 : vector<8x8x256xf32>
    %cst_26 = arith.constant dense<0.000000e+00> : vector<8x256xf32>
    %92 = vector.multi_reduction <add>, %91, %cst_26 [1] : vector<8x8x256xf32> to vector<8x256xf32>
    %cst_27 = arith.constant 0.999998986 : f32
    %93 = vector.broadcast %cst_27 : f32 to vector<8x256xf32>
    %94 = arith.mulf %92, %93 : vector<8x256xf32>
    %cst_28 = arith.constant 5.000000e-07 : f32
    %95 = vector.broadcast %cst_28 : f32 to vector<8x256xf32>
    %96 = arith.addf %94, %95 : vector<8x256xf32>
    %cst_29 = arith.constant 1.000000e+02 : f32
    %97 = vector.broadcast %cst_29 : f32 to vector<8x256xf32>
    %98 = arith.mulf %96, %97 : vector<8x256xf32>
    %99 = math.log %98 : vector<8x256xf32>
    %cst_30 = arith.constant 4.60517025 : f32
    %100 = vector.broadcast %cst_30 : f32 to vector<8x256xf32>
    %101 = arith.subf %99, %100 : vector<8x256xf32>
    %cst_31 = arith.constant 1.000000e+00 : f32
    %102 = vector.broadcast %cst_31 : f32 to vector<8x256xf32>
    %103 = arith.subf %102, %96 : vector<8x256xf32>
    %cst_32 = arith.constant 1.000000e+02 : f32
    %104 = vector.broadcast %cst_32 : f32 to vector<8x256xf32>
    %105 = arith.mulf %103, %104 : vector<8x256xf32>
    %106 = math.log %105 : vector<8x256xf32>
    %cst_33 = arith.constant 4.60517025 : f32
    %107 = vector.broadcast %cst_33 : f32 to vector<8x256xf32>
    %108 = arith.subf %106, %107 : vector<8x256xf32>
    %109 = arith.subf %101, %108 : vector<8x256xf32>
    %cst_34 = arith.constant 9.99999997E-7 : f32
    %110 = vector.broadcast %cst_34 : f32 to vector<8x256xf32>
    %111 = arith.addf %84, %110 : vector<8x256xf32>
    %cst_35 = arith.constant 0.000000e+00 : f32
    %112 = vector.broadcast %cst_35 : f32 to vector<8x256xf32>
    %113 = arith.subf %112, %111 : vector<8x256xf32>
    %cst_36 = arith.constant 9.99999997E-7 : f32
    %114 = vector.broadcast %cst_36 : f32 to vector<8x256xf32>
    %115 = arith.addf %85, %114 : vector<8x256xf32>
    %116 = arith.subf %113, %115 : vector<8x256xf32>
    %117 = arith.addf %116, %28 : vector<8x256xf32>
    %118 = vector.shape_cast %117 : vector<8x256xf32> to vector<1x8x256xf32>
    %119 = vector.broadcast %118 : vector<1x8x256xf32> to vector<8x8x256xf32>
    %120 = arith.addf %52, %119 : vector<8x8x256xf32>
    %cst_37 = arith.constant dense<0xFF800000> : vector<8x256xf32>
    %121 = vector.multi_reduction <maximumf>, %120, %cst_37 [1] : vector<8x8x256xf32> to vector<8x256xf32>
    %122 = vector.shape_cast %121 : vector<8x256xf32> to vector<8x1x256xf32>
    %123 = vector.broadcast %122 : vector<8x1x256xf32> to vector<8x8x256xf32>
    %124 = arith.subf %120, %123 : vector<8x8x256xf32>
    %125 = math.exp %124 : vector<8x8x256xf32>
    %cst_38 = arith.constant dense<0xFF800000> : vector<256xf32>
    %126 = vector.multi_reduction <maximumf>, %1, %cst_38 [0] : vector<1x256xf32> to vector<256xf32>
    %127 = vector.shape_cast %126 : vector<256xf32> to vector<1x256xf32>
    %128 = arith.subf %1, %127 : vector<1x256xf32>
    %129 = math.exp %128 : vector<1x256xf32>
    %130 = vector.shape_cast %129 : vector<1x256xf32> to vector<1x1x256xf32>
    %131 = vector.broadcast %130 : vector<1x1x256xf32> to vector<8x1x256xf32>
    %132 = arith.mulf %61, %131 : vector<8x1x256xf32>
    %cst_39 = arith.constant dense<0.000000e+00> : vector<8x256xf32>
    %133 = vector.multi_reduction <add>, %132, %cst_39 [1] : vector<8x1x256xf32> to vector<8x256xf32>
    %134 = vector.shape_cast %133 : vector<8x256xf32> to vector<1x8x256xf32>
    %135 = vector.broadcast %134 : vector<1x8x256xf32> to vector<8x8x256xf32>
    %136 = arith.mulf %125, %135 : vector<8x8x256xf32>
    %cst_40 = arith.constant dense<0.000000e+00> : vector<8x256xf32>
    %137 = vector.multi_reduction <add>, %136, %cst_40 [1] : vector<8x8x256xf32> to vector<8x256xf32>
    %138 = arith.addf %101, %108 : vector<8x256xf32>
    %cst_41 = arith.constant -1.00000045E-6 : f32
    %139 = vector.broadcast %cst_41 : f32 to vector<8x256xf32>
    %140 = arith.subf %139, %138 : vector<8x256xf32>
    %141 = vector.shape_cast %122 : vector<8x1x256xf32> to vector<8x256xf32>
    %142 = arith.addf %140, %141 : vector<8x256xf32>
    %143 = vector.broadcast %127 : vector<1x256xf32> to vector<8x256xf32>
    %144 = arith.addf %142, %143 : vector<8x256xf32>
    %145 = math.log %137 : vector<8x256xf32>
    %146 = arith.addf %144, %145 : vector<8x256xf32>
    %c0_42 = arith.constant 0 : index
    %c0_43 = arith.constant 0 : index
    %147 = vector.load %arg5[%c0_42, %c0_43] : memref<8x8xf32, #tpu.memory_space<vmem>>, vector<8x8xf32>
    %c0_44 = arith.constant 0 : index
    %c0_45 = arith.constant 0 : index
    %148 = vector.load %arg6[%c0_44, %c0_45] : memref<8x8xf32, #tpu.memory_space<vmem>>, vector<8x8xf32>
    %c32 = arith.constant 32 : index
    %c0_46 = arith.constant 0 : index
    %149 = vector.load %arg2[%c32, %c0_46] : memref<96x256xf32, #tpu.memory_space<vmem>>, vector<8x256xf32>
    %c40 = arith.constant 40 : index
    %c0_47 = arith.constant 0 : index
    %150 = vector.load %arg2[%c40, %c0_47] : memref<96x256xf32, #tpu.memory_space<vmem>>, vector<8x256xf32>
    %c48 = arith.constant 48 : index
    %c0_48 = arith.constant 0 : index
    %151 = vector.load %arg2[%c48, %c0_48] : memref<96x256xf32, #tpu.memory_space<vmem>>, vector<8x256xf32>
    %c56 = arith.constant 56 : index
    %c0_49 = arith.constant 0 : index
    %152 = vector.load %arg2[%c56, %c0_49] : memref<96x256xf32, #tpu.memory_space<vmem>>, vector<8x256xf32>
    %cst_50 = arith.constant 0.541323245 : f32
    %153 = vector.broadcast %cst_50 : f32 to vector<8x256xf32>
    %154 = arith.addf %149, %153 : vector<8x256xf32>
    %cst_51 = arith.constant 0.000000e+00 : f32
    %155 = vector.broadcast %cst_51 : f32 to vector<8x256xf32>
    %156 = arith.maximumf %154, %155 : vector<8x256xf32>
    %157 = vector.broadcast %cst_51 : f32 to vector<8x256xf32>
    %158 = arith.subf %154, %157 : vector<8x256xf32>
    %159 = arith.cmpf one, %158, %158 : vector<8x256xf32>
    %160 = vector.broadcast %cst_51 : f32 to vector<8x256xf32>
    %161 = arith.addf %154, %160 : vector<8x256xf32>
    %162 = math.absf %158 : vector<8x256xf32>
    %cst_52 = arith.constant 0.000000e+00 : f32
    %163 = vector.broadcast %cst_52 : f32 to vector<8x256xf32>
    %164 = arith.subf %163, %162 : vector<8x256xf32>
    %165 = math.exp %164 : vector<8x256xf32>
    %166 = math.log1p %165 : vector<8x256xf32>
    %167 = arith.addf %156, %166 : vector<8x256xf32>
    %168 = arith.select %159, %161, %167 : vector<8x256xi1>, vector<8x256xf32>
    %cst_53 = arith.constant 1.000000e+02 : f32
    %169 = vector.broadcast %cst_53 : f32 to vector<8x256xf32>
    %170 = arith.mulf %168, %169 : vector<8x256xf32>
    %171 = math.log %170 : vector<8x256xf32>
    %cst_54 = arith.constant 4.60517025 : f32
    %172 = vector.broadcast %cst_54 : f32 to vector<8x256xf32>
    %173 = arith.subf %171, %172 : vector<8x256xf32>
    %174 = vector.shape_cast %148 : vector<8x8xf32> to vector<8x8x1xf32>
    %175 = vector.shape_cast %151 : vector<8x256xf32> to vector<1x8x256xf32>
    %176 = vector.broadcast %174 : vector<8x8x1xf32> to vector<8x8x256xf32>
    %177 = vector.broadcast %175 : vector<1x8x256xf32> to vector<8x8x256xf32>
    %178 = arith.addf %176, %177 : vector<8x8x256xf32>
    %179 = vector.shape_cast %147 : vector<8x8xf32> to vector<8x8x1xf32>
    %180 = vector.shape_cast %152 : vector<8x256xf32> to vector<1x8x256xf32>
    %181 = vector.broadcast %179 : vector<8x8x1xf32> to vector<8x8x256xf32>
    %182 = vector.broadcast %180 : vector<1x8x256xf32> to vector<8x8x256xf32>
    %183 = arith.addf %181, %182 : vector<8x8x256xf32>
    %cst_55 = arith.constant dense<0xFF800000> : vector<8x256xf32>
    %184 = vector.multi_reduction <maximumf>, %178, %cst_55 [1] : vector<8x8x256xf32> to vector<8x256xf32>
    %185 = vector.shape_cast %184 : vector<8x256xf32> to vector<8x1x256xf32>
    %186 = vector.broadcast %185 : vector<8x1x256xf32> to vector<8x8x256xf32>
    %187 = arith.subf %178, %186 : vector<8x8x256xf32>
    %188 = math.exp %187 : vector<8x8x256xf32>
    %cst_56 = arith.constant dense<0.000000e+00> : vector<8x256xf32>
    %189 = vector.multi_reduction <add>, %188, %cst_56 [1] : vector<8x8x256xf32> to vector<8x256xf32>
    %190 = vector.shape_cast %189 : vector<8x256xf32> to vector<8x1x256xf32>
    %cst_57 = arith.constant 1.000000e+00 : f32
    %191 = vector.broadcast %cst_57 : f32 to vector<8x1x256xf32>
    %192 = arith.divf %191, %190 : vector<8x1x256xf32>
    %193 = vector.broadcast %192 : vector<8x1x256xf32> to vector<8x8x256xf32>
    %194 = arith.mulf %188, %193 : vector<8x8x256xf32>
    %195 = math.log %190 : vector<8x1x256xf32>
    %196 = vector.broadcast %195 : vector<8x1x256xf32> to vector<8x8x256xf32>
    %197 = arith.subf %187, %196 : vector<8x8x256xf32>
    %cst_58 = arith.constant dense<0xFF800000> : vector<8x256xf32>
    %198 = vector.multi_reduction <maximumf>, %183, %cst_58 [1] : vector<8x8x256xf32> to vector<8x256xf32>
    %199 = vector.shape_cast %198 : vector<8x256xf32> to vector<8x1x256xf32>
    %200 = vector.broadcast %199 : vector<8x1x256xf32> to vector<8x8x256xf32>
    %201 = arith.subf %183, %200 : vector<8x8x256xf32>
    %202 = math.exp %201 : vector<8x8x256xf32>
    %cst_59 = arith.constant dense<0.000000e+00> : vector<8x256xf32>
    %203 = vector.multi_reduction <add>, %202, %cst_59 [1] : vector<8x8x256xf32> to vector<8x256xf32>
    %204 = vector.shape_cast %203 : vector<8x256xf32> to vector<8x1x256xf32>
    %cst_60 = arith.constant 1.000000e+00 : f32
    %205 = vector.broadcast %cst_60 : f32 to vector<8x1x256xf32>
    %206 = arith.divf %205, %204 : vector<8x1x256xf32>
    %207 = vector.broadcast %206 : vector<8x1x256xf32> to vector<8x8x256xf32>
    %208 = arith.mulf %202, %207 : vector<8x8x256xf32>
    %209 = vector.shape_cast %168 : vector<8x256xf32> to vector<8x1x256xf32>
    %210 = vector.broadcast %209 : vector<8x1x256xf32> to vector<8x8x256xf32>
    %211 = arith.mulf %208, %210 : vector<8x8x256xf32>
    %212 = vector.shape_cast %109 : vector<8x256xf32> to vector<1x8x256xf32>
    %213 = vector.broadcast %212 : vector<1x8x256xf32> to vector<8x8x256xf32>
    %214 = arith.mulf %211, %213 : vector<8x8x256xf32>
    %cst_61 = arith.constant dense<0.000000e+00> : vector<8x256xf32>
    %215 = vector.multi_reduction <add>, %214, %cst_61 [1] : vector<8x8x256xf32> to vector<8x256xf32>
    %216 = arith.addf %215, %150 : vector<8x256xf32>
    %cst_62 = arith.constant 0.000000e+00 : f32
    %217 = vector.broadcast %cst_62 : f32 to vector<8x256xf32>
    %218 = arith.subf %217, %216 : vector<8x256xf32>
    %cst_63 = arith.constant 0.000000e+00 : f32
    %219 = vector.broadcast %cst_63 : f32 to vector<8x256xf32>
    %220 = arith.maximumf %218, %219 : vector<8x256xf32>
    %221 = vector.broadcast %cst_63 : f32 to vector<8x256xf32>
    %222 = arith.subf %218, %221 : vector<8x256xf32>
    %223 = arith.cmpf one, %222, %222 : vector<8x256xf32>
    %224 = vector.broadcast %cst_63 : f32 to vector<8x256xf32>
    %225 = arith.addf %218, %224 : vector<8x256xf32>
    %226 = math.absf %222 : vector<8x256xf32>
    %cst_64 = arith.constant 0.000000e+00 : f32
    %227 = vector.broadcast %cst_64 : f32 to vector<8x256xf32>
    %228 = arith.subf %227, %226 : vector<8x256xf32>
    %229 = math.exp %228 : vector<8x256xf32>
    %230 = math.log1p %229 : vector<8x256xf32>
    %231 = arith.addf %220, %230 : vector<8x256xf32>
    %232 = arith.select %223, %225, %231 : vector<8x256xi1>, vector<8x256xf32>
    %233 = arith.addf %216, %232 : vector<8x256xf32>
    %cst_65 = arith.constant 0.000000e+00 : f32
    %234 = vector.broadcast %cst_65 : f32 to vector<8x256xf32>
    %235 = arith.subf %234, %232 : vector<8x256xf32>
    %236 = math.exp %235 : vector<8x256xf32>
    %237 = vector.shape_cast %236 : vector<8x256xf32> to vector<1x8x256xf32>
    %238 = vector.broadcast %237 : vector<1x8x256xf32> to vector<8x8x256xf32>
    %239 = arith.mulf %194, %238 : vector<8x8x256xf32>
    %cst_66 = arith.constant dense<0.000000e+00> : vector<8x256xf32>
    %240 = vector.multi_reduction <add>, %239, %cst_66 [1] : vector<8x8x256xf32> to vector<8x256xf32>
    %cst_67 = arith.constant 0.999998986 : f32
    %241 = vector.broadcast %cst_67 : f32 to vector<8x256xf32>
    %242 = arith.mulf %240, %241 : vector<8x256xf32>
    %cst_68 = arith.constant 5.000000e-07 : f32
    %243 = vector.broadcast %cst_68 : f32 to vector<8x256xf32>
    %244 = arith.addf %242, %243 : vector<8x256xf32>
    %cst_69 = arith.constant 1.000000e+02 : f32
    %245 = vector.broadcast %cst_69 : f32 to vector<8x256xf32>
    %246 = arith.mulf %244, %245 : vector<8x256xf32>
    %247 = math.log %246 : vector<8x256xf32>
    %cst_70 = arith.constant 4.60517025 : f32
    %248 = vector.broadcast %cst_70 : f32 to vector<8x256xf32>
    %249 = arith.subf %247, %248 : vector<8x256xf32>
    %cst_71 = arith.constant 1.000000e+00 : f32
    %250 = vector.broadcast %cst_71 : f32 to vector<8x256xf32>
    %251 = arith.subf %250, %244 : vector<8x256xf32>
    %cst_72 = arith.constant 1.000000e+02 : f32
    %252 = vector.broadcast %cst_72 : f32 to vector<8x256xf32>
    %253 = arith.mulf %251, %252 : vector<8x256xf32>
    %254 = math.log %253 : vector<8x256xf32>
    %cst_73 = arith.constant 4.60517025 : f32
    %255 = vector.broadcast %cst_73 : f32 to vector<8x256xf32>
    %256 = arith.subf %254, %255 : vector<8x256xf32>
    %257 = arith.subf %249, %256 : vector<8x256xf32>
    %cst_74 = arith.constant 9.99999997E-7 : f32
    %258 = vector.broadcast %cst_74 : f32 to vector<8x256xf32>
    %259 = arith.addf %232, %258 : vector<8x256xf32>
    %cst_75 = arith.constant 0.000000e+00 : f32
    %260 = vector.broadcast %cst_75 : f32 to vector<8x256xf32>
    %261 = arith.subf %260, %259 : vector<8x256xf32>
    %cst_76 = arith.constant 9.99999997E-7 : f32
    %262 = vector.broadcast %cst_76 : f32 to vector<8x256xf32>
    %263 = arith.addf %233, %262 : vector<8x256xf32>
    %264 = arith.subf %261, %263 : vector<8x256xf32>
    %265 = arith.addf %264, %173 : vector<8x256xf32>
    %266 = vector.shape_cast %265 : vector<8x256xf32> to vector<1x8x256xf32>
    %267 = vector.broadcast %266 : vector<1x8x256xf32> to vector<8x8x256xf32>
    %268 = arith.addf %197, %267 : vector<8x8x256xf32>
    %cst_77 = arith.constant dense<0xFF800000> : vector<8x256xf32>
    %269 = vector.multi_reduction <maximumf>, %268, %cst_77 [1] : vector<8x8x256xf32> to vector<8x256xf32>
    %270 = vector.shape_cast %269 : vector<8x256xf32> to vector<8x1x256xf32>
    %271 = vector.broadcast %270 : vector<8x1x256xf32> to vector<8x8x256xf32>
    %272 = arith.subf %268, %271 : vector<8x8x256xf32>
    %273 = math.exp %272 : vector<8x8x256xf32>
    %cst_78 = arith.constant dense<0xFF800000> : vector<256xf32>
    %274 = vector.multi_reduction <maximumf>, %146, %cst_78 [0] : vector<8x256xf32> to vector<256xf32>
    %275 = vector.shape_cast %274 : vector<256xf32> to vector<1x256xf32>
    %276 = vector.broadcast %275 : vector<1x256xf32> to vector<8x256xf32>
    %277 = arith.subf %146, %276 : vector<8x256xf32>
    %278 = math.exp %277 : vector<8x256xf32>
    %279 = vector.shape_cast %278 : vector<8x256xf32> to vector<1x8x256xf32>
    %280 = vector.broadcast %279 : vector<1x8x256xf32> to vector<8x8x256xf32>
    %281 = arith.mulf %208, %280 : vector<8x8x256xf32>
    %cst_79 = arith.constant dense<0.000000e+00> : vector<8x256xf32>
    %282 = vector.multi_reduction <add>, %281, %cst_79 [1] : vector<8x8x256xf32> to vector<8x256xf32>
    %283 = vector.shape_cast %282 : vector<8x256xf32> to vector<1x8x256xf32>
    %284 = vector.broadcast %283 : vector<1x8x256xf32> to vector<8x8x256xf32>
    %285 = arith.mulf %273, %284 : vector<8x8x256xf32>
    %cst_80 = arith.constant dense<0.000000e+00> : vector<8x256xf32>
    %286 = vector.multi_reduction <add>, %285, %cst_80 [1] : vector<8x8x256xf32> to vector<8x256xf32>
    %287 = arith.addf %249, %256 : vector<8x256xf32>
    %cst_81 = arith.constant -1.00000045E-6 : f32
    %288 = vector.broadcast %cst_81 : f32 to vector<8x256xf32>
    %289 = arith.subf %288, %287 : vector<8x256xf32>
    %290 = vector.shape_cast %270 : vector<8x1x256xf32> to vector<8x256xf32>
    %291 = arith.addf %289, %290 : vector<8x256xf32>
    %292 = vector.broadcast %275 : vector<1x256xf32> to vector<8x256xf32>
    %293 = arith.addf %291, %292 : vector<8x256xf32>
    %294 = math.log %286 : vector<8x256xf32>
    %295 = arith.addf %293, %294 : vector<8x256xf32>
    %c0_82 = arith.constant 0 : index
    %c0_83 = arith.constant 0 : index
    %296 = vector.load %arg7[%c0_82, %c0_83] : memref<8x8xf32, #tpu.memory_space<vmem>>, vector<8x8xf32>
    %c0_84 = arith.constant 0 : index
    %c0_85 = arith.constant 0 : index
    %297 = vector.load %arg8[%c0_84, %c0_85] : memref<1x8xf32, #tpu.memory_space<vmem>>, vector<1x8xf32>
    %c64 = arith.constant 64 : index
    %c0_86 = arith.constant 0 : index
    %298 = vector.load %arg2[%c64, %c0_86] : memref<96x256xf32, #tpu.memory_space<vmem>>, vector<8x256xf32>
    %c72 = arith.constant 72 : index
    %c0_87 = arith.constant 0 : index
    %299 = vector.load %arg2[%c72, %c0_87] : memref<96x256xf32, #tpu.memory_space<vmem>>, vector<8x256xf32>
    %c80 = arith.constant 80 : index
    %c0_88 = arith.constant 0 : index
    %300 = vector.load %arg2[%c80, %c0_88] : memref<96x256xf32, #tpu.memory_space<vmem>>, vector<8x256xf32>
    %c88 = arith.constant 88 : index
    %c0_89 = arith.constant 0 : index
    %301 = vector.load %arg2[%c88, %c0_89] : memref<96x256xf32, #tpu.memory_space<vmem>>, vector<8x256xf32>
    %cst_90 = arith.constant 0.541323245 : f32
    %302 = vector.broadcast %cst_90 : f32 to vector<8x256xf32>
    %303 = arith.addf %298, %302 : vector<8x256xf32>
    %cst_91 = arith.constant 0.000000e+00 : f32
    %304 = vector.broadcast %cst_91 : f32 to vector<8x256xf32>
    %305 = arith.maximumf %303, %304 : vector<8x256xf32>
    %306 = vector.broadcast %cst_91 : f32 to vector<8x256xf32>
    %307 = arith.subf %303, %306 : vector<8x256xf32>
    %308 = arith.cmpf one, %307, %307 : vector<8x256xf32>
    %309 = vector.broadcast %cst_91 : f32 to vector<8x256xf32>
    %310 = arith.addf %303, %309 : vector<8x256xf32>
    %311 = math.absf %307 : vector<8x256xf32>
    %cst_92 = arith.constant 0.000000e+00 : f32
    %312 = vector.broadcast %cst_92 : f32 to vector<8x256xf32>
    %313 = arith.subf %312, %311 : vector<8x256xf32>
    %314 = math.exp %313 : vector<8x256xf32>
    %315 = math.log1p %314 : vector<8x256xf32>
    %316 = arith.addf %305, %315 : vector<8x256xf32>
    %317 = arith.select %308, %310, %316 : vector<8x256xi1>, vector<8x256xf32>
    %cst_93 = arith.constant 1.000000e+02 : f32
    %318 = vector.broadcast %cst_93 : f32 to vector<8x256xf32>
    %319 = arith.mulf %317, %318 : vector<8x256xf32>
    %320 = math.log %319 : vector<8x256xf32>
    %cst_94 = arith.constant 4.60517025 : f32
    %321 = vector.broadcast %cst_94 : f32 to vector<8x256xf32>
    %322 = arith.subf %320, %321 : vector<8x256xf32>
    %323 = vector.shape_cast %297 : vector<1x8xf32> to vector<1x8x1xf32>
    %324 = vector.shape_cast %300 : vector<8x256xf32> to vector<1x8x256xf32>
    %325 = vector.broadcast %323 : vector<1x8x1xf32> to vector<1x8x256xf32>
    %326 = arith.addf %325, %324 : vector<1x8x256xf32>
    %327 = vector.shape_cast %296 : vector<8x8xf32> to vector<8x8x1xf32>
    %328 = vector.shape_cast %301 : vector<8x256xf32> to vector<1x8x256xf32>
    %329 = vector.broadcast %327 : vector<8x8x1xf32> to vector<8x8x256xf32>
    %330 = vector.broadcast %328 : vector<1x8x256xf32> to vector<8x8x256xf32>
    %331 = arith.addf %329, %330 : vector<8x8x256xf32>
    %cst_95 = arith.constant dense<0xFF800000> : vector<1x256xf32>
    %332 = vector.multi_reduction <maximumf>, %326, %cst_95 [1] : vector<1x8x256xf32> to vector<1x256xf32>
    %333 = vector.shape_cast %332 : vector<1x256xf32> to vector<1x1x256xf32>
    %334 = vector.broadcast %333 : vector<1x1x256xf32> to vector<1x8x256xf32>
    %335 = arith.subf %326, %334 : vector<1x8x256xf32>
    %336 = math.exp %335 : vector<1x8x256xf32>
    %cst_96 = arith.constant dense<0.000000e+00> : vector<1x256xf32>
    %337 = vector.multi_reduction <add>, %336, %cst_96 [1] : vector<1x8x256xf32> to vector<1x256xf32>
    %338 = vector.shape_cast %337 : vector<1x256xf32> to vector<1x1x256xf32>
    %cst_97 = arith.constant 1.000000e+00 : f32
    %339 = vector.broadcast %cst_97 : f32 to vector<1x1x256xf32>
    %340 = arith.divf %339, %338 : vector<1x1x256xf32>
    %341 = vector.broadcast %340 : vector<1x1x256xf32> to vector<1x8x256xf32>
    %342 = arith.mulf %336, %341 : vector<1x8x256xf32>
    %343 = math.log %338 : vector<1x1x256xf32>
    %344 = vector.broadcast %343 : vector<1x1x256xf32> to vector<1x8x256xf32>
    %345 = arith.subf %335, %344 : vector<1x8x256xf32>
    %cst_98 = arith.constant dense<0xFF800000> : vector<8x256xf32>
    %346 = vector.multi_reduction <maximumf>, %331, %cst_98 [1] : vector<8x8x256xf32> to vector<8x256xf32>
    %347 = vector.shape_cast %346 : vector<8x256xf32> to vector<8x1x256xf32>
    %348 = vector.broadcast %347 : vector<8x1x256xf32> to vector<8x8x256xf32>
    %349 = arith.subf %331, %348 : vector<8x8x256xf32>
    %350 = math.exp %349 : vector<8x8x256xf32>
    %cst_99 = arith.constant dense<0.000000e+00> : vector<8x256xf32>
    %351 = vector.multi_reduction <add>, %350, %cst_99 [1] : vector<8x8x256xf32> to vector<8x256xf32>
    %352 = vector.shape_cast %351 : vector<8x256xf32> to vector<8x1x256xf32>
    %cst_100 = arith.constant 1.000000e+00 : f32
    %353 = vector.broadcast %cst_100 : f32 to vector<8x1x256xf32>
    %354 = arith.divf %353, %352 : vector<8x1x256xf32>
    %355 = vector.broadcast %354 : vector<8x1x256xf32> to vector<8x8x256xf32>
    %356 = arith.mulf %350, %355 : vector<8x8x256xf32>
    %357 = vector.shape_cast %317 : vector<8x256xf32> to vector<8x1x256xf32>
    %358 = vector.broadcast %357 : vector<8x1x256xf32> to vector<8x8x256xf32>
    %359 = arith.mulf %356, %358 : vector<8x8x256xf32>
    %360 = vector.shape_cast %257 : vector<8x256xf32> to vector<1x8x256xf32>
    %361 = vector.broadcast %360 : vector<1x8x256xf32> to vector<8x8x256xf32>
    %362 = arith.mulf %359, %361 : vector<8x8x256xf32>
    %cst_101 = arith.constant dense<0.000000e+00> : vector<8x256xf32>
    %363 = vector.multi_reduction <add>, %362, %cst_101 [1] : vector<8x8x256xf32> to vector<8x256xf32>
    %364 = arith.addf %363, %299 : vector<8x256xf32>
    %cst_102 = arith.constant 0.000000e+00 : f32
    %365 = vector.broadcast %cst_102 : f32 to vector<8x256xf32>
    %366 = arith.subf %365, %364 : vector<8x256xf32>
    %cst_103 = arith.constant 0.000000e+00 : f32
    %367 = vector.broadcast %cst_103 : f32 to vector<8x256xf32>
    %368 = arith.maximumf %366, %367 : vector<8x256xf32>
    %369 = vector.broadcast %cst_103 : f32 to vector<8x256xf32>
    %370 = arith.subf %366, %369 : vector<8x256xf32>
    %371 = arith.cmpf one, %370, %370 : vector<8x256xf32>
    %372 = vector.broadcast %cst_103 : f32 to vector<8x256xf32>
    %373 = arith.addf %366, %372 : vector<8x256xf32>
    %374 = math.absf %370 : vector<8x256xf32>
    %cst_104 = arith.constant 0.000000e+00 : f32
    %375 = vector.broadcast %cst_104 : f32 to vector<8x256xf32>
    %376 = arith.subf %375, %374 : vector<8x256xf32>
    %377 = math.exp %376 : vector<8x256xf32>
    %378 = math.log1p %377 : vector<8x256xf32>
    %379 = arith.addf %368, %378 : vector<8x256xf32>
    %380 = arith.select %371, %373, %379 : vector<8x256xi1>, vector<8x256xf32>
    %381 = arith.addf %364, %380 : vector<8x256xf32>
    %cst_105 = arith.constant 0.000000e+00 : f32
    %382 = vector.broadcast %cst_105 : f32 to vector<8x256xf32>
    %383 = arith.subf %382, %380 : vector<8x256xf32>
    %384 = math.exp %383 : vector<8x256xf32>
    %385 = vector.shape_cast %384 : vector<8x256xf32> to vector<1x8x256xf32>
    %386 = arith.mulf %342, %385 : vector<1x8x256xf32>
    %cst_106 = arith.constant dense<0.000000e+00> : vector<1x256xf32>
    %387 = vector.multi_reduction <add>, %386, %cst_106 [1] : vector<1x8x256xf32> to vector<1x256xf32>
    %cst_107 = arith.constant 0.999998986 : f32
    %388 = vector.broadcast %cst_107 : f32 to vector<1x256xf32>
    %389 = arith.mulf %387, %388 : vector<1x256xf32>
    %cst_108 = arith.constant 5.000000e-07 : f32
    %390 = vector.broadcast %cst_108 : f32 to vector<1x256xf32>
    %391 = arith.addf %389, %390 : vector<1x256xf32>
    %cst_109 = arith.constant 1.000000e+02 : f32
    %392 = vector.broadcast %cst_109 : f32 to vector<1x256xf32>
    %393 = arith.mulf %391, %392 : vector<1x256xf32>
    %394 = math.log %393 : vector<1x256xf32>
    %cst_110 = arith.constant 4.60517025 : f32
    %395 = vector.broadcast %cst_110 : f32 to vector<1x256xf32>
    %396 = arith.subf %394, %395 : vector<1x256xf32>
    %cst_111 = arith.constant 1.000000e+00 : f32
    %397 = vector.broadcast %cst_111 : f32 to vector<1x256xf32>
    %398 = arith.subf %397, %391 : vector<1x256xf32>
    %cst_112 = arith.constant 1.000000e+02 : f32
    %399 = vector.broadcast %cst_112 : f32 to vector<1x256xf32>
    %400 = arith.mulf %398, %399 : vector<1x256xf32>
    %401 = math.log %400 : vector<1x256xf32>
    %cst_113 = arith.constant 4.60517025 : f32
    %402 = vector.broadcast %cst_113 : f32 to vector<1x256xf32>
    %403 = arith.subf %401, %402 : vector<1x256xf32>
    %404 = arith.subf %396, %403 : vector<1x256xf32>
    %cst_114 = arith.constant 9.99999997E-7 : f32
    %405 = vector.broadcast %cst_114 : f32 to vector<8x256xf32>
    %406 = arith.addf %380, %405 : vector<8x256xf32>
    %cst_115 = arith.constant 0.000000e+00 : f32
    %407 = vector.broadcast %cst_115 : f32 to vector<8x256xf32>
    %408 = arith.subf %407, %406 : vector<8x256xf32>
    %cst_116 = arith.constant 9.99999997E-7 : f32
    %409 = vector.broadcast %cst_116 : f32 to vector<8x256xf32>
    %410 = arith.addf %381, %409 : vector<8x256xf32>
    %411 = arith.subf %408, %410 : vector<8x256xf32>
    %412 = arith.addf %411, %322 : vector<8x256xf32>
    %413 = vector.shape_cast %412 : vector<8x256xf32> to vector<1x8x256xf32>
    %414 = arith.addf %345, %413 : vector<1x8x256xf32>
    %cst_117 = arith.constant dense<0xFF800000> : vector<1x256xf32>
    %415 = vector.multi_reduction <maximumf>, %414, %cst_117 [1] : vector<1x8x256xf32> to vector<1x256xf32>
    %416 = vector.shape_cast %415 : vector<1x256xf32> to vector<1x1x256xf32>
    %417 = vector.broadcast %416 : vector<1x1x256xf32> to vector<1x8x256xf32>
    %418 = arith.subf %414, %417 : vector<1x8x256xf32>
    %419 = math.exp %418 : vector<1x8x256xf32>
    %cst_118 = arith.constant dense<0xFF800000> : vector<256xf32>
    %420 = vector.multi_reduction <maximumf>, %295, %cst_118 [0] : vector<8x256xf32> to vector<256xf32>
    %421 = vector.shape_cast %420 : vector<256xf32> to vector<1x256xf32>
    %422 = vector.broadcast %421 : vector<1x256xf32> to vector<8x256xf32>
    %423 = arith.subf %295, %422 : vector<8x256xf32>
    %424 = math.exp %423 : vector<8x256xf32>
    %425 = vector.shape_cast %424 : vector<8x256xf32> to vector<1x8x256xf32>
    %426 = vector.broadcast %425 : vector<1x8x256xf32> to vector<8x8x256xf32>
    %427 = arith.mulf %356, %426 : vector<8x8x256xf32>
    %cst_119 = arith.constant dense<0.000000e+00> : vector<8x256xf32>
    %428 = vector.multi_reduction <add>, %427, %cst_119 [1] : vector<8x8x256xf32> to vector<8x256xf32>
    %429 = vector.shape_cast %428 : vector<8x256xf32> to vector<1x8x256xf32>
    %430 = arith.mulf %419, %429 : vector<1x8x256xf32>
    %cst_120 = arith.constant dense<0.000000e+00> : vector<1x256xf32>
    %431 = vector.multi_reduction <add>, %430, %cst_120 [1] : vector<1x8x256xf32> to vector<1x256xf32>
    %432 = arith.addf %396, %403 : vector<1x256xf32>
    %cst_121 = arith.constant -1.00000045E-6 : f32
    %433 = vector.broadcast %cst_121 : f32 to vector<1x256xf32>
    %434 = arith.subf %433, %432 : vector<1x256xf32>
    %435 = vector.shape_cast %416 : vector<1x1x256xf32> to vector<1x256xf32>
    %436 = arith.addf %434, %435 : vector<1x256xf32>
    %437 = arith.addf %436, %421 : vector<1x256xf32>
    %438 = math.log %431 : vector<1x256xf32>
    %439 = arith.addf %437, %438 : vector<1x256xf32>
    %c0_122 = arith.constant 0 : index
    %c0_123 = arith.constant 0 : index
    %440 = vector.load %arg9[%c0_122, %c0_123] : memref<1x256xf32, #tpu.memory_space<vmem>>, vector<1x256xf32>
    tpu.vector_store %arg9[%c0_122, %c0_123], %404 {strides = array<i32>} : memref<1x256xf32, #tpu.memory_space<vmem>>, vector<1x256xf32>,
    %c0_124 = arith.constant 0 : index
    %c0_125 = arith.constant 0 : index
    %441 = vector.load %arg10[%c0_124, %c0_125] : memref<1x256xf32, #tpu.memory_space<vmem>>, vector<1x256xf32>
    tpu.vector_store %arg10[%c0_124, %c0_125], %439 {strides = array<i32>} : memref<1x256xf32, #tpu.memory_space<vmem>>, vector<1x256xf32>,
    return
  }
  func.func @transform_0(%arg0: i32) -> (i32, i32) {
    %c0_i32 = arith.constant 0 : i32
    %c0_i32_0 = arith.constant 0 : i32
    return %c0_i32, %arg0 : i32, i32
  }
  func.func @transform_1(%arg0: i32) -> (i32, i32) {
    %c0_i32 = arith.constant 0 : i32
    %c0_i32_0 = arith.constant 0 : i32
    return %c0_i32, %arg0 : i32, i32
  }
  func.func @transform_2(%arg0: i32) -> (i32, i32) {
    %c0_i32 = arith.constant 0 : i32
    %c0_i32_0 = arith.constant 0 : i32
    %c0_i32_1 = arith.constant 0 : i32
    return %c0_i32, %c0_i32_0 : i32, i32
  }
  func.func @transform_3(%arg0: i32) -> (i32, i32) {
    %c0_i32 = arith.constant 0 : i32
    %c0_i32_0 = arith.constant 0 : i32
    %c0_i32_1 = arith.constant 0 : i32
    return %c0_i32, %c0_i32_0 : i32, i32
  }
  func.func @transform_4(%arg0: i32) -> (i32, i32) {
    %c0_i32 = arith.constant 0 : i32
    %c0_i32_0 = arith.constant 0 : i32
    %c0_i32_1 = arith.constant 0 : i32
    return %c0_i32, %c0_i32_0 : i32, i32
  }
  func.func @transform_5(%arg0: i32) -> (i32, i32) {
    %c0_i32 = arith.constant 0 : i32
    %c0_i32_0 = arith.constant 0 : i32
    %c0_i32_1 = arith.constant 0 : i32
    return %c0_i32, %c0_i32_0 : i32, i32
  }
  func.func @transform_6(%arg0: i32) -> (i32, i32) {
    %c0_i32 = arith.constant 0 : i32
    %c0_i32_0 = arith.constant 0 : i32
    %c0_i32_1 = arith.constant 0 : i32
    return %c0_i32, %c0_i32_0 : i32, i32
  }
  func.func @transform_7(%arg0: i32) -> (i32, i32) {
    %c0_i32 = arith.constant 0 : i32
    %c0_i32_0 = arith.constant 0 : i32
    %c0_i32_1 = arith.constant 0 : i32
    return %c0_i32, %c0_i32_0 : i32, i32
  }
  func.func @transform_8(%arg0: i32) -> (i32, i32) {
    %c0_i32 = arith.constant 0 : i32
    %c0_i32_0 = arith.constant 0 : i32
    return %c0_i32, %arg0 : i32, i32
  }
  func.func @transform_9(%arg0: i32) -> (i32, i32) {
    %c0_i32 = arith.constant 0 : i32
    %c0_i32_0 = arith.constant 0 : i32
    return %c0_i32, %arg0 : i32, i32
  }
}

</mosaic_0001>

<bundles_post_ra>
// kernel: tpu_custom_call.1
= control target key start
LH: loop header
LB: loop body
LE: loop exit
PB: predicated region body
PF: predicated region fallthrough
CT: control target
= control target key end

     0   :  { %s13795_s0 = inlined_call_operand.hbm [shape: f32[1,512], index: 0, kind: input, shape index: {}]   ;;  %s13796_s1 = inlined_call_operand.hbm [shape: f32[96,512], index: 1, kind: input, shape index: {}]   ;;  %s13797_s2 = inlined_call_operand.vmem [shape: f32[8,1], index: 2, kind: input, shape index: {}]   ;;  %s13798_s3 = inlined_call_operand.vmem [shape: f32[8,8], index: 3, kind: input, shape index: {}]   ;;  %s13799_s4 = inlined_call_operand.vmem [shape: f32[8,8], index: 4, kind: input, shape index: {}]   ;;  %s13800_s5 = inlined_call_operand.vmem [shape: f32[8,8], index: 5, kind: input, shape index: {}]   ;;  %s13801_s6 = inlined_call_operand.hbm [shape: f32[8,8], index: 6, kind: input, shape index: {}]   ;;  %s13802_s7 = inlined_call_operand.vmem [shape: f32[1,8], index: 7, kind: input, shape index: {}]   ;;  %s13803_s8 = inlined_call_operand.hbm [shape: f32[1,512], index: 8, kind: output, shape index: {0}]   ;;  %s13804_s9 = inlined_call_operand.hbm [shape: f32[1,512], index: 9, kind: output, shape index: {1}]  }
   0x1   :  { %13962 = sst [smem:[#allocation83_spill]] %s13795_s0 }
   0x2   :  { %13963 = sst [smem:[#allocation84_spill]] %s13801_s6 }
   0x3   :  { %15 = vsyncpa [#allocation3], 0 }
   0x4   :  { %17 = vsyncpa [#allocation3 + $0x1], 0 }
   0x5   :  { %18 = vsyncpa [#allocation6], 0 }
   0x6   :  { %20 = vsyncpa [#allocation6 + $0x1], 0 }
   0x7   :  { %21 = vsyncpa [#allocation4], 0 }
   0x8   :  { %23 = vsyncpa [#allocation4 + $0x1], 0 }
   0x9   :  { %24 = vsyncpa [#allocation10], 0 }
   0xa   :  { %26 = vsyncpa [#allocation10 + $0x1], 0  ;;  %s8481_s30 = smov 0   ;;  %s8483_s10 = smov 0  }
   0xb   :  { %s8485_s11 = smov 0   ;;  %s8487_s12 = smov 0  }
   0xc LB: > { %13964 = sst [smem:[#allocation16_spill]] %s8415_s11  ;;  %s8502_s13 = sadd.s32 4294967295, %s8419_s12   ;;  %s8419_s12 = sphi %s8487_s12, %s14569_s12   ;;  %s8415_s11 = sphi %s8485_s11, %s14571_s11   ;;  %s8411_s10 = sphi %s8483_s10, %s14573_s10   ;;  %s8407_s30 = sphi %s8481_s30, %s14572_s30  }
   0xd   : > { %s7054_s14 = sadd.s32 4294967294, %s8419_s12   ;;  %s8506_s15 = sadd.s32 1, %s8419_s12  }
   0xe   : > { %13965 = sst [smem:[#allocation17_spill]] %s8506_s15  ;;  %s39_s16 = sadd.s32 1, %s8415_s11 }
   0xf   : > { %s36_s17 = ssub.s32 %s8419_s12, %s8506_s15  ;;  %p46_p0 = scmp.ne.s32.totalorder %s8415_s11, %s8411_s10 }
  0x10   : > { %p37_p1 = scmp.eq.s32.totalorder %s36_s17, 0  ;;  %p52_p2 = scmp.ne.s32.totalorder %s8411_s10, %s8407_s30 }
  0x11   : > { %p13808_p3 = scmp.eq.s32.totalorder %s8502_s13, 0  ;;  %p228_p4 = scmp.eq.s32.totalorder %s8502_s13, 1 }
  0x12   : > { %s8518_s18 = scalar_select %p37_p1, %s8415_s11, %s39_s16  }
  0x13   : > { %p8522_p5 = por %p13808_p3, %p52_p2  ;;  %p8529_p6 = por %p228_p4, %p46_p0 }
  0x14   : > { %13966 = sst [smem:[#allocation18_spill]] %s8518_s18  ;;  %p234_p7 = scmp.eq.s32.totalorder %s7054_s14, 1 }
  0x15   : > { %s13967_s19 = scalar_select %p8522_p5, 1, 0 }
  0x16   : > { %s13968_s20 = scalar_select %p8529_p6, 1, 0 }
  0x17   : > { %p7055_p8 = scmp.ge.s32.totalorder %s8419_s12, 1  ;;  %p267_p9 = scmp.lt.s32.totalorder %s8419_s12, 3 }
  0x18   : > { %p8535_p10 = por %p234_p7, %p52_p2  ;;  %s8421_s23 = smov [#allocation7]  }
  0x19   : > { %p8539_p11 = pnand %p7055_p8, %p267_p9  ;;  %s292_s24 = sshll.u32 %s8421_s23, 4  ;;  %s293_s24 = int_to_ptr.vmem [resolvable:$true] %s292_s24 }
  0x1a   : > { %s13969_s21 = scalar_select %p8535_p10, 1, 0 }
  0x1b   : > { %s13970_s22 = scalar_select %p8539_p11, 1, 0 }
  0x1c   : > { %p7170_p13 = pneg %p8539_p11  ;;  %p47_p1 = scmp.eq.s32.totalorder %s8419_s12, 0 }
  0x1d   : > { %s8549_s25 = sand.u32 1, %s8415_s11   ;;  %s13973_s6 = sld [smem:[#allocation84_spill]] }
  0x1e   : > { %p8553_p2 = pnand %p7170_p13, %p13808_p3  ;;  %p8560_p7 = por %p47_p1, %p46_p0 }
  0x1f   : > { %s7058_s28 = sshll.u32 %s8549_s25, 1 }
  0x20   : > { %s13972_s27 = scalar_select %p8560_p7, 1, 0 }
  0x21   : > { %p8227_p9 = pneg %p8553_p2 }
  0x23   : > { %s8225_s16 = scalar_lea.hbm %s13973_s6, 128 }
  0x24   : > { %p8226_p8 = scmp.ne.s32.totalorder %s13973_s6, %s8225_s16  ;;  %p8232_p0 = scmp.lt.u32.totalorder %s8225_s16, %s13973_s6 }
  0x26   : > { %p8228_p13 = pnand %p8227_p9, %p8226_p8 }
  0x28   : > { %p8229_p12 = pneg %p8228_p13 }
  0x2a   : > { %p8234_p1 = pnand %p8232_p0, %p8229_p12 }
  0x2c   : > { %8237 = shalt.err (!%p8234_p1)
}
  0x2d   : > { %s8238_s15 = scalar_lea.vmem %s293_s24, 128  ;;  %p8246_p6 = scmp.lt.s32.totalorder %s293_s24, %s293_s24 }
  0x2e   : > { %p8239_p3 = scmp.ne.s32.totalorder %s293_s24, %s8238_s15  ;;  %p8247_p5 = scmp.lt.s32.totalorder %s8238_s15, %s8238_s15 }
  0x30   : > { %p8241_p4 = pnand %p8239_p3, %p8227_p9  ;;  %p8248_p11 = por %p8247_p5, %p8246_p6 }
  0x32   : > { %p8242_p10 = pneg %p8241_p4 }
  0x34   : > { %p8249_p7 = pnand %p8248_p11, %p8242_p10 }
  0x36   : > { %8252 = shalt.err (!%p8249_p7)
}
  0x37   : > { %7173 = dma.hbm_to_vmem [thread:$0]  (!%p8553_p2), %s13973_s6, 128, %s293_s24, [#allocation6]  }
  0x38   : > { %s7152_s11 = sshll.u32 %s8419_s12, 5  ;;  %s310_s18 = scalar_lea.vmem [#allocation2], %s7058_s28 }
  0x39   : > { %s318_s16 = sshll.u32 %s310_s18, 4  ;;  %s13974_s0 = sld [smem:[#allocation83_spill]]  ;;  %s8587_s16 = int_to_ptr.vmem [resolvable:$true] %s318_s16 }
  0x3a   : > { %p13975_p3 = scmp.ne.s32.totalorder %s13972_s27, 0  ;;  %p13976_p5 = scmp.lt.s32.totalorder %s8419_s12, 2 }
  0x3b   : > { %s7156_s24 = smul.u32 192, %s8549_s25  ;;  %s7153_s29 = sshll.u32 %s8419_s12, 8 }
  0x3c   : > { %p8593_p6 = pnand %p13976_p5, %p13975_p3  ;;  %s307_s14 = scalar_lea.sflag [#allocation3], %s8549_s25 }
  0x3e   : > { %p8255_p11 = pneg %p8593_p6 }
  0x3f   : > { %s8585_s23 = scalar_lea.hbm %s13974_s0, %s7152_s11  ;;  %s8258_s15 = scalar_lea.hbm %s13974_s0, 64 }
  0x40   : > { %s8253_s11 = scalar_lea.hbm %s8585_s23, 32  ;;  %p8259_p2 = scmp.lt.u32.totalorder %s8585_s23, %s13974_s0 }
  0x41   : > { %p8254_p10 = scmp.ne.s32.totalorder %s8585_s23, %s8253_s11  ;;  %p8260_p7 = scmp.lt.u32.totalorder %s8258_s15, %s8253_s11 }
  0x42   : > { %p8262_p9 = scmp.lt.u32.totalorder %s8253_s11, %s8585_s23 }
  0x43   : > { %p8256_p12 = pnand %p8255_p11, %p8254_p10  ;;  %p8261_p8 = por %p8260_p7, %p8259_p2 }
  0x45   : > { %p8257_p4 = pneg %p8256_p12  ;;  %p8263_p13 = por %p8262_p9, %p8261_p8 }
  0x47   : > { %p8264_p0 = pnand %p8263_p13, %p8257_p4 }
  0x49   : > { %8267 = shalt.err (!%p8264_p0)
}
  0x4a   : > { %s8268_s28 = scalar_lea.vmem %s8587_s16, 32  ;;  %s8422_s27 = smov [#allocation2]  }
  0x4b   : > { %p8269_p1 = scmp.ne.s32.totalorder %s8587_s16, %s8268_s28  ;;  %s8273_s18 = sshll.u32 %s8422_s27, 4  ;;  %s8274_s18 = int_to_ptr.vmem [resolvable:$false] %s8273_s18 }
  0x4c   : > { %s8275_s6 = scalar_lea.vmem %s8274_s18, 64  ;;  %p8276_p10 = scmp.lt.s32.totalorder %s8587_s16, %s8274_s18 }
  0x4d   : > { %p8271_p3 = pnand %p8269_p1, %p8255_p11  ;;  %p8277_p12 = scmp.lt.s32.totalorder %s8275_s6, %s8268_s28 }
  0x4f   : > { %p8272_p5 = pneg %p8271_p3  ;;  %p8278_p2 = por %p8277_p12, %p8276_p10 }
  0x51   : > { %p8279_p7 = pnand %p8278_p2, %p8272_p5 }
  0x53   : > { %8282 = shalt.err (!%p8279_p7)
}
  0x54   : > { %7177 = dma.hbm_to_vmem [thread:$0]  (!%p8593_p6), %s8585_s23, 32, %s8587_s16, %s307_s14  }
  0x55   : > { %s329_s11 = scalar_lea.vmem [#allocation5], %s7156_s24  ;;  %s8635_s27 = scalar_lea.hbm %s13796_s1, %s7153_s29 }
  0x56   : > { %s336_s15 = sshll.u32 %s329_s11, 4  ;;  %s13978_s18 = sand.u32 1, %s8419_s12   ;;  %s8628_s15 = int_to_ptr.vmem [resolvable:$true] %s336_s15 }
  0x57   : > { %s8639_s6 = scalar_lea.sflag [#allocation6], %s13978_s18  ;;  %s8283_s0 = scalar_lea.hbm %s8635_s27, 3072 }
  0x58   : > { %p8284_p4 = scmp.ne.s32.totalorder %s8635_s27, %s8283_s0  ;;  %s8288_s23 = scalar_lea.hbm %s13796_s1, 6144 }
  0x59   : > { %p8289_p13 = scmp.lt.u32.totalorder %s8635_s27, %s13796_s1  ;;  %p8290_p0 = scmp.lt.u32.totalorder %s8288_s23, %s8283_s0 }
  0x5a   : > { %p8286_p8 = pnand %p8284_p4, %p8255_p11  ;;  %p8292_p3 = scmp.lt.u32.totalorder %s8283_s0, %s8635_s27 }
  0x5b   : > { %p8291_p1 = por %p8290_p0, %p8289_p13 }
  0x5c   : > { %p8287_p9 = pneg %p8286_p8 }
  0x5d   : > { %p8293_p5 = por %p8292_p3, %p8291_p1 }
  0x5f   : > { %p8294_p10 = pnand %p8293_p5, %p8287_p9 }
  0x61   : > { %8297 = shalt.err (!%p8294_p10)
}
  0x62   : > { %s8298_s14 = scalar_lea.vmem %s8628_s15, 3072  ;;  %s8423_s11 = smov [#allocation5]  }
  0x63   : > { %p8299_p12 = scmp.ne.s32.totalorder %s8628_s15, %s8298_s14  ;;  %s8303_s17 = sshll.u32 %s8423_s11, 4  ;;  %s8304_s17 = int_to_ptr.vmem [resolvable:$false] %s8303_s17 }
  0x64   : > { %s8305_s28 = scalar_lea.vmem %s8304_s17, 6144  ;;  %p8306_p4 = scmp.lt.s32.totalorder %s8628_s15, %s8304_s17 }
  0x65   : > { %p8301_p2 = pnand %p8299_p12, %p8255_p11  ;;  %p8307_p8 = scmp.lt.s32.totalorder %s8305_s28, %s8298_s14 }
  0x67   : > { %p8302_p7 = pneg %p8301_p2  ;;  %p8308_p13 = por %p8307_p8, %p8306_p4 }
  0x69   : > { %p8309_p0 = pnand %p8308_p13, %p8302_p7 }
  0x6b   : > { %8312 = shalt.err (!%p8309_p0)
}
  0x6c   : > { %s8424_s0 = smov 512   ;;  %s8425_s18 = smov 256  }
  0x6d   : > { %s8426_s25 = smov 16   ;;  %p13979_p11 = scmp.ne.s32.totalorder %s13970_s22, 0 }
  0x6e   : > { %7180 = dma.hbm_to_vmem [thread:$0]  (!%p8593_p6), %s8635_s27, 3072, %s8628_s15, %s8639_s6, %s8424_s0, %s8425_s18, %s8426_s25  }
  0x6f   : > { %348 = sbr.rel (%p13979_p11) target bundleno = 1632 (0x660), region = 52 }
  0x76   : > { %s8668_s16 = sand.u32 1, %s8411_s10   ;;  %p13980_p9 = scmp.ne.s32.totalorder %s13967_s19, 0 }
  0x77   : > { %s8671_s23 = sshll.u32 %s8668_s16, 1  ;;  %s351_s24 = scalar_lea.sflag [#allocation3], %s8668_s16 }
  0x78   : > { %s354_s29 = scalar_lea.vmem [#allocation2], %s8671_s23 }
  0x79   : > { %8386 = dma.done.wait (%p13980_p9), %s351_s24, 32  }
  0x7a   : > { %8388 = vsyncadd (%p13980_p9), %s351_s24, 4294967264  ;;  %s359_s22 = sand.u32 1, %s8502_s13   ;;  %s7157_s26 = smul.u32 192, %s8668_s16 }
  0x7b   : > { %s360_s15 = scalar_lea.sflag [#allocation6], %s359_s22 }
  0x7c   : > { %s8681_s27 = scalar_lea.vmem [#allocation5], %s7157_s26 }
  0x7d   : > { %8390 = dma.done.wait (%p13980_p9), %s360_s15, 3072  }
  0x7e   : > { %8392 = vsyncadd (%p13980_p9), %s360_s15, 4294964224  ;;  %p13981_p6 = scmp.eq.s32.totalorder %s8502_s13, 0 }
  0x80   : > { %8394 = dma.done.wait (%p13981_p6), [#allocation6], 128   ;;  %p13982_p1 = pmov %p13981_p6 }
  0x81   : > { %v13812_v0 = vlaneseq  ;;  %v8427_v1 = vmov 0   ;;  %v8428_v2 = vmov 1966171168   ;;  %v417_v7 = vld [vmem:[%s13797_s2] sm:$0xff]  ;;  %v420_v16 = vld [vmem:[%s8681_s27 + $0x8] sm:$0xff]  ;;  %s7154_s26 = sshll.u32 %s8502_s13, 5 }
  0x82   : > { %8396 = vsyncadd (%p13982_p1), [#allocation6], 4294967168  ;;  %7230 = vset.pattern.permute.xlu0 %v8427_v1  ;;  %v548_v3 = vunpack.c.l.s4 %v8428_v2  ;;  %7231 = vset.pattern.permute.xlu1 %v8427_v1  ;;  %v546_v9 = vcombine.high %v417_v7, %v417_v7  ;;  %v419_v15 = vld [vmem:[%s8681_s27] sm:$0xff]  ;;  %v8705_v20 = vadd.f32 0.54132324, %v420_v16  ;;  %s404_s15 = scalar_lea.vmem [#allocation8], %s8671_s23  ;;  %s13661_s14 = scalar_lea.hbm %s13803_s8, %s7154_s26 }
  0x83   : > { %v474_v4 = vshrl.u32 %v13812_v0, 7  ;;  %v8703_v19 = vadd.f32 0.54132324, %v419_v15  ;;  %v418_v29 = vld [vmem:[%s13798_s3] sm:$0xff]  ;;  %s6887_s11 = scalar_lea.sflag [#allocation4], %s8668_s16  ;;  %p14531_p5 = scmp.ne.s32.totalorder %s13968_s20, 0 }
  0x84   : > { %v549_v5 = vunpack.c.0.s8 %v548_v3  ;;  %v436_v24 = vand.u32 2147483647, %v8705_v20  ;;  %v2419_v51 = vld [vmem:[%s13799_s4] sm:$0xff]  ;;  %vm432_vm3 = vcmp.ne.f32.partialorder %v8705_v20, %v8705_v20  ;;  %s8429_s28 = smov [#allocation8]  }
  0x85   : > { %v435_v23 = vand.u32 2147483647, %v8703_v19  ;;  %v8711_v26 = vsub.s32 0, %v474_v4  ;;  %v8716_v31 = vsub.s32 1, %v474_v4  ;;  %v8719_v35 = vsub.s32 2, %v474_v4  ;;  %s8317_s0 = sshll.u32 %s8429_s28, 4  ;;  %s8318_s0 = int_to_ptr.vmem [resolvable:$false] %s8317_s0 }
  0x86   : > { %v8692_v6 = vsub.s32 %v549_v5, %v474_v4  ;;  %v438_v28 = vsub.f32 0.0, %v436_v24  ;;  %v8722_v37 = vsub.s32 3, %v474_v4  ;;  %v8725_v39 = vsub.s32 4, %v474_v4  ;;  %v8914_v0 = vld [vmem:[%s354_s29] sm:$0x3]  ;;  %s8319_s18 = scalar_lea.vmem %s8318_s0, 64 }
  0x87   : > { %13984 = vst [vmem:[#allocation20_spill] sm:$0xff] %v8711_v26  ;;  %v437_v27 = vsub.f32 0.0, %v435_v23  ;;  %13985 = vst [vmem:[#allocation21_spill] sm:$0xff] %v8716_v31  ;;  %v476_v34 = vrot.slane %v418_v29, %v8711_v26  ;;  %v483_v36 = vrot.slane %v418_v29, %v8716_v31  ;;  %v490_v38 = vrot.slane %v418_v29, %v8719_v35 }
  0x88   : > { %13983 = vst [vmem:[#allocation19_spill] sm:$0xff] %v8692_v6  ;;  %v553_v8 = vrot.slane %v417_v7, %v8692_v6  ;;  %v560_v12 = vrot.slane %v546_v9, %v8692_v6  ;;  %v441_v33 = vmul.f32 1.442695, %v438_v28  ;;  %13986 = vst [vmem:[#allocation22_spill] sm:$0xff] %v8719_v35  ;;  %v497_v40 = vrot.slane %v418_v29, %v8722_v37 }
  0x89   : > { %v439_v32 = vmul.f32 1.442695, %v437_v27  ;;  %13987 = vst [vmem:[#allocation23_spill] sm:$0xff] %v8722_v37  ;;  %13988 = vst [vmem:[#allocation24_spill] sm:$0xff] %v8725_v39  ;;  %v8728_v41 = vsub.s32 5, %v474_v4  ;;  %v504_v42 = vrot.slane %v418_v29, %v8725_v39  ;;  %v8731_v43 = vsub.s32 6, %v474_v4 }
  0x8a   : > { %v569_v10 = vrot.slane %v553_v8, %v8692_v6  ;;  %v561_v11 = vcombine.high %v553_v8, %v553_v8  ;;  %v562_v18 = vcombine.high %v560_v12, %v560_v12  ;;  %v576_v21 = vrot.slane %v560_v12, %v8692_v6 }
  0x8b   : > { %7236 = vpow2.f32 %v439_v32  ;;  %13989 = vst [vmem:[#allocation25_spill] sm:$0xff] %v8728_v41  ;;  %13990 = vst [vmem:[#allocation26_spill] sm:$0xff] %v8731_v43  ;;  %v511_v45 = vrot.slane %v418_v29, %v8728_v41  ;;  %v8734_v46 = vsub.s32 7, %v474_v4  ;;  %v518_v49 = vrot.slane %v418_v29, %v8731_v43 }
  0x8c   : > { %596 = vperm.xlu0 %7230, %v569_v10   ;;  %v591_v13 = vcombine.high %v569_v10, %v569_v10  ;;  %v583_v14 = vrot.slane %v561_v11, %v8692_v6  ;;  %v590_v22 = vrot.slane %v562_v18, %v8692_v6  ;;  %v592_v25 = vcombine.high %v576_v21, %v576_v21 }
  0x8d   : > { %7238 = vpow2.f32 %v441_v33  ;;  %13991 = vst [vmem:[#allocation27_spill] sm:$0xff] %v8734_v46  ;;  %v525_v52 = vrot.slane %v418_v29, %v8734_v46  ;;  %v2557_v55 = vrot.slane %v2419_v51, %v8716_v31  ;;  %v2564_v56 = vrot.slane %v2419_v51, %v8719_v35 }
  0x8e   : > { %612 = vperm.xlu1 %7231, %v591_v13   ;;  %v593_v17 = vcombine.high %v583_v14, %v583_v14  ;;  %v594_v30 = vcombine.high %v590_v22, %v590_v22  ;;  %v2550_v60 = vrot.slane %v2419_v51, %v8711_v26  ;;  %v2571_v62 = vrot.slane %v2419_v51, %v8722_v37 }
  0x8f   : > { %v429_v2 = vmax.f32 %v8703_v19, 0.0  ;;  %v2578_v5 = vrot.slane %v2419_v51, %v8725_v39  ;;  %v430_v7 = vmax.f32 %v8705_v20, 0.0  ;;  %v2585_v10 = vrot.slane %v2419_v51, %v8728_v41 }
  0x90   : > { %604 = vperm.xlu0 %7230, %v583_v14   ;;  %vm431_vm2 = vcmp.ne.f32.partialorder %v8703_v19, %v8703_v19  ;;  %v2592_v14 = vrot.slane %v2419_v51, %v8731_v43  ;;  %v2599_v18 = vrot.slane %v2419_v51, %v8734_v46 }
  0x92   : > { %620 = vperm.xlu1 %7231, %v593_v17   ;;  %v2420_v17 = vld [vmem:[%s13800_s5] sm:$0xff] }
  0x93   : > { %v2478_v24 = vrot.slane %v2420_v17, %v8711_v26  ;;  %v2492_v33 = vrot.slane %v2420_v17, %v8719_v35 }
  0x94   : > { %628 = vperm.xlu0 %7230, %v576_v21  }
  0x95   : > { %v7237_v44 = vpop.eup %7236 }
  0x96   : > { %636 = vperm.xlu1 %7231, %v590_v22   ;;  %v443_v48 = vadd.f32 1.0, %v7237_v44  ;;  %v446_v53 = vmul.f32 -0.5, %v7237_v44  ;;  %v449_v58 = vand.u32 2147483647, %v7237_v44 }
  0x97   : > { %v7239_v47 = vpop.eup %7238 }
  0x98   : > { %644 = vperm.xlu0 %7230, %v592_v25   ;;  %v452_v50 = vadd.f32 1.0, %v7239_v47  ;;  %7240 = vlog2.f32 %v443_v48  ;;  %v455_v54 = vmul.f32 -0.5, %v7239_v47  ;;  %v447_v57 = vadd.f32 1.0, %v446_v53 }
  0x99   : > { %v458_v61 = vand.u32 2147483647, %v7239_v47  ;;  %vm450_vm0 = vcmp.lt.f32.partialorder %v449_v58, 0.0004427343  ;;  %v2485_v25 = vrot.slane %v2420_v17, %v8716_v31 }
  0x9a   : > { %652 = vperm.xlu1 %7231, %v594_v30   ;;  %7242 = vlog2.f32 %v452_v50  ;;  %v456_v59 = vadd.f32 1.0, %v455_v54  ;;  %v448_v63 = vmul.f32 %v7237_v44, %v447_v57  ;;  %v7235_v54 = vld [vmem:[%s8681_s27 + $0x14] ss:$8 sps:$4 sm:$0xff]  }
  0x9b   : > { %vm459_vm1 = vcmp.lt.f32.partialorder %v458_v61, 0.0004427343 }
  0x9c   : > { %478 = vbcast.lane.b32.xlu0 %v476_v34, 256  ;;  %v457_v3 = vmul.f32 %v7239_v47, %v456_v59  ;;  %v2499_v34 = vrot.slane %v2420_v17, %v8722_v37 }
  0x9e   : > { %485 = vbcast.lane.b32.xlu1 %v483_v36, 256 }
  0xa0   : > { %492 = vbcast.lane.b32.xlu0 %v490_v38, 256  ;;  %v2506_v38 = vrot.slane %v2420_v17, %v8725_v39 }
  0xa2   : > { %499 = vbcast.lane.b32.xlu1 %v497_v40, 256  ;;  %v7241_v1 = vpop.eup %7240  ;;  %v7233_v40 = vld [vmem:[%s8681_s27 + $0x10] ss:$8 sps:$4 sm:$0xff]  }
  0xa3   : > { %v445_v8 = vmul.f32 0.6931472, %v7241_v1  ;;  %v1153_v47 = vrot.slane %v7233_v40, %v8692_v6 }
  0xa4   : > { %506 = vbcast.lane.b32.xlu0 %v504_v42, 256  ;;  %v7243_v4 = vpop.eup %7242  ;;  %v8775_v42 = vld [vmem:[%s8681_s27 + $0x30] ss:$8 sm:$0x3] }
  0xa5   : > { %v454_v9 = vmul.f32 0.6931472, %v7243_v4  ;;  %v451_v11 = vsel %vm450_vm0, %v448_v63, %v445_v8  ;;  %v8785_v58 = vrot.slane %v1153_v47, %v8692_v6  ;;  %v8794_v4 = vrot.slane %v7235_v54, %v8692_v6 }
  0xa6   : > { %513 = vbcast.lane.b32.xlu1 %v511_v45, 256  ;;  %v461_v13 = vadd.f32 %v451_v11, %v429_v2 }
  0xa7   : > { %v460_v12 = vsel %vm459_vm1, %v457_v3, %v454_v9 }
  0xa8   : > { %520 = vbcast.lane.b32.xlu0 %v518_v49, 256  ;;  %v462_v15 = vadd.f32 %v460_v12, %v430_v7  ;;  %v463_v16 = vsel %vm431_vm2, %v8703_v19, %v461_v13 }
  0xa9   : > { %v465_v22 = vmul.f32 100.0, %v463_v16 }
  0xaa   : > { %527 = vbcast.lane.b32.xlu1 %v525_v52, 256  ;;  %v464_v21 = vsel %vm432_vm3, %v8705_v20, %v462_v15  ;;  %v1161_v52 = vcombine.high %v1153_v47, %v1153_v47  ;;  %v8828_v47 = vld [vmem:[%s8681_s27 + $0x28] sm:$0xff] }
  0xab   : > { %v466_v23 = vmul.f32 100.0, %v464_v21  ;;  %7244 = vlog2.f32 %v465_v22  ;;  %v1061_v51 = vcombine.low %v463_v16, %v464_v21  ;;  %13992 = vst [vmem:[#allocation28_spill] sm:$0xff] %v8828_v47 }
  0xac   : > { %2559 = vbcast.lane.b32.xlu0 %v2557_v55, 256  ;;  %v8791_v3 = vrot.slane %v1161_v52, %v8692_v6 }
  0xad   : > { %7246 = vlog2.f32 %v466_v23  ;;  %v1069_v2 = vrot.slane %v1061_v51, %v8692_v6  ;;  %v1162_v51 = vcombine.high %v8794_v4, %v8794_v4 }
  0xae   : > { %2566 = vbcast.lane.b32.xlu1 %v2564_v56, 256 }
  0xaf   : > { %v8805_v17 = vrot.slane %v1069_v2, %v8692_v6 }
  0xb0   : > { %2552 = vbcast.lane.b32.xlu0 %v2550_v60, 256  ;;  %v1062_v60 = vcombine.high %v463_v16, %v464_v21  ;;  %v8811_v21 = vrot.slane %v8794_v4, %v8692_v6 }
  0xb2   : > { %2573 = vbcast.lane.b32.xlu1 %v2571_v62, 256  ;;  %v8800_v11 = vrot.slane %v1062_v60, %v8692_v6 }
  0xb4   : > { %2580 = vbcast.lane.b32.xlu0 %v2578_v5, 256 }
  0xb5   : > { %v7245_v19 = vpop.eup %7244 }
  0xb6   : > { %2587 = vbcast.lane.b32.xlu1 %v2585_v10, 256  ;;  %v468_v28 = vmul.f32 0.6931472, %v7245_v19  ;;  %v1191_v10 = vcombine.high %v8785_v58, %v8785_v58 }
  0xb7   : > { %v7247_v27 = vpop.eup %7246 }
  0xb8   : > { %2594 = vbcast.lane.b32.xlu0 %v2592_v14, 256  ;;  %v470_v29 = vmul.f32 0.6931472, %v7247_v27  ;;  %v8762_v30 = vadd.f32 -4.6051702, %v468_v28  ;;  %v1077_v27 = vcombine.high %v1069_v2, %v1069_v2  ;;  %v8818_v28 = vrot.slane %v8800_v11, %v8692_v6 }
  0xba   : > { %2601 = vbcast.lane.b32.xlu1 %v2599_v18, 256  ;;  %v8764_v20 = vadd.f32 -4.6051702, %v470_v29  ;;  %v1193_v18 = vcombine.high %v8791_v3, %v8791_v3 }
  0xbc   : > { %2480 = vbcast.lane.b32.xlu0 %v2478_v24, 256  ;;  %v1809_v32 = vcombine.low %v8762_v30, %v8764_v20  ;;  %v1810_v36 = vcombine.high %v8762_v30, %v8764_v20 }
  0xbe   : > { %2487 = vbcast.lane.b32.xlu1 %v2485_v25, 256 }
  0xc0   : > { %2494 = vbcast.lane.b32.xlu0 %v2492_v33, 256  ;;  %v1078_v33 = vcombine.high %v8800_v11, %v8800_v11 }
  0xc2   : > { %2501 = vbcast.lane.b32.xlu1 %v2499_v34, 256 }
  0xc4   : > { %2508 = vbcast.lane.b32.xlu0 %v2506_v38, 256  ;;  %v8823_v38 = vld [vmem:[%s8681_s27 + $0x20] sm:$0xff] }
 0x10b   : > { %v597_v44 = vpop.permute.xlu0 %596 }
 0x10c   : > { %v602_v45 = vrot.slane %v597_v44, %v8711_v26 }
 0x10d   : > { %v613_v48 = vpop.permute.xlu1 %612 }
 0x10e   : > { %v659_v49 = vadd.f32 %v8775_v42, %v602_v45  ;;  %v618_v50 = vrot.slane %v613_v48, %v8711_v26  ;;  %v1817_v48 = vrot.slane %v1809_v32, %v8692_v6 }
 0x10f   : > { %v605_v53 = vpop.permute.xlu0 %604 }
 0x110   : > { %v1003_v55 = vsub.f32 %v659_v49, %v659_v49  ;;  %v661_v56 = vadd.f32 %v8775_v42, %v618_v50  ;;  %v610_v57 = vrot.slane %v605_v53, %v8711_v26  ;;  %v1107_v49 = vcombine.high %v8805_v17, %v8805_v17 }
 0x111   : > { %v621_v59 = vpop.permute.xlu1 %620 }
 0x112   : > { %v1011_v61 = vmul.f32 1.442695, %v1003_v55  ;;  %v1005_v62 = vsub.f32 %v661_v56, %v661_v56  ;;  %v660_v63 = vadd.f32 %v8775_v42, %v610_v57  ;;  %v626_v1 = vrot.slane %v621_v59, %v8711_v26 }
 0x113   : > { %v629_v5 = vpop.permute.xlu0 %628  ;;  %v8843_v57 = vrot.slane %v1077_v27, %v8692_v6  ;;  %v1825_v59 = vcombine.high %v1817_v48, %v1817_v48 }
 0x114   : > { %7248 = vpow2.f32 %v1011_v61  ;;  %v1015_v7 = vmul.f32 1.442695, %v1005_v62  ;;  %v1004_v8 = vsub.f32 %v660_v63, %v660_v63  ;;  %v662_v9 = vadd.f32 %v8775_v42, %v626_v1 }
 0x115   : > { %v634_v12 = vrot.slane %v629_v5, %v8711_v26  ;;  %v637_v13 = vpop.permute.xlu1 %636 }
 0x116   : > { %7250 = vpow2.f32 %v1015_v7  ;;  %v1013_v14 = vmul.f32 1.442695, %v1004_v8  ;;  %v1006_v15 = vsub.f32 %v662_v9, %v662_v9  ;;  %v642_v16 = vrot.slane %v637_v13, %v8711_v26 }
 0x117   : > { %v663_v22 = vadd.f32 %v8775_v42, %v634_v12  ;;  %v645_v23 = vpop.permute.xlu0 %644 }
 0x118   : > { %7252 = vpow2.f32 %v1013_v14  ;;  %v1017_v24 = vmul.f32 1.442695, %v1006_v15  ;;  %v664_v25 = vadd.f32 %v8775_v42, %v642_v16  ;;  %v650_v19 = vrot.slane %v645_v23, %v8711_v26 }
 0x119   : > { %v1007_v29 = vsub.f32 %v663_v22, %v663_v22  ;;  %v653_v34 = vpop.permute.xlu1 %652  ;;  %v1824_v16 = vrot.slane %v1810_v36, %v8692_v6 }
 0x11a   : > { %7254 = vpow2.f32 %v1017_v24  ;;  %v1008_v40 = vsub.f32 %v664_v25, %v664_v25  ;;  %v665_v44 = vadd.f32 %v8775_v42, %v650_v19  ;;  %v658_v45 = vrot.slane %v653_v34, %v8711_v26 }
 0x11b   : > { %v1019_v50 = vmul.f32 1.442695, %v1007_v29  ;;  %v479_v52 = vpop.permute.xlu0 %478  ;;  %v8873_v29 = vrot.slane %v1078_v33, %v8692_v6  ;;  %v8876_v34 = vrot.slane %v1162_v51, %v8692_v6  ;;  %v1109_v33 = vcombine.high %v8843_v57, %v8843_v57 }
 0x11c   : > { %v1021_v53 = vmul.f32 1.442695, %v1008_v40  ;;  %v1009_v54 = vsub.f32 %v665_v44, %v665_v44  ;;  %v666_v55 = vadd.f32 %v8775_v42, %v658_v45  ;;  %v8840_v56 = vadd.f32 %v479_v52, %v8823_v38 }
 0x11d   : > { %7256 = vpow2.f32 %v1019_v50  ;;  %v8846_v32 = vadd.f32 %v479_v52, %v8828_v47  ;;  %v486_v60 = vpop.permute.xlu1 %485  ;;  %v8884_v45 = vrot.slane %v1817_v48, %v8692_v6  ;;  %v1826_v50 = vcombine.high %v1824_v16, %v1824_v16 }
 0x11e   : > { %v7249_v61 = vpop.eup %7248  ;;  %7258 = vpow2.f32 %v1021_v53  ;;  %v1023_v62 = vmul.f32 1.442695, %v1009_v54  ;;  %v1010_v63 = vsub.f32 %v666_v55, %v666_v55  ;;  %v667_v1 = vrot.slane %v8840_v56, 4 }
 0x11f   : > { %7260 = vrcp.f32 %v7249_v61  ;;  %v673_v42 = vrot.slane %v8846_v32, 4  ;;  %v8851_v2 = vadd.f32 %v486_v60, %v8823_v38  ;;  %v8854_v4 = vadd.f32 %v486_v60, %v8828_v47  ;;  %v493_v5 = vpop.permute.xlu0 %492 }
 0x120   : > { %v7251_v7 = vpop.eup %7250  ;;  %7262 = vpow2.f32 %v1023_v62  ;;  %v1025_v8 = vmul.f32 1.442695, %v1010_v63  ;;  %v668_v9 = vmax.f32 %v8840_v56, %v667_v1  ;;  %v8858_v11 = vadd.f32 %v493_v5, %v8823_v38 }
 0x121   : > { %7264 = vrcp.f32 %v7251_v7  ;;  %v674_v12 = vmax.f32 %v8846_v32, %v673_v42  ;;  %v679_v13 = vrot.slane %v8851_v2, 4  ;;  %v685_v14 = vrot.slane %v8854_v4, 4 }
 0x122   : > { %v7253_v15 = vpop.eup %7252  ;;  %7266 = vpow2.f32 %v1025_v8  ;;  %v669_v22 = vrot.slane %v668_v9, 2  ;;  %v691_v23 = vrot.slane %v8858_v11, 4  ;;  %v8879_v20 = vadd.f32 %v493_v5, %v8828_v47 }
 0x123   : > { %7268 = vrcp.f32 %v7253_v15  ;;  %v675_v24 = vrot.slane %v674_v12, 2  ;;  %v680_v25 = vmax.f32 %v8851_v2, %v679_v13  ;;  %v686_v19 = vmax.f32 %v8854_v4, %v685_v14  ;;  %v500_v14 = vpop.permute.xlu1 %499 }
 0x124   : > { %v8870_v27 = vpop.eup %7254  ;;  %v670_v30 = vmax.f32 %v668_v9, %v669_v22  ;;  %v692_v44 = vmax.f32 %v8858_v11, %v691_v23  ;;  %v8889_v53 = vrot.slane %v1825_v59, %v8692_v6  ;;  %v1108_v54 = vcombine.high %v8818_v28, %v8818_v28 }
 0x125   : > { %7270 = vrcp.f32 %v8870_v27  ;;  %v676_v36 = vmax.f32 %v674_v12, %v675_v24  ;;  %v681_v40 = vrot.slane %v680_v25, 2  ;;  %v687_v60 = vrot.slane %v686_v19, 2 }
 0x126   : > { %v671_v52 = vrot.slane %v670_v30, 1  ;;  %v693_v8 = vrot.slane %v692_v44, 2  ;;  %v697_v9 = vrot.slane %v8879_v20, 4  ;;  %v8907_v22 = vrot.slane %v1824_v16, %v8692_v6 }
 0x127   : > { %v7257_v51 = vpop.eup %7256  ;;  %v677_v55 = vrot.slane %v676_v36, 1  ;;  %v682_v5 = vmax.f32 %v680_v25, %v681_v40  ;;  %v8910_v23 = vrot.slane %v1826_v50, %v8692_v6 }
 0x128   : > { %v8893_v62 = vpop.eup %7258  ;;  %7272 = vrcp.f32 %v7257_v51  ;;  %v672_v42 = vmax.f32 %v670_v30, %v671_v52  ;;  %v694_v63 = vmax.f32 %v692_v44, %v693_v8  ;;  %v8940_v44 = vadd.f32 %v500_v14, %v8823_v38 }
 0x129   : > { %v7261_v59 = vpop.eup %7260  ;;  %7274 = vrcp.f32 %v8893_v62  ;;  %v678_v30 = vmax.f32 %v676_v36, %v677_v55  ;;  %v683_v25 = vrot.slane %v682_v5, 1 }
 0x12a   : > { %v8902_v12 = vpop.eup %7262  ;;  %v1051_v13 = vmul.f32 %v7261_v59, %v7249_v61  ;;  %v688_v61 = vmax.f32 %v686_v19, %v687_v60  ;;  %v8927_v48 = vsub.f32 %v8840_v56, %v672_v42  ;;  %v698_v19 = vmax.f32 %v8879_v20, %v697_v9 }
 0x12b   : > { %v7265_v24 = vpop.eup %7264  ;;  %7276 = vrcp.f32 %v8902_v12  ;;  %v695_v9 = vrot.slane %v694_v63, 1 }
 0x12c   : > { %v8919_v40 = vpop.eup %7266  ;;  %v1119_v52 = vmul.f32 %v8805_v17, %v1051_v13  ;;  %v1053_v16 = vmul.f32 %v7265_v24, %v7251_v7  ;;  %13993 = vst [vmem:[#allocation29_spill] sm:$0xff] %v8927_v48  ;;  %v8937_v24 = vsub.f32 %v8846_v32, %v678_v30  ;;  %v689_v56 = vrot.slane %v688_v61, 1 }
 0x12d   : > { %v7269_v1 = vpop.eup %7268  ;;  %7278 = vrcp.f32 %v8919_v40 }
 0x12e   : > { %v1127_v36 = vmul.f32 %v1119_v52, %v8914_v0  ;;  %v1121_v7 = vmul.f32 %v1107_v49, %v1053_v16  ;;  %v1052_v55 = vmul.f32 %v7269_v1, %v7253_v15  ;;  %13994 = vst [vmem:[#allocation30_spill] sm:$0xff] %v8937_v24  ;;  %v684_v1 = vmax.f32 %v682_v5, %v683_v25 }
 0x12f   : > { %v7271_v60 = vpop.eup %7270  ;;  %v699_v52 = vrot.slane %v698_v19, 2 }
 0x130   : > { %v8943_v42 = vadd.f32 %v8785_v58, %v1127_v36  ;;  %v1129_v8 = vmul.f32 %v1121_v7, %v8914_v0  ;;  %v1120_v17 = vmul.f32 %v8843_v57, %v1052_v55  ;;  %v2127_v49 = vcombine.low %v1051_v13, %v1052_v55 }
 0x131   : > { %v1054_v15 = vmul.f32 %v7271_v60, %v8870_v27  ;;  %v779_v7 = vmul.f32 1.442695, %v8927_v48  ;;  %v690_v27 = vmax.f32 %v688_v61, %v689_v56  ;;  %v781_v58 = vmul.f32 1.442695, %v8937_v24 }
 0x132   : > { %v7273_v59 = vpop.eup %7272  ;;  %v8949_v32 = vsub.f32 0.0, %v8943_v42  ;;  %v8954_v30 = vadd.f32 %v1191_v10, %v1129_v8  ;;  %v1128_v36 = vmul.f32 %v1120_v17, %v8914_v0  ;;  %v8965_v60 = vrot.slane %v2127_v49, %v8692_v6 }
 0x133   : > { %v1122_v57 = vmul.f32 %v1109_v33, %v1054_v15  ;;  %v2128_v13 = vcombine.low %v1053_v16, %v1054_v15  ;;  %v8958_v55 = vmul.f32 %v7273_v59, %v7257_v51  ;;  %v7275_v10 = vpop.eup %7274  ;;  %7280 = vpow2.f32 %v779_v7 }
 0x134   : > { %v1243_v5 = vand.u32 2147483647, %v8949_v32  ;;  %v8962_v25 = vsub.f32 0.0, %v8954_v30  ;;  %v8969_v8 = vadd.f32 %v8791_v3, %v1128_v36  ;;  %v8979_v56 = vsub.f32 %v8851_v2, %v684_v1 }
 0x135   : > { %v1130_v33 = vmul.f32 %v1122_v57, %v8914_v0  ;;  %v8973_v51 = vrot.slane %v2128_v13, %v8692_v6  ;;  %v1123_v61 = vmul.f32 %v8818_v28, %v8958_v55  ;;  %v7277_v57 = vpop.eup %7276  ;;  %v1056_v1 = vmul.f32 %v7275_v10, %v8893_v62 }
 0x136   : > { %v1251_v16 = vsub.f32 0.0, %v1243_v5  ;;  %v1245_v59 = vand.u32 2147483647, %v8962_v25  ;;  %13995 = vst [vmem:[#allocation31_spill] sm:$0xff] %v8979_v56  ;;  %v8982_v17 = vsub.f32 0.0, %v8969_v8  ;;  %v9003_v36 = vsub.f32 %v8854_v4, %v690_v27 }
 0x137   : > { %v8987_v49 = vadd.f32 %v1193_v18, %v1130_v33  ;;  %v1131_v2 = vmul.f32 %v1123_v61, %v8914_v0  ;;  %v7279_v5 = vpop.eup %7278  ;;  %v700_v18 = vmax.f32 %v698_v19, %v699_v52  ;;  %v9000_v33 = vadd.f32 %v500_v14, %v8828_v47 }
 0x138   : > { %v1259_v13 = vmul.f32 1.442695, %v1251_v16  ;;  %v1253_v7 = vsub.f32 0.0, %v1245_v59  ;;  %v1244_v50 = vand.u32 2147483647, %v8982_v17  ;;  %13996 = vst [vmem:[#allocation32_spill] sm:$0xff] %v9003_v36  ;;  %v696_v16 = vmax.f32 %v694_v63, %v695_v9 }
 0x139   : > { %v8997_v3 = vsub.f32 0.0, %v8987_v49  ;;  %v783_v62 = vmul.f32 1.442695, %v8979_v56  ;;  %v9008_v10 = vadd.f32 %v8811_v21, %v1131_v2  ;;  %v1124_v19 = vmul.f32 %v8873_v29, %v1056_v1 }
 0x13a   : > { %7282 = vpow2.f32 %v1259_v13  ;;  %v1263_v15 = vmul.f32 1.442695, %v1253_v7  ;;  %v1252_v59 = vsub.f32 0.0, %v1244_v50  ;;  %v2129_v14 = vcombine.low %v8958_v55, %v1056_v1 }
 0x13b   : > { %v1246_v61 = vand.u32 2147483647, %v8997_v3  ;;  %7284 = vpow2.f32 %v781_v58  ;;  %v1057_v4 = vmul.f32 %v7277_v57, %v8902_v12  ;;  %v1058_v63 = vmul.f32 %v7279_v5, %v8919_v40 }
 0x13c   : > { %7286 = vpow2.f32 %v1263_v15  ;;  %v1261_v52 = vmul.f32 1.442695, %v1252_v59  ;;  %v9015_v50 = vsub.f32 0.0, %v9008_v10  ;;  %v1132_v9 = vmul.f32 %v1124_v19, %v8914_v0 }
 0x13d   : > { %v1254_v13 = vsub.f32 0.0, %v1246_v61  ;;  %v785_v27 = vmul.f32 1.442695, %v9003_v36  ;;  %v701_v58 = vrot.slane %v700_v18, 1  ;;  %v1125_v55 = vmul.f32 %v1108_v54, %v1057_v4  ;;  %v9025_v57 = vpop.eup %7280 }
 0x13e   : > { %7288 = vpow2.f32 %v1261_v52  ;;  %v13997_v7 = vcombine.high %v8873_v29, %v8873_v29  ;;  %13998 = vst [vmem:[#allocation33_spill] sm:$0xff] %v9025_v57  ;;  %v1247_v40 = vand.u32 2147483647, %v9015_v50  ;;  %v9029_v2 = vadd.f32 %v8876_v34, %v1132_v9 }
 0x13f   : > { %v1265_v15 = vmul.f32 1.442695, %v1254_v13  ;;  %7290 = vpow2.f32 %v783_v62  ;;  %v1133_v5 = vmul.f32 %v1125_v55, %v8914_v0  ;;  %v2130_v54 = vcombine.low %v1057_v4, %v1058_v63 }
 0x140   : > { %v1126_v12 = vmul.f32 %v13997_v7, %v1058_v63  ;;  %v1255_v59 = vsub.f32 0.0, %v1247_v40  ;;  %v9035_v29 = vsub.f32 0.0, %v9029_v2  ;;  %v9037_v61 = vmax.f32 %v700_v18, %v701_v58 }
 0x141   : > { %7292 = vpow2.f32 %v1265_v15  ;;  %v9040_v19 = vsub.f32 %v8858_v11, %v696_v16  ;;  %v13999_v62 = vcombine.high %v8811_v21, %v8811_v21  ;;  %v9049_v9 = vrot.slane %v2130_v54, %v8692_v6 }
 0x142   : > { %v1134_v28 = vmul.f32 %v1126_v12, %v8914_v0  ;;  %7294 = vpow2.f32 %v785_v27  ;;  %v1267_v63 = vmul.f32 1.442695, %v1255_v59  ;;  %v1248_v18 = vand.u32 2147483647, %v9035_v29 }
 0x143   : > { %v9046_v13 = vadd.f32 %v13999_v62, %v1133_v5  ;;  %v9054_v11 = vrot.slane %v2129_v14, %v8692_v6  ;;  %v14000_v15 = vcombine.high %v8876_v34, %v8876_v34  ;;  %v811_v27 = vrot.slane %v9025_v57, 4 }
 0x144   : > { %v7283_v0 = vpop.eup %7282  ;;  %7296 = vpow2.f32 %v1267_v63  ;;  %v1256_v40 = vsub.f32 0.0, %v1248_v18  ;;  %v14001_v59 = vcombine.low %v8965_v60, %v8973_v51  ;;  %v14002_v63 = vcombine.high %v8965_v60, %v8973_v51 }
 0x145   : > { %v9056_v16 = vpop.eup %7284  ;;  %v1275_v58 = vadd.f32 1.0, %v7283_v0  ;;  %v9059_v21 = vsub.f32 0.0, %v9046_v13  ;;  %v9064_v55 = vadd.f32 %v14000_v15, %v1134_v28  ;;  %v1278_v12 = vmul.f32 -0.5, %v7283_v0 }
 0x146   : > { %v7287_v7 = vpop.eup %7286  ;;  %v2161_v14 = vcombine.low %v9054_v11, %v9049_v9  ;;  %v2169_v34 = vrot.slane %v14001_v59, %v8692_v6  ;;  %v2176_v18 = vrot.slane %v14002_v63, %v8692_v6  ;;  %v1269_v15 = vmul.f32 1.442695, %v1256_v40 }
 0x147   : > { %7298 = vlog2.f32 %v1275_v58  ;;  %v1293_v5 = vadd.f32 1.0, %v7287_v7  ;;  %v1296_v28 = vmul.f32 -0.5, %v7287_v7  ;;  %v1249_v54 = vand.u32 2147483647, %v9059_v21 }
 0x148   : > { %v7289_v1 = vpop.eup %7288  ;;  %v9082_v4 = vadd.f32 %v9025_v57, %v811_v27  ;;  %v1279_v59 = vadd.f32 1.0, %v1278_v12  ;;  %v1281_v39 = vand.u32 2147483647, %v7283_v0  ;;  %v9087_v37 = vsub.f32 0.0, %v9064_v55 }
 0x149   : > { %7300 = vlog2.f32 %v1293_v5  ;;  %v9084_v52 = vpop.eup %7290  ;;  %v1284_v62 = vadd.f32 1.0, %v7289_v1  ;;  %v1299_v51 = vand.u32 2147483647, %v7287_v7  ;;  %v1287_v40 = vmul.f32 -0.5, %v7289_v1 }
 0x14a   : > { %7302 = vpow2.f32 %v1269_v15  ;;  %v817_v5 = vrot.slane %v9056_v16, 4  ;;  %v1297_v63 = vadd.f32 1.0, %v1296_v28  ;;  %v1290_v58 = vand.u32 2147483647, %v7289_v1 }
 0x14b   : > { %v7293_v60 = vpop.eup %7292  ;;  %7304 = vlog2.f32 %v1284_v62  ;;  %v1257_v26 = vsub.f32 0.0, %v1249_v54  ;;  %vm1227_vm4 = vcmp.ne.f32.partialorder %v8949_v32, %v8949_v32  ;;  %v1280_v36 = vmul.f32 %v7283_v0, %v1279_v59 }
 0x14c   : > { %v1302_v35 = vadd.f32 1.0, %v7293_v60  ;;  %v9090_v27 = vpop.eup %7294  ;;  %v1305_v31 = vmul.f32 -0.5, %v7293_v60  ;;  %vm9096_vm5 = vcmp.lt.f32.partialorder %v1281_v39, 0.0004427343  ;;  %v1250_v28 = vand.u32 2147483647, %v9087_v37 }
 0x14d   : > { %v1288_v62 = vadd.f32 1.0, %v1287_v40  ;;  %v1308_v56 = vand.u32 2147483647, %v7293_v60  ;;  %v2162_v24 = vcombine.high %v9054_v11, %v9049_v9  ;;  %v2183_v54 = vrot.slane %v2161_v14, %v8692_v6 }
 0x14e   : > { %7306 = vlog2.f32 %v1302_v35  ;;  %v7297_v12 = vpop.eup %7296  ;;  %vm1229_vm6 = vcmp.ne.f32.partialorder %v8962_v25, %v8962_v25  ;;  %v1298_v46 = vmul.f32 %v7287_v7, %v1297_v63  ;;  %vm9106_vm7 = vcmp.lt.f32.partialorder %v1299_v51, 0.0004427343 }
 0x14f   : > { %vm9110_vm8 = vcmp.lt.f32.partialorder %v1290_v58, 0.0004427343  ;;  %v1258_v0 = vsub.f32 0.0, %v1250_v28  ;;  %v1306_v40 = vadd.f32 1.0, %v1305_v31  ;;  %v1311_v48 = vadd.f32 1.0, %v7297_v12 }
 0x150   : > { %v1271_v9 = vmul.f32 1.442695, %v1257_v26  ;;  %v813_v11 = vrot.slane %v9082_v4, 2  ;;  %v1314_v57 = vmul.f32 -0.5, %v7297_v12  ;;  %v2190_v43 = vrot.slane %v2162_v24, %v8692_v6 }
 0x151   : > { %v7299_v59 = vpop.eup %7298  ;;  %v9116_v7 = vcombine.low %v2169_v34, %v2183_v54  ;;  %v1289_v63 = vmul.f32 %v7289_v1, %v1288_v62  ;;  %vm9118_vm9 = vcmp.lt.f32.partialorder %v1308_v56, 0.0004427343  ;;  %7308 = vlog2.f32 %v1311_v48 }
 0x152   : > { %v1277_v14 = vmul.f32 0.6931472, %v7299_v59  ;;  %v1273_v28 = vmul.f32 1.442695, %v1258_v0  ;;  %vm1228_vm10 = vcmp.ne.f32.partialorder %v8982_v17, %v8982_v17  ;;  %v1317_v59 = vand.u32 2147483647, %v7297_v12 }
 0x153   : > { %v7301_v51 = vpop.eup %7300  ;;  %v9126_v47 = vcombine.low %v2176_v18, %v2190_v43  ;;  %v14011_v1 = vmax.f32 %v8949_v32, 0.0  ;;  %v1307_v34 = vmul.f32 %v7293_v60, %v1306_v40  ;;  %7310 = vpow2.f32 %v1271_v9 }
 0x154   : > { %v1283_v31 = vsel %vm9096_vm5, %v1280_v36, %v1277_v14  ;;  %v1295_v26 = vmul.f32 0.6931472, %v7301_v51  ;;  %v9128_v24 = vpop.eup %7302  ;;  %v9133_v48 = vadd.f32 %v9056_v16, %v817_v5  ;;  %vm1230_vm11 = vcmp.ne.f32.partialorder %v8997_v3, %v8997_v3 }
 0x155   : > { %v1347_v56 = vadd.f32 %v1283_v31, %v14011_v1  ;;  %v7305_v62 = vpop.eup %7304  ;;  %v1315_v15 = vadd.f32 1.0, %v1314_v57  ;;  %v1320_v43 = vadd.f32 1.0, %v9128_v24  ;;  %v9141_v18 = vadd.f32 %v813_v11, %v9082_v4 }
 0x156   : > { %v1301_v36 = vsel %vm9106_vm7, %v1298_v46, %v1295_v26  ;;  %v14012_v5 = vmax.f32 %v8962_v25, 0.0  ;;  %v1286_v0 = vmul.f32 0.6931472, %v7305_v62  ;;  %7312 = vpow2.f32 %v1273_v28 }
 0x157   : > { %v1355_v60 = vsel %vm1227_vm4, %v8949_v32, %v1347_v56  ;;  %vm9150_vm12 = vcmp.lt.f32.partialorder %v1317_v59, 0.0004427343  ;;  %7314 = vlog2.f32 %v1320_v43  ;;  %v1323_v4 = vmul.f32 -0.5, %v9128_v24 }
 0x158   : > { %v1349_v54 = vadd.f32 %v1301_v36, %v14012_v5  ;;  %v7307_v46 = vpop.eup %7306  ;;  %v1363_v39 = vadd.f32 %v1355_v60, %v8943_v42  ;;  %v1775_v40 = vadd.f32 1e-06, %v1355_v60  ;;  %v1371_v9 = vsub.f32 0.0, %v1355_v60 }
 0x159   : > { %v1292_v11 = vsel %vm9110_vm8, %v1289_v63, %v1286_v0  ;;  %v1304_v14 = vmul.f32 0.6931472, %v7307_v46  ;;  %v1316_v31 = vmul.f32 %v7297_v12, %v1315_v15  ;;  %v14015_v1 = vmax.f32 %v8982_v17, 0.0 }
 0x15a   : > { %v1357_v32 = vsel %vm1229_vm6, %v8962_v25, %v1349_v54  ;;  %v1783_v51 = vsub.f32 0.0, %v1775_v40  ;;  %v1791_v42 = vadd.f32 1e-06, %v1363_v39  ;;  %vm1231_vm13 = vcmp.ne.f32.partialorder %v9015_v50, %v9015_v50 }
 0x15b   : > { %v1365_v28 = vadd.f32 %v1357_v32, %v8954_v30  ;;  %v1373_v26 = vsub.f32 0.0, %v1357_v32  ;;  %v1777_v59 = vadd.f32 1e-06, %v1357_v32  ;;  %v1348_v56 = vadd.f32 %v1292_v11, %v14015_v1  ;;  %v7309_v30 = vpop.eup %7308 }
 0x15c   : > { %v1310_v62 = vsel %vm9118_vm9, %v1307_v34, %v1304_v14  ;;  %v1799_v25 = vsub.f32 %v1783_v51, %v1791_v42  ;;  %v14016_v63 = vmax.f32 %v8997_v3, 0.0  ;;  %v1326_v43 = vand.u32 2147483647, %v9128_v24 }
 0x15d   : > { %v1793_v35 = vadd.f32 1e-06, %v1365_v28  ;;  %v1379_v12 = vmul.f32 1.442695, %v1371_v9  ;;  %v1785_v15 = vsub.f32 0.0, %v1777_v59  ;;  %v1356_v60 = vsel %vm1228_vm10, %v8982_v17, %v1348_v56  ;;  %v9177_v46 = vpop.eup %7310 }
 0x15e   : > { %v1350_v36 = vadd.f32 %v1310_v62, %v14016_v63  ;;  %v1324_v58 = vadd.f32 1.0, %v1323_v4  ;;  %v1867_v34 = vadd.f32 %v8884_v45, %v1799_v25  ;;  %v1364_v5 = vadd.f32 %v1356_v60, %v8969_v8 }
 0x15f   : > { %v1372_v54 = vsub.f32 0.0, %v1356_v60  ;;  %v1776_v0 = vadd.f32 1e-06, %v1356_v60  ;;  %v1383_v39 = vmul.f32 1.442695, %v1373_v26  ;;  %v1801_v40 = vsub.f32 %v1785_v15, %v1793_v35 }
 0x160   : > { %v1358_v9 = vsel %vm1230_vm11, %v8997_v3, %v1350_v36  ;;  %v1313_v32 = vmul.f32 0.6931472, %v7309_v30  ;;  %v1792_v17 = vadd.f32 1e-06, %v1364_v5  ;;  %v9184_v51 = vpop.eup %7312  ;;  %v14017_v8 = vcombine.high %v8884_v45, %v8884_v45 }
 0x161   : > { %v1381_v11 = vmul.f32 1.442695, %v1372_v54  ;;  %v1784_v14 = vsub.f32 0.0, %v1776_v0  ;;  %v1366_v4 = vadd.f32 %v1358_v9, %v8987_v49  ;;  %v1374_v28 = vsub.f32 0.0, %v1358_v9  ;;  %v7315_v1 = vpop.eup %7314 }
 0x162   : > { %v1869_v42 = vadd.f32 %v14017_v8, %v1801_v40  ;;  %v1778_v26 = vadd.f32 1e-06, %v1358_v9  ;;  %v1319_v59 = vsel %vm9150_vm12, %v1316_v31, %v1313_v32  ;;  %v14018_v62 = vmax.f32 %v9015_v50, 0.0 }
 0x163   : > { %7316 = vpow2.f32 %v1381_v11  ;;  %v1800_v3 = vsub.f32 %v1784_v14, %v1792_v17  ;;  %v1794_v56 = vadd.f32 1e-06, %v1366_v4  ;;  %v1385_v35 = vmul.f32 1.442695, %v1374_v28 }
 0x164   : > { %v1351_v25 = vadd.f32 %v1319_v59, %v14018_v62  ;;  %v1786_v49 = vsub.f32 0.0, %v1778_v26  ;;  %v1322_v63 = vmul.f32 0.6931472, %v7315_v1  ;;  %v1329_v36 = vadd.f32 1.0, %v9177_v46 }
 0x165   : > { %7318 = vpow2.f32 %v1379_v12  ;;  %v1868_v45 = vadd.f32 %v8889_v53, %v1800_v3  ;;  %v1325_v31 = vmul.f32 %v9128_v24, %v1324_v58  ;;  %vm1327_vm14 = vcmp.lt.f32.partialorder %v1326_v43, 0.0004427343 }
 0x166   : > { %v1359_v57 = vsel %vm1231_vm13, %v9015_v50, %v1351_v25  ;;  %7320 = vpow2.f32 %v1385_v35  ;;  %v1802_v30 = vsub.f32 %v1786_v49, %v1794_v56  ;;  %v14019_v12 = vcombine.high %v8889_v53, %v8889_v53 }
 0x167   : > { %v1367_v15 = vadd.f32 %v1359_v57, %v9008_v10  ;;  %v1883_v60 = vcombine.low %v1867_v34, %v1868_v45  ;;  %v1779_v5 = vadd.f32 1e-06, %v1359_v57  ;;  %v1328_v54 = vsel %vm1327_vm14, %v1325_v31, %v1322_v63 }
 0x168   : > { %7322 = vlog2.f32 %v1329_v36  ;;  %v1870_v0 = vadd.f32 %v14019_v12, %v1802_v30  ;;  %v14020_v9 = vmax.f32 %v9035_v29, 0.0  ;;  %v1375_v32 = vsub.f32 0.0, %v1359_v57 }
 0x169   : > { %7324 = vpow2.f32 %v1383_v39  ;;  %v1795_v40 = vadd.f32 1e-06, %v1367_v15  ;;  %v1787_v24 = vsub.f32 0.0, %v1779_v5  ;;  %vm1232_vm15 = vcmp.ne.f32.partialorder %v9035_v29, %v9035_v29 }
 0x16a   : > { %v1352_v50 = vadd.f32 %v1328_v54, %v14020_v9  ;;  %v819_v10 = vrot.slane %v9133_v48, 2  ;;  %v1884_v43 = vcombine.low %v1869_v42, %v1870_v0  ;;  %v1332_v34 = vmul.f32 -0.5, %v9177_v46 }
 0x16b   : > { %v1338_v39 = vadd.f32 1.0, %v9184_v51  ;;  %v1803_v53 = vsub.f32 %v1787_v24, %v1795_v40  ;;  %v9214_v4 = vrot.slane %v1883_v60, %v8692_v6  ;;  %v815_v42 = vrot.slane %v9141_v18, 1 }
 0x16c   : > { %v1360_v58 = vsel %vm1232_vm15, %v9035_v29, %v1352_v50  ;;  %v9217_v8 = vrot.slane %v1884_v43, %v8692_v6  ;;  %v1387_v29 = vmul.f32 1.442695, %v1375_v32  ;;  %v1333_v56 = vadd.f32 1.0, %v1332_v34 }
 0x16d   : > { %v1368_v11 = vadd.f32 %v1360_v58, %v9029_v2  ;;  %v1376_v14 = vsub.f32 0.0, %v1360_v58  ;;  %v1780_v17 = vadd.f32 1e-06, %v1360_v58  ;;  %7326 = vlog2.f32 %v1338_v39  ;;  %v7317_v28 = vpop.eup %7316 }
 0x16e   : > { %v9221_v26 = vadd.f32 %v8907_v22, %v1803_v53  ;;  %v1915_v2 = vcombine.low %v9214_v4, %v9217_v8  ;;  %v1916_v3 = vcombine.high %v9214_v4, %v9217_v8  ;;  %v1341_v62 = vmul.f32 -0.5, %v9184_v51 }
 0x16f   : > { %v1788_v59 = vsub.f32 0.0, %v1780_v17  ;;  %v1796_v1 = vadd.f32 1e-06, %v1368_v11  ;;  %v7319_v25 = vpop.eup %7318  ;;  %v1389_v35 = vmul.f32 1.442695, %v1376_v14  ;;  %v820_v36 = vadd.f32 %v819_v10, %v9133_v48 }
 0x170   : > { %v1335_v63 = vand.u32 2147483647, %v9177_v46  ;;  %v7321_v45 = vpop.eup %7320  ;;  %v1225_v57 = vmax.f32 %v9059_v21, 0.0  ;;  %vm1233_vm0 = vcmp.ne.f32.partialorder %v9059_v21, %v9059_v21  ;;  %v1226_v31 = vmax.f32 %v9087_v37, 0.0 }
 0x171   : > { %v1804_v49 = vsub.f32 %v1788_v59, %v1796_v1  ;;  %v816_v30 = vadd.f32 %v815_v42, %v9141_v18  ;;  %v1403_v60 = vcombine.low %v7319_v25, %v7317_v28  ;;  %v1344_v54 = vand.u32 2147483647, %v9184_v51 }
 0x172   : > { %v7323_v15 = vpop.eup %7322  ;;  %v821_v12 = vrot.slane %v820_v36, 1  ;;  %7328 = vpow2.f32 %v1387_v29  ;;  %v1334_v40 = vmul.f32 %v9177_v46, %v1333_v56  ;;  %v1342_v9 = vadd.f32 1.0, %v1341_v62 }
 0x173   : > { %v9236_v5 = vadd.f32 %v8910_v23, %v1804_v49  ;;  %v7325_v0 = vpop.eup %7324  ;;  %v1331_v48 = vmul.f32 0.6931472, %v7323_v15  ;;  %7330 = vpow2.f32 %v1389_v35  ;;  %vm1336_vm1 = vcmp.lt.f32.partialorder %v1335_v63, 0.0004427343 }
 0x174   : > { %v1404_v50 = vcombine.low %v7325_v0, %v7321_v45  ;;  %vm1234_vm2 = vcmp.ne.f32.partialorder %v9087_v37, %v9087_v37  ;;  %v822_v24 = vadd.f32 %v821_v12, %v820_v36  ;;  %v14021_v10 = vrot.slane %v9084_v52, 4 }
 0x175   : > { %v1885_v32 = vcombine.low %v9221_v26, %v9236_v5  ;;  %v1337_v18 = vsel %vm1336_vm1, %v1334_v40, %v1331_v48  ;;  %v829_v58 = vrot.slane %v9090_v27, 4  ;;  %v9249_v46 = vrot.slane %v1403_v60, %v8692_v6 }
 0x176   : > { %v824_v43 = vadd.f32 %v9084_v52, %v14021_v10  ;;  %v9252_v34 = vrot.slane %v1915_v2, %v8692_v6  ;;  %v1353_v39 = vadd.f32 %v1337_v18, %v1225_v57  ;;  %vm9254_vm3 = vcmp.lt.f32.partialorder %v1344_v54, 0.0004427343 }
 0x177   : > { %v7327_v11 = vpop.eup %7326  ;;  %v1343_v14 = vmul.f32 %v9184_v51, %v1342_v9  ;;  %7332 = vlog2.f32 %v816_v30  ;;  %v830_v42 = vadd.f32 %v9090_v27, %v829_v58  ;;  %v9261_v28 = vrot.slane %v1404_v50, %v8692_v6 }
 0x178   : > { %v825_v17 = vrot.slane %v824_v43, 2  ;;  %v1361_v29 = vsel %vm1233_vm0, %v9059_v21, %v1353_v39  ;;  %v1340_v26 = vmul.f32 0.6931472, %v7327_v11  ;;  %7334 = vrcp.f32 %v816_v30  ;;  %v9302_v11 = vld [vmem:[%s13800_s5] sm:$0xff] }
 0x179   : > { %v1369_v59 = vadd.f32 %v1361_v29, %v9046_v13  ;;  %v1377_v1 = vsub.f32 0.0, %v1361_v29  ;;  %v1781_v2 = vadd.f32 1e-06, %v1361_v29  ;;  %7336 = vlog2.f32 %v822_v24 }
 0x17a   : > { %v1346_v51 = vsel %vm9254_vm3, %v1343_v14, %v1340_v26  ;;  %v826_v56 = vadd.f32 %v825_v17, %v824_v43  ;;  %v831_v62 = vrot.slane %v830_v42, 2  ;;  %v787_v25 = vmul.f32 1.442695, %v9040_v19 }
 0x17b   : > { %v1391_v35 = vmul.f32 1.442695, %v1377_v1  ;;  %v1789_v49 = vsub.f32 0.0, %v1781_v2  ;;  %v1797_v63 = vadd.f32 1e-06, %v1369_v59  ;;  %v9273_v21 = vsub.f32 %v8879_v20, %v9037_v61  ;;  %v14027_v59 = vld [vmem:[#allocation28_spill] sm:$0xff] }
 0x17c   : > { %v1354_v36 = vadd.f32 %v1346_v51, %v1226_v31  ;;  %v827_v45 = vrot.slane %v826_v56, 1  ;;  %v832_v13 = vadd.f32 %v831_v62, %v830_v42  ;;  %7338 = vpow2.f32 %v787_v25  ;;  %v7329_v57 = vpop.eup %7328  ;;  %v14028_v25 = vld [vmem:[#allocation26_spill] sm:$0xff] }
 0x17d   : > { %v1435_v30 = vcombine.low %v9249_v46, %v9261_v28  ;;  %v9281_v15 = vrot.slane %v1916_v3, %v8692_v6  ;;  %v1805_v60 = vsub.f32 %v1789_v49, %v1797_v63  ;;  %7340 = vrcp.f32 %v822_v24  ;;  %v7331_v5 = vpop.eup %7330  ;;  %v507_v24 = vpop.permute.xlu0 %506 }
 0x17e   : > { %7342 = vpow2.f32 %v1391_v35  ;;  %v1362_v20 = vsel %vm1234_vm2, %v9087_v37, %v1354_v36  ;;  %v828_v61 = vadd.f32 %v827_v45, %v826_v56  ;;  %v833_v31 = vrot.slane %v832_v13, 1 }
 0x17f   : > { %v14024_v54 = vcombine.high %v8907_v22, %v8907_v22  ;;  %v1370_v0 = vadd.f32 %v1362_v20, %v9064_v55  ;;  %v1378_v4 = vsub.f32 0.0, %v1362_v20  ;;  %v1782_v8 = vadd.f32 1e-06, %v1362_v20 }
 0x180   : > { %v1436_v3 = vcombine.high %v9249_v46, %v9261_v28  ;;  %v834_v48 = vadd.f32 %v833_v31, %v832_v13  ;;  %7344 = vrcp.f32 %v828_v61  ;;  %v789_v40 = vmul.f32 1.442695, %v9273_v21  ;;  %v514_v13 = vpop.permute.xlu1 %513 }
 0x181   : > { %v1873_v12 = vadd.f32 %v14024_v54, %v1805_v60  ;;  %v7333_v9 = vpop.eup %7332  ;;  %v1393_v50 = vmul.f32 1.442695, %v1378_v4  ;;  %v1790_v37 = vsub.f32 0.0, %v1782_v8  ;;  %v1798_v18 = vadd.f32 1e-06, %v1370_v0  ;;  %v14029_v54 = vld [vmem:[#allocation33_spill] sm:$0xff] }
 0x182   : > { %7346 = vlog2.f32 %v828_v61  ;;  %v7335_v10 = vpop.eup %7334  ;;  %v1405_v22 = vcombine.low %v7329_v57, %v7331_v5  ;;  %v1907_v43 = vrot.slane %v1885_v32, %v8692_v6  ;;  %v14025_v55 = vrot.slane %v8940_v44, 4 }
 0x183   : > { %7348 = vrcp.f32 %v834_v48  ;;  %v7337_v46 = vpop.eup %7336  ;;  %v1806_v39 = vsub.f32 %v1790_v37, %v1798_v18  ;;  %v709_v53 = vrot.slane %v9000_v33, 4  ;;  %v2513_v14 = vrot.slane %v9302_v11, %v8728_v41 }
 0x184   : > { %v704_v58 = vmax.f32 %v8940_v44, %v14025_v55  ;;  %7350 = vpow2.f32 %v1393_v50  ;;  %v9306_v17 = vmul.f32 0.6931472, %v7333_v9  ;;  %v9309_v42 = vadd.f32 %v507_v24, %v8823_v38 }
 0x185   : > { %7352 = vlog2.f32 %v834_v48  ;;  %v14026_v28 = vcombine.high %v8910_v23, %v8910_v23  ;;  %v710_v26 = vmax.f32 %v9000_v33, %v709_v53  ;;  %2515 = vbcast.lane.b32.xlu1 %v2513_v14, 256  ;;  %v9316_v1 = vadd.f32 %v507_v24, %v14027_v59 }
 0x186   : > { %v705_v32 = vrot.slane %v704_v58, 2  ;;  %7354 = vpow2.f32 %v789_v40  ;;  %v9318_v2 = vpop.eup %7338  ;;  %v958_v51 = vmul.f32 0.6931472, %v7337_v46  ;;  %v715_v62 = vrot.slane %v9309_v42, 4  ;;  %v14031_v40 = vld [vmem:[#allocation30_spill] sm:$0xff] }
 0x187   : > { %v1874_v29 = vadd.f32 %v14026_v28, %v1806_v39  ;;  %v2520_v35 = vrot.slane %v9302_v11, %v14028_v25  ;;  %v7341_v49 = vpop.eup %7340  ;;  %v9324_v23 = vrot.slane %v1435_v30, %v8692_v6  ;;  %v9327_v63 = vrot.slane %v1436_v3, %v8692_v6  ;;  %v14030_v3 = vld [vmem:[#allocation29_spill] sm:$0xff] }
 0x188   : > { %v706_v56 = vmax.f32 %v704_v58, %v705_v32  ;;  %v835_v45 = vrot.slane %v9318_v2, 4  ;;  %v7343_v57 = vpop.eup %7342  ;;  %v1427_v60 = vrot.slane %v1405_v22, %v8692_v6  ;;  %v711_v20 = vrot.slane %v710_v26, 2 }
 0x189   : > { %v1886_v36 = vcombine.low %v1873_v12, %v1874_v29  ;;  %v721_v61 = vrot.slane %v9316_v1, 4  ;;  %2522 = vbcast.lane.b32.xlu0 %v2520_v35, 256  ;;  %v9334_v30 = vmul.f32 %v7335_v10, %v14029_v54  ;;  %v9338_v12 = vmax.f32 %v9309_v42, %v715_v62 }
 0x18a   : > { %v707_v5 = vrot.slane %v706_v56, 1  ;;  %v836_v0 = vadd.f32 %v9318_v2, %v835_v45  ;;  %v7345_v4 = vpop.eup %7344  ;;  %v940_v8 = vmul.f32 %v7341_v49, %v9056_v16  ;;  %v987_v48 = vsub.f32 %v14030_v3, %v9306_v17 }
 0x18b   : > { %v1914_v31 = vrot.slane %v1886_v36, %v8692_v6  ;;  %v988_v9 = vsub.f32 %v14031_v40, %v958_v51  ;;  %v9345_v50 = vadd.f32 %v514_v13, %v8823_v38  ;;  %v9348_v22 = vadd.f32 %v514_v13, %v14027_v59  ;;  %v14032_v59 = vld [vmem:[#allocation31_spill] sm:$0xff] }
 0x18c   : > { %v7347_v37 = vpop.eup %7346  ;;  %v837_v10 = vrot.slane %v836_v0, 2  ;;  %v9350_v46 = vmax.f32 %v706_v56, %v707_v5  ;;  %v9352_v16 = vmax.f32 %v710_v26, %v711_v20  ;;  %v9355_v39 = vmax.f32 %v9316_v1, %v721_v61 }
 0x18d   : > { %v1917_v18 = vcombine.low %v1907_v43, %v1914_v31  ;;  %v1918_v24 = vcombine.high %v1907_v43, %v1914_v31  ;;  %v7349_v55 = vpop.eup %7348  ;;  %v960_v58 = vmul.f32 0.6931472, %v7347_v37  ;;  %v717_v43 = vrot.slane %v9338_v12, 2 }
 0x18e   : > { %v7351_v53 = vpop.eup %7350  ;;  %v838_v17 = vadd.f32 %v837_v10, %v836_v0  ;;  %v941_v29 = vmul.f32 %v7345_v4, %v9084_v52  ;;  %v727_v26 = vrot.slane %v9345_v50, 4  ;;  %v942_v13 = vmul.f32 %v7349_v55, %v9090_v27 }
 0x18f   : > { %v1939_v38 = vrot.slane %v1917_v18, %v8692_v6  ;;  %v1946_v14 = vrot.slane %v1918_v24, %v8692_v6  ;;  %v7353_v32 = vpop.eup %7352  ;;  %v1406_v28 = vcombine.low %v7343_v57, %v7351_v53  ;;  %v989_v51 = vsub.f32 %v14032_v59, %v960_v58 }
 0x190   : > { %v9363_v56 = vpop.eup %7354  ;;  %v962_v49 = vmul.f32 0.6931472, %v7353_v32  ;;  %v839_v36 = vrot.slane %v838_v17, 1  ;;  %v713_v57 = vrot.slane %v9352_v16, 1  ;;  %vm13961_vm4 = vcmask 1041409  }
 0x191   : > { %v9366_v62 = vcombine.low %v9252_v34, %v1939_v38  ;;  %v9369_v35 = vcombine.low %v9281_v15, %v1946_v14  ;;  %v1434_v45 = vrot.slane %v1406_v28, %v8692_v6  ;;  %v841_v52 = vrot.slane %v9363_v56, 4  ;;  %v14034_v34 = vld [vmem:[#allocation32_spill] sm:$0xff] }
 0x192   : > { %v990_v61 = vsub.f32 %v14034_v34, %v962_v49  ;;  %v840_v0 = vadd.f32 %v839_v36, %v838_v17  ;;  %vm13960_vm5 = vcmask 1042434   ;;  %vm13959_vm6 = vcmask 1043459  }
 0x193   : > { %14033 = vst [vmem:[#allocation28_spill] sm:$0xff] %v9369_v35  ;;  %v9376_v5 = vadd.f32 %v9366_v62, %v987_v48  ;;  %v9379_v20 = vadd.f32 %v9369_v35, %v988_v9  ;;  %v9383_v15 = vadd.f32 %v9366_v62, %v989_v51  ;;  %v1437_v31 = vcombine.low %v1427_v60, %v1434_v45 }
 0x194   : > { %v1438_v54 = vcombine.high %v1427_v60, %v1434_v45  ;;  %v842_v27 = vadd.f32 %v9363_v56, %v841_v52  ;;  %v9389_v48 = vadd.f32 %v9369_v35, %v990_v61  ;;  %7356 = vrcp.f32 %v840_v0 }
 0x195   : > { %v1967_v4 = vrot.slane %v9376_v5, 4  ;;  %v1973_v3 = vrot.slane %v9379_v20, 4  ;;  %v1979_v40 = vrot.slane %v9383_v15, 4  ;;  %v1459_v9 = vrot.slane %v1437_v31, %v8692_v6 }
 0x196   : > { %v1466_v37 = vrot.slane %v1438_v54, %v8692_v6  ;;  %v843_v18 = vrot.slane %v842_v27, 2  ;;  %v1985_v55 = vrot.slane %v9389_v48, 4  ;;  %7358 = vlog2.f32 %v840_v0 }
 0x197   : > { %v1968_v60 = vmax.f32 %v9376_v5, %v1967_v4  ;;  %v1974_v24 = vmax.f32 %v9379_v20, %v1973_v3  ;;  %v1980_v10 = vmax.f32 %v9383_v15, %v1979_v40  ;;  %v9399_v58 = vcombine.low %v9324_v23, %v1459_v9 }
 0x198   : > { %v9402_v53 = vcombine.low %v9327_v63, %v1466_v37  ;;  %v844_v38 = vadd.f32 %v843_v18, %v842_v27  ;;  %v1986_v28 = vmax.f32 %v9389_v48, %v1985_v55  ;;  %vm13958_vm7 = vcmask 1044484  }
 0x199   : > { %v1969_v14 = vrot.slane %v1968_v60, 2  ;;  %v1975_v17 = vrot.slane %v1974_v24, 2  ;;  %v1981_v32 = vrot.slane %v1980_v10, 2  ;;  %v1471_v59 = vmul.f32 %v9399_v58, %v9334_v30 }
 0x19a   : > { %v1472_v51 = vmul.f32 %v9402_v53, %v940_v8  ;;  %v1473_v49 = vmul.f32 %v9399_v58, %v941_v29  ;;  %v1474_v23 = vmul.f32 %v9402_v53, %v942_v13  ;;  %v1987_v52 = vrot.slane %v1986_v28, 2 }
 0x19b   : > { %v1970_v36 = vmax.f32 %v1968_v60, %v1969_v14  ;;  %v1976_v45 = vmax.f32 %v1974_v24, %v1975_v17  ;;  %v1982_v63 = vmax.f32 %v1980_v10, %v1981_v32  ;;  %v1487_v34 = vrot.slane %v1471_v59, 4 }
 0x19c   : > { %v1493_v61 = vrot.slane %v1472_v51, 4  ;;  %v1499_v31 = vrot.slane %v1473_v49, 4  ;;  %v1505_v54 = vrot.slane %v1474_v23, 4  ;;  %v1988_v3 = vmax.f32 %v1986_v28, %v1987_v52 }
 0x19d   : > { %v1971_v0 = vrot.slane %v1970_v36, 1  ;;  %v1977_v27 = vrot.slane %v1976_v45, 1  ;;  %v1983_v4 = vrot.slane %v1982_v63, 1  ;;  %v1488_v40 = vadd.f32 %v1487_v34, %v1471_v59 }
 0x19e   : > { %v1494_v30 = vadd.f32 %v1493_v61, %v1472_v51  ;;  %v1500_v9 = vadd.f32 %v1499_v31, %v1473_v49  ;;  %v1506_v8 = vadd.f32 %v1505_v54, %v1474_v23  ;;  %v1989_v18 = vrot.slane %v1988_v3, 1  ;;  %v7357_v60 = vpop.eup %7356 }
 0x19f   : > { %v9410_v37 = vmax.f32 %v1970_v36, %v1971_v0  ;;  %v9412_v29 = vmax.f32 %v1976_v45, %v1977_v27  ;;  %v9414_v13 = vmax.f32 %v1982_v63, %v1983_v4  ;;  %v1489_v24 = vrot.slane %v1488_v40, 2 }
 0x1a0   : > { %v1495_v10 = vrot.slane %v1494_v30, 2  ;;  %v1501_v55 = vrot.slane %v1500_v9, 2  ;;  %v1507_v14 = vrot.slane %v1506_v8, 2  ;;  %v9420_v28 = vmax.f32 %v1988_v3, %v1989_v18  ;;  %v7359_v51 = vpop.eup %7358 }
 0x1a1   : > { %v2063_v17 = vsub.f32 %v9376_v5, %v9410_v37  ;;  %v2064_v32 = vsub.f32 %v9379_v20, %v9412_v29  ;;  %v2065_v59 = vsub.f32 %v9383_v15, %v9414_v13  ;;  %v1490_v49 = vadd.f32 %v1489_v24, %v1488_v40 }
 0x1a2   : > { %v1496_v23 = vadd.f32 %v1495_v10, %v1494_v30  ;;  %v1502_v36 = vadd.f32 %v1501_v55, %v1500_v9  ;;  %v1508_v45 = vadd.f32 %v1507_v14, %v1506_v8  ;;  %v2066_v34 = vsub.f32 %v9389_v48, %v9420_v28 }
 0x1a3   : > { %v2079_v63 = vmul.f32 1.442695, %v2063_v17  ;;  %v2081_v52 = vmul.f32 1.442695, %v2064_v32  ;;  %v2083_v61 = vmul.f32 1.442695, %v2065_v59  ;;  %v943_v15 = vmul.f32 %v7357_v60, %v9318_v2 }
 0x1a4   : > { %v1491_v5 = vrot.slane %v1490_v49, 1  ;;  %v1497_v31 = vrot.slane %v1496_v23, 1  ;;  %v1503_v54 = vrot.slane %v1502_v36, 1  ;;  %v1509_v20 = vrot.slane %v1508_v45, 1 }
 0x1a5   : > { %7360 = vpow2.f32 %v2079_v63  ;;  %v2085_v0 = vmul.f32 1.442695, %v2066_v34  ;;  %v845_v27 = vrot.slane %v844_v38, 1  ;;  %v964_v8 = vmul.f32 0.6931472, %v7359_v51 }
 0x1a6   : > { %v1492_v4 = vadd.f32 %v1491_v5, %v1490_v49  ;;  %v1498_v3 = vadd.f32 %v1497_v31, %v1496_v23  ;;  %7362 = vpow2.f32 %v2081_v52  ;;  %v1504_v40 = vadd.f32 %v1503_v54, %v1502_v36 }
 0x1a7   : > { %v1510_v30 = vadd.f32 %v1509_v20, %v1508_v45  ;;  %7364 = vpow2.f32 %v2083_v61  ;;  %v846_v9 = vadd.f32 %v845_v27, %v844_v38  ;;  %v991_v55 = vsub.f32 %v9040_v19, %v964_v8 }
 0x1a8   : > { %v1583_v18 = vmul.f32 0.999999, %v1492_v4  ;;  %v1584_v48 = vmul.f32 0.999999, %v1498_v3  ;;  %v1585_v24 = vmul.f32 0.999999, %v1504_v40  ;;  %7366 = vpow2.f32 %v2085_v0 }
 0x1a9   : > { %v1586_v10 = vmul.f32 0.999999, %v1510_v30  ;;  %7368 = vrcp.f32 %v846_v9  ;;  %v1475_v14 = vmul.f32 %v9399_v58, %v943_v15  ;;  %v9430_v49 = vadd.f32 %v9366_v62, %v991_v55 }
 0x1aa   : > { %v1599_v17 = vadd.f32 5e-07, %v1583_v18  ;;  %v1600_v2 = vadd.f32 5e-07, %v1584_v48  ;;  %v1601_v60 = vadd.f32 5e-07, %v1585_v24  ;;  %7370 = vlog2.f32 %v846_v9 }
 0x1ab   : > { %v1602_v32 = vadd.f32 5e-07, %v1586_v10  ;;  %v1511_v59 = vrot.slane %v1475_v14, 4  ;;  %v9434_v38 = vsub.f32 %v8940_v44, %v9350_v46  ;;  %v9439_v34 = vmax.f32 %v9352_v16, %v713_v57 }
 0x1ac   : > { %v1615_v51 = vmul.f32 100.0, %v1599_v17  ;;  %v1616_v23 = vmul.f32 100.0, %v1600_v2  ;;  %v1679_v36 = vsub.f32 1.0, %v1599_v17  ;;  %v1680_v45 = vsub.f32 1.0, %v1600_v2 }
 0x1ad   : > { %v1617_v19 = vmul.f32 100.0, %v1601_v60  ;;  %v1681_v63 = vsub.f32 1.0, %v1601_v60  ;;  %v1682_v52 = vsub.f32 1.0, %v1602_v32  ;;  %v1512_v31 = vadd.f32 %v1511_v59, %v1475_v14 }
 0x1ae   : > { %7372 = vlog2.f32 %v1615_v51  ;;  %v1695_v61 = vmul.f32 100.0, %v1679_v36  ;;  %v1696_v5 = vmul.f32 100.0, %v1680_v45  ;;  %v1618_v44 = vmul.f32 100.0, %v1602_v32 }
 0x1af   : > { %v7361_v54 = vpop.eup %7360  ;;  %7374 = vlog2.f32 %v1616_v23  ;;  %v1991_v46 = vrot.slane %v9430_v49, 4  ;;  %v791_v20 = vmul.f32 1.442695, %v9434_v38  ;;  %v1697_v15 = vmul.f32 100.0, %v1681_v63 }
 0x1b0   : > { %v7363_v0 = vpop.eup %7362  ;;  %7376 = vlog2.f32 %v1695_v61  ;;  %v2195_v27 = vmul.f32 %v7361_v54, %v9116_v7  ;;  %v1513_v4 = vrot.slane %v1512_v31, 2  ;;  %v1698_v57 = vmul.f32 100.0, %v1682_v52 }
 0x1b1   : > { %v7365_v3 = vpop.eup %7364  ;;  %7378 = vlog2.f32 %v1696_v5  ;;  %v2196_v16 = vmul.f32 %v7363_v0, %v9126_v47  ;;  %v1992_v40 = vmax.f32 %v9430_v49, %v1991_v46  ;;  %vm13957_vm9 = vcmask 1045509  }
 0x1b2   : > { %v7367_v30 = vpop.eup %7366  ;;  %v2211_v9 = vrot.slane %v2195_v27, 4  ;;  %7380 = vlog2.f32 %v1617_v19  ;;  %v2197_v8 = vmul.f32 %v7365_v3, %v9116_v7  ;;  %v1514_v18 = vadd.f32 %v1513_v4, %v1512_v31 }
 0x1b3   : > { %v7369_v48 = vpop.eup %7368  ;;  %v2217_v24 = vrot.slane %v2196_v16, 4  ;;  %7382 = vlog2.f32 %v1618_v44  ;;  %v2198_v10 = vmul.f32 %v7367_v30, %v9126_v47  ;;  %v1993_v55 = vrot.slane %v1992_v40, 2 }
 0x1b4   : > { %v7371_v14 = vpop.eup %7370  ;;  %v2212_v17 = vadd.f32 %v2211_v9, %v2195_v27  ;;  %7384 = vlog2.f32 %v1697_v15  ;;  %v2223_v2 = vrot.slane %v2197_v8, 4  ;;  %v944_v60 = vmul.f32 %v7369_v48, %v9363_v56 }
 0x1b5   : > { %v2218_v32 = vadd.f32 %v2217_v24, %v2196_v16  ;;  %7386 = vlog2.f32 %v1698_v57  ;;  %v2229_v59 = vrot.slane %v2198_v10, 4  ;;  %v966_v51 = vmul.f32 0.6931472, %v7371_v14 }
 0x1b6   : > { %v2213_v23 = vrot.slane %v2212_v17, 2  ;;  %v2224_v36 = vadd.f32 %v2223_v2, %v2197_v8  ;;  %v1476_v45 = vmul.f32 %v9402_v53, %v944_v60  ;;  %7388 = vpow2.f32 %v791_v20 }
 0x1b7   : > { %v2219_v19 = vrot.slane %v2218_v32, 2  ;;  %v2230_v63 = vadd.f32 %v2229_v59, %v2198_v10  ;;  %v992_v52 = vsub.f32 %v9273_v21, %v966_v51  ;;  %v1515_v61 = vrot.slane %v1514_v18, 1 }
 0x1b8   : > { %v7373_v5 = vpop.eup %7372  ;;  %v2214_v31 = vadd.f32 %v2213_v23, %v2212_v17  ;;  %v2225_v54 = vrot.slane %v2224_v36, 2  ;;  %v1517_v44 = vrot.slane %v1476_v45, 4  ;;  %v1994_v46 = vmax.f32 %v1992_v40, %v1993_v55 }
 0x1b9   : > { %v7375_v56 = vpop.eup %7374  ;;  %v1632_v0 = vmul.f32 0.6931472, %v7373_v5  ;;  %v2220_v27 = vadd.f32 %v2219_v19, %v2218_v32  ;;  %v2231_v15 = vrot.slane %v2230_v63, 2  ;;  %v9452_v4 = vadd.f32 %v9369_v35, %v992_v52 }
 0x1ba   : > { %v7377_v3 = vpop.eup %7376  ;;  %v1634_v16 = vmul.f32 0.6931472, %v7375_v56  ;;  %v2215_v20 = vrot.slane %v2214_v31, 1  ;;  %v2226_v57 = vadd.f32 %v2225_v54, %v2224_v36  ;;  %v1518_v30 = vadd.f32 %v1517_v44, %v1476_v45 }
 0x1bb   : > { %v7379_v9 = vpop.eup %7378  ;;  %v9454_v21 = vadd.f32 -4.6051702, %v1632_v0  ;;  %v1712_v8 = vmul.f32 0.6931472, %v7377_v3  ;;  %v2221_v48 = vrot.slane %v2220_v27, 1  ;;  %v2232_v24 = vadd.f32 %v2231_v15, %v2230_v63 }
 0x1bc   : > { %v7381_v10 = vpop.eup %7380  ;;  %v9456_v40 = vadd.f32 -4.6051702, %v1634_v16  ;;  %v1714_v55 = vmul.f32 0.6931472, %v7379_v9  ;;  %v2216_v14 = vadd.f32 %v2215_v20, %v2214_v31  ;;  %v2227_v17 = vrot.slane %v2226_v57, 1 }
 0x1bd   : > { %v7383_v2 = vpop.eup %7382  ;;  %v9458_v60 = vadd.f32 -4.6051702, %v1712_v8  ;;  %v2222_v32 = vadd.f32 %v2221_v48, %v2220_v27  ;;  %v1636_v59 = vmul.f32 0.6931472, %v7381_v10  ;;  %v2233_v51 = vrot.slane %v2232_v24, 1 }
 0x1be   : > { %v7385_v23 = vpop.eup %7384  ;;  %v9460_v36 = vadd.f32 -4.6051702, %v1714_v55  ;;  %7390 = vlog2.f32 %v2216_v14  ;;  %v1638_v45 = vmul.f32 0.6931472, %v7383_v2  ;;  %v2228_v19 = vadd.f32 %v2227_v17, %v2226_v57 }
 0x1bf   : > { %v7387_v52 = vpop.eup %7386  ;;  %v2307_v63 = vadd.f32 %v9458_v60, %v9454_v21  ;;  %7392 = vlog2.f32 %v2222_v32  ;;  %v1516_v5 = vadd.f32 %v1515_v61, %v1514_v18  ;;  %v9466_v31 = vsub.f32 %v9000_v33, %v9439_v34 }
 0x1c0   : > { %v9468_v54 = vpop.eup %7388  ;;  %v2308_v44 = vadd.f32 %v9460_v36, %v9456_v40  ;;  %v9472_v56 = vadd.f32 -4.6051702, %v1636_v59  ;;  %v9474_v0 = vadd.f32 -4.6051702, %v1638_v45  ;;  %v1716_v27 = vmul.f32 0.6931472, %v7385_v23 }
 0x1c1   : > { %v2323_v15 = vsub.f32 -1.0000005e-06, %v2307_v63  ;;  %v1718_v3 = vmul.f32 0.6931472, %v7387_v52  ;;  %v2234_v16 = vadd.f32 %v2233_v51, %v2232_v24  ;;  %7394 = vlog2.f32 %v2228_v19 }
 0x1c2   : > { %v2324_v20 = vsub.f32 -1.0000005e-06, %v2308_v44  ;;  %v9476_v18 = vadd.f32 -4.6051702, %v1716_v27  ;;  %v1519_v61 = vrot.slane %v1518_v30, 2  ;;  %v1995_v33 = vrot.slane %v1994_v46, 1 }
 0x1c3   : > { %v2339_v34 = vadd.f32 %v2323_v15, %v9410_v37  ;;  %v9479_v57 = vadd.f32 -4.6051702, %v1718_v3  ;;  %7396 = vlog2.f32 %v2234_v16  ;;  %v1587_v9 = vmul.f32 0.999999, %v1516_v5 }
 0x1c4   : > { %v2340_v8 = vadd.f32 %v2324_v20, %v9412_v29  ;;  %v2309_v48 = vadd.f32 %v9476_v18, %v9472_v56  ;;  %v1520_v10 = vadd.f32 %v1519_v61, %v1518_v30  ;;  %v733_v24 = vrot.slane %v9348_v22, 4 }
 0x1c5   : > { %v2310_v55 = vadd.f32 %v9479_v57, %v9474_v0  ;;  %v1603_v14 = vadd.f32 5e-07, %v1587_v9  ;;  %v9487_v17 = vmax.f32 %v1994_v46, %v1995_v33  ;;  %v718_v37 = vmax.f32 %v9338_v12, %v717_v43 }
 0x1c6   : > { %v2325_v2 = vsub.f32 -1.0000005e-06, %v2309_v48  ;;  %v1521_v32 = vrot.slane %v1520_v10, 1  ;;  %v1997_v29 = vrot.slane %v9452_v4, 4  ;;  %v793_v59 = vmul.f32 1.442695, %v9466_v31 }
 0x1c7   : > { %v2326_v51 = vsub.f32 -1.0000005e-06, %v2310_v55  ;;  %v1619_v30 = vmul.f32 100.0, %v1603_v14  ;;  %v1683_v23 = vsub.f32 1.0, %v1603_v14  ;;  %v847_v45 = vrot.slane %v9468_v54, 4 }
 0x1c8   : > { %v7391_v19 = vpop.eup %7390  ;;  %v2341_v52 = vadd.f32 %v2325_v2, %v9414_v13  ;;  %v1522_v46 = vadd.f32 %v1521_v32, %v1520_v10  ;;  %v1998_v63 = vmax.f32 %v9452_v4, %v1997_v29  ;;  %v2067_v12 = vsub.f32 %v9430_v49, %v9487_v17 }
 0x1c9   : > { %v7393_v43 = vpop.eup %7392  ;;  %v2372_v5 = vmul.f32 0.6931472, %v7391_v19  ;;  %v2342_v44 = vadd.f32 %v2326_v51, %v9420_v28  ;;  %7398 = vlog2.f32 %v1619_v30  ;;  %v1699_v27 = vmul.f32 100.0, %v1683_v23 }
 0x1ca   : > { %v2374_v15 = vmul.f32 0.6931472, %v7393_v43  ;;  %v1588_v3 = vmul.f32 0.999999, %v1522_v46  ;;  %v1999_v16 = vrot.slane %v1998_v63, 2  ;;  %7400 = vpow2.f32 %v793_v59 }
 0x1cb   : > { %v7395_v20 = vpop.eup %7394  ;;  %v9500_v61 = vadd.f32 %v2372_v5, %v2339_v34  ;;  %7402 = vlog2.f32 %v1699_v27  ;;  %v2087_v13 = vmul.f32 1.442695, %v2067_v12  ;;  %v848_v33 = vadd.f32 %v9468_v54, %v847_v45  ;;  %v14036_v5 = vld [vmem:[#allocation27_spill] sm:$0xff] }
 0x1cc   : > { %v9503_v9 = vadd.f32 %v2374_v15, %v2340_v8  ;;  %v2376_v49 = vmul.f32 0.6931472, %v7395_v20  ;;  %v1604_v48 = vadd.f32 5e-07, %v1588_v3  ;;  %v2000_v10 = vmax.f32 %v1998_v63, %v1999_v16 }
 0x1cd   : > { %v7397_v55 = vpop.eup %7396  ;;  %7404 = vpow2.f32 %v2087_v13  ;;  %v849_v28 = vrot.slane %v848_v33, 2  ;;  %v719_v14 = vrot.slane %v718_v37, 1  ;;  %v723_v2 = vrot.slane %v9355_v39, 2 }
 0x1ce   : > { %14035 = vst [vmem:[#allocation33_spill] sm:$0xff] %v9503_v9  ;;  %v2378_v32 = vmul.f32 0.6931472, %v7397_v55  ;;  %v9506_v29 = vadd.f32 %v2376_v49, %v2341_v52  ;;  %v1620_v34 = vmul.f32 100.0, %v1604_v48  ;;  %v1684_v59 = vsub.f32 1.0, %v1604_v48 }
 0x1cf   : > { %v2001_v51 = vrot.slane %v2000_v10, 1  ;;  %v850_v30 = vadd.f32 %v849_v28, %v848_v33  ;;  %v720_v23 = vmax.f32 %v718_v37, %v719_v14  ;;  %v724_v8 = vmax.f32 %v9355_v39, %v723_v2 }
 0x1d0   : > { %v9509_v45 = vadd.f32 %v2378_v32, %v2342_v44  ;;  %7406 = vlog2.f32 %v1620_v34  ;;  %v1700_v19 = vmul.f32 100.0, %v1684_v59  ;;  %v728_v52 = vmax.f32 %v9345_v50, %v727_v26  ;;  %v521_v59 = vpop.permute.xlu0 %520 }
 0x1d1   : > { %v9511_v46 = vmax.f32 %v2000_v10, %v2001_v51  ;;  %v851_v63 = vrot.slane %v850_v30, 1  ;;  %v725_v12 = vrot.slane %v724_v8, 1  ;;  %v9514_v43 = vsub.f32 %v9309_v42, %v720_v23 }
 0x1d2   : > { %7408 = vlog2.f32 %v1700_v19  ;;  %v734_v37 = vmax.f32 %v9348_v22, %v733_v24  ;;  %v2527_v39 = vrot.slane %v9302_v11, %v14036_v5  ;;  %v729_v13 = vrot.slane %v728_v52, 2 }
 0x1d3   : > { %v7399_v44 = vpop.eup %7398  ;;  %v2068_v27 = vsub.f32 %v9452_v4, %v9511_v46  ;;  %v852_v15 = vadd.f32 %v851_v63, %v850_v30  ;;  %v726_v3 = vmax.f32 %v724_v8, %v725_v12  ;;  %v795_v16 = vmul.f32 1.442695, %v9514_v43 }
 0x1d4   : > { %v9525_v42 = vpop.eup %7400  ;;  %v1640_v20 = vmul.f32 0.6931472, %v7399_v44  ;;  %v735_v33 = vrot.slane %v734_v37, 2  ;;  %2529 = vbcast.lane.b32.xlu1 %v2527_v39, 256  ;;  %v730_v10 = vmax.f32 %v728_v52, %v729_v13  ;;  %v9541_v39 = vld [vmem:[%s8681_s27 + $0x20] sm:$0xff]  ;;  %vm13954_vm13 = vcmask 1046534  }
 0x1d5   : > { %v7403_v26 = vpop.eup %7402  ;;  %v2089_v49 = vmul.f32 1.442695, %v2068_v27  ;;  %v853_v24 = vrot.slane %v9525_v42, 4  ;;  %7410 = vrcp.f32 %v852_v15  ;;  %v9529_v11 = vsub.f32 %v9316_v1, %v726_v3 }
 0x1d6   : > { %v9531_v48 = vadd.f32 -4.6051702, %v1640_v20  ;;  %v1720_v4 = vmul.f32 0.6931472, %v7403_v26  ;;  %7412 = vlog2.f32 %v852_v15  ;;  %v736_v2 = vmax.f32 %v734_v37, %v735_v33  ;;  %v9553_v26 = vld [vmem:[%s8681_s27 + $0x28] sm:$0xff] }
 0x1d7   : > { %v7405_v55 = vpop.eup %7404  ;;  %7414 = vpow2.f32 %v2089_v49  ;;  %v854_v28 = vadd.f32 %v9525_v42, %v853_v24  ;;  %v797_v14 = vmul.f32 1.442695, %v9529_v11  ;;  %v731_v1 = vrot.slane %v730_v10, 1 }
 0x1d8   : > { %v9535_v32 = vadd.f32 -4.6051702, %v1720_v4  ;;  %v2199_v34 = vmul.f32 %v7405_v55, %v9116_v7  ;;  %7416 = vpow2.f32 %v795_v16  ;;  %v737_v30 = vrot.slane %v736_v2, 1 }
 0x1d9   : > { %v855_v51 = vrot.slane %v854_v28, 2  ;;  %7418 = vpow2.f32 %v797_v14  ;;  %v732_v63 = vmax.f32 %v730_v10, %v731_v1  ;;  %v9544_v44 = vadd.f32 %v9541_v39, %v521_v59 }
 0x1da   : > { %v7407_v23 = vpop.eup %7406  ;;  %v2235_v8 = vrot.slane %v2199_v34, 4  ;;  %v2311_v19 = vadd.f32 %v9535_v32, %v9531_v48  ;;  %v738_v37 = vmax.f32 %v736_v2, %v737_v30  ;;  %v9556_v49 = vadd.f32 %v9553_v26, %v521_v59 }
 0x1db   : > { %v1642_v12 = vmul.f32 0.6931472, %v7407_v23  ;;  %v856_v52 = vadd.f32 %v855_v51, %v854_v28  ;;  %v9547_v16 = vsub.f32 %v9345_v50, %v732_v63  ;;  %vm13948_vm14 = vcmask 1047559  }
 0x1dc   : > { %v7409_v27 = vpop.eup %7408  ;;  %v2236_v15 = vadd.f32 %v2235_v8, %v2199_v34  ;;  %v2327_v3 = vsub.f32 -1.0000005e-06, %v2311_v19  ;;  %v9550_v33 = vsub.f32 %v9348_v22, %v738_v37  ;;  %v739_v22 = vrot.slane %v9544_v44, 4 }
 0x1dd   : > { %v1722_v20 = vmul.f32 0.6931472, %v7409_v27  ;;  %v857_v13 = vrot.slane %v856_v52, 1  ;;  %v799_v10 = vmul.f32 1.442695, %v9547_v16  ;;  %v745_v23 = vrot.slane %v9556_v49, 4 }
 0x1de   : > { %v2237_v24 = vrot.slane %v2236_v15, 2  ;;  %v9559_v4 = vadd.f32 %v2327_v3, %v9487_v17  ;;  %v9562_v28 = vadd.f32 -4.6051702, %v1642_v12  ;;  %v801_v59 = vmul.f32 1.442695, %v9550_v33 }
 0x1df   : > { %v7411_v55 = vpop.eup %7410  ;;  %v9564_v50 = vadd.f32 -4.6051702, %v1722_v20  ;;  %v858_v14 = vadd.f32 %v857_v13, %v856_v52  ;;  %7420 = vpow2.f32 %v799_v10 }
 0x1e0   : > { %14037 = vst [vmem:[#allocation29_spill] sm:$0xff] %v9562_v28  ;;  %v7413_v2 = vpop.eup %7412  ;;  %v2238_v34 = vadd.f32 %v2237_v24, %v2236_v15  ;;  %v945_v1 = vmul.f32 %v7411_v55, %v9468_v54  ;;  %v740_v15 = vmax.f32 %v9544_v44, %v739_v22 }
 0x1e1   : > { %v7415_v51 = vpop.eup %7414  ;;  %v2312_v17 = vadd.f32 %v9564_v50, %v9562_v28  ;;  %7422 = vrcp.f32 %v858_v14  ;;  %v968_v30 = vmul.f32 0.6931472, %v7413_v2 }
 0x1e2   : > { %v9572_v8 = vpop.eup %7416  ;;  %v2200_v19 = vmul.f32 %v7415_v51, %v9126_v47  ;;  %v2239_v63 = vrot.slane %v2238_v34, 1  ;;  %7424 = vlog2.f32 %v858_v14  ;;  %v1477_v12 = vmul.f32 %v9399_v58, %v945_v1 }
 0x1e3   : > { %v9576_v54 = vpop.eup %7418  ;;  %v2328_v52 = vsub.f32 -1.0000005e-06, %v2312_v17  ;;  %v993_v37 = vsub.f32 %v9434_v38, %v968_v30  ;;  %v859_v27 = vrot.slane %v9572_v8, 4  ;;  %7426 = vpow2.f32 %v801_v59 }
 0x1e4   : > { %v2240_v3 = vadd.f32 %v2239_v63, %v2238_v34  ;;  %v2241_v20 = vrot.slane %v2200_v19, 4  ;;  %v1523_v13 = vrot.slane %v1477_v12, 4  ;;  %v865_v24 = vrot.slane %v9576_v54, 4 }
 0x1e5   : > { %v9583_v10 = vadd.f32 %v2328_v52, %v9511_v46  ;;  %v9586_v55 = vadd.f32 %v9366_v62, %v993_v37  ;;  %v860_v14 = vadd.f32 %v9572_v8, %v859_v27  ;;  %v741_v51 = vrot.slane %v740_v15, 2 }
 0x1e6   : > { %v2242_v2 = vadd.f32 %v2241_v20, %v2200_v19  ;;  %7428 = vlog2.f32 %v2240_v3  ;;  %v1524_v38 = vadd.f32 %v1523_v13, %v1477_v12  ;;  %v866_v1 = vadd.f32 %v9576_v54, %v865_v24 }
 0x1e7   : > { %v2003_v22 = vrot.slane %v9586_v55, 4  ;;  %v861_v34 = vrot.slane %v860_v14, 2  ;;  %v9599_v20 = vmax.f32 %v9556_v49, %v745_v23  ;;  %v9602_v46 = vmax.f32 %v740_v15, %v741_v51 }
 0x1e8   : > { %v2243_v17 = vrot.slane %v2242_v2, 2  ;;  %v1525_v30 = vrot.slane %v1524_v38, 2  ;;  %v867_v63 = vrot.slane %v866_v1, 2 }
 0x1e9   : > { %v2004_v59 = vmax.f32 %v9586_v55, %v2003_v22  ;;  %v862_v19 = vadd.f32 %v861_v34, %v860_v14  ;;  %v9596_v37 = vpop.eup %7420 }
 0x1ea   : > { %v2244_v12 = vadd.f32 %v2243_v17, %v2242_v2  ;;  %v1526_v27 = vadd.f32 %v1525_v30, %v1524_v38  ;;  %v868_v3 = vadd.f32 %v867_v63, %v866_v1  ;;  %v871_v25 = vrot.slane %v9596_v37, 4 }
 0x1eb   : > { %v7423_v13 = vpop.eup %7422  ;;  %v2005_v24 = vrot.slane %v2004_v59, 2  ;;  %v863_v5 = vrot.slane %v862_v19, 1 }
 0x1ec   : > { %v7425_v41 = vpop.eup %7424  ;;  %v2245_v52 = vrot.slane %v2244_v12, 1  ;;  %v946_v22 = vmul.f32 %v7423_v13, %v9525_v42  ;;  %v1527_v14 = vrot.slane %v1526_v27, 1  ;;  %v869_v34 = vrot.slane %v868_v3, 1 }
 0x1ed   : > { %v970_v6 = vmul.f32 0.6931472, %v7425_v41  ;;  %v2006_v2 = vmax.f32 %v2004_v59, %v2005_v24  ;;  %v864_v38 = vadd.f32 %v863_v5, %v862_v19  ;;  %v872_v1 = vadd.f32 %v9596_v37, %v871_v25  ;;  %v9607_v28 = vpop.eup %7426 }
 0x1ee   : > { %v2246_v23 = vadd.f32 %v2245_v52, %v2244_v12  ;;  %v1478_v17 = vmul.f32 %v9402_v53, %v946_v22  ;;  %v1528_v30 = vadd.f32 %v1527_v14, %v1526_v27  ;;  %v870_v63 = vadd.f32 %v869_v34, %v868_v3 }
 0x1ef   : > { %v994_v15 = vsub.f32 %v9466_v31, %v970_v6  ;;  %v2007_v51 = vrot.slane %v2006_v2, 1  ;;  %7430 = vrcp.f32 %v864_v38  ;;  %v873_v42 = vrot.slane %v872_v1, 2 }
 0x1f0   : > { %v7429_v13 = vpop.eup %7428  ;;  %7432 = vlog2.f32 %v2246_v23  ;;  %v1529_v41 = vrot.slane %v1478_v17, 4  ;;  %v1589_v59 = vmul.f32 0.999999, %v1528_v30  ;;  %v877_v5 = vrot.slane %v9607_v28, 4 }
 0x1f1   : > { %v2380_v25 = vmul.f32 0.6931472, %v7429_v13  ;;  %v9612_v52 = vadd.f32 %v9369_v35, %v994_v15  ;;  %v9614_v19 = vmax.f32 %v2006_v2, %v2007_v51  ;;  %7434 = vrcp.f32 %v870_v63 }
 0x1f2   : > { %v1530_v12 = vadd.f32 %v1529_v41, %v1478_v17  ;;  %v1605_v27 = vadd.f32 5e-07, %v1589_v59  ;;  %7436 = vlog2.f32 %v864_v38  ;;  %v874_v6 = vadd.f32 %v873_v42, %v872_v1 }
 0x1f3   : > { %v9617_v31 = vadd.f32 %v2380_v25, %v9559_v4  ;;  %v2009_v3 = vrot.slane %v9612_v52, 4  ;;  %v2069_v24 = vsub.f32 %v9586_v55, %v9614_v19  ;;  %7438 = vlog2.f32 %v870_v63 }
 0x1f4   : > { %v1531_v22 = vrot.slane %v1530_v12, 2  ;;  %v1621_v14 = vmul.f32 100.0, %v1605_v27  ;;  %v1685_v34 = vsub.f32 1.0, %v1605_v27  ;;  %v875_v23 = vrot.slane %v874_v6, 1 }
 0x1f5   : > { %14038 = vst [vmem:[#allocation30_spill] sm:$0xff] %v9617_v31  ;;  %v2010_v17 = vmax.f32 %v9612_v52, %v2009_v3  ;;  %v2091_v38 = vmul.f32 1.442695, %v2069_v24  ;;  %v878_v1 = vadd.f32 %v9607_v28, %v877_v5  ;;  %v743_v63 = vrot.slane %v9602_v46, 1 }
 0x1f6   : > { %v1532_v4 = vadd.f32 %v1531_v22, %v1530_v12  ;;  %7440 = vlog2.f32 %v1621_v14  ;;  %v1701_v30 = vmul.f32 100.0, %v1685_v34  ;;  %v876_v15 = vadd.f32 %v875_v23, %v874_v6 }
 0x1f7   : > { %v2011_v51 = vrot.slane %v2010_v17, 2  ;;  %7442 = vpow2.f32 %v2091_v38  ;;  %v879_v55 = vrot.slane %v878_v1, 2  ;;  %v14039_v5 = vsub.f32 %v9454_v21, %v9458_v60 }
 0x1f8   : > { %v1533_v13 = vrot.slane %v1532_v4, 1  ;;  %7444 = vlog2.f32 %v1701_v30  ;;  %v14040_v25 = vsub.f32 %v9472_v56, %v9476_v18  ;;  %v747_v14 = vrot.slane %v9599_v20, 2 }
 0x1f9   : > { %v7431_v41 = vpop.eup %7430  ;;  %v2012_v27 = vmax.f32 %v2010_v17, %v2011_v51  ;;  %v880_v6 = vadd.f32 %v879_v55, %v878_v1  ;;  %7446 = vlog2.f32 %v876_v15  ;;  %v744_v21 = vmax.f32 %v9602_v46, %v743_v63 }
 0x1fa   : > { %v9638_v12 = vsel %vm13961_vm4, %v14040_v25, %v14039_v5  ;;  %v7433_v3 = vpop.eup %7432  ;;  %v1534_v24 = vadd.f32 %v1533_v13, %v1532_v4  ;;  %v947_v22 = vmul.f32 %v7431_v41, %v9572_v8  ;;  %7448 = vrcp.f32 %v876_v15 }
 0x1fb   : > { %v7435_v34 = vpop.eup %7434  ;;  %v2382_v23 = vmul.f32 0.6931472, %v7433_v3  ;;  %v2013_v38 = vrot.slane %v2012_v27, 1  ;;  %v881_v30 = vrot.slane %v880_v6, 1 }
 0x1fc   : > { %v7437_v60 = vpop.eup %7436  ;;  %v1590_v56 = vmul.f32 0.999999, %v1534_v24  ;;  %v948_v18 = vmul.f32 %v7435_v34, %v9576_v54  ;;  %v1479_v17 = vmul.f32 %v9399_v58, %v947_v22 }
 0x1fd   : > { %v7439_v1 = vpop.eup %7438  ;;  %v9646_v4 = vadd.f32 %v2382_v23, %v9583_v10  ;;  %v9648_v8 = vmax.f32 %v2012_v27, %v2013_v38  ;;  %v972_v51 = vmul.f32 0.6931472, %v7437_v60  ;;  %v882_v55 = vadd.f32 %v881_v30, %v880_v6 }
 0x1fe   : > { %v1606_v13 = vadd.f32 5e-07, %v1590_v56  ;;  %v974_v41 = vmul.f32 0.6931472, %v7439_v1  ;;  %v1480_v5 = vmul.f32 %v9402_v53, %v948_v18  ;;  %v1535_v46 = vrot.slane %v1479_v17, 4 }
 0x1ff   : > { %14041 = vst [vmem:[#allocation31_spill] sm:$0xff] %v9646_v4  ;;  %v2070_v54 = vsub.f32 %v9612_v52, %v9648_v8  ;;  %v995_v15 = vsub.f32 %v9514_v43, %v972_v51  ;;  %7450 = vrcp.f32 %v882_v55  ;;  %v9662_v1 = vmax.f32 %v9599_v20, %v747_v14 }
 0x200   : > { %v7441_v10 = vpop.eup %7440  ;;  %v1622_v25 = vmul.f32 100.0, %v1606_v13  ;;  %v1686_v27 = vsub.f32 1.0, %v1606_v13  ;;  %v996_v3 = vsub.f32 %v9529_v11, %v974_v41  ;;  %v1536_v6 = vadd.f32 %v1535_v46, %v1479_v17 }
 0x201   : > { %v7443_v24 = vpop.eup %7442  ;;  %v1644_v22 = vmul.f32 0.6931472, %v7441_v10  ;;  %v2093_v34 = vmul.f32 1.442695, %v2070_v54  ;;  %v1541_v23 = vrot.slane %v1480_v5, 4  ;;  %v9658_v38 = vadd.f32 %v9366_v62, %v995_v15 }
 0x202   : > { %v7445_v30 = vpop.eup %7444  ;;  %7452 = vlog2.f32 %v1622_v25  ;;  %v1702_v60 = vmul.f32 100.0, %v1686_v27  ;;  %v2201_v52 = vmul.f32 %v7443_v24, %v9116_v7  ;;  %v1537_v43 = vrot.slane %v1536_v6, 2 }
 0x203   : > { %v1724_v56 = vmul.f32 0.6931472, %v7445_v30  ;;  %7454 = vpow2.f32 %v2093_v34  ;;  %v1542_v18 = vadd.f32 %v1541_v23, %v1480_v5  ;;  %v7447_v11 = vpop.eup %7446  ;;  %v9665_v13 = vadd.f32 %v9369_v35, %v996_v3 }
 0x204   : > { %7456 = vlog2.f32 %v1702_v60  ;;  %v2247_v17 = vrot.slane %v2201_v52, 4  ;;  %v1538_v51 = vadd.f32 %v1537_v43, %v1536_v6  ;;  %v9667_v41 = vadd.f32 -4.6051702, %v1644_v22  ;;  %v7449_v10 = vpop.eup %7448 }
 0x205   : > { %v9669_v46 = vadd.f32 -4.6051702, %v1724_v56  ;;  %v1543_v54 = vrot.slane %v1542_v18, 2  ;;  %v2015_v15 = vrot.slane %v9658_v38, 4  ;;  %v2021_v20 = vrot.slane %v9665_v13, 4 }
 0x206   : > { %v2248_v25 = vadd.f32 %v2247_v17, %v2201_v52  ;;  %v1539_v5 = vrot.slane %v1538_v51, 1  ;;  %v9674_v14 = vsub.f32 %v9544_v44, %v744_v21  ;;  %v9679_v24 = vmul.f32 0.6931472, %v7447_v11 }
 0x207   : > { %v2313_v27 = vadd.f32 %v9669_v46, %v9667_v41  ;;  %v1544_v3 = vadd.f32 %v1543_v54, %v1542_v18  ;;  %v2016_v6 = vmax.f32 %v9658_v38, %v2015_v15  ;;  %v2022_v23 = vmax.f32 %v9665_v13, %v2021_v20 }
 0x208   : > { %v2249_v22 = vrot.slane %v2248_v25, 2  ;;  %v1540_v34 = vadd.f32 %v1539_v5, %v1538_v51  ;;  %7458 = vlog2.f32 %v882_v55  ;;  %v749_v44 = vrot.slane %v9662_v1, 1 }
 0x209   : > { %v7451_v30 = vpop.eup %7450  ;;  %v2329_v60 = vsub.f32 -1.0000005e-06, %v2313_v27  ;;  %v1545_v52 = vrot.slane %v1544_v3, 1  ;;  %v2017_v43 = vrot.slane %v2016_v6, 2  ;;  %v2023_v17 = vrot.slane %v2022_v23, 2 }
 0x20a   : > { %v2250_v21 = vadd.f32 %v2249_v22, %v2248_v25  ;;  %v1591_v56 = vmul.f32 0.999999, %v1540_v34  ;;  %v949_v18 = vmul.f32 %v7449_v10, %v9596_v37  ;;  %v997_v51 = vsub.f32 %v9547_v16, %v9679_v24 }
 0x20b   : > { %v9685_v54 = vadd.f32 %v2329_v60, %v9614_v19  ;;  %v1546_v11 = vadd.f32 %v1545_v52, %v1544_v3  ;;  %v2018_v15 = vmax.f32 %v2016_v6, %v2017_v43  ;;  %v2024_v27 = vmax.f32 %v2022_v23, %v2023_v17 }
 0x20c   : > { %v7453_v55 = vpop.eup %7452  ;;  %v2251_v5 = vrot.slane %v2250_v21, 1  ;;  %v1607_v20 = vadd.f32 5e-07, %v1591_v56  ;;  %v950_v63 = vmul.f32 %v7451_v30, %v9607_v28  ;;  %v1481_v37 = vmul.f32 %v9399_v58, %v949_v18 }
 0x20d   : > { %v7455_v2 = vpop.eup %7454  ;;  %v1646_v25 = vmul.f32 0.6931472, %v7453_v55  ;;  %v1592_v22 = vmul.f32 0.999999, %v1546_v11  ;;  %v2019_v34 = vrot.slane %v2018_v15, 1  ;;  %v2025_v30 = vrot.slane %v2024_v27, 1 }
 0x20e   : > { %v7457_v10 = vpop.eup %7456  ;;  %v2202_v19 = vmul.f32 %v7455_v2, %v9126_v47  ;;  %v2252_v3 = vadd.f32 %v2251_v5, %v2250_v21  ;;  %v1623_v6 = vmul.f32 100.0, %v1607_v20  ;;  %v1687_v60 = vsub.f32 1.0, %v1607_v20 }
 0x20f   : > { %v9692_v52 = vadd.f32 -4.6051702, %v1646_v25  ;;  %v1726_v16 = vmul.f32 0.6931472, %v7457_v10  ;;  %v1608_v24 = vadd.f32 5e-07, %v1592_v22  ;;  %v9694_v43 = vmax.f32 %v2018_v15, %v2019_v34 }
 0x210   : > { %v2253_v23 = vrot.slane %v2202_v19, 4  ;;  %7460 = vlog2.f32 %v2252_v3  ;;  %v1703_v28 = vmul.f32 100.0, %v1687_v60  ;;  %v9698_v21 = vmax.f32 %v2024_v27, %v2025_v30 }
 0x211   : > { %v9696_v56 = vadd.f32 -4.6051702, %v1726_v16  ;;  %v1624_v17 = vmul.f32 100.0, %v1608_v24  ;;  %7462 = vlog2.f32 %v1623_v6  ;;  %v1688_v18 = vsub.f32 1.0, %v1608_v24 }
 0x212   : > { %v7459_v11 = vpop.eup %7458  ;;  %v2254_v2 = vadd.f32 %v2253_v23, %v2202_v19  ;;  %7464 = vlog2.f32 %v1703_v28  ;;  %v2071_v55 = vsub.f32 %v9658_v38, %v9694_v43  ;;  %v1482_v20 = vmul.f32 %v9402_v53, %v950_v63 }
 0x213   : > { %v2314_v15 = vadd.f32 %v9696_v56, %v9692_v52  ;;  %7466 = vlog2.f32 %v1624_v17  ;;  %v1704_v5 = vmul.f32 100.0, %v1688_v18  ;;  %v2072_v22 = vsub.f32 %v9665_v13, %v9698_v21  ;;  %v528_v13 = vpop.permute.xlu1 %527 }
 0x214   : > { %v2255_v25 = vrot.slane %v2254_v2, 2  ;;  %v2095_v34 = vmul.f32 1.442695, %v2071_v55  ;;  %v978_v10 = vmul.f32 0.6931472, %v7459_v11  ;;  %v1547_v27 = vrot.slane %v1481_v37, 4 }
 0x215   : > { %v2330_v19 = vsub.f32 -1.0000005e-06, %v2314_v15  ;;  %7468 = vlog2.f32 %v1704_v5  ;;  %v803_v3 = vmul.f32 1.442695, %v9674_v14  ;;  %v2097_v38 = vmul.f32 1.442695, %v2072_v22 }
 0x216   : > { %v2256_v6 = vadd.f32 %v2255_v25, %v2254_v2  ;;  %7470 = vpow2.f32 %v2095_v34  ;;  %v998_v60 = vsub.f32 %v9550_v33, %v978_v10  ;;  %v1548_v63 = vadd.f32 %v1547_v27, %v1481_v37 }
 0x217   : > { %v9710_v16 = vadd.f32 %v2330_v19, %v9648_v8  ;;  %v1553_v24 = vrot.slane %v1482_v20, 4  ;;  %v9713_v23 = vadd.f32 %v9366_v62, %v997_v51  ;;  %7472 = vpow2.f32 %v2097_v38 }
 0x218   : > { %v2257_v28 = vrot.slane %v2256_v6, 1  ;;  %v9716_v30 = vadd.f32 %v9369_v35, %v998_v60  ;;  %v750_v17 = vmax.f32 %v9662_v1, %v749_v44  ;;  %v1549_v8 = vrot.slane %v1548_v63, 2 }
 0x219   : > { %v1554_v18 = vadd.f32 %v1553_v24, %v1482_v20  ;;  %v2027_v37 = vrot.slane %v9713_v23, 4  ;;  %7474 = vpow2.f32 %v803_v3  ;;  %v9726_v55 = vadd.f32 %v9541_v39, %v528_v13 }
 0x21a   : > { %v7461_v11 = vpop.eup %7460  ;;  %v2258_v51 = vadd.f32 %v2257_v28, %v2256_v6  ;;  %v2033_v2 = vrot.slane %v9716_v30, 4  ;;  %v1550_v25 = vadd.f32 %v1549_v8, %v1548_v63  ;;  %v9731_v10 = vsub.f32 %v9556_v49, %v750_v17 }
 0x21b   : > { %v7463_v15 = vpop.eup %7462  ;;  %v2384_v5 = vmul.f32 0.6931472, %v7461_v11  ;;  %v1555_v22 = vrot.slane %v1554_v18, 2  ;;  %v2028_v1 = vmax.f32 %v9713_v23, %v2027_v37 }
 0x21c   : > { %v7465_v44 = vpop.eup %7464  ;;  %7476 = vlog2.f32 %v2258_v51  ;;  %v1648_v34 = vmul.f32 0.6931472, %v7463_v15  ;;  %v2034_v20 = vmax.f32 %v9716_v30, %v2033_v2  ;;  %v1551_v3 = vrot.slane %v1550_v25, 1 }
 0x21d   : > { %v7467_v19 = vpop.eup %7466  ;;  %v9734_v27 = vadd.f32 %v2384_v5, %v9685_v54  ;;  %v1728_v39 = vmul.f32 0.6931472, %v7465_v44  ;;  %v1556_v6 = vadd.f32 %v1555_v22, %v1554_v18  ;;  %v2029_v63 = vrot.slane %v2028_v1, 2 }
 0x21e   : > { %v1650_v38 = vmul.f32 0.6931472, %v7467_v19  ;;  %v9736_v60 = vadd.f32 -4.6051702, %v1648_v34  ;;  %v2035_v24 = vrot.slane %v2034_v20, 2  ;;  %v1552_v49 = vadd.f32 %v1551_v3, %v1550_v25 }
 0x21f   : > { %14042 = vst [vmem:[#allocation32_spill] sm:$0xff] %v9734_v27  ;;  %v7469_v28 = vpop.eup %7468  ;;  %v9740_v37 = vadd.f32 -4.6051702, %v1728_v39  ;;  %v1557_v17 = vrot.slane %v1556_v6, 1  ;;  %v2030_v2 = vmax.f32 %v2028_v1, %v2029_v63  ;;  %v751_v18 = vrot.slane %v9726_v55, 4 }
 0x220   : > { %v7471_v11 = vpop.eup %7470  ;;  %v9742_v51 = vadd.f32 -4.6051702, %v1650_v38  ;;  %v1730_v54 = vmul.f32 0.6931472, %v7469_v28  ;;  %v2036_v44 = vmax.f32 %v2034_v20, %v2035_v24  ;;  %v1593_v39 = vmul.f32 0.999999, %v1552_v49 }
 0x221   : > { %v2203_v15 = vmul.f32 %v7471_v11, %v9116_v7  ;;  %v2315_v5 = vadd.f32 %v9740_v37, %v9736_v60  ;;  %v1558_v22 = vadd.f32 %v1557_v17, %v1556_v6  ;;  %v7473_v34 = vpop.eup %7472  ;;  %v2031_v25 = vrot.slane %v2030_v2, 1 }
 0x222   : > { %v9748_v19 = vadd.f32 -4.6051702, %v1730_v54  ;;  %v9751_v3 = vadd.f32 %v9553_v26, %v528_v13  ;;  %v2204_v38 = vmul.f32 %v7473_v34, %v9126_v47  ;;  %v805_v28 = vmul.f32 1.442695, %v9731_v10 }
 0x223   : > { %v2259_v1 = vrot.slane %v2203_v15, 4  ;;  %v2331_v63 = vsub.f32 -1.0000005e-06, %v2315_v5  ;;  %v9755_v11 = vpop.eup %7474  ;;  %v1594_v20 = vmul.f32 0.999999, %v1558_v22  ;;  %v752_v17 = vmax.f32 %v9726_v55, %v751_v18 }
 0x224   : > { %v2316_v6 = vadd.f32 %v9748_v19, %v9742_v51  ;;  %v1609_v24 = vadd.f32 5e-07, %v1593_v39  ;;  %v2265_v54 = vrot.slane %v2204_v38, 4  ;;  %v2037_v13 = vrot.slane %v2036_v44, 1 }
 0x225   : > { %v2260_v49 = vadd.f32 %v2259_v1, %v2203_v15  ;;  %v9761_v26 = vadd.f32 %v2331_v63, %v9694_v43  ;;  %v1610_v5 = vadd.f32 5e-07, %v1594_v20  ;;  %v9763_v59 = vmax.f32 %v2030_v2, %v2031_v25 }
 0x226   : > { %v7477_v34 = vpop.eup %7476  ;;  %v2332_v8 = vsub.f32 -1.0000005e-06, %v2316_v6  ;;  %v1625_v33 = vmul.f32 100.0, %v1609_v24  ;;  %v2266_v27 = vadd.f32 %v2265_v54, %v2204_v38  ;;  %v1689_v22 = vsub.f32 1.0, %v1609_v24 }
 0x227   : > { %v2386_v42 = vmul.f32 0.6931472, %v7477_v34  ;;  %v2261_v35 = vrot.slane %v2260_v49, 2  ;;  %v1626_v18 = vmul.f32 100.0, %v1610_v5  ;;  %v1690_v15 = vsub.f32 1.0, %v1610_v5  ;;  %v14044_v34 = vld [vmem:[#allocation29_spill] sm:$0xff] }
 0x228   : > { %v9766_v39 = vadd.f32 %v2332_v8, %v9698_v21  ;;  %7478 = vlog2.f32 %v1625_v33  ;;  %v2267_v63 = vrot.slane %v2266_v27, 2  ;;  %v1705_v6 = vmul.f32 100.0, %v1689_v22 }
 0x229   : > { %v9769_v43 = vadd.f32 %v2386_v42, %v9710_v16  ;;  %v2262_v1 = vadd.f32 %v2261_v35, %v2260_v49  ;;  %7480 = vlog2.f32 %v1626_v18  ;;  %v1706_v2 = vmul.f32 100.0, %v1690_v15  ;;  %v2421_v49 = vld [vmem:[%s8681_s27 + $0x40] sm:$0xff] }
 0x22a   : > { %v9771_v25 = vmax.f32 %v2036_v44, %v2037_v13  ;;  %v2073_v38 = vsub.f32 %v9713_v23, %v9763_v59  ;;  %v2268_v33 = vadd.f32 %v2267_v63, %v2266_v27  ;;  %7482 = vlog2.f32 %v1705_v6  ;;  %v2422_v27 = vld [vmem:[%s8681_s27 + $0x48] sm:$0xff] }
 0x22b   : > { %14043 = vst [vmem:[#allocation34_spill] sm:$0xff] %v9769_v43  ;;  %v2263_v8 = vrot.slane %v2262_v1, 1  ;;  %7484 = vlog2.f32 %v1706_v2  ;;  %v883_v16 = vrot.slane %v9755_v11, 4  ;;  %v753_v24 = vrot.slane %v752_v17, 2 }
 0x22c   : > { %v2074_v35 = vsub.f32 %v9716_v30, %v9771_v25  ;;  %v2099_v42 = vmul.f32 1.442695, %v2073_v38  ;;  %v2269_v44 = vrot.slane %v2268_v33, 1  ;;  %7486 = vpow2.f32 %v805_v28 }
 0x22d   : > { %v2264_v20 = vadd.f32 %v2263_v8, %v2262_v1  ;;  %v884_v54 = vadd.f32 %v9755_v11, %v883_v16  ;;  %v757_v13 = vrot.slane %v9751_v3, 4  ;;  %v1764_v5 = vsub.f32 %v14044_v34, %v9564_v50  ;;  %v2560_v16 = vpop.permute.xlu0 %2559 }
 0x22e   : > { %7488 = vpow2.f32 %v2099_v42  ;;  %v2101_v23 = vmul.f32 1.442695, %v2074_v35  ;;  %v2270_v22 = vadd.f32 %v2269_v44, %v2268_v33  ;;  %v754_v30 = vmax.f32 %v752_v17, %v753_v24  ;;  %v9809_v42 = vld [vmem:[%s8681_s27 + $0x78] sm:$0xff] }
 0x22f   : > { %7490 = vlog2.f32 %v2264_v20  ;;  %v885_v18 = vrot.slane %v884_v54, 2  ;;  %v758_v28 = vmax.f32 %v9751_v3, %v757_v13  ;;  %v9787_v15 = vadd.f32 0.54132324, %v2421_v49 }
 0x230   : > { %7492 = vpow2.f32 %v2101_v23  ;;  %v14045_v1 = vsub.f32 %v9456_v40, %v9460_v36  ;;  %v14046_v63 = vsub.f32 %v9474_v0, %v9479_v57  ;;  %v755_v50 = vrot.slane %v754_v30, 1  ;;  %v9806_v57 = vld [vmem:[%s8681_s27 + $0x70] sm:$0xff] }
 0x231   : > { %7494 = vlog2.f32 %v2270_v22  ;;  %v9796_v2 = vadd.f32 0.54132324, %v2422_v27  ;;  %v14047_v38 = vsub.f32 %v9531_v48, %v9535_v32  ;;  %v886_v33 = vadd.f32 %v885_v18, %v884_v54 }
 0x232   : > { %v3421_v6 = vsel %vm13961_vm4, %v14046_v63, %v14045_v1  ;;  %v7479_v17 = vpop.eup %7478  ;;  %v759_v35 = vrot.slane %v758_v28, 2  ;;  %v1765_v40 = vsub.f32 %v9667_v41, %v9669_v46  ;;  %v756_v0 = vmax.f32 %v754_v30, %v755_v50 }
 0x233   : > { %v3410_v8 = vsel %vm13960_vm5, %v14047_v38, %v9638_v12  ;;  %v1652_v36 = vmul.f32 0.6931472, %v7479_v17  ;;  %v7481_v20 = vpop.eup %7480  ;;  %v9812_v44 = vsel %vm13960_vm5, %v1764_v5, %v3421_v6  ;;  %v887_v48 = vrot.slane %v886_v33, 1 }
 0x234   : > { %v760_v32 = vmax.f32 %v758_v28, %v759_v35  ;;  %v2437_v12 = vand.u32 2147483647, %v9787_v15  ;;  %v7483_v24 = vpop.eup %7482  ;;  %v1766_v49 = vsub.f32 %v9692_v52, %v9696_v56  ;;  %v9818_v41 = vsel %vm13959_vm6, %v1765_v40, %v3410_v8 }
 0x235   : > { %v1654_v46 = vmul.f32 0.6931472, %v7481_v20  ;;  %v2438_v23 = vand.u32 2147483647, %v9796_v2  ;;  %v7485_v54 = vpop.eup %7484  ;;  %v1732_v13 = vmul.f32 0.6931472, %v7483_v24  ;;  %v888_v27 = vadd.f32 %v887_v48, %v886_v33 }
 0x236   : > { %v9822_v34 = vadd.f32 %v2560_v16, %v9806_v57  ;;  %v9825_v5 = vadd.f32 %v2560_v16, %v9809_v42  ;;  %v9827_v22 = vpop.eup %7486  ;;  %v9829_v30 = vadd.f32 -4.6051702, %v1652_v36  ;;  %v1734_v18 = vmul.f32 0.6931472, %v7485_v54 }
 0x237   : > { %v761_v28 = vrot.slane %v760_v32, 1  ;;  %v9832_v1 = vsub.f32 %v9726_v55, %v756_v0  ;;  %v9834_v6 = vadd.f32 -4.6051702, %v1732_v13  ;;  %v889_v50 = vrot.slane %v9827_v22, 4 }
 0x238   : > { %v7489_v63 = vpop.eup %7488  ;;  %7496 = vrcp.f32 %v888_v27  ;;  %v2439_v17 = vsub.f32 0.0, %v2437_v12  ;;  %v9837_v8 = vadd.f32 -4.6051702, %v1654_v46  ;;  %v9839_v33 = vadd.f32 -4.6051702, %v1734_v18 }
 0x239   : > { %v7491_v38 = vpop.eup %7490  ;;  %v2205_v35 = vmul.f32 %v7489_v63, %v9116_v7  ;;  %7498 = vlog2.f32 %v888_v27  ;;  %v2317_v55 = vadd.f32 %v9834_v6, %v9829_v30  ;;  %v890_v0 = vadd.f32 %v9827_v22, %v889_v50 }
 0x23a   : > { %v7493_v40 = vpop.eup %7492  ;;  %v2388_v36 = vmul.f32 0.6931472, %v7491_v38  ;;  %v2440_v16 = vsub.f32 0.0, %v2438_v23  ;;  %v2318_v24 = vadd.f32 %v9839_v33, %v9837_v8  ;;  %v762_v46 = vmax.f32 %v760_v32, %v761_v28 }
 0x23b   : > { %v7495_v20 = vpop.eup %7494  ;;  %v2206_v48 = vmul.f32 %v7493_v40, %v9126_v47  ;;  %v2271_v12 = vrot.slane %v2205_v35, 4  ;;  %v2333_v27 = vsub.f32 -1.0000005e-06, %v2317_v55  ;;  %v807_v18 = vmul.f32 1.442695, %v9832_v1 }
 0x23c   : > { %v2390_v54 = vmul.f32 0.6931472, %v7495_v20  ;;  %v9849_v13 = vadd.f32 %v2388_v36, %v9761_v26  ;;  %v2334_v21 = vsub.f32 -1.0000005e-06, %v2318_v24  ;;  %v2441_v50 = vmul.f32 1.442695, %v2439_v17 }
 0x23d   : > { %v2272_v63 = vadd.f32 %v2271_v12, %v2205_v35  ;;  %v2277_v38 = vrot.slane %v2206_v48, 4  ;;  %v14050_v40 = vmax.f32 %v9500_v61, %v9617_v31  ;;  %v9862_v26 = vadd.f32 %v2333_v27, %v9763_v59 }
 0x23e   : > { %14048 = vst [vmem:[#allocation29_spill] sm:$0xff] %v9849_v13  ;;  %v9853_v23 = vadd.f32 %v2390_v54, %v9766_v39  ;;  %v891_v28 = vrot.slane %v890_v0, 2  ;;  %v9865_v35 = vadd.f32 %v2334_v21, %v9771_v25  ;;  %v9868_v17 = vsub.f32 %v9751_v3, %v762_v46 }
 0x23f   : > { %v9859_v32 = vmax.f32 %v14050_v40, %v9849_v13  ;;  %v2273_v36 = vrot.slane %v2272_v63, 2  ;;  %v2278_v55 = vadd.f32 %v2277_v38, %v2206_v48  ;;  %v14051_v39 = vmax.f32 %v9503_v9, %v9646_v4 }
 0x240   : > { %14049 = vst [vmem:[#allocation35_spill] sm:$0xff] %v9853_v23  ;;  %v892_v12 = vadd.f32 %v891_v28, %v890_v0  ;;  %7500 = vpow2.f32 %v807_v18  ;;  %v2443_v24 = vmul.f32 1.442695, %v2440_v16  ;;  %v809_v27 = vmul.f32 1.442695, %v9868_v17  ;;  %v9880_v0 = vpop.permute.xlu1 %2566 }
 0x241   : > { %v9874_v20 = vmax.f32 %v14051_v39, %v9853_v23  ;;  %v2274_v59 = vadd.f32 %v2273_v36, %v2272_v63  ;;  %v2279_v54 = vrot.slane %v2278_v55, 2  ;;  %7502 = vpow2.f32 %v2441_v50 }
 0x242   : > { %v7497_v48 = vpop.eup %7496  ;;  %v893_v25 = vrot.slane %v892_v12, 1  ;;  %7504 = vpow2.f32 %v2443_v24  ;;  %v2967_v3 = vrot.slane %v9822_v34, 4  ;;  %v2973_v21 = vrot.slane %v9825_v5, 4 }
 0x243   : > { %v7499_v46 = vpop.eup %7498  ;;  %v2275_v38 = vrot.slane %v2274_v59, 1  ;;  %v2280_v40 = vadd.f32 %v2279_v54, %v2278_v55  ;;  %v951_v39 = vmul.f32 %v7497_v48, %v9755_v11  ;;  %7506 = vpow2.f32 %v809_v27 }
 0x244   : > { %v3423_v16 = vsel %vm13959_vm6, %v1766_v49, %v9812_v44  ;;  %v1767_v18 = vsub.f32 %v9736_v60, %v9740_v37  ;;  %v894_v63 = vadd.f32 %v893_v25, %v892_v12  ;;  %v980_v50 = vmul.f32 0.6931472, %v7499_v46 }
 0x245   : > { %v2276_v28 = vadd.f32 %v2275_v38, %v2274_v59  ;;  %v2281_v36 = vrot.slane %v2280_v40, 1  ;;  %v1483_v55 = vmul.f32 %v9399_v58, %v951_v39  ;;  %v2968_v11 = vmax.f32 %v9822_v34, %v2967_v3 }
 0x246   : > { %7508 = vrcp.f32 %v894_v63  ;;  %v999_v24 = vsub.f32 %v9674_v14, %v980_v50  ;;  %v2974_v54 = vmax.f32 %v9825_v5, %v2973_v21  ;;  %v9895_v52 = vadd.f32 %v9880_v0, %v9806_v57 }
 0x247   : > { %v2282_v56 = vadd.f32 %v2281_v36, %v2280_v40  ;;  %7510 = vlog2.f32 %v2276_v28  ;;  %v1559_v60 = vrot.slane %v1483_v55, 4  ;;  %v2969_v37 = vrot.slane %v2968_v11, 2 }
 0x248   : > { %v1768_v44 = vsub.f32 %v9742_v51, %v9748_v19  ;;  %7512 = vlog2.f32 %v894_v63  ;;  %v9900_v49 = vadd.f32 %v9366_v62, %v999_v24  ;;  %v9904_v14 = vsel %vm13958_vm7, %v1767_v18, %v9818_v41 }
 0x249   : > { %7514 = vlog2.f32 %v2282_v56  ;;  %v1560_v12 = vadd.f32 %v1559_v60, %v1483_v55  ;;  %v2975_v51 = vrot.slane %v2974_v54, 2  ;;  %v9914_v46 = vmax.f32 %v2968_v11, %v2969_v37 }
 0x24a   : > { %v9906_v59 = vpop.eup %7500  ;;  %v9909_v27 = vsel %vm13958_vm7, %v1768_v44, %v3423_v16  ;;  %v2039_v48 = vrot.slane %v9900_v49, 4  ;;  %vm2433_vm10 = vcmp.ne.f32.partialorder %v9787_v15, %v9787_v15  ;;  %vm2434_vm12 = vcmp.ne.f32.partialorder %v9796_v2, %v9796_v2 }
 0x24b   : > { %v7503_v19 = vpop.eup %7502  ;;  %v1561_v3 = vrot.slane %v1560_v12, 2  ;;  %v895_v21 = vrot.slane %v9906_v59, 4  ;;  %v9926_v44 = vmax.f32 %v2974_v54, %v2975_v51 }
 0x24c   : > { %v9917_v38 = vpop.eup %7504  ;;  %v2040_v40 = vmax.f32 %v9900_v49, %v2039_v48  ;;  %v2445_v39 = vadd.f32 1.0, %v7503_v19  ;;  %v2448_v16 = vmul.f32 -0.5, %v7503_v19  ;;  %v2451_v18 = vand.u32 2147483647, %v7503_v19 }
 0x24d   : > { %v9920_v63 = vpop.eup %7506  ;;  %v1562_v50 = vadd.f32 %v1561_v3, %v1560_v12  ;;  %v896_v28 = vadd.f32 %v9906_v59, %v895_v21  ;;  %v2454_v36 = vadd.f32 1.0, %v9917_v38  ;;  %v2457_v55 = vmul.f32 -0.5, %v9917_v38 }
 0x24e   : > { %v2041_v11 = vrot.slane %v2040_v40, 2  ;;  %v901_v24 = vrot.slane %v9920_v63, 4  ;;  %7516 = vlog2.f32 %v2445_v39  ;;  %v2449_v56 = vadd.f32 1.0, %v2448_v16 }
 0x24f   : > { %v1563_v60 = vrot.slane %v1562_v50, 1  ;;  %v897_v37 = vrot.slane %v896_v28, 2  ;;  %7518 = vlog2.f32 %v2454_v36  ;;  %v2971_v21 = vrot.slane %v9914_v46, 1 }
 0x250   : > { %v7509_v48 = vpop.eup %7508  ;;  %v2042_v41 = vmax.f32 %v2040_v40, %v2041_v11  ;;  %v902_v12 = vadd.f32 %v9920_v63, %v901_v24  ;;  %v9929_v3 = vmul.f32 %v7503_v19, %v2449_v56  ;;  %vm9933_vm8 = vcmp.lt.f32.partialorder %v2451_v18, 0.0004427343 }
 0x251   : > { %v7511_v25 = vpop.eup %7510  ;;  %v952_v23 = vmul.f32 %v7509_v48, %v9827_v22  ;;  %v1564_v13 = vadd.f32 %v1563_v60, %v1562_v50  ;;  %v898_v4 = vadd.f32 %v897_v37, %v896_v28  ;;  %v2458_v16 = vadd.f32 1.0, %v2457_v55 }
 0x252   : > { %v7513_v54 = vpop.eup %7512  ;;  %v2392_v51 = vmul.f32 0.6931472, %v7511_v25  ;;  %v2043_v36 = vrot.slane %v2042_v41, 1  ;;  %v903_v40 = vrot.slane %v902_v12, 2  ;;  %v2460_v11 = vand.u32 2147483647, %v9917_v38 }
 0x253   : > { %v7515_v19 = vpop.eup %7514  ;;  %v982_v24 = vmul.f32 0.6931472, %v7513_v54  ;;  %v1484_v56 = vmul.f32 %v9402_v53, %v952_v23  ;;  %v1595_v31 = vmul.f32 0.999999, %v1564_v13  ;;  %v899_v9 = vrot.slane %v898_v4, 1  ;;  %v14056_v23 = vld [vmem:[#allocation32_spill] sm:$0xff] }
 0x254   : > { %v2394_v22 = vmul.f32 0.6931472, %v7515_v19  ;;  %v9940_v50 = vadd.f32 %v2392_v51, %v9862_v26  ;;  %v9942_v18 = vmax.f32 %v2042_v41, %v2043_v36  ;;  %v904_v28 = vadd.f32 %v903_v40, %v902_v12  ;;  %v14058_v36 = vld [vmem:[#allocation28_spill] sm:$0xff] }
 0x255   : > { %v1000_v55 = vsub.f32 %v9731_v10, %v982_v24  ;;  %v1565_v25 = vrot.slane %v1484_v56, 4  ;;  %v1611_v60 = vadd.f32 5e-07, %v1595_v31  ;;  %v900_v37 = vadd.f32 %v899_v9, %v898_v4 }
 0x256   : > { %14054 = vst [vmem:[#allocation36_spill] sm:$0xff] %v9940_v50  ;;  %v9946_v48 = vadd.f32 %v2394_v22, %v9865_v35  ;;  %v14057_v13 = vmax.f32 %v9506_v29, %v14056_v23  ;;  %v2075_v26 = vsub.f32 %v9900_v49, %v9942_v18  ;;  %v905_v41 = vrot.slane %v904_v28, 1 }
 0x257   : > { %v1566_v12 = vadd.f32 %v1565_v25, %v1484_v56  ;;  %v1627_v51 = vmul.f32 100.0, %v1611_v60  ;;  %v1691_v10 = vsub.f32 1.0, %v1611_v60  ;;  %v9957_v31 = vadd.f32 %v14058_v36, %v1000_v55 }
 0x258   : > { %14055 = vst [vmem:[#allocation37_spill] sm:$0xff] %v9946_v48  ;;  %v9952_v54 = vmax.f32 %v14057_v13, %v9940_v50  ;;  %v7517_v9 = vpop.eup %7516  ;;  %v14059_v4 = vmax.f32 %v9509_v45, %v9769_v43  ;;  %v2103_v40 = vmul.f32 1.442695, %v2075_v26  ;;  %7520 = vrcp.f32 %v900_v37 }
 0x259   : > { %v2459_v49 = vmul.f32 %v9917_v38, %v2458_v16  ;;  %v7519_v19 = vpop.eup %7518  ;;  %v1567_v24 = vrot.slane %v1566_v12, 2  ;;  %7522 = vlog2.f32 %v1627_v51  ;;  %v1707_v56 = vmul.f32 100.0, %v1691_v10 }
 0x25a   : > { %v9963_v35 = vmax.f32 %v14059_v4, %v9946_v48  ;;  %v2045_v22 = vrot.slane %v9957_v31, 4  ;;  %7524 = vpow2.f32 %v2103_v40  ;;  %v906_v55 = vadd.f32 %v905_v41, %v904_v28 }
 0x25b   : > { %v2447_v25 = vmul.f32 0.6931472, %v7517_v9  ;;  %v2456_v60 = vmul.f32 0.6931472, %v7519_v19  ;;  %v1568_v13 = vadd.f32 %v1567_v24, %v1566_v12  ;;  %7526 = vlog2.f32 %v1707_v56 }
 0x25c   : > { %v2046_v26 = vmax.f32 %v9957_v31, %v2045_v22  ;;  %v2972_v4 = vmax.f32 %v9914_v46, %v2971_v21  ;;  %7528 = vrcp.f32 %v906_v55  ;;  %vm9974_vm11 = vcmp.lt.f32.partialorder %v2460_v11, 0.0004427343 }
 0x25d   : > { %v2453_v38 = vsel %vm9933_vm8, %v9929_v3, %v2447_v25  ;;  %v2977_v51 = vrot.slane %v9926_v44, 1  ;;  %v1569_v28 = vrot.slane %v1568_v13, 1  ;;  %7530 = vlog2.f32 %v900_v37 }
 0x25e   : > { %v2047_v41 = vrot.slane %v2046_v26, 2  ;;  %v2432_v12 = vmax.f32 %v9796_v2, 0.0  ;;  %7532 = vlog2.f32 %v906_v55  ;;  %v3053_v46 = vsub.f32 %v9822_v34, %v2972_v4 }
 0x25f   : > { %v2978_v10 = vmax.f32 %v9926_v44, %v2977_v51  ;;  %v9984_v21 = vadd.f32 %v9880_v0, %v9809_v42  ;;  %v1570_v3 = vadd.f32 %v1569_v28, %v1568_v13  ;;  %v2462_v11 = vsel %vm9974_vm11, %v2459_v49, %v2456_v60 }
 0x260   : > { %v2048_v39 = vmax.f32 %v2046_v26, %v2047_v41  ;;  %v14062_v9 = vmax.f32 %v9787_v15, 0.0  ;;  %v1769_v37 = vsub.f32 %v9829_v30, %v9834_v6  ;;  %v3071_v44 = vmul.f32 1.442695, %v3053_v46 }
 0x261   : > { %v3054_v19 = vsub.f32 %v9825_v5, %v2978_v10  ;;  %v14063_v34 = vrot.slane %v9895_v52, 4  ;;  %v1596_v56 = vmul.f32 0.999999, %v1570_v3  ;;  %v2464_v30 = vadd.f32 %v2462_v11, %v2432_v12 }
 0x262   : > { %v2463_v40 = vadd.f32 %v2453_v38, %v14062_v9  ;;  %v2049_v22 = vrot.slane %v2048_v39, 1  ;;  %v7521_v49 = vpop.eup %7520  ;;  %v10002_v55 = vsel %vm13957_vm9, %v1769_v37, %v9904_v14  ;;  %7534 = vpow2.f32 %v3071_v44 }
 0x263   : > { %v2980_v24 = vmax.f32 %v9895_v52, %v14063_v34  ;;  %v3073_v5 = vmul.f32 1.442695, %v3054_v19  ;;  %v7523_v6 = vpop.eup %7522  ;;  %v1612_v25 = vadd.f32 5e-07, %v1596_v56  ;;  %v2985_v26 = vrot.slane %v9984_v21, 4 }
 0x264   : > { %v10004_v60 = vmax.f32 %v2048_v39, %v2049_v22  ;;  %v10010_v13 = vsel %vm2433_vm10, %v9787_v15, %v2463_v40  ;;  %v7525_v4 = vpop.eup %7524  ;;  %v1656_v38 = vmul.f32 0.6931472, %v7523_v6  ;;  %v953_v14 = vmul.f32 %v7521_v49, %v9906_v59 }
 0x265   : > { %14064 = vst [vmem:[#allocation32_spill] sm:$0xff] %v10010_v13  ;;  %7536 = vpow2.f32 %v3073_v5  ;;  %v2981_v16 = vrot.slane %v2980_v24, 2  ;;  %v7527_v51 = vpop.eup %7526  ;;  %v1628_v28 = vmul.f32 100.0, %v1612_v25  ;;  %v1692_v41 = vsub.f32 1.0, %v1612_v25 }
 0x266   : > { %v2076_v12 = vsub.f32 %v9957_v31, %v10004_v60  ;;  %v2207_v10 = vmul.f32 %v7525_v4, %v9116_v7  ;;  %v7529_v46 = vpop.eup %7528  ;;  %v10017_v3 = vadd.f32 -4.6051702, %v1656_v38  ;;  %v1736_v15 = vmul.f32 0.6931472, %v7527_v51  ;;  %v10039_v38 = vpop.permute.xlu0 %2552 }
 0x267   : > { %v1485_v39 = vmul.f32 %v9399_v58, %v953_v14  ;;  %v10024_v59 = vsel %vm2434_vm12, %v9796_v2, %v2464_v30  ;;  %v7531_v11 = vpop.eup %7530  ;;  %7538 = vlog2.f32 %v1628_v28  ;;  %v1708_v9 = vmul.f32 100.0, %v1692_v41 }
 0x268   : > { %14065 = vst [vmem:[#allocation28_spill] sm:$0xff] %v10024_v59  ;;  %v2105_v40 = vmul.f32 1.442695, %v2076_v12  ;;  %v2283_v37 = vrot.slane %v2207_v10, 4  ;;  %v7533_v31 = vpop.eup %7532  ;;  %v10026_v19 = vadd.f32 -4.6051702, %v1736_v15  ;;  %v10029_v56 = vmax.f32 %v9984_v21, %v2985_v26 }
 0x269   : > { %v984_v44 = vmul.f32 0.6931472, %v7531_v11  ;;  %v1571_v34 = vrot.slane %v1485_v39, 4  ;;  %7540 = vlog2.f32 %v1708_v9  ;;  %v954_v22 = vmul.f32 %v7529_v46, %v9920_v63 }
 0x26a   : > { %v2284_v58 = vadd.f32 %v2283_v37, %v2207_v10  ;;  %v986_v49 = vmul.f32 0.6931472, %v7533_v31  ;;  %7542 = vpow2.f32 %v2105_v40  ;;  %v2319_v2 = vadd.f32 %v10026_v19, %v10017_v3  ;;  %v14066_v40 = vld [vmem:[#allocation19_spill] sm:$0xff] }
 0x26b   : > { %v1001_v30 = vsub.f32 %v9832_v1, %v984_v44  ;;  %v3245_v5 = vcombine.low %v10010_v13, %v10024_v59  ;;  %v1486_v26 = vmul.f32 %v9402_v53, %v954_v22  ;;  %v1572_v4 = vadd.f32 %v1571_v34, %v1485_v39 }
 0x26c   : > { %v2285_v6 = vrot.slane %v2284_v58, 2  ;;  %v1002_v25 = vsub.f32 %v9868_v17, %v986_v49  ;;  %v10041_v14 = vpop.eup %7534  ;;  %v2335_v63 = vsub.f32 -1.0000005e-06, %v2319_v2  ;;  %v10046_v28 = vmax.f32 %v2980_v24, %v2981_v16 }
 0x26d   : > { %v10044_v51 = vadd.f32 %v9366_v62, %v1001_v30  ;;  %v2987_v1 = vrot.slane %v10029_v56, 2  ;;  %v1573_v12 = vrot.slane %v1572_v4, 2  ;;  %v1577_v10 = vrot.slane %v1486_v26, 4 }
 0x26e   : > { %v2286_v41 = vadd.f32 %v2285_v6, %v2284_v58  ;;  %v10050_v17 = vadd.f32 %v14058_v36, %v1002_v25  ;;  %v10055_v46 = vadd.f32 %v2335_v63, %v9942_v18  ;;  %v3111_v62 = vrot.slane %v10041_v14, 4 }
 0x26f   : > { %v10052_v53 = vpop.eup %7536  ;;  %v2051_v15 = vrot.slane %v10044_v51, 4  ;;  %v10061_v24 = vadd.f32 %v10039_v38, %v9806_v57  ;;  %v1574_v39 = vadd.f32 %v1573_v12, %v1572_v4  ;;  %v1578_v11 = vadd.f32 %v1577_v10, %v1486_v26 }
 0x270   : > { %v2287_v16 = vrot.slane %v2286_v41, 1  ;;  %v2057_v9 = vrot.slane %v10050_v17, 4  ;;  %v10066_v37 = vrot.slane %v3245_v5, %v14066_v40  ;;  %v3112_v18 = vadd.f32 %v10041_v14, %v3111_v62 }
 0x271   : > { %v2052_v36 = vmax.f32 %v10044_v51, %v2051_v15  ;;  %v3117_v31 = vrot.slane %v10052_v53, 4  ;;  %v7539_v44 = vpop.eup %7538  ;;  %v1575_v58 = vrot.slane %v1574_v39, 1  ;;  %v1579_v22 = vrot.slane %v1578_v11, 2 }
 0x272   : > { %v2288_v34 = vadd.f32 %v2287_v16, %v2286_v41  ;;  %v2058_v49 = vmax.f32 %v10050_v17, %v2057_v9  ;;  %v1658_v2 = vmul.f32 0.6931472, %v7539_v44  ;;  %v3113_v6 = vrot.slane %v3112_v18, 2 }
 0x273   : > { %v2053_v30 = vrot.slane %v2052_v36, 2  ;;  %v2983_v25 = vrot.slane %v10046_v28, 1  ;;  %v7541_v26 = vpop.eup %7540  ;;  %v1576_v4 = vadd.f32 %v1575_v58, %v1574_v39  ;;  %v1580_v5 = vadd.f32 %v1579_v22, %v1578_v11 }
 0x274   : > { %7544 = vlog2.f32 %v2288_v34  ;;  %v2059_v63 = vrot.slane %v2058_v49, 2  ;;  %v7543_v12 = vpop.eup %7542  ;;  %v1738_v10 = vmul.f32 0.6931472, %v7541_v26  ;;  %v3114_v62 = vadd.f32 %v3113_v6, %v3112_v18 }
 0x275   : > { %v2054_v15 = vmax.f32 %v2052_v36, %v2053_v30  ;;  %v3118_v41 = vadd.f32 %v10052_v53, %v3117_v31  ;;  %v2208_v16 = vmul.f32 %v7543_v12, %v9126_v47  ;;  %v1581_v0 = vrot.slane %v1580_v5, 1 }
 0x276   : > { %v1597_v9 = vmul.f32 0.999999, %v1576_v4  ;;  %v2060_v44 = vmax.f32 %v2058_v49, %v2059_v63  ;;  %v10074_v48 = vadd.f32 -4.6051702, %v1658_v2  ;;  %v10076_v50 = vadd.f32 -4.6051702, %v1738_v10 }
 0x277   : > { %v2055_v43 = vrot.slane %v2054_v15, 1  ;;  %v3115_v34 = vrot.slane %v3114_v62, 1  ;;  %v2289_v39 = vrot.slane %v2208_v16, 4  ;;  %v1582_v11 = vadd.f32 %v1581_v0, %v1580_v5 }
 0x278   : > { %v1613_v58 = vadd.f32 5e-07, %v1597_v9  ;;  %v2061_v22 = vrot.slane %v2060_v44, 1  ;;  %v2320_v36 = vadd.f32 %v10076_v50, %v10074_v48  ;;  %v3119_v31 = vrot.slane %v3118_v41, 2 }
 0x279   : > { %v10080_v18 = vmax.f32 %v2054_v15, %v2055_v43  ;;  %v2988_v30 = vmax.f32 %v10029_v56, %v2987_v1  ;;  %v2290_v49 = vadd.f32 %v2289_v39, %v2208_v16  ;;  %v1598_v2 = vmul.f32 0.999999, %v1582_v11 }
 0x27a   : > { %v1629_v6 = vmul.f32 100.0, %v1613_v58  ;;  %v1693_v26 = vsub.f32 1.0, %v1613_v58  ;;  %v2336_v4 = vsub.f32 -1.0000005e-06, %v2320_v36  ;;  %v10083_v63 = vmax.f32 %v2060_v44, %v2061_v22 }
 0x27b   : > { %v2077_v0 = vsub.f32 %v10044_v51, %v10080_v18  ;;  %v3116_v5 = vadd.f32 %v3115_v34, %v3114_v62  ;;  %v2291_v12 = vrot.slane %v2290_v49, 2  ;;  %v1614_v10 = vadd.f32 5e-07, %v1598_v2 }
 0x27c   : > { %7546 = vlog2.f32 %v1629_v6  ;;  %v1709_v9 = vmul.f32 100.0, %v1693_v26  ;;  %v10088_v43 = vadd.f32 %v2336_v4, %v10004_v60  ;;  %v2078_v56 = vsub.f32 %v10050_v17, %v10083_v63 }
 0x27d   : > { %v2107_v1 = vmul.f32 1.442695, %v2077_v0  ;;  %v3120_v15 = vadd.f32 %v3119_v31, %v3118_v41  ;;  %v2292_v39 = vadd.f32 %v2291_v12, %v2290_v49  ;;  %v1630_v44 = vmul.f32 100.0, %v1614_v10  ;;  %v2574_v0 = vpop.permute.xlu1 %2573 }
 0x27e   : > { %v7545_v16 = vpop.eup %7544  ;;  %v1694_v11 = vsub.f32 1.0, %v1614_v10  ;;  %7548 = vlog2.f32 %v1709_v9  ;;  %v2109_v51 = vmul.f32 1.442695, %v2078_v56  ;;  %v3261_v60 = vcombine.high %v10066_v37, %v10066_v37  ;;  %v14068_v56 = vld [vmem:[#allocation20_spill] sm:$0xff] }
 0x27f   : > { %v2396_v58 = vmul.f32 0.6931472, %v7545_v16  ;;  %7550 = vpow2.f32 %v2107_v1  ;;  %v3121_v62 = vrot.slane %v3120_v15, 1  ;;  %v2293_v34 = vrot.slane %v2292_v39, 1 }
 0x280   : > { %7552 = vlog2.f32 %v1630_v44  ;;  %v1710_v22 = vmul.f32 100.0, %v1694_v11  ;;  %v2984_v41 = vmax.f32 %v10046_v28, %v2983_v25  ;;  %v14067_v31 = vsub.f32 %v9837_v8, %v9839_v33 }
 0x281   : > { %v10095_v36 = vadd.f32 %v2396_v58, %v10055_v46  ;;  %7554 = vpow2.f32 %v2109_v51  ;;  %v3122_v17 = vadd.f32 %v3121_v62, %v3120_v15  ;;  %v1771_v2 = vsub.f32 %v10017_v3, %v10026_v19  ;;  %v14069_v15 = vld [vmem:[#allocation21_spill] sm:$0xff] }
 0x282   : > { %v3425_v49 = vsel %vm13957_vm9, %v14067_v31, %v9909_v27  ;;  %v2294_v6 = vadd.f32 %v2293_v34, %v2292_v39  ;;  %7556 = vlog2.f32 %v1710_v22  ;;  %v2989_v46 = vrot.slane %v2988_v30, 1 }
 0x283   : > { %v4630_v26 = vmax.f32 %v9859_v32, %v10095_v36  ;;  %7558 = vrcp.f32 %v3116_v5  ;;  %v3055_v4 = vsub.f32 %v9895_v52, %v2984_v41  ;;  %v3418_v28 = vsel %vm13954_vm13, %v1771_v2, %v10002_v55 }
 0x284   : > { %7560 = vlog2.f32 %v2294_v6  ;;  %v10111_v8 = vrot.slane %v3261_v60, %v14066_v40  ;;  %v10115_v33 = vadd.f32 %v10039_v38, %v9809_v42  ;;  %v2990_v27 = vmax.f32 %v2988_v30, %v2989_v46 }
 0x285   : > { %7562 = vrcp.f32 %v3122_v17  ;;  %v3075_v3 = vmul.f32 1.442695, %v3055_v4  ;;  %v2955_v19 = vrot.slane %v10061_v24, 4  ;;  %v1772_v52 = vsub.f32 %v10074_v48, %v10076_v50 }
 0x286   : > { %v7547_v25 = vpop.eup %7546  ;;  %v2961_v5 = vrot.slane %v10115_v33, 4  ;;  %v10122_v55 = vadd.f32 %v2574_v0, %v9806_v57  ;;  %v10125_v12 = vadd.f32 %v2574_v0, %v9809_v42  ;;  %v3056_v38 = vsub.f32 %v9984_v21, %v2990_v27 }
 0x287   : > { %v1660_v10 = vmul.f32 0.6931472, %v7547_v25  ;;  %7564 = vpow2.f32 %v3075_v3  ;;  %v2956_v30 = vmax.f32 %v10061_v24, %v2955_v19  ;;  %v3306_v1 = vrot.slane %v10111_v8, %v14068_v56 }
 0x288   : > { %v7549_v9 = vpop.eup %7548  ;;  %v3310_v50 = vrot.slane %v10111_v8, %v14069_v15  ;;  %v2962_v48 = vmax.f32 %v10115_v33, %v2961_v5  ;;  %v2991_v57 = vrot.slane %v10122_v55, 4  ;;  %v3426_v42 = vsel %vm13954_vm13, %v1772_v52, %v3425_v49 }
 0x289   : > { %v7551_v16 = vpop.eup %7550  ;;  %v7085_v39 = vadd.f32 -4.6051702, %v1660_v10  ;;  %v1740_v44 = vmul.f32 0.6931472, %v7549_v9  ;;  %v3077_v21 = vmul.f32 1.442695, %v3056_v38 }
 0x28a   : > { %v7553_v11 = vpop.eup %7552  ;;  %v2209_v58 = vmul.f32 %v7551_v16, %v9116_v7  ;;  %v2957_v51 = vrot.slane %v2956_v30, 2  ;;  %v2963_v62 = vrot.slane %v2962_v48, 2  ;;  %v10138_v34 = vmax.f32 %v10122_v55, %v2991_v57 }
 0x28b   : > { %v7555_v22 = vpop.eup %7554  ;;  %v1662_v60 = vmul.f32 0.6931472, %v7553_v11  ;;  %v7101_v17 = vadd.f32 -4.6051702, %v1740_v44  ;;  %7566 = vpow2.f32 %v3077_v21  ;;  %v2997_v41 = vrot.slane %v10125_v12, 4 }
 0x28c   : > { %v7557_v31 = vpop.eup %7556  ;;  %v2210_v49 = vmul.f32 %v7555_v22, %v9126_v47  ;;  %v2295_v2 = vrot.slane %v2209_v58, 4  ;;  %v2958_v6 = vmax.f32 %v2956_v30, %v2957_v51  ;;  %v2964_v46 = vmax.f32 %v2962_v48, %v2963_v62 }
 0x28d   : > { %v7559_v4 = vpop.eup %7558  ;;  %v7086_v0 = vadd.f32 -4.6051702, %v1662_v60  ;;  %v1742_v7 = vmul.f32 0.6931472, %v7557_v31  ;;  %v1773_v27 = vsub.f32 %v7085_v39, %v7101_v17  ;;  %v2321_v3 = vadd.f32 %v7101_v17, %v7085_v39 }
 0x28e   : > { %v7561_v19 = vpop.eup %7560  ;;  %v2296_v25 = vadd.f32 %v2295_v2, %v2209_v58  ;;  %v2301_v52 = vrot.slane %v2210_v49, 4  ;;  %v10143_v5 = vmul.f32 %v7559_v4, %v10041_v14  ;;  %v2959_v10 = vrot.slane %v2958_v6, 1 }
 0x28f   : > { %v7563_v38 = vpop.eup %7562  ;;  %v2398_v9 = vmul.f32 0.6931472, %v7561_v19  ;;  %v7102_v57 = vadd.f32 -4.6051702, %v1742_v7  ;;  %v2337_v16 = vsub.f32 -1.0000005e-06, %v2321_v3  ;;  %v10146_v47 = vsel %vm13948_vm14, %v1773_v27, %v3418_v28 }
 0x290   : > { %v2297_v30 = vrot.slane %v2296_v25, 2  ;;  %v2302_v48 = vadd.f32 %v2301_v52, %v2210_v49  ;;  %v10149_v44 = vmul.f32 %v7563_v38, %v10052_v53  ;;  %v3377_v39 = vmul.f32 %v3306_v1, %v10143_v5 }
 0x291   : > { %v10152_v21 = vpop.eup %7564  ;;  %v10155_v14 = vadd.f32 %v2398_v9, %v10088_v43  ;;  %v1774_v11 = vsub.f32 %v7086_v0, %v7102_v57  ;;  %v2322_v58 = vadd.f32 %v7102_v57, %v7086_v0  ;;  %v10158_v51 = vadd.f32 %v2337_v16, %v10080_v18 }
 0x292   : > { %v2298_v62 = vadd.f32 %v2297_v30, %v2296_v25  ;;  %v2303_v28 = vrot.slane %v2302_v48, 2  ;;  %v3378_v22 = vmul.f32 %v3310_v50, %v10149_v44  ;;  %v3432_v60 = vmul.f32 %v10146_v47, %v3377_v39  ;;  %v10178_v30 = vld [vmem:[%s8681_s27 + $0x50] sm:$0xff] }
 0x293   : > { %v4637_v53 = vmax.f32 %v9874_v20, %v10155_v14  ;;  %v2338_v1 = vsub.f32 -1.0000005e-06, %v2322_v58  ;;  %v10165_v17 = vsel %vm13948_vm14, %v1774_v11, %v3426_v42  ;;  %v3123_v43 = vrot.slane %v10152_v21, 4 }
 0x294   : > { %14070 = vst [vmem:[#allocation38_spill] sm:$0xff] %v10165_v17  ;;  %v2299_v31 = vrot.slane %v2298_v62, 1  ;;  %v2304_v49 = vadd.f32 %v2303_v28, %v2302_v48  ;;  %v3433_v18 = vmul.f32 %v10165_v17, %v3378_v22  ;;  %v3458_v2 = vrot.slane %v3432_v60, 4  ;;  %v10183_v28 = vld [vmem:[%s8681_s27 + $0x58] sm:$0xff] }
 0x295   : > { %v10169_v4 = vpop.eup %7566  ;;  %v10172_v50 = vadd.f32 %v2338_v1, %v10083_v63  ;;  %v3124_v0 = vadd.f32 %v10152_v21, %v3123_v43  ;;  %v2960_v7 = vmax.f32 %v2958_v6, %v2959_v10  ;;  %v2965_v27 = vrot.slane %v2964_v46, 1 }
 0x296   : > { %v2300_v3 = vadd.f32 %v2299_v31, %v2298_v62  ;;  %v2305_v42 = vrot.slane %v2304_v49, 1  ;;  %v3459_v19 = vadd.f32 %v3458_v2, %v3432_v60  ;;  %v3464_v25 = vrot.slane %v3433_v18, 4 }
 0x297   : > { %v3125_v52 = vrot.slane %v3124_v0, 2  ;;  %v3129_v38 = vrot.slane %v10169_v4, 4  ;;  %v2966_v9 = vmax.f32 %v2964_v46, %v2965_v27  ;;  %v3051_v57 = vsub.f32 %v10061_v24, %v2960_v7 }
 0x298   : > { %v2306_v16 = vadd.f32 %v2305_v42, %v2304_v49  ;;  %7568 = vlog2.f32 %v2300_v3  ;;  %v3460_v63 = vrot.slane %v3459_v19, 2  ;;  %v3465_v48 = vadd.f32 %v3464_v25, %v3433_v18 }
 0x299   : > { %v3126_v39 = vadd.f32 %v3125_v52, %v3124_v0  ;;  %v3130_v6 = vadd.f32 %v10169_v4, %v3129_v38  ;;  %v3052_v10 = vsub.f32 %v10115_v33, %v2966_v9  ;;  %v3067_v11 = vmul.f32 1.442695, %v3051_v57 }
 0x29a   : > { %7570 = vlog2.f32 %v2306_v16  ;;  %v3461_v58 = vadd.f32 %v3460_v63, %v3459_v19  ;;  %v3466_v62 = vrot.slane %v3465_v48, 2  ;;  %v3544_v46 = vrot.slane %v10178_v30, 1 }
 0x29b   : > { %v3127_v24 = vrot.slane %v3126_v39, 1  ;;  %v3131_v22 = vrot.slane %v3130_v6, 2  ;;  %v3069_v60 = vmul.f32 1.442695, %v3052_v10  ;;  %v10188_v31 = vrot.slane %v10066_v37, %v14066_v40 }
 0x29c   : > { %v3462_v1 = vrot.slane %v3461_v58, 1  ;;  %v3467_v43 = vadd.f32 %v3466_v62, %v3465_v48  ;;  %v2993_v49 = vrot.slane %v10138_v34, 2  ;;  %7572 = vpow2.f32 %v3067_v11 }
 0x29d   : > { %v3128_v33 = vadd.f32 %v3127_v24, %v3126_v39  ;;  %v3132_v18 = vadd.f32 %v3131_v22, %v3130_v6  ;;  %v2998_v2 = vmax.f32 %v10125_v12, %v2997_v41  ;;  %v3545_v0 = vrot.slane %v10183_v28, 1 }
 0x29e   : > { %v3463_v7 = vadd.f32 %v3462_v1, %v3461_v58  ;;  %v3468_v27 = vrot.slane %v3467_v43, 1  ;;  %v2994_v3 = vmax.f32 %v10138_v34, %v2993_v49  ;;  %7574 = vpow2.f32 %v3069_v60 }
 0x29f   : > { %v3133_v42 = vrot.slane %v3132_v18, 1  ;;  %v2999_v19 = vrot.slane %v2998_v2, 2  ;;  %v10200_v52 = vcombine.high %v10188_v31, %v10188_v31  ;;  %7576 = vrcp.f32 %v3128_v33 }
 0x2a0   : > { %v3469_v37 = vadd.f32 %v3468_v27, %v3467_v43  ;;  %v10196_v25 = vadd.f32 %v3544_v46, %v3463_v7  ;;  %v2995_v16 = vrot.slane %v2994_v3, 1  ;;  %v10220_v24 = vcombine.high %v10111_v8, %v10111_v8 }
 0x2a1   : > { %v3000_v38 = vmax.f32 %v2998_v2, %v2999_v19  ;;  %v3134_v48 = vadd.f32 %v3133_v42, %v3132_v18  ;;  %v3314_v11 = vrot.slane %v10200_v52, %v14068_v56  ;;  %v3246_v49 = vcombine.high %v10010_v13, %v10024_v59  ;;  %v10234_v2 = vpop.permute.xlu0 %2580 }
 0x2a2   : > { %v7569_v9 = vpop.eup %7568  ;;  %v10202_v41 = vadd.f32 %v3545_v0, %v3469_v37  ;;  %v10205_v57 = vsub.f32 0.0, %v10196_v25  ;;  %v2996_v43 = vmax.f32 %v2994_v3, %v2995_v16  ;;  %v3318_v8 = vrot.slane %v10200_v52, %v14069_v15 }
 0x2a3   : > { %v2400_v34 = vmul.f32 0.6931472, %v7569_v9  ;;  %v3001_v22 = vrot.slane %v3000_v38, 1  ;;  %7578 = vrcp.f32 %v3134_v48  ;;  %v10259_v48 = vld [vmem:[%s8681_s27 + $0x70] sm:$0xff] }
 0x2a4   : > { %v7571_v39 = vpop.eup %7570  ;;  %v10209_v6 = vsub.f32 0.0, %v10202_v41  ;;  %v3656_v10 = vand.u32 2147483647, %v10205_v57  ;;  %v3057_v16 = vsub.f32 %v10122_v55, %v2996_v43  ;;  %v10263_v32 = vadd.f32 %v10259_v48, %v10234_v2  ;;  %v14075_v43 = vld [vmem:[#allocation31_spill] sm:$0xff] }
 0x2a5   : > { %v2402_v62 = vmul.f32 0.6931472, %v7571_v39  ;;  %v10216_v46 = vadd.f32 %v2400_v34, %v10158_v51  ;;  %v10251_v37 = vmax.f32 %v3000_v38, %v3001_v22  ;;  %v10256_v34 = vrot.slane %v3246_v49, %v14066_v40 }
 0x2a6   : > { %v3657_v60 = vand.u32 2147483647, %v10209_v6  ;;  %v3672_v1 = vsub.f32 0.0, %v3656_v10  ;;  %v10225_v33 = vpop.eup %7572  ;;  %vm3624_vm15 = vcmp.ne.f32.partialorder %v10205_v57, %v10205_v57  ;;  %vm3625_vm1 = vcmp.ne.f32.partialorder %v10209_v6, %v10209_v6 }
 0x2a7   : > { %v10228_v18 = vadd.f32 %v2402_v62, %v10172_v50  ;;  %v4631_v51 = vmax.f32 %v9952_v54, %v10216_v46  ;;  %v3099_v9 = vrot.slane %v10225_v33, 4 }
 0x2a8   : > { %v3673_v0 = vsub.f32 0.0, %v3657_v60  ;;  %v3690_v7 = vmul.f32 1.442695, %v3672_v1  ;;  %v10240_v50 = vpop.eup %7574  ;;  %v14073_v60 = vld [vmem:[#allocation33_spill] sm:$0xff] }
 0x2a9   : > { %v10245_v54 = vmax.f32 %v4630_v26, %v4631_v51  ;;  %v4638_v42 = vmax.f32 %v9963_v35, %v10228_v18  ;;  %v7577_v26 = vpop.eup %7576  ;;  %v3105_v22 = vrot.slane %v10240_v50, 4 }
 0x2aa   : > { %7580 = vpow2.f32 %v3690_v7  ;;  %v3692_v62 = vmul.f32 1.442695, %v3673_v0  ;;  %v10288_v51 = vmul.f32 %v7577_v26, %v10152_v21  ;;  %v3100_v0 = vadd.f32 %v10225_v33, %v3099_v9  ;;  %v14077_v21 = vld [vmem:[#allocation29_spill] sm:$0xff]  ;;  %v14078_v9 = vld [vmem:[#allocation36_spill] sm:$0xff] }
 0x2ab   : > { %14071 = vst [vmem:[#allocation39_spill] sm:$0xff] %v10245_v54  ;;  %v10268_v35 = vmax.f32 %v4637_v53, %v4638_v42  ;;  %v4640_v38 = vsub.f32 %v9500_v61, %v10245_v54  ;;  %v4642_v55 = vsub.f32 %v9506_v29, %v10245_v54  ;;  %v14074_v53 = vld [vmem:[#allocation30_spill] sm:$0xff]  ;;  %v10291_v7 = vmul.f32 1.442695, %v3057_v16 }
 0x2ac   : > { %v4644_v61 = vsub.f32 %v14074_v53, %v10245_v54  ;;  %v4646_v42 = vsub.f32 %v14056_v23, %v10245_v54  ;;  %v14076_v53 = vld [vmem:[#allocation34_spill] sm:$0xff]  ;;  %7582 = vpow2.f32 %v3692_v62  ;;  %v4648_v26 = vsub.f32 %v14077_v21, %v10245_v54  ;;  %v14079_v23 = vld [vmem:[#allocation35_spill] sm:$0xff]  ;;  %v14080_v62 = vld [vmem:[#allocation37_spill] sm:$0xff] }
 0x2ad   : > { %14072 = vst [vmem:[#allocation40_spill] sm:$0xff] %v10268_v35  ;;  %v4641_v1 = vsub.f32 %v14073_v60, %v10268_v35  ;;  %v4643_v20 = vsub.f32 %v9509_v45, %v10268_v35  ;;  %v4645_v49 = vsub.f32 %v14075_v43, %v10268_v35  ;;  %v4656_v45 = vmul.f32 1.442695, %v4640_v38  ;;  %v7579_v29 = vpop.eup %7578 }
 0x2ae   : > { %v4660_v19 = vmul.f32 1.442695, %v4642_v55  ;;  %v4647_v3 = vsub.f32 %v14076_v53, %v10268_v35  ;;  %v3106_v43 = vadd.f32 %v10240_v50, %v3105_v22  ;;  %v4650_v16 = vsub.f32 %v14078_v9, %v10245_v54 }
 0x2af   : > { %v4658_v60 = vmul.f32 1.442695, %v4641_v1  ;;  %v4662_v27 = vmul.f32 1.442695, %v4643_v20  ;;  %7584 = vpow2.f32 %v4656_v45  ;;  %v4664_v10 = vmul.f32 1.442695, %v4644_v61 }
 0x2b0   : > { %v4649_v38 = vsub.f32 %v14079_v23, %v10268_v35  ;;  %v4652_v55 = vsub.f32 %v10095_v36, %v10245_v54  ;;  %v4666_v1 = vmul.f32 1.442695, %v4645_v49  ;;  %v4651_v22 = vsub.f32 %v14080_v62, %v10268_v35 }
 0x2b1   : > { %7586 = vpow2.f32 %v4658_v60  ;;  %v4653_v20 = vsub.f32 %v10155_v14, %v10268_v35  ;;  %v4668_v53 = vmul.f32 1.442695, %v4646_v42  ;;  %v4670_v21 = vmul.f32 1.442695, %v4647_v3 }
 0x2b2   : > { %7588 = vpow2.f32 %v4660_v19  ;;  %v10311_v61 = vmul.f32 %v7579_v29, %v10169_v4  ;;  %v3379_v36 = vmul.f32 %v3314_v11, %v10288_v51  ;;  %v4654_v49 = vsub.f32 %v10216_v46, %v10245_v54 }
 0x2b3   : > { %7590 = vpow2.f32 %v4662_v27  ;;  %v4655_v45 = vsub.f32 %v10228_v18, %v10268_v35  ;;  %v4672_v14 = vmul.f32 1.442695, %v4648_v26  ;;  %v4674_v27 = vmul.f32 1.442695, %v4649_v38 }
 0x2b4   : > { %7592 = vpow2.f32 %v4664_v10  ;;  %v10321_v19 = vpop.eup %7580  ;;  %v3380_v4 = vmul.f32 %v3318_v8, %v10311_v61  ;;  %v3434_v3 = vmul.f32 %v10146_v47, %v3379_v36  ;;  %v4676_v11 = vmul.f32 1.442695, %v4650_v16 }
 0x2b5   : > { %7594 = vpow2.f32 %v4666_v1  ;;  %v3101_v29 = vrot.slane %v3100_v0, 2  ;;  %v3107_v46 = vrot.slane %v3106_v43, 2  ;;  %v4678_v42 = vmul.f32 1.442695, %v4651_v22 }
 0x2b6   : > { %7596 = vpow2.f32 %v4668_v53  ;;  %v3435_v18 = vmul.f32 %v10165_v17, %v3380_v4  ;;  %v3470_v10 = vrot.slane %v3434_v3, 4  ;;  %v4680_v60 = vmul.f32 1.442695, %v4652_v55  ;;  %v10330_v23 = vpop.eup %7582 }
 0x2b7   : > { %7598 = vpow2.f32 %v4670_v21  ;;  %v4682_v26 = vmul.f32 1.442695, %v4653_v20  ;;  %v3739_v9 = vmul.f32 -0.5, %v10321_v19  ;;  %v4684_v52 = vmul.f32 1.442695, %v4654_v49 }
 0x2b8   : > { %7600 = vpow2.f32 %v4672_v14  ;;  %v3471_v8 = vadd.f32 %v3470_v10, %v3434_v3  ;;  %v3476_v38 = vrot.slane %v3435_v18, 4  ;;  %v4686_v16 = vmul.f32 1.442695, %v4655_v45 }
 0x2b9   : > { %7602 = vpow2.f32 %v4674_v27  ;;  %v7585_v1 = vpop.eup %7584  ;;  %v3102_v62 = vadd.f32 %v3101_v29, %v3100_v0  ;;  %v3108_v53 = vadd.f32 %v3107_v46, %v3106_v43  ;;  %v3736_v21 = vadd.f32 1.0, %v10321_v19 }
 0x2ba   : > { %7604 = vpow2.f32 %v4676_v11  ;;  %v3472_v36 = vrot.slane %v3471_v8, 2  ;;  %v3477_v55 = vadd.f32 %v3476_v38, %v3435_v18  ;;  %v10333_v14 = vadd.f32 1.0, %v3739_v9 }
 0x2bb   : > { %v7587_v22 = vpop.eup %7586  ;;  %7606 = vpow2.f32 %v4678_v42  ;;  %v3742_v27 = vand.u32 2147483647, %v10321_v19  ;;  %v3745_v49 = vadd.f32 1.0, %v10330_v23  ;;  %v3103_v29 = vrot.slane %v3102_v62, 1 }
 0x2bc   : > { %v7589_v20 = vpop.eup %7588  ;;  %7608 = vpow2.f32 %v4680_v60  ;;  %v3473_v45 = vadd.f32 %v3472_v36, %v3471_v8  ;;  %v3478_v0 = vrot.slane %v3477_v55, 2  ;;  %v3109_v46 = vrot.slane %v3108_v53, 1 }
 0x2bd   : > { %v7591_v4 = vpop.eup %7590  ;;  %7610 = vpow2.f32 %v4682_v26  ;;  %v4704_v3 = vrot.slane %v7589_v20, 7  ;;  %vm10361_vm0 = vcmp.lt.f32.partialorder %v3742_v27, 0.0004427343 }
 0x2be   : > { %v7593_v43 = vpop.eup %7592  ;;  %7612 = vpow2.f32 %v4684_v52  ;;  %v4718_v11 = vrot.slane %v7591_v4, 7  ;;  %v3474_v60 = vrot.slane %v3473_v45, 1  ;;  %v3479_v26 = vadd.f32 %v3478_v0, %v3477_v55 }
 0x2bf   : > { %v7595_v42 = vpop.eup %7594  ;;  %7614 = vpow2.f32 %v4686_v16  ;;  %v4705_v18 = vsel %vm13961_vm4, %v4704_v3, %v7585_v1  ;;  %v4706_v10 = vrot.slane %v7593_v43, 6  ;;  %v3748_v1 = vmul.f32 -0.5, %v10330_v23 }
 0x2c0   : > { %v7597_v9 = vpop.eup %7596  ;;  %v4719_v38 = vsel %vm13961_vm4, %v4718_v11, %v7587_v22  ;;  %v4720_v39 = vrot.slane %v7595_v42, 6  ;;  %7616 = vlog2.f32 %v3736_v21  ;;  %v3475_v52 = vadd.f32 %v3474_v60, %v3473_v45 }
 0x2c1   : > { %v7599_v20 = vpop.eup %7598  ;;  %v4707_v8 = vsel %vm13960_vm5, %v4706_v10, %v4705_v18  ;;  %v4708_v36 = vrot.slane %v7597_v9, 5  ;;  %7618 = vlog2.f32 %v3745_v49  ;;  %v3480_v3 = vrot.slane %v3479_v26, 1 }
 0x2c2   : > { %v7601_v4 = vpop.eup %7600  ;;  %v4721_v58 = vsel %vm13960_vm5, %v4720_v39, %v4719_v38  ;;  %v4722_v16 = vrot.slane %v7599_v20, 5  ;;  %v14081_v21 = vrot.slane %v10178_v30, 2  ;;  %v3104_v0 = vadd.f32 %v3103_v29, %v3102_v62 }
 0x2c3   : > { %v7603_v43 = vpop.eup %7602  ;;  %v4709_v63 = vsel %vm13959_vm6, %v4708_v36, %v4707_v8  ;;  %v4710_v22 = vrot.slane %v7601_v4, 4  ;;  %v3751_v42 = vand.u32 2147483647, %v10330_v23  ;;  %v3481_v39 = vadd.f32 %v3480_v3, %v3479_v26 }
 0x2c4   : > { %v10345_v55 = vadd.f32 %v14081_v21, %v3475_v52  ;;  %v7605_v11 = vpop.eup %7604  ;;  %v4723_v49 = vsel %vm13959_vm6, %v4722_v16, %v4721_v58  ;;  %v4724_v45 = vrot.slane %v7603_v43, 4  ;;  %v3110_v38 = vadd.f32 %v3109_v46, %v3108_v53 }
 0x2c5   : > { %v7607_v18 = vpop.eup %7606  ;;  %v4711_v10 = vsel %vm13958_vm7, %v4710_v22, %v4709_v63  ;;  %v4712_v60 = vrot.slane %v7605_v11, 3  ;;  %v3749_v62 = vadd.f32 1.0, %v3748_v1  ;;  %v14082_v29 = vrot.slane %v10183_v28, 2 }
 0x2c6   : > { %v10351_v9 = vsub.f32 0.0, %v10345_v55  ;;  %v7609_v20 = vpop.eup %7608  ;;  %v4725_v8 = vsel %vm13958_vm7, %v4724_v45, %v4723_v49  ;;  %v4726_v36 = vrot.slane %v7607_v18, 3  ;;  %7620 = vrcp.f32 %v3104_v0 }
 0x2c7   : > { %v10356_v58 = vadd.f32 %v14082_v29, %v3481_v39  ;;  %v7611_v52 = vpop.eup %7610  ;;  %v4713_v26 = vsel %vm13957_vm9, %v4712_v60, %v4711_v10  ;;  %v4714_v4 = vrot.slane %v7609_v20, 2  ;;  %v3741_v21 = vmul.f32 %v10321_v19, %v10333_v14 }
 0x2c8   : > { %v7613_v53 = vpop.eup %7612  ;;  %v4727_v46 = vsel %vm13957_vm9, %v4726_v36, %v4725_v8  ;;  %v4728_v16 = vrot.slane %v7611_v52, 2  ;;  %v3658_v3 = vand.u32 2147483647, %v10351_v9  ;;  %7622 = vrcp.f32 %v3110_v38 }
 0x2c9   : > { %v10369_v1 = vsub.f32 0.0, %v10356_v58  ;;  %v7615_v43 = vpop.eup %7614  ;;  %v4715_v22 = vsel %vm13954_vm13, %v4714_v4, %v4713_v26  ;;  %v4716_v27 = vrot.slane %v7613_v53, 1  ;;  %v3750_v45 = vmul.f32 %v10330_v23, %v3749_v62 }
 0x2ca   : > { %v7617_v0 = vpop.eup %7616  ;;  %v4729_v11 = vsel %vm13954_vm13, %v4728_v16, %v4727_v46  ;;  %v4730_v49 = vrot.slane %v7615_v43, 1  ;;  %vm10377_vm2 = vcmp.lt.f32.partialorder %v3751_v42, 0.0004427343  ;;  %v3674_v8 = vsub.f32 0.0, %v3658_v3 }
 0x2cb   : > { %v7619_v18 = vpop.eup %7618  ;;  %v10382_v10 = vsel %vm13948_vm14, %v4716_v27, %v4715_v22  ;;  %v3738_v60 = vmul.f32 0.6931472, %v7617_v0  ;;  %v3659_v20 = vand.u32 2147483647, %v10369_v1  ;;  %v14088_v26 = vmax.f32 %v10205_v57, 0.0 }
 0x2cc   : > { %v10386_v19 = vsel %vm13948_vm14, %v4730_v49, %v4729_v11  ;;  %v3747_v14 = vmul.f32 0.6931472, %v7619_v18  ;;  %v4736_v38 = vmul.f32 %v10382_v10, %v10143_v5  ;;  %v4738_v23 = vmul.f32 %v10382_v10, %v10288_v51 }
 0x2cd   : > { %14087 = vst [vmem:[#allocation33_spill] sm:$0xff] %v10386_v19  ;;  %v3744_v42 = vsel %vm10361_vm0, %v3741_v21, %v3738_v60  ;;  %v4737_v36 = vmul.f32 %v10386_v19, %v10149_v44  ;;  %v3675_v62 = vsub.f32 0.0, %v3659_v20  ;;  %v3694_v29 = vmul.f32 1.442695, %v3674_v8 }
 0x2ce   : > { %v3753_v52 = vsel %vm10377_vm2, %v3750_v45, %v3747_v14  ;;  %v3864_v4 = vadd.f32 %v3744_v42, %v14088_v26  ;;  %v4762_v53 = vrot.slane %v4736_v38, 4  ;;  %v4739_v5 = vmul.f32 %v10386_v19, %v10311_v61 }
 0x2cf   : > { %v14089_v51 = vmax.f32 %v10209_v6, 0.0  ;;  %v4768_v63 = vrot.slane %v4737_v36, 4  ;;  %7624 = vpow2.f32 %v3694_v29  ;;  %v3696_v16 = vmul.f32 1.442695, %v3675_v62 }
 0x2d0   : > { %v10408_v44 = vsel %vm3624_vm15, %v10205_v57, %v3864_v4  ;;  %v4763_v3 = vadd.f32 %v4762_v53, %v4736_v38  ;;  %v4774_v43 = vrot.slane %v4738_v23, 4  ;;  %v4780_v22 = vrot.slane %v4739_v5, 4  ;;  %v7621_v27 = vpop.eup %7620 }
 0x2d1   : > { %v3865_v46 = vadd.f32 %v3753_v52, %v14089_v51  ;;  %14090 = vst [vmem:[#allocation30_spill] sm:$0xff] %v10408_v44  ;;  %v3912_v21 = vsub.f32 0.0, %v10408_v44  ;;  %v4769_v0 = vadd.f32 %v4768_v63, %v4737_v36  ;;  %v14092_v11 = vsub.f32 %v10125_v12, %v10251_v37  ;;  %v10432_v52 = vld [vmem:[%s8681_s27 + $0x78] sm:$0xff] }
 0x2d2   : > { %v4764_v45 = vrot.slane %v4763_v3, 2  ;;  %7626 = vpow2.f32 %v3696_v16  ;;  %v7623_v18 = vpop.eup %7622  ;;  %v4775_v20 = vadd.f32 %v4774_v43, %v4738_v23  ;;  %v3003_v8 = vrot.slane %v10263_v32, 4 }
 0x2d3   : > { %v10414_v61 = vsel %vm3625_vm1, %v10209_v6, %v3865_v46  ;;  %v3081_v49 = vmul.f32 1.442695, %v14092_v11  ;;  %v4770_v60 = vrot.slane %v4769_v0, 2  ;;  %v10425_v6 = vrot.slane %v10256_v34, %v14066_v40 }
 0x2d4   : > { %14091 = vst [vmem:[#allocation31_spill] sm:$0xff] %v10414_v61  ;;  %v3913_v57 = vsub.f32 0.0, %v10414_v61  ;;  %v3930_v14 = vmul.f32 1.442695, %v3912_v21  ;;  %v4765_v12 = vadd.f32 %v4764_v45, %v4763_v3  ;;  %v4781_v37 = vadd.f32 %v4780_v22, %v4739_v5 }
 0x2d5   : > { %7628 = vpow2.f32 %v10291_v7  ;;  %v4771_v38 = vadd.f32 %v4770_v60, %v4769_v0  ;;  %v4776_v42 = vrot.slane %v4775_v20, 2  ;;  %v3227_v36 = vmul.f32 %v7621_v27, %v10225_v33 }
 0x2d6   : > { %7630 = vpow2.f32 %v3081_v49  ;;  %v3932_v62 = vmul.f32 1.442695, %v3913_v57  ;;  %v4782_v29 = vrot.slane %v4781_v37, 2  ;;  %v3228_v23 = vmul.f32 %v7623_v18, %v10240_v50 }
 0x2d7   : > { %v10436_v26 = vadd.f32 %v10432_v52, %v10234_v2  ;;  %v4777_v53 = vadd.f32 %v4776_v42, %v4775_v20  ;;  %v14093_v7 = vrot.slane %v10188_v31, %v14068_v56  ;;  %v4734_v33 = vmul.f32 %v10382_v10, %v3227_v36 }
 0x2d8   : > { %7632 = vpow2.f32 %v3930_v14  ;;  %v4766_v51 = vrot.slane %v4765_v12, 1  ;;  %v4735_v46 = vmul.f32 %v10386_v19, %v3228_v23  ;;  %v10445_v50 = vmax.f32 %v10263_v32, %v3003_v8 }
 0x2d9   : > { %v3375_v5 = vmul.f32 %v14093_v7, %v3227_v36  ;;  %v7625_v63 = vpop.eup %7624  ;;  %v4772_v16 = vrot.slane %v4771_v38, 1  ;;  %v14094_v2 = vrot.slane %v10188_v31, %v14069_v15  ;;  %v4750_v22 = vrot.slane %v4734_v33, 4 }
 0x2da   : > { %7634 = vpow2.f32 %v3932_v62  ;;  %v3754_v27 = vadd.f32 1.0, %v7625_v63  ;;  %v4778_v21 = vrot.slane %v4777_v53, 1  ;;  %v10451_v0 = vadd.f32 %v4782_v29, %v4781_v37 }
 0x2db   : > { %v3376_v3 = vmul.f32 %v14094_v2, %v3228_v23  ;;  %v3430_v43 = vmul.f32 %v10146_v47, %v3375_v5  ;;  %v3757_v11 = vmul.f32 -0.5, %v7625_v63  ;;  %v4751_v45 = vadd.f32 %v4750_v22, %v4734_v33 }
 0x2dc   : > { %v10454_v18 = vpop.eup %7626  ;;  %7636 = vlog2.f32 %v3754_v27  ;;  %v3760_v31 = vand.u32 2147483647, %v7625_v63  ;;  %v3009_v20 = vrot.slane %v10436_v26, 4  ;;  %v4767_v8 = vadd.f32 %v4766_v51, %v4765_v12 }
 0x2dd   : > { %v3431_v49 = vmul.f32 %v10165_v17, %v3376_v3  ;;  %v3446_v57 = vrot.slane %v3430_v43, 4  ;;  %v4773_v14 = vadd.f32 %v4772_v16, %v4771_v38  ;;  %v3763_v42 = vadd.f32 1.0, %v10454_v18 }
 0x2de   : > { %v4784_v62 = vrot.slane %v10451_v0, 1  ;;  %v4752_v23 = vrot.slane %v4751_v45, 2  ;;  %v4756_v7 = vrot.slane %v4735_v46, 4  ;;  %v3758_v33 = vadd.f32 1.0, %v3757_v11 }
 0x2df   : > { %v3447_v36 = vadd.f32 %v3446_v57, %v3430_v43  ;;  %v10459_v37 = vpop.eup %7628  ;;  %v3452_v29 = vrot.slane %v3431_v49, 4  ;;  %7638 = vlog2.f32 %v3763_v42  ;;  %v4779_v2 = vadd.f32 %v4778_v21, %v4777_v53 }
 0x2e0   : > { %v10462_v5 = vpop.eup %7630  ;;  %vm10464_vm3 = vcmp.lt.f32.partialorder %v3760_v31, 0.0004427343  ;;  %v4753_v38 = vadd.f32 %v4752_v23, %v4751_v45  ;;  %v4757_v51 = vadd.f32 %v4756_v7, %v4735_v46  ;;  %v3766_v16 = vmul.f32 -0.5, %v10454_v18 }
 0x2e1   : > { %v3448_v3 = vrot.slane %v3447_v36, 2  ;;  %v3453_v12 = vadd.f32 %v3452_v29, %v3431_v49  ;;  %v3769_v43 = vand.u32 2147483647, %v10454_v18  ;;  %v3135_v57 = vrot.slane %v10459_v37, 4 }
 0x2e2   : > { %v10471_v39 = vpop.eup %7632  ;;  %v4754_v42 = vrot.slane %v4753_v38, 1  ;;  %v4758_v53 = vrot.slane %v4757_v51, 2  ;;  %v3141_v21 = vrot.slane %v10462_v5, 4  ;;  %v3759_v31 = vmul.f32 %v7625_v63, %v3758_v33 }
 0x2e3   : > { %v3449_v27 = vadd.f32 %v3448_v3, %v3447_v36  ;;  %v3454_v11 = vrot.slane %v3453_v12, 2  ;;  %v3136_v49 = vadd.f32 %v10459_v37, %v3135_v57  ;;  %v3005_v46 = vrot.slane %v10445_v50, 2 }
 0x2e4   : > { %v10476_v45 = vpop.eup %7634  ;;  %v4755_v23 = vadd.f32 %v4754_v42, %v4753_v38  ;;  %v4759_v36 = vadd.f32 %v4758_v53, %v4757_v51  ;;  %v3142_v7 = vadd.f32 %v10462_v5, %v3141_v21  ;;  %v3767_v3 = vadd.f32 1.0, %v3766_v16 }
 0x2e5   : > { %v3450_v60 = vrot.slane %v3449_v27, 1  ;;  %14097 = vst [vmem:[#allocation34_spill] sm:$0xff] %v10476_v45  ;;  %v3455_v29 = vadd.f32 %v3454_v11, %v3453_v12  ;;  %v3137_v35 = vrot.slane %v3136_v49, 2  ;;  %v3010_v54 = vmax.f32 %v10436_v26, %v3009_v20 }
 0x2e6   : > { %v7637_v59 = vpop.eup %7636  ;;  %v4760_v63 = vrot.slane %v4759_v36, 1  ;;  %v4862_v33 = vsel %vm13961_vm4, %v4767_v8, %v4755_v23  ;;  %v3143_v57 = vrot.slane %v3142_v7, 2  ;;  %vm3770_vm8 = vcmp.lt.f32.partialorder %v3769_v43, 0.0004427343 }
 0x2e7   : > { %v3451_v4 = vadd.f32 %v3450_v60, %v3449_v27  ;;  %v3456_v13 = vrot.slane %v3455_v29, 1  ;;  %v3756_v17 = vmul.f32 0.6931472, %v7637_v59  ;;  %v3138_v12 = vadd.f32 %v3137_v35, %v3136_v49 }
 0x2e8   : > { %v10485_v38 = vsel %vm13960_vm5, %v4779_v2, %v4862_v33  ;;  %v4761_v16 = vadd.f32 %v4760_v63, %v4759_v36  ;;  %v3144_v60 = vadd.f32 %v3143_v57, %v3142_v7  ;;  %v3006_v27 = vmax.f32 %v10445_v50, %v3005_v46 }
 0x2e9   : > { %v10482_v19 = vadd.f32 %v3451_v4, %v10178_v30  ;;  %v3457_v51 = vadd.f32 %v3456_v13, %v3455_v29  ;;  %v7639_v20 = vpop.eup %7638  ;;  %v3762_v11 = vsel %vm10464_vm3, %v3759_v31, %v3756_v17  ;;  %v3139_v59 = vrot.slane %v3138_v12, 1 }
 0x2ea   : > { %v3011_v42 = vrot.slane %v3010_v54, 2  ;;  %v3765_v4 = vmul.f32 0.6931472, %v7639_v20  ;;  %v3768_v35 = vmul.f32 %v10454_v18, %v3767_v3  ;;  %v4869_v13 = vsel %vm13961_vm4, %v4773_v14, %v4761_v16 }
 0x2eb   : > { %v10491_v8 = vsub.f32 0.0, %v10482_v19  ;;  %v10495_v2 = vadd.f32 %v3457_v51, %v10183_v28  ;;  %v4785_v50 = vadd.f32 %v4784_v62, %v10451_v0  ;;  %v3140_v22 = vadd.f32 %v3139_v59, %v3138_v12  ;;  %v10529_v59 = vld [vmem:[#allocation7] sm:$0xff] }
 0x2ec   : > { %v3771_v17 = vsel %vm3770_vm8, %v3768_v35, %v3765_v4  ;;  %v14098_v21 = vmax.f32 %v10351_v9, 0.0  ;;  %v3145_v46 = vrot.slane %v3144_v60, 1  ;;  %v14099_v18 = vmax.f32 %v10369_v1, 0.0 }
 0x2ed   : > { %v3654_v53 = vand.u32 2147483647, %v10491_v8  ;;  %v10503_v49 = vsub.f32 0.0, %v10495_v2  ;;  %v3007_v36 = vrot.slane %v3006_v27, 1  ;;  %v3012_v14 = vmax.f32 %v3010_v54, %v3011_v42 }
 0x2ee   : > { %v3866_v31 = vadd.f32 %v3762_v11, %v14098_v21  ;;  %v3867_v29 = vadd.f32 %v3771_v17, %v14099_v18  ;;  %v3146_v7 = vadd.f32 %v3145_v46, %v3144_v60  ;;  %vm3626_vm10 = vcmp.ne.f32.partialorder %v10351_v9, %v10351_v9  ;;  %v2588_v60 = vpop.permute.xlu1 %2587 }
 0x2ef   : > { %v3670_v23 = vsub.f32 0.0, %v3654_v53  ;;  %v3655_v43 = vand.u32 2147483647, %v10503_v49  ;;  %7640 = vrcp.f32 %v3140_v22  ;;  %vm3627_vm11 = vcmp.ne.f32.partialorder %v10369_v1, %v10369_v1 }
 0x2f0   : > { %v10517_v54 = vsel %vm3626_vm10, %v10351_v9, %v3866_v31  ;;  %7642 = vrcp.f32 %v3146_v7  ;;  %v10520_v57 = vsel %vm3627_vm11, %v10369_v1, %v3867_v29  ;;  %v10523_v12 = vsel %vm13960_vm5, %v4785_v50, %v4869_v13  ;;  %v14104_v29 = vld [vmem:[#allocation22_spill] sm:$0xff] }
 0x2f1   : > { %v3686_v3 = vmul.f32 1.442695, %v3670_v23  ;;  %14100 = vst [vmem:[#allocation29_spill] sm:$0xff] %v10517_v54  ;;  %v3671_v33 = vsub.f32 0.0, %v3655_v43  ;;  %14101 = vst [vmem:[#allocation36_spill] sm:$0xff] %v10520_v57  ;;  %v3008_v51 = vmax.f32 %v3006_v27, %v3007_v36  ;;  %v3013_v16 = vrot.slane %v3012_v14, 1 }
 0x2f2   : > { %v3896_v20 = vadd.f32 %v10408_v44, %v10196_v25  ;;  %v3897_v11 = vadd.f32 %v10414_v61, %v10202_v41  ;;  %v3914_v42 = vsub.f32 0.0, %v10517_v54  ;;  %v3915_v35 = vsub.f32 0.0, %v10520_v57 }
 0x2f3   : > { %7644 = vpow2.f32 %v3686_v3  ;;  %v3688_v9 = vmul.f32 1.442695, %v3671_v33  ;;  %v3014_v4 = vmax.f32 %v3012_v14, %v3013_v16  ;;  %v3059_v27 = vsub.f32 %v10263_v32, %v3008_v51 }
 0x2f4   : > { %v10538_v25 = vadd.f32 %v10259_v48, %v2588_v60  ;;  %v10541_v41 = vadd.f32 %v10432_v52, %v2588_v60  ;;  %v5177_v22 = vrot.slane %v10529_v59, %v14069_v15  ;;  %v10546_v17 = vadd.f32 1e-06, %v3896_v20 }
 0x2f5   : > { %7646 = vpow2.f32 %v3688_v9  ;;  %v3060_v50 = vsub.f32 %v10436_v26, %v3014_v4  ;;  %v3083_v53 = vmul.f32 1.442695, %v3059_v27  ;;  %v10548_v32 = vadd.f32 1e-06, %v3897_v11 }
 0x2f6   : > { %14102 = vst [vmem:[#allocation35_spill] sm:$0xff] %v10546_v17  ;;  %v3015_v31 = vrot.slane %v10538_v25, 4  ;;  %v3934_v46 = vmul.f32 1.442695, %v3914_v42  ;;  %5179 = vbcast.lane.b32.xlu0 %v5177_v22, 256  ;;  %v5184_v23 = vrot.slane %v10529_v59, %v14104_v29  ;;  %v3262_v33 = vcombine.high %v10256_v34, %v10256_v34  ;;  %v14109_v29 = vld [vmem:[#allocation33_spill] sm:$0xff] }
 0x2f7   : > { %14103 = vst [vmem:[#allocation37_spill] sm:$0xff] %v10548_v32  ;;  %7648 = vpow2.f32 %v3083_v53  ;;  %v3085_v18 = vmul.f32 1.442695, %v3060_v50  ;;  %v3936_v14 = vmul.f32 1.442695, %v3915_v35  ;;  %v3021_v51 = vrot.slane %v10541_v41, 4 }
 0x2f8   : > { %v3016_v43 = vmax.f32 %v10538_v25, %v3015_v31  ;;  %5186 = vbcast.lane.b32.xlu1 %v5184_v23, 256  ;;  %v10563_v60 = vadd.f32 %v10517_v54, %v10345_v55  ;;  %v10569_v42 = vadd.f32 %v10520_v57, %v10356_v58  ;;  %v14107_v55 = vrot.slane %v10220_v24, %v14068_v56 }
 0x2f9   : > { %v7641_v7 = vpop.eup %7640  ;;  %7650 = vpow2.f32 %v3085_v18  ;;  %v10578_v31 = vrot.slane %v3262_v33, %v14066_v40  ;;  %v3022_v58 = vmax.f32 %v10541_v41, %v3021_v51  ;;  %vm3622_vm15 = vcmp.ne.f32.partialorder %v10491_v8, %v10491_v8 }
 0x2fa   : > { %v7643_v16 = vpop.eup %7642  ;;  %14105 = vst [vmem:[#allocation22_spill] sm:$0xff] %v10563_v60  ;;  %v3233_v11 = vmul.f32 %v7641_v7, %v10459_v37  ;;  %v3017_v9 = vrot.slane %v3016_v43, 2  ;;  %14106 = vst [vmem:[#allocation41_spill] sm:$0xff] %v10569_v42  ;;  %7652 = vpow2.f32 %v3934_v46  ;;  %v2595_v60 = vpop.permute.xlu0 %2594  ;;  %vm3623_vm0 = vcmp.ne.f32.partialorder %v10503_v49, %v10503_v49 }
 0x2fb   : > { %v3234_v34 = vmul.f32 %v7643_v16, %v10462_v5  ;;  %7654 = vpow2.f32 %v3936_v14  ;;  %v14108_v5 = vrot.slane %v10220_v24, %v14069_v15 }
 0x2fc   : > { %v3381_v35 = vmul.f32 %v14107_v55, %v3233_v11  ;;  %v4740_v50 = vmul.f32 %v10382_v10, %v3233_v11  ;;  %v3018_v53 = vmax.f32 %v3016_v43, %v3017_v9  ;;  %v14110_v9 = vld [vmem:[#allocation38_spill] sm:$0xff]  ;;  %v3023_v11 = vrot.slane %v3022_v58, 2 }
 0x2fd   : > { %v7645_v27 = vpop.eup %7644  ;;  %v3382_v46 = vmul.f32 %v14108_v5, %v3234_v34  ;;  %v4741_v23 = vmul.f32 %v14109_v29, %v3234_v34 }
 0x2fe   : > { %v3718_v37 = vadd.f32 1.0, %v7645_v27  ;;  %v3721_v22 = vmul.f32 -0.5, %v7645_v27  ;;  %v3436_v18 = vmul.f32 %v10146_v47, %v3381_v35  ;;  %v4786_v14 = vrot.slane %v4740_v50, 4 }
 0x2ff   : > { %v10586_v7 = vpop.eup %7646  ;;  %v3724_v16 = vand.u32 2147483647, %v7645_v27  ;;  %v3437_v55 = vmul.f32 %v14110_v9, %v3382_v46  ;;  %v3019_v24 = vrot.slane %v3018_v53, 1  ;;  %v4792_v34 = vrot.slane %v4741_v23, 4 }
 0x300   : > { %7656 = vlog2.f32 %v3718_v37  ;;  %v3722_v43 = vadd.f32 1.0, %v3721_v22  ;;  %v3727_v33 = vadd.f32 1.0, %v10586_v7  ;;  %v3730_v51 = vmul.f32 -0.5, %v10586_v7 }
 0x301   : > { %v10592_v5 = vpop.eup %7648  ;;  %v3482_v35 = vrot.slane %v3436_v18, 4  ;;  %v4787_v36 = vadd.f32 %v4786_v14, %v4740_v50  ;;  %v3488_v22 = vrot.slane %v3437_v55, 4  ;;  %vm10600_vm12 = vcmp.lt.f32.partialorder %v3724_v16, 0.0004427343 }
 0x302   : > { %v10596_v37 = vmul.f32 %v7645_v27, %v3722_v43  ;;  %7658 = vlog2.f32 %v3727_v33  ;;  %v4793_v1 = vadd.f32 %v4792_v34, %v4741_v23  ;;  %v3147_v50 = vrot.slane %v10592_v5, 4 }
 0x303   : > { %v10598_v4 = vpop.eup %7650  ;;  %v3483_v46 = vadd.f32 %v3482_v35, %v3436_v18  ;;  %v4788_v13 = vrot.slane %v4787_v36, 2  ;;  %v3731_v14 = vadd.f32 1.0, %v3730_v51  ;;  %v3489_v63 = vadd.f32 %v3488_v22, %v3437_v55 }
 0x304   : > { %v3153_v26 = vrot.slane %v10598_v4, 4  ;;  %v3020_v27 = vmax.f32 %v3018_v53, %v3019_v24  ;;  %v10606_v43 = vpop.eup %7652  ;;  %v4794_v3 = vrot.slane %v4793_v1, 2  ;;  %v3148_v16 = vadd.f32 %v10592_v5, %v3147_v50 }
 0x305   : > { %14113 = vst [vmem:[#allocation33_spill] sm:$0xff] %v10606_v43  ;;  %v3484_v33 = vrot.slane %v3483_v46, 2  ;;  %v4789_v20 = vadd.f32 %v4788_v13, %v4787_v36  ;;  %v10609_v62 = vpop.eup %7654  ;;  %v3490_v0 = vrot.slane %v3489_v63, 2  ;;  %v3024_v23 = vmax.f32 %v3022_v58, %v3023_v11 }
 0x306   : > { %14114 = vst [vmem:[#allocation38_spill] sm:$0xff] %v10609_v62  ;;  %v3154_v18 = vadd.f32 %v10598_v4, %v3153_v26  ;;  %v3061_v35 = vsub.f32 %v10538_v25, %v3020_v27  ;;  %v4795_v34 = vadd.f32 %v4794_v3, %v4793_v1  ;;  %v3149_v22 = vrot.slane %v3148_v16, 2 }
 0x307   : > { %v3485_v51 = vadd.f32 %v3484_v33, %v3483_v46  ;;  %v4790_v55 = vrot.slane %v4789_v20, 1  ;;  %v3491_v53 = vadd.f32 %v3490_v0, %v3489_v63  ;;  %v3025_v40 = vrot.slane %v3024_v23, 1 }
 0x308   : > { %v3155_v24 = vrot.slane %v3154_v18, 2  ;;  %v3087_v32 = vmul.f32 1.442695, %v3061_v35  ;;  %v4796_v50 = vrot.slane %v4795_v34, 1  ;;  %v3150_v42 = vadd.f32 %v3149_v22, %v3148_v16 }
 0x309   : > { %v3486_v36 = vrot.slane %v3485_v51, 1  ;;  %v4791_v17 = vadd.f32 %v4790_v55, %v4789_v20  ;;  %v3492_v58 = vrot.slane %v3491_v53, 1  ;;  %v3026_v11 = vmax.f32 %v3024_v23, %v3025_v40 }
 0x30a   : > { %v7657_v13 = vpop.eup %7656  ;;  %v3156_v25 = vadd.f32 %v3155_v24, %v3154_v18  ;;  %v4797_v1 = vadd.f32 %v4796_v50, %v4795_v34  ;;  %v3151_v63 = vrot.slane %v3150_v42, 1  ;;  %v3733_v27 = vand.u32 2147483647, %v10586_v7 }
 0x30b   : > { %v3720_v26 = vmul.f32 0.6931472, %v7657_v13  ;;  %v3487_v46 = vadd.f32 %v3486_v36, %v3485_v51  ;;  %v10617_v0 = vsel %vm13959_vm6, %v4791_v17, %v10485_v38  ;;  %v3493_v33 = vadd.f32 %v3492_v58, %v3491_v53 }
 0x30c   : > { %v7659_v3 = vpop.eup %7658  ;;  %v10624_v16 = vadd.f32 %v10259_v48, %v2595_v60  ;;  %v14115_v40 = vrot.slane %v10178_v30, 3  ;;  %v10632_v38 = vsel %vm13959_vm6, %v4797_v1, %v10523_v12  ;;  %v3157_v17 = vrot.slane %v3156_v25, 1 }
 0x30d   : > { %v3726_v20 = vsel %vm10600_vm12, %v10596_v37, %v3720_v26  ;;  %v3729_v18 = vmul.f32 0.6931472, %v7659_v3  ;;  %v14116_v35 = vrot.slane %v10183_v28, 3  ;;  %v3152_v37 = vadd.f32 %v3151_v63, %v3150_v42  ;;  %v10668_v26 = vld [vmem:[%s8681_s27 + $0x50] sm:$0xff] }
 0x30e   : > { %v10628_v23 = vadd.f32 %v14115_v40, %v3487_v46  ;;  %v3062_v51 = vsub.f32 %v10541_v41, %v3026_v11  ;;  %7660 = vpow2.f32 %v3087_v32  ;;  %v3732_v55 = vmul.f32 %v10586_v7, %v3731_v14  ;;  %v10672_v11 = vld [vmem:[%s8681_s27 + $0x58] sm:$0xff]  ;;  %v2602_v46 = vpop.permute.xlu1 %2601 }
 0x30f   : > { %v10636_v21 = vadd.f32 %v14116_v35, %v3493_v33  ;;  %v14117_v34 = vmax.f32 %v10491_v8, 0.0  ;;  %v10649_v53 = vcombine.high %v10425_v6, %v10425_v6  ;;  %vm10651_vm1 = vcmp.lt.f32.partialorder %v3733_v27, 0.0004427343 }
 0x310   : > { %v10645_v22 = vsub.f32 0.0, %v10628_v23  ;;  %v10659_v42 = vadd.f32 %v10432_v52, %v2595_v60  ;;  %v3027_v7 = vrot.slane %v10624_v16, 4  ;;  %v3735_v14 = vsel %vm10651_vm1, %v3732_v55, %v3729_v18 }
 0x311   : > { %v3862_v12 = vadd.f32 %v3726_v20, %v14117_v34  ;;  %v10656_v32 = vsub.f32 0.0, %v10636_v21  ;;  %v3158_v13 = vadd.f32 %v3157_v17, %v3156_v25  ;;  %7662 = vrcp.f32 %v3152_v37 }
 0x312   : > { %v3660_v24 = vand.u32 2147483647, %v10645_v22  ;;  %v3089_v50 = vmul.f32 1.442695, %v3062_v51  ;;  %v14121_v20 = vmax.f32 %v10503_v49, 0.0  ;;  %v3028_v18 = vmax.f32 %v10624_v16, %v3027_v7 }
 0x313   : > { %v10679_v1 = vsel %vm3622_vm15, %v10491_v8, %v3862_v12  ;;  %v3661_v25 = vand.u32 2147483647, %v10656_v32  ;;  %v3033_v40 = vrot.slane %v10659_v42, 4  ;;  %7664 = vrcp.f32 %v3158_v13 }
 0x314   : > { %14120 = vst [vmem:[#allocation42_spill] sm:$0xff] %v10679_v1  ;;  %v3863_v27 = vadd.f32 %v3735_v14, %v14121_v20  ;;  %v3676_v33 = vsub.f32 0.0, %v3660_v24  ;;  %v10692_v8 = vcombine.high %v10578_v31, %v10578_v31  ;;  %v10695_v35 = vadd.f32 %v10259_v48, %v2602_v46 }
 0x315   : > { %v3677_v17 = vsub.f32 0.0, %v3661_v25  ;;  %7666 = vpow2.f32 %v3089_v50  ;;  %v3029_v51 = vrot.slane %v3028_v18, 2  ;;  %v3034_v55 = vmax.f32 %v10659_v42, %v3033_v40 }
 0x316   : > { %v3698_v37 = vmul.f32 1.442695, %v3676_v33  ;;  %v10702_v41 = vadd.f32 %v10679_v1, %v10482_v19  ;;  %v10710_v48 = vsel %vm3623_vm0, %v10503_v49, %v3863_v27  ;;  %v3910_v50 = vsub.f32 0.0, %v10679_v1 }
 0x317   : > { %v3700_v7 = vmul.f32 1.442695, %v3677_v17  ;;  %14122 = vst [vmem:[#allocation43_spill] sm:$0xff] %v10710_v48  ;;  %v3030_v24 = vmax.f32 %v3028_v18, %v3029_v51  ;;  %v3035_v13 = vrot.slane %v3034_v55, 2  ;;  %v10715_v19 = vadd.f32 %v10432_v52, %v2602_v46  ;;  %v14123_v51 = vld [vmem:[#allocation23_spill] sm:$0xff] }
 0x318   : > { %v10704_v14 = vpop.eup %7660  ;;  %7668 = vpow2.f32 %v3698_v37  ;;  %v3039_v40 = vrot.slane %v10695_v35, 4  ;;  %v5170_v17 = vrot.slane %v10529_v59, %v14068_v56  ;;  %v3911_v27 = vsub.f32 0.0, %v10710_v48 }
 0x319   : > { %7670 = vpow2.f32 %v3700_v7  ;;  %v3159_v25 = vrot.slane %v10704_v14, 4  ;;  %v3031_v20 = vrot.slane %v3030_v24, 1  ;;  %v3036_v33 = vmax.f32 %v3034_v55, %v3035_v13  ;;  %v14124_v13 = vld [vmem:[#allocation24_spill] sm:$0xff] }
 0x31a   : > { %v3045_v37 = vrot.slane %v10715_v19, 4  ;;  %v5191_v7 = vrot.slane %v10529_v59, %v14123_v51  ;;  %5172 = vbcast.lane.b32.xlu0 %v5170_v17, 256  ;;  %v5198_v12 = vrot.slane %v10529_v59, %v14124_v13  ;;  %v3040_v58 = vmax.f32 %v10695_v35, %v3039_v40 }
 0x31b   : > { %v7663_v49 = vpop.eup %7662  ;;  %v3160_v18 = vadd.f32 %v10704_v14, %v3159_v25  ;;  %v3037_v55 = vrot.slane %v3036_v33, 1  ;;  %v3032_v60 = vmax.f32 %v3030_v24, %v3031_v20  ;;  %v14125_v25 = vld [vmem:[#allocation25_spill] sm:$0xff]  ;;  %v10732_v63 = vmul.f32 1.442695, %v3910_v50 }
 0x31c   : > { %v3235_v46 = vmul.f32 %v7663_v49, %v10592_v5  ;;  %5193 = vbcast.lane.b32.xlu1 %v5191_v7, 256  ;;  %v5205_v3 = vrot.slane %v10529_v59, %v14125_v25  ;;  %v14126_v51 = vrot.slane %v10425_v6, %v14068_v56  ;;  %v10739_v17 = vmax.f32 %v10715_v19, %v3045_v37 }
 0x31d   : > { %v3161_v34 = vrot.slane %v3160_v18, 2  ;;  %v7665_v49 = vpop.eup %7664  ;;  %v10743_v24 = vadd.f32 %v10710_v48, %v10495_v2  ;;  %v10745_v20 = vmul.f32 1.442695, %v3911_v27  ;;  %v3038_v7 = vmax.f32 %v3036_v33, %v3037_v55  ;;  %v14128_v27 = vld [vmem:[#allocation27_spill] sm:$0xff] }
 0x31e   : > { %v3383_v36 = vmul.f32 %v14126_v51, %v3235_v46  ;;  %v4742_v5 = vmul.f32 %v10382_v10, %v3235_v46  ;;  %v3236_v13 = vmul.f32 %v7665_v49, %v10598_v4  ;;  %5200 = vbcast.lane.b32.xlu0 %v5198_v12, 256  ;;  %v14127_v46 = vld [vmem:[#allocation26_spill] sm:$0xff]  ;;  %v3063_v57 = vsub.f32 %v10624_v16, %v3032_v60 }
 0x31f   : > { %v3162_v40 = vadd.f32 %v3161_v34, %v3160_v18  ;;  %v10747_v50 = vpop.eup %7666  ;;  %v5212_v37 = vrot.slane %v10529_v59, %v14127_v46  ;;  %v3041_v2 = vrot.slane %v3040_v58, 2  ;;  %v5219_v34 = vrot.slane %v10529_v59, %v14128_v27 }
 0x320   : > { %v3438_v25 = vmul.f32 %v10146_v47, %v3383_v36  ;;  %v4798_v51 = vrot.slane %v4742_v5, 4  ;;  %5207 = vbcast.lane.b32.xlu1 %v5205_v3, 256  ;;  %v14129_v18 = vrot.slane %v10425_v6, %v14069_v15  ;;  %v4743_v36 = vmul.f32 %v14109_v29, %v3236_v13 }
 0x321   : > { %v3163_v52 = vrot.slane %v3162_v40, 1  ;;  %v3047_v12 = vrot.slane %v10739_v17, 2  ;;  %v3165_v16 = vrot.slane %v10747_v50, 4  ;;  %v3064_v60 = vsub.f32 %v10659_v42, %v3038_v7 }
 0x322   : > { %v7669_v33 = vpop.eup %7668  ;;  %v3384_v4 = vmul.f32 %v14129_v18, %v3236_v13  ;;  %v3494_v55 = vrot.slane %v3438_v25, 4  ;;  %v4799_v54 = vadd.f32 %v4798_v51, %v4742_v5  ;;  %5214 = vbcast.lane.b32.xlu0 %v5212_v37, 256  ;;  %v3091_v44 = vmul.f32 1.442695, %v3063_v57 }
 0x323   : > { %v7671_v49 = vpop.eup %7670  ;;  %v3772_v46 = vadd.f32 1.0, %v7669_v33  ;;  %v3775_v3 = vmul.f32 -0.5, %v7669_v33  ;;  %v3164_v27 = vadd.f32 %v3163_v52, %v3162_v40  ;;  %v3778_v6 = vand.u32 2147483647, %v7669_v33 }
 0x324   : > { %v3781_v61 = vadd.f32 1.0, %v7671_v49  ;;  %v3439_v59 = vmul.f32 %v14110_v9, %v3384_v4  ;;  %v3495_v18 = vadd.f32 %v3494_v55, %v3438_v25  ;;  %5221 = vbcast.lane.b32.xlu1 %v5219_v34, 256  ;;  %v3784_v13 = vmul.f32 -0.5, %v7671_v49 }
 0x325   : > { %7672 = vlog2.f32 %v3772_v46  ;;  %v3042_v1 = vmax.f32 %v3040_v58, %v3041_v2  ;;  %v3787_v5 = vand.u32 2147483647, %v7671_v49  ;;  %v4800_v62 = vrot.slane %v4799_v54, 2 }
 0x326   : > { %7674 = vlog2.f32 %v3781_v61  ;;  %v3500_v48 = vrot.slane %v3439_v59, 4  ;;  %v3496_v51 = vrot.slane %v3495_v18, 2  ;;  %v4804_v45 = vrot.slane %v4743_v36, 4 }
 0x327   : > { %v3776_v42 = vadd.f32 1.0, %v3775_v3  ;;  %v3166_v43 = vadd.f32 %v10747_v50, %v3165_v16  ;;  %7676 = vrcp.f32 %v3164_v27  ;;  %vm10765_vm2 = vcmp.lt.f32.partialorder %v3778_v6, 0.0004427343 }
 0x328   : > { %v3501_v7 = vadd.f32 %v3500_v48, %v3439_v59  ;;  %v3497_v40 = vadd.f32 %v3496_v51, %v3495_v18  ;;  %v4801_v57 = vadd.f32 %v4800_v62, %v4799_v54  ;;  %v4805_v25 = vadd.f32 %v4804_v45, %v4743_v36 }
 0x329   : > { %7678 = vpow2.f32 %v3091_v44  ;;  %v3167_v37 = vrot.slane %v3166_v43, 2  ;;  %v3093_v58 = vmul.f32 1.442695, %v3064_v60  ;;  %v3043_v2 = vrot.slane %v3042_v1, 1 }
 0x32a   : > { %v3502_v61 = vrot.slane %v3501_v7, 2  ;;  %v3785_v34 = vadd.f32 1.0, %v3784_v13  ;;  %v3498_v4 = vrot.slane %v3497_v40, 1  ;;  %v4802_v55 = vrot.slane %v4801_v57, 1 }
 0x32b   : > { %v4806_v46 = vrot.slane %v4805_v25, 2  ;;  %v3168_v3 = vadd.f32 %v3167_v37, %v3166_v43  ;;  %7680 = vpow2.f32 %v3093_v58  ;;  %v3044_v16 = vmax.f32 %v3042_v1, %v3043_v2 }
 0x32c   : > { %v3503_v48 = vadd.f32 %v3502_v61, %v3501_v7  ;;  %v3499_v59 = vadd.f32 %v3498_v4, %v3497_v40  ;;  %v4803_v27 = vadd.f32 %v4802_v55, %v4801_v57  ;;  %v3048_v18 = vmax.f32 %v10739_v17, %v3047_v12 }
 0x32d   : > { %v4807_v6 = vadd.f32 %v4806_v46, %v4805_v25  ;;  %vm10770_vm3 = vcmp.lt.f32.partialorder %v3787_v5, 0.0004427343  ;;  %v3169_v62 = vrot.slane %v3168_v3, 1  ;;  %v3065_v54 = vsub.f32 %v10695_v35, %v3044_v16 }
 0x32e   : > { %v3504_v44 = vrot.slane %v3503_v48, 1  ;;  %vm3628_vm8 = vcmp.ne.f32.partialorder %v10645_v22, %v10645_v22  ;;  %v3777_v43 = vmul.f32 %v7669_v33, %v3776_v42  ;;  %v14134_v1 = vrot.slane %v10178_v30, 4 }
 0x32f   : > { %v7673_v36 = vpop.eup %7672  ;;  %v4808_v13 = vrot.slane %v4807_v6, 1  ;;  %v10783_v17 = vsel %vm13958_vm7, %v4803_v27, %v10617_v0  ;;  %v3786_v51 = vmul.f32 %v7671_v49, %v3785_v34  ;;  %v3170_v40 = vadd.f32 %v3169_v62, %v3168_v3 }
 0x330   : > { %v10779_v60 = vadd.f32 %v14134_v1, %v3499_v59  ;;  %v7675_v12 = vpop.eup %7674  ;;  %v3774_v5 = vmul.f32 0.6931472, %v7673_v36  ;;  %v3505_v7 = vadd.f32 %v3504_v44, %v3503_v48  ;;  %v3049_v25 = vrot.slane %v3048_v18, 1 }
 0x331   : > { %v3783_v35 = vmul.f32 0.6931472, %v7675_v12  ;;  %v3095_v33 = vmul.f32 1.442695, %v3065_v54  ;;  %v7677_v42 = vpop.eup %7676  ;;  %v14135_v37 = vrot.slane %v10183_v28, 4  ;;  %v4809_v0 = vadd.f32 %v4808_v13, %v4807_v6 }
 0x332   : > { %v10786_v57 = vsub.f32 0.0, %v10779_v60  ;;  %v3780_v61 = vsel %vm10765_vm2, %v3777_v43, %v3774_v5  ;;  %7682 = vrcp.f32 %v3170_v40  ;;  %v10798_v49 = vadd.f32 1e-06, %v10702_v41 }
 0x333   : > { %v10792_v58 = vadd.f32 %v14135_v37, %v3505_v7  ;;  %v10794_v2 = vpop.eup %7678  ;;  %7684 = vpow2.f32 %v10732_v63  ;;  %v3613_v34 = vmax.f32 %v10656_v32, 0.0  ;;  %v3789_v4 = vsel %vm10770_vm3, %v3786_v51, %v3783_v35 }
 0x334   : > { %14136 = vst [vmem:[#allocation23_spill] sm:$0xff] %v10798_v49  ;;  %v14137_v52 = vmax.f32 %v10645_v22, 0.0  ;;  %v3662_v48 = vand.u32 2147483647, %v10786_v57  ;;  %v10811_v3 = vsel %vm13958_vm7, %v4809_v0, %v10632_v38  ;;  %v3237_v63 = vmul.f32 %v7677_v42, %v10704_v14  ;;  %v10951_v49 = vld [vmem:[%s8681_s27 + $0x68] sm:$0xff] }
 0x335   : > { %v10806_v46 = vsub.f32 0.0, %v10792_v58  ;;  %v3171_v41 = vrot.slane %v10794_v2, 4  ;;  %v3050_v16 = vmax.f32 %v3048_v18, %v3049_v25  ;;  %7686 = vpow2.f32 %v3095_v33  ;;  %v10815_v59 = vpop.eup %7680 }
 0x336   : > { %v3868_v55 = vadd.f32 %v3780_v61, %v14137_v52  ;;  %7688 = vpow2.f32 %v10745_v20  ;;  %v10819_v27 = vadd.f32 1e-06, %v10743_v24  ;;  %vm3629_vm10 = vcmp.ne.f32.partialorder %v10656_v32, %v10656_v32 }
 0x337   : > { %v3869_v6 = vadd.f32 %v3789_v4, %v3613_v34  ;;  %v3663_v14 = vand.u32 2147483647, %v10806_v46  ;;  %v3678_v45 = vsub.f32 0.0, %v3662_v48  ;;  %v14139_v18 = vrot.slane %v10578_v31, %v14068_v56 }
 0x338   : > { %14138 = vst [vmem:[#allocation24_spill] sm:$0xff] %v10819_v27  ;;  %v10833_v24 = vsel %vm3628_vm8, %v10645_v22, %v3868_v55  ;;  %v4744_v20 = vmul.f32 %v10382_v10, %v3237_v63  ;;  %v3172_v62 = vadd.f32 %v10794_v2, %v3171_v41  ;;  %v3177_v54 = vrot.slane %v10815_v59, 4 }
 0x339   : > { %v3385_v44 = vmul.f32 %v14139_v18, %v3237_v63  ;;  %v3679_v36 = vsub.f32 0.0, %v3663_v14  ;;  %v3702_v43 = vmul.f32 1.442695, %v3678_v45  ;;  %v3066_v13 = vsub.f32 %v10715_v19, %v3050_v16 }
 0x33a   : > { %v4810_v12 = vrot.slane %v4744_v20, 4  ;;  %v3173_v5 = vrot.slane %v3172_v62, 2  ;;  %v3178_v51 = vadd.f32 %v10815_v59, %v3177_v54  ;;  %v10847_v7 = vsel %vm3629_vm10, %v10656_v32, %v3869_v6 }
 0x33b   : > { %v3440_v1 = vmul.f32 %v10146_v47, %v3385_v44  ;;  %v3916_v40 = vsub.f32 0.0, %v10833_v24  ;;  %v3704_v35 = vmul.f32 1.442695, %v3679_v36  ;;  %7690 = vpow2.f32 %v3702_v43 }
 0x33c   : > { %v7683_v33 = vpop.eup %7682  ;;  %v4811_v19 = vadd.f32 %v4810_v12, %v4744_v20  ;;  %v3174_v42 = vadd.f32 %v3173_v5, %v3172_v62  ;;  %v3179_v61 = vrot.slane %v3178_v51, 2  ;;  %v3097_v4 = vmul.f32 1.442695, %v3066_v13 }
 0x33d   : > { %v3506_v25 = vrot.slane %v3440_v1, 4  ;;  %v10850_v37 = vpop.eup %7684  ;;  %7692 = vpow2.f32 %v3704_v35  ;;  %v3238_v0 = vmul.f32 %v7683_v33, %v10747_v50  ;;  %v3917_v52 = vsub.f32 0.0, %v10847_v7 }
 0x33e   : > { %v4812_v32 = vrot.slane %v4811_v19, 2  ;;  %v3175_v55 = vrot.slane %v3174_v42, 1  ;;  %v3180_v48 = vadd.f32 %v3179_v61, %v3178_v51  ;;  %v3938_v41 = vmul.f32 1.442695, %v3916_v40 }
 0x33f   : > { %v3507_v34 = vadd.f32 %v3506_v25, %v3440_v1  ;;  %v10854_v63 = vpop.eup %7686  ;;  %v14140_v16 = vrot.slane %v10578_v31, %v14069_v15  ;;  %v4745_v45 = vmul.f32 %v14109_v29, %v3238_v0  ;;  %7694 = vpow2.f32 %v3097_v4 }
 0x340   : > { %v10860_v18 = vpop.eup %7688  ;;  %v4813_v50 = vadd.f32 %v4812_v32, %v4811_v19  ;;  %v3176_v44 = vadd.f32 %v3175_v55, %v3174_v42  ;;  %v3181_v20 = vrot.slane %v3180_v48, 1  ;;  %v3183_v62 = vrot.slane %v10854_v63, 4 }
 0x341   : > { %v3386_v6 = vmul.f32 %v14140_v16, %v3238_v0  ;;  %v3508_v14 = vrot.slane %v3507_v34, 2  ;;  %v4816_v43 = vrot.slane %v4745_v45, 4  ;;  %v3940_v35 = vmul.f32 1.442695, %v3917_v52  ;;  %v14141_v0 = vld [vmem:[#allocation32_spill] sm:$0xff] }
 0x342   : > { %v4814_v1 = vrot.slane %v4813_v50, 1  ;;  %v3182_v13 = vadd.f32 %v3181_v20, %v3180_v48  ;;  %7696 = vrcp.f32 %v3176_v44  ;;  %v3184_v31 = vadd.f32 %v10854_v63, %v3183_v62  ;;  %v14142_v52 = vld [vmem:[#allocation28_spill] sm:$0xff] }
 0x343   : > { %v3441_v54 = vmul.f32 %v14110_v9, %v3386_v6  ;;  %v3509_v36 = vadd.f32 %v3508_v14, %v3507_v34  ;;  %v4817_v51 = vadd.f32 %v4816_v43, %v4745_v45  ;;  %v2467_v34 = vmul.f32 100.0, %v14141_v0  ;;  %v10885_v43 = vld [vmem:[%s8681_s27 + $0x60] sm:$0xff] }
 0x344   : > { %v4815_v25 = vadd.f32 %v4814_v1, %v4813_v50  ;;  %7698 = vrcp.f32 %v3182_v13  ;;  %v3185_v33 = vrot.slane %v3184_v31, 2  ;;  %v2468_v48 = vmul.f32 100.0, %v14142_v52  ;;  %14144 = vst [vmem:[#allocation25_spill] sm:$0xff] %v10885_v43  ;;  %v10887_v1 = vpop.permute.xlu0 %2480 }
 0x345   : > { %v3510_v12 = vrot.slane %v3509_v36, 1  ;;  %v3512_v5 = vrot.slane %v3441_v54, 4  ;;  %v10868_v4 = vpop.eup %7690  ;;  %7700 = vpow2.f32 %v3938_v41  ;;  %v4818_v45 = vrot.slane %v4817_v51, 2 }
 0x346   : > { %v10873_v55 = vsel %vm13957_vm9, %v4815_v25, %v10783_v17  ;;  %v3790_v6 = vadd.f32 1.0, %v10868_v4  ;;  %v3186_v50 = vadd.f32 %v3185_v33, %v3184_v31  ;;  %7702 = vpow2.f32 %v3940_v35 }
 0x347   : > { %v3511_v19 = vadd.f32 %v3510_v12, %v3509_v36  ;;  %v3513_v42 = vadd.f32 %v3512_v5, %v3441_v54  ;;  %v7693_v16 = vpop.eup %7692  ;;  %v3793_v44 = vmul.f32 -0.5, %v10868_v4  ;;  %v14143_v41 = vrot.slane %v10178_v30, 5 }
 0x348   : > { %v3799_v20 = vadd.f32 1.0, %v7693_v16  ;;  %7704 = vlog2.f32 %v3790_v6  ;;  %v3796_v17 = vand.u32 2147483647, %v10868_v4  ;;  %v3802_v13 = vmul.f32 -0.5, %v7693_v16 }
 0x349   : > { %v3514_v14 = vrot.slane %v3513_v42, 2  ;;  %v10880_v62 = vadd.f32 %v14143_v41, %v3511_v19  ;;  %v3805_v31 = vand.u32 2147483647, %v7693_v16  ;;  %v10892_v5 = vpop.eup %7694  ;;  %v4819_v35 = vadd.f32 %v4818_v45, %v4817_v51 }
 0x34a   : > { %7706 = vlog2.f32 %v3799_v20  ;;  %v3187_v25 = vrot.slane %v3186_v50, 1  ;;  %v3794_v19 = vadd.f32 1.0, %v3793_v44  ;;  %v10897_v0 = vadd.f32 %v10887_v1, %v10885_v43 }
 0x34b   : > { %v3515_v36 = vadd.f32 %v3514_v14, %v3513_v42  ;;  %v10890_v12 = vsub.f32 0.0, %v10880_v62  ;;  %7708 = vlog2.f32 %v2467_v34  ;;  %vm10899_vm11 = vcmp.lt.f32.partialorder %v3796_v17, 0.0004427343 }
 0x34c   : > { %v7697_v33 = vpop.eup %7696  ;;  %7710 = vlog2.f32 %v2468_v48  ;;  %v4820_v14 = vrot.slane %v4819_v35, 1  ;;  %v3188_v51 = vadd.f32 %v3187_v25, %v3186_v50  ;;  %v3803_v34 = vadd.f32 1.0, %v3802_v13 }
 0x34d   : > { %v3516_v30 = vrot.slane %v3515_v36, 1  ;;  %v3664_v42 = vand.u32 2147483647, %v10890_v12  ;;  %v3239_v20 = vmul.f32 %v7697_v33, %v10794_v2  ;;  %vm10904_vm12 = vcmp.lt.f32.partialorder %v3805_v31, 0.0004427343 }
 0x34e   : > { %v7699_v45 = vpop.eup %7698  ;;  %v3189_v41 = vrot.slane %v10892_v5, 4  ;;  %v14149_v61 = vrot.slane %v10183_v28, 5  ;;  %v4821_v40 = vadd.f32 %v4820_v14, %v4819_v35  ;;  %v14150_v2 = vrot.slane %v10649_v53, %v14068_v56 }
 0x34f   : > { %v3517_v6 = vadd.f32 %v3516_v30, %v3515_v36  ;;  %v3680_v48 = vsub.f32 0.0, %v3664_v42  ;;  %v3240_v36 = vmul.f32 %v7699_v45, %v10815_v59  ;;  %v10917_v30 = vpop.eup %7700  ;;  %vm3630_vm15 = vcmp.ne.f32.partialorder %v10786_v57, %v10786_v57 }
 0x350   : > { %v3387_v50 = vmul.f32 %v14150_v2, %v3239_v20  ;;  %v4746_v31 = vmul.f32 %v10382_v10, %v3239_v20  ;;  %v3190_v25 = vadd.f32 %v10892_v5, %v3189_v41  ;;  %7712 = vrcp.f32 %v3188_v51  ;;  %v10936_v42 = vpop.eup %7702 }
 0x351   : > { %v10911_v17 = vadd.f32 %v14149_v61, %v3517_v6  ;;  %v3706_v13 = vmul.f32 1.442695, %v3680_v48  ;;  %vm3631_vm0 = vcmp.ne.f32.partialorder %v10806_v46, %v10806_v46  ;;  %v10930_v59 = vsel %vm13957_vm9, %v4821_v40, %v10811_v3 }
 0x352   : > { %v14151_v61 = vrot.slane %v10649_v53, %v14069_v15  ;;  %v3442_v33 = vmul.f32 %v10146_v47, %v3387_v50  ;;  %v4747_v6 = vmul.f32 %v14109_v29, %v3240_v36  ;;  %v4822_v14 = vrot.slane %v4746_v31, 4  ;;  %v7705_v51 = vpop.eup %7704 }
 0x353   : > { %v10926_v28 = vsub.f32 0.0, %v10911_v17  ;;  %7714 = vpow2.f32 %v3706_v13  ;;  %v3191_v20 = vrot.slane %v3190_v25, 2  ;;  %v3795_v45 = vmul.f32 %v10868_v4, %v3794_v19 }
 0x354   : > { %v3388_v35 = vmul.f32 %v14151_v61, %v3240_v36  ;;  %v3804_v48 = vmul.f32 %v7693_v16, %v3803_v34  ;;  %v7707_v41 = vpop.eup %7706  ;;  %v3792_v53 = vmul.f32 0.6931472, %v7705_v51  ;;  %v3518_v2 = vrot.slane %v3442_v33, 4 }
 0x355   : > { %v3665_v3 = vand.u32 2147483647, %v10926_v28  ;;  %v4823_v61 = vadd.f32 %v4822_v14, %v4746_v31  ;;  %v4828_v50 = vrot.slane %v4747_v6, 4  ;;  %v7709_v22 = vpop.eup %7708  ;;  %v3801_v38 = vmul.f32 0.6931472, %v7707_v41 }
 0x356   : > { %v3443_v40 = vmul.f32 %v14110_v9, %v3388_v35  ;;  %v3192_v54 = vadd.f32 %v3191_v20, %v3190_v25  ;;  %v7711_v32 = vpop.eup %7710  ;;  %v3798_v4 = vsel %vm10899_vm11, %v3795_v45, %v3792_v53  ;;  %v3519_v16 = vadd.f32 %v3518_v2, %v3442_v33 }
 0x357   : > { %v3681_v13 = vsub.f32 0.0, %v3665_v3  ;;  %v4824_v19 = vrot.slane %v4823_v61, 2  ;;  %v4829_v34 = vadd.f32 %v4828_v50, %v4747_v6  ;;  %v3807_v35 = vsel %vm10904_vm12, %v3804_v48, %v3801_v38 }
 0x358   : > { %v3524_v36 = vrot.slane %v3443_v40, 4  ;;  %v14152_v51 = vmax.f32 %v10786_v57, 0.0  ;;  %v14153_v3 = vmax.f32 %v10806_v46, 0.0  ;;  %v3520_v27 = vrot.slane %v3519_v16, 2 }
 0x359   : > { %v3708_v14 = vmul.f32 1.442695, %v3681_v13  ;;  %v4825_v25 = vadd.f32 %v4824_v19, %v4823_v61  ;;  %v4830_v20 = vrot.slane %v4829_v34, 2  ;;  %v3193_v44 = vrot.slane %v3192_v54, 1 }
 0x35a   : > { %v3870_v31 = vadd.f32 %v3798_v4, %v14152_v51  ;;  %v3525_v43 = vadd.f32 %v3524_v36, %v3443_v40  ;;  %v3871_v41 = vadd.f32 %v3807_v35, %v14153_v3  ;;  %v7713_v33 = vpop.eup %7712  ;;  %v3521_v48 = vadd.f32 %v3520_v27, %v3519_v16 }
 0x35b   : > { %7716 = vpow2.f32 %v3708_v14  ;;  %v4826_v40 = vrot.slane %v4825_v25, 1  ;;  %v4831_v61 = vadd.f32 %v4830_v20, %v4829_v34  ;;  %v3194_v19 = vadd.f32 %v3193_v44, %v3192_v54 }
 0x35c   : > { %v10957_v52 = vsel %vm3630_vm15, %v10786_v57, %v3870_v31  ;;  %v3526_v38 = vrot.slane %v3525_v43, 2  ;;  %v10963_v6 = vsel %vm3631_vm0, %v10806_v46, %v3871_v41  ;;  %v10969_v57 = vadd.f32 %v10887_v1, %v10951_v49 }
 0x35d   : > { %v3918_v45 = vsub.f32 0.0, %v10957_v52  ;;  %v3919_v53 = vsub.f32 0.0, %v10963_v6  ;;  %v7715_v50 = vpop.eup %7714  ;;  %v3522_v4 = vrot.slane %v3521_v48, 1  ;;  %v4827_v51 = vadd.f32 %v4826_v40, %v4825_v25 }
 0x35e   : > { %v3527_v2 = vadd.f32 %v3526_v38, %v3525_v43  ;;  %v3808_v35 = vadd.f32 1.0, %v7715_v50  ;;  %v3241_v27 = vmul.f32 %v7713_v33, %v10854_v63  ;;  %v4832_v43 = vrot.slane %v4831_v61, 1 }
 0x35f   : > { %v3942_v36 = vmul.f32 1.442695, %v3918_v45  ;;  %v3944_v46 = vmul.f32 1.442695, %v3919_v53  ;;  %v3523_v16 = vadd.f32 %v3522_v4, %v3521_v48  ;;  %v3811_v1 = vmul.f32 -0.5, %v7715_v50 }
 0x360   : > { %v3528_v31 = vrot.slane %v3527_v2, 1  ;;  %v10976_v14 = vsel %vm13954_vm13, %v4827_v51, %v10873_v55  ;;  %v14154_v54 = vrot.slane %v10668_v26, 6  ;;  %v4833_v25 = vadd.f32 %v4832_v43, %v4831_v61 }
 0x361   : > { %7718 = vpow2.f32 %v3942_v36  ;;  %v14155_v63 = vrot.slane %v10692_v8, %v14068_v56  ;;  %v4748_v38 = vmul.f32 %v10382_v10, %v3241_v27  ;;  %v2619_v44 = vrot.slane %v10897_v0, 4 }
 0x362   : > { %7720 = vpow2.f32 %v3944_v46  ;;  %v3529_v3 = vadd.f32 %v3528_v31, %v3527_v2  ;;  %v10980_v41 = vadd.f32 %v14154_v54, %v3523_v16  ;;  %v14156_v33 = vrot.slane %v10672_v11, 6 }
 0x363   : > { %7722 = vlog2.f32 %v3808_v35  ;;  %v3389_v20 = vmul.f32 %v14155_v63, %v3241_v27  ;;  %v10996_v48 = vsel %vm13954_vm13, %v4833_v25, %v10930_v59  ;;  %v2470_v40 = vmul.f32 0.6931472, %v7709_v22 }
 0x364   : > { %7724 = vrcp.f32 %v3194_v19  ;;  %v10989_v55 = vadd.f32 %v14156_v33, %v3529_v3  ;;  %v10992_v45 = vsub.f32 0.0, %v10980_v41  ;;  %v3812_v2 = vadd.f32 1.0, %v3811_v1 }
 0x365   : > { %v7717_v53 = vpop.eup %7716  ;;  %v3814_v61 = vand.u32 2147483647, %v7715_v50  ;;  %v3444_v36 = vmul.f32 %v10146_v47, %v3389_v20  ;;  %v2472_v10 = vmul.f32 0.6931472, %v7711_v32  ;;  %v4834_v35 = vrot.slane %v4748_v38, 4 }
 0x366   : > { %v3817_v4 = vadd.f32 1.0, %v7717_v53  ;;  %v3820_v19 = vmul.f32 -0.5, %v7717_v53  ;;  %v11000_v46 = vsub.f32 0.0, %v10989_v55  ;;  %v3616_v51 = vmax.f32 %v10890_v12, 0.0 }
 0x367   : > { %v3666_v59 = vand.u32 2147483647, %v10992_v45  ;;  %v3530_v16 = vrot.slane %v3444_v36, 4  ;;  %v3823_v31 = vand.u32 2147483647, %v7717_v53  ;;  %vm3632_vm1 = vcmp.ne.f32.partialorder %v10890_v12, %v10890_v12 }
 0x368   : > { %7726 = vlog2.f32 %v3817_v4  ;;  %v3821_v22 = vadd.f32 1.0, %v3820_v19  ;;  %v11005_v43 = vadd.f32 -4.6051702, %v2470_v40  ;;  %vm11009_vm2 = vcmp.lt.f32.partialorder %v3814_v61, 0.0004427343 }
 0x369   : > { %v3667_v32 = vand.u32 2147483647, %v11000_v46  ;;  %v3682_v1 = vsub.f32 0.0, %v3666_v59  ;;  %v3531_v3 = vadd.f32 %v3530_v16, %v3444_v36  ;;  %v3813_v25 = vmul.f32 %v7715_v50, %v3812_v2 }
 0x36a   : > { %v4835_v63 = vadd.f32 %v4834_v35, %v4748_v38  ;;  %v11016_v20 = vadd.f32 -4.6051702, %v2472_v10  ;;  %v11019_v33 = vmax.f32 %v10897_v0, %v2619_v44  ;;  %v3618_v61 = vmax.f32 %v10992_v45, 0.0 }
 0x36b   : > { %v11014_v54 = vpop.eup %7718  ;;  %v3683_v4 = vsub.f32 0.0, %v3667_v32  ;;  %v3710_v19 = vmul.f32 1.442695, %v3682_v1  ;;  %v3532_v34 = vrot.slane %v3531_v3, 2  ;;  %v3822_v27 = vmul.f32 %v7717_v53, %v3821_v22 }
 0x36c   : > { %v11021_v40 = vpop.eup %7720  ;;  %vm11024_vm3 = vcmp.lt.f32.partialorder %v3823_v31, 0.0004427343  ;;  %v4836_v38 = vrot.slane %v4835_v63, 2  ;;  %v3980_v16 = vrot.slane %v11014_v54, 4  ;;  %vm3633_vm8 = vcmp.ne.f32.partialorder %v10926_v28, %v10926_v28 }
 0x36d   : > { %v7723_v13 = vpop.eup %7722  ;;  %7728 = vpow2.f32 %v3710_v19  ;;  %v3712_v35 = vmul.f32 1.442695, %v3683_v4  ;;  %v3533_v59 = vadd.f32 %v3532_v34, %v3531_v3  ;;  %v3994_v22 = vrot.slane %v11021_v40, 4 }
 0x36e   : > { %v7725_v44 = vpop.eup %7724  ;;  %v3810_v10 = vmul.f32 0.6931472, %v7723_v13  ;;  %v4837_v1 = vadd.f32 %v4836_v38, %v4835_v63  ;;  %v14161_v34 = vrot.slane %v10692_v8, %v14069_v15  ;;  %vm3634_vm12 = vcmp.ne.f32.partialorder %v10992_v45, %v10992_v45 }
 0x36f   : > { %v3242_v32 = vmul.f32 %v7725_v44, %v10892_v5  ;;  %7730 = vpow2.f32 %v3712_v35  ;;  %v3534_v13 = vrot.slane %v3533_v59, 1  ;;  %vm3635_vm15 = vcmp.ne.f32.partialorder %v11000_v46, %v11000_v46 }
 0x370   : > { %v3816_v31 = vsel %vm11009_vm2, %v3813_v25, %v3810_v10  ;;  %v4838_v25 = vrot.slane %v4837_v1, 1 }
 0x371   : > { %v3872_v19 = vadd.f32 %v3816_v31, %v3616_v51  ;;  %v3390_v3 = vmul.f32 %v14161_v34, %v3242_v32  ;;  %v4749_v5 = vmul.f32 %v14109_v29, %v3242_v32  ;;  %v3535_v4 = vadd.f32 %v3534_v13, %v3533_v59 }
 0x372   : > { %v7727_v47 = vpop.eup %7726  ;;  %v14162_v59 = vrot.slane %v10668_v26, 7  ;;  %v14163_v26 = vmax.f32 %v10926_v28, 0.0  ;;  %v11069_v31 = vadd.f32 %v4838_v25, %v4837_v1 }
 0x373   : > { %v11050_v51 = vsel %vm3632_vm1, %v10890_v12, %v3872_v19  ;;  %v3445_v8 = vmul.f32 %v14110_v9, %v3390_v3  ;;  %v4840_v29 = vrot.slane %v4749_v5, 4  ;;  %v3819_v10 = vmul.f32 0.6931472, %v7727_v47 }
 0x374   : > { %v3920_v35 = vsub.f32 0.0, %v11050_v51  ;;  %v11056_v32 = vadd.f32 %v14162_v59, %v3535_v4 }
 0x375   : > { %v3536_v13 = vrot.slane %v3445_v8, 4  ;;  %v4841_v34 = vadd.f32 %v4840_v29, %v4749_v5  ;;  %v3825_v9 = vsel %vm11024_vm3, %v3822_v27, %v3819_v10  ;;  %v7139_v27 = vld [vmem:[%s13802_s7] ss:$0 sm:$0xff] }
 0x376   : > { %v3946_v19 = vmul.f32 1.442695, %v3920_v35  ;;  %v11064_v3 = vsub.f32 0.0, %v11056_v32  ;;  %v3873_v4 = vadd.f32 %v3825_v9, %v14163_v26  ;;  %5163 = vbcast.lane.b32.xlu0 %v7139_v27, 256  ;;  %v2625_v27 = vrot.slane %v10969_v57, 4 }
 0x377   : > { %v3537_v59 = vadd.f32 %v3536_v13, %v3445_v8  ;;  %v4842_v5 = vrot.slane %v4841_v34, 2  ;;  %v7729_v29 = vpop.eup %7728 }
 0x378   : > { %7732 = vpow2.f32 %v3946_v19  ;;  %v3668_v12 = vand.u32 2147483647, %v11064_v3  ;;  %v11078_v10 = vsel %vm3633_vm8, %v10926_v28, %v3873_v4  ;;  %v3826_v35 = vadd.f32 1.0, %v7729_v29 }
 0x379   : > { %v3829_v9 = vmul.f32 -0.5, %v7729_v29  ;;  %v7731_v8 = vpop.eup %7730  ;;  %v3921_v25 = vsub.f32 0.0, %v11078_v10  ;;  %v3538_v13 = vrot.slane %v3537_v59, 2  ;;  %v4843_v26 = vadd.f32 %v4842_v5, %v4841_v34 }
 0x37a   : > { %v3684_v19 = vsub.f32 0.0, %v3668_v12  ;;  %7734 = vlog2.f32 %v3826_v35  ;;  %v3832_v36 = vand.u32 2147483647, %v7729_v29  ;;  %v3835_v47 = vadd.f32 1.0, %v7731_v8 }
 0x37b   : > { %v2621_v28 = vrot.slane %v11019_v33, 2  ;;  %v3948_v4 = vmul.f32 1.442695, %v3921_v25  ;;  %v3830_v53 = vadd.f32 1.0, %v3829_v9  ;;  %v3838_v44 = vmul.f32 -0.5, %v7731_v8 }
 0x37c   : > { %v3539_v1 = vadd.f32 %v3538_v13, %v3537_v59  ;;  %7736 = vlog2.f32 %v3835_v47  ;;  %v3841_v38 = vand.u32 2147483647, %v7731_v8  ;;  %v3714_v63 = vmul.f32 1.442695, %v3684_v19 }
 0x37d   : > { %v4844_v2 = vrot.slane %v4843_v26, 1  ;;  %7738 = vpow2.f32 %v3948_v4  ;;  %v3839_v34 = vadd.f32 1.0, %v3838_v44  ;;  %v3620_v35 = vmax.f32 %v11064_v3, 0.0 }
 0x37e   : > { %v3540_v12 = vrot.slane %v3539_v1, 1  ;;  %7740 = vpow2.f32 %v3714_v63  ;;  %v2622_v50 = vmax.f32 %v11019_v33, %v2621_v28  ;;  %v3831_v25 = vmul.f32 %v7729_v29, %v3830_v53  ;;  %v14170_v28 = vld [vmem:[#allocation33_spill] sm:$0xff] }
 0x37f   : > { %vm11090_vm10 = vcmp.lt.f32.partialorder %v3832_v36, 0.0004427343  ;;  %v11094_v59 = vadd.f32 %v4844_v2, %v4843_v26  ;;  %v3840_v13 = vmul.f32 %v7731_v8, %v3839_v34  ;;  %vm11096_vm11 = vcmp.lt.f32.partialorder %v3841_v38, 0.0004427343 }
 0x380   : > { %v3541_v47 = vadd.f32 %v3540_v12, %v3539_v1  ;;  %v2623_v19 = vrot.slane %v2622_v50, 1  ;;  %v2626_v63 = vmax.f32 %v10969_v57, %v2625_v27  ;;  %v11103_v33 = vadd.f32 %v10833_v24, %v10628_v23 }
 0x381   : > { %v14168_v29 = vrot.slane %v10672_v11, 7  ;;  %v11113_v38 = vadd.f32 %v11050_v51, %v10880_v62  ;;  %v11117_v36 = vadd.f32 %v11078_v10, %v10911_v17  ;;  %v14169_v23 = vrot.slane %v10471_v39, 7 }
 0x382   : > { %v7733_v53 = vpop.eup %7732  ;;  %v2624_v8 = vmax.f32 %v2622_v50, %v2623_v19  ;;  %v2627_v26 = vrot.slane %v2626_v63, 2  ;;  %v11125_v11 = vadd.f32 %v10847_v7, %v10636_v21  ;;  %v14171_v4 = vrot.slane %v14170_v28, 6  ;;  %v14173_v21 = vld [vmem:[#allocation34_spill] sm:$0xff] }
 0x383   : > { %v11109_v2 = vadd.f32 %v14168_v29, %v3541_v47  ;;  %v3975_v1 = vsel %vm13961_vm4, %v14169_v23, %v10850_v37  ;;  %v11137_v39 = vadd.f32 %v10957_v52, %v10779_v60  ;;  %v14172_v37 = vrot.slane %v10917_v30, 5  ;;  %v14175_v23 = vld [vmem:[#allocation38_spill] sm:$0xff] }
 0x384   : > { %v3977_v62 = vsel %vm13960_vm5, %v14171_v4, %v3975_v1  ;;  %v14174_v34 = vrot.slane %v14173_v21, 7  ;;  %v7735_v27 = vpop.eup %7734  ;;  %v3982_v47 = vrot.slane %v7733_v53, 3  ;;  %v2628_v19 = vmax.f32 %v2626_v63, %v2627_v26 }
 0x385   : > { %v11133_v17 = vsub.f32 0.0, %v11109_v2  ;;  %v3979_v50 = vsel %vm13959_vm6, %v14172_v37, %v3977_v62  ;;  %v11147_v29 = vsub.f32 %v10897_v0, %v2624_v8  ;;  %v14176_v1 = vrot.slane %v14175_v23, 6  ;;  %v14177_v62 = vld [vmem:[#allocation42_spill] sm:$0xff] }
 0x386   : > { %v3989_v12 = vsel %vm13961_vm4, %v14174_v34, %v10860_v18  ;;  %v3828_v28 = vmul.f32 0.6931472, %v7735_v27  ;;  %v11155_v4 = vadd.f32 %v10963_v6, %v10792_v58  ;;  %v11158_v37 = vadd.f32 1e-06, %v14177_v62  ;;  %v7737_v18 = vpop.eup %7736 }
 0x387   : > { %v3991_v60 = vsel %vm13960_vm5, %v14176_v1, %v3989_v12  ;;  %v3669_v30 = vand.u32 2147483647, %v11133_v17  ;;  %v2629_v53 = vrot.slane %v2628_v19, 1  ;;  %v2731_v63 = vmul.f32 1.442695, %v11147_v29  ;;  %v7739_v21 = vpop.eup %7738 }
 0x388   : > { %v3981_v0 = vsel %vm13958_vm7, %v3980_v16, %v3979_v50  ;;  %v14178_v8 = vrot.slane %v10936_v42, 5  ;;  %v3834_v58 = vsel %vm11090_vm10, %v3831_v25, %v3828_v28  ;;  %v3837_v34 = vmul.f32 0.6931472, %v7737_v18  ;;  %v7741_v23 = vpop.eup %7740 }
 0x389   : > { %v3685_v27 = vsub.f32 0.0, %v3669_v30  ;;  %v3874_v1 = vadd.f32 %v3834_v58, %v3618_v61  ;;  %v2630_v62 = vmax.f32 %v2628_v19, %v2629_v53  ;;  %7742 = vpow2.f32 %v2731_v63  ;;  %v14181_v58 = vld [vmem:[#allocation30_spill] sm:$0xff] }
 0x38a   : > { %v3993_v26 = vsel %vm13959_vm6, %v14178_v8, %v3991_v60  ;;  %v3843_v54 = vsel %vm11096_vm11, %v3840_v13, %v3837_v34  ;;  %v3844_v9 = vadd.f32 1.0, %v7741_v23  ;;  %v3847_v25 = vmul.f32 -0.5, %v7741_v23 }
 0x38b   : > { %v3995_v42 = vsel %vm13958_vm7, %v3994_v22, %v3993_v26  ;;  %v3716_v16 = vmul.f32 1.442695, %v3685_v27  ;;  %v3996_v50 = vrot.slane %v7739_v21, 3  ;;  %v14179_v60 = vmax.f32 %v11000_v46, 0.0  ;;  %v14180_v26 = vld [vmem:[#allocation43_spill] sm:$0xff] }
 0x38c   : > { %v3890_v61 = vsel %vm3634_vm12, %v10992_v45, %v3874_v1  ;;  %v11184_v19 = vsub.f32 %v10969_v57, %v2630_v62  ;;  %v3848_v22 = vadd.f32 1.0, %v3847_v25  ;;  %v3850_v30 = vand.u32 2147483647, %v7741_v23  ;;  %v14182_v27 = vld [vmem:[#allocation31_spill] sm:$0xff] }
 0x38d   : > { %v3875_v28 = vadd.f32 %v3843_v54, %v14179_v60  ;;  %v3922_v40 = vsub.f32 0.0, %v3890_v61  ;;  %7744 = vpow2.f32 %v3716_v16  ;;  %v11187_v13 = vadd.f32 %v3890_v61, %v10980_v41 }
 0x38e   : > { %7746 = vlog2.f32 %v3844_v9  ;;  %v2733_v18 = vmul.f32 1.442695, %v11184_v19  ;;  %v11198_v63 = vsel %vm13957_vm9, %v3982_v47, %v3981_v0  ;;  %v3849_v8 = vmul.f32 %v7741_v23, %v3848_v22  ;;  %v14185_v47 = vld [vmem:[#allocation29_spill] sm:$0xff]  ;;  %v14186_v23 = vld [vmem:[#allocation36_spill] sm:$0xff] }
 0x38f   : > { %v3891_v44 = vsel %vm3635_vm15, %v11000_v46, %v3875_v28  ;;  %v3950_v45 = vmul.f32 1.442695, %v3922_v40  ;;  %v11201_v41 = vsel %vm13957_vm9, %v3996_v50, %v3995_v42  ;;  %v11204_v21 = vadd.f32 1e-06, %v14180_v26 }
 0x390   : > { %v3923_v53 = vsub.f32 0.0, %v3891_v44  ;;  %v11195_v57 = vadd.f32 %v3891_v44, %v10989_v55  ;;  %7748 = vpow2.f32 %v2733_v18  ;;  %v11207_v34 = vadd.f32 1e-06, %v14181_v58 }
 0x391   : > { %7750 = vpow2.f32 %v3950_v45  ;;  %v11210_v1 = vadd.f32 1e-06, %v14182_v27  ;;  %vm11212_vm0 = vcmp.lt.f32.partialorder %v3850_v30, 0.0004427343  ;;  %v11217_v0 = vadd.f32 1e-06, %v14185_v47 }
 0x392   : > { %v3952_v46 = vmul.f32 1.442695, %v3923_v53  ;;  %v11220_v62 = vadd.f32 1e-06, %v14186_v23  ;;  %v11223_v42 = vadd.f32 1e-06, %v10833_v24  ;;  %v11228_v54 = vsel %vm13948_vm14, %v11069_v31, %v10976_v14 }
 0x393   : > { %v11231_v16 = vadd.f32 1e-06, %v10847_v7  ;;  %v11234_v9 = vadd.f32 1e-06, %v10957_v52  ;;  %v11237_v25 = vadd.f32 1e-06, %v10963_v6  ;;  %v11239_v50 = vpop.eup %7742  ;;  %v11252_v7 = vsel %vm13948_vm14, %v11094_v59, %v10996_v48 }
 0x394   : > { %7752 = vpow2.f32 %v3952_v46  ;;  %v11242_v24 = vadd.f32 1e-06, %v11050_v51  ;;  %v11245_v60 = vadd.f32 1e-06, %v11078_v10  ;;  %v11247_v14 = vadd.f32 1e-06, %v3890_v61 }
 0x395   : > { %vm3636_vm1 = vcmp.ne.f32.partialorder %v11064_v3, %v11064_v3  ;;  %v2763_v52 = vrot.slane %v11239_v50, 4  ;;  %v11257_v6 = vadd.f32 1e-06, %v3891_v44  ;;  %v4324_v51 = vsub.f32 0.0, %v11158_v37 }
 0x396   : > { %v4333_v46 = vsub.f32 0.0, %v11237_v25  ;;  %v4334_v47 = vsub.f32 0.0, %v11242_v24  ;;  %v4335_v23 = vsub.f32 0.0, %v11245_v60  ;;  %v4336_v12 = vsub.f32 0.0, %v11247_v14 }
 0x397   : > { %v7745_v59 = vpop.eup %7744  ;;  %v2764_v40 = vadd.f32 %v11239_v50, %v2763_v52  ;;  %v4337_v30 = vsub.f32 0.0, %v11257_v6  ;;  %v4346_v31 = vadd.f32 1e-06, %v11103_v33  ;;  %vm3637_vm3 = vcmp.ne.f32.partialorder %v11133_v17, %v11133_v17 }
 0x398   : > { %v7747_v18 = vpop.eup %7746  ;;  %v3853_v53 = vadd.f32 1.0, %v7745_v59  ;;  %v3856_v45 = vmul.f32 -0.5, %v7745_v59  ;;  %v3859_v26 = vand.u32 2147483647, %v7745_v59  ;;  %v14199_v37 = vsub.f32 0.0, %v11220_v62 }
 0x399   : > { %v3846_v58 = vmul.f32 0.6931472, %v7747_v18  ;;  %v2765_v27 = vrot.slane %v2764_v40, 2  ;;  %v14187_v18 = vld [vmem:[#allocation22_spill] sm:$0xff]  ;;  %v14203_v62 = vmax.f32 %v11133_v17, 0.0  ;;  %vm6539_vm8 = vcmask 1040384  }
 0x39a   : > { %v11272_v5 = vpop.eup %7748  ;;  %7754 = vlog2.f32 %v3853_v53  ;;  %v3857_v52 = vadd.f32 1.0, %v3856_v45  ;;  %v4344_v61 = vadd.f32 1e-06, %v14187_v18  ;;  %v14188_v53 = vld [vmem:[#allocation41_spill] sm:$0xff]  ;;  %vm11286_vm2 = vcmp.lt.f32.partialorder %v3859_v26, 0.0004427343 }
 0x39b   : > { %v7751_v44 = vpop.eup %7750  ;;  %v3852_v22 = vsel %vm11212_vm0, %v3849_v8, %v3846_v58  ;;  %v2766_v48 = vadd.f32 %v2765_v27, %v2764_v40  ;;  %v2769_v25 = vrot.slane %v11272_v5, 4  ;;  %v4345_v45 = vadd.f32 1e-06, %v14188_v53 }
 0x39c   : > { %v3858_v24 = vmul.f32 %v7745_v59, %v3857_v52  ;;  %v3876_v60 = vadd.f32 %v3852_v22, %v3620_v35  ;;  %v3984_v28 = vrot.slane %v7751_v44, 2  ;;  %v4347_v8 = vadd.f32 1e-06, %v11125_v11 }
 0x39d   : > { %v2767_v14 = vrot.slane %v2766_v48, 1  ;;  %v2770_v6 = vadd.f32 %v11272_v5, %v2769_v25  ;;  %v4348_v22 = vadd.f32 1e-06, %v11137_v39  ;;  %v4349_v52 = vadd.f32 1e-06, %v11155_v4  ;;  %v14191_v4 = vld [vmem:[#allocation23_spill] sm:$0xff] }
 0x39e   : > { %v7753_v10 = vpop.eup %7752  ;;  %v3892_v35 = vsel %vm3636_vm1, %v11064_v3, %v3876_v60  ;;  %v11296_v59 = vsel %vm13954_vm13, %v3984_v28, %v11198_v63  ;;  %v4350_v3 = vadd.f32 1e-06, %v11113_v38  ;;  %v4351_v39 = vadd.f32 1e-06, %v11117_v36  ;;  %v14192_v60 = vld [vmem:[#allocation24_spill] sm:$0xff] }
 0x39f   : > { %v3998_v40 = vrot.slane %v7753_v10, 2  ;;  %v3924_v44 = vsub.f32 0.0, %v3892_v35  ;;  %v2768_v33 = vadd.f32 %v2767_v14, %v2766_v48  ;;  %v2771_v58 = vrot.slane %v2770_v6, 2 }
 0x3a0   : > { %v3908_v11 = vadd.f32 %v3892_v35, %v11056_v32  ;;  %v4322_v27 = vadd.f32 1e-06, %v3892_v35  ;;  %v4352_v32 = vadd.f32 1e-06, %v11187_v13  ;;  %v4356_v38 = vsub.f32 %v4324_v51, %v14191_v4 }
 0x3a1   : > { %v11302_v26 = vsel %vm13954_vm13, %v3998_v40, %v11201_v41  ;;  %v3954_v63 = vmul.f32 1.442695, %v3924_v44  ;;  %v2772_v10 = vadd.f32 %v2771_v58, %v2770_v6  ;;  %7756 = vrcp.f32 %v2768_v33  ;;  %v14194_v6 = vld [vmem:[#allocation35_spill] sm:$0xff]  ;;  %v14196_v40 = vld [vmem:[#allocation37_spill] sm:$0xff] }
 0x3a2   : > { %7758 = vlog2.f32 %v2768_v33  ;;  %v4338_v28 = vsub.f32 0.0, %v4322_v27  ;;  %v4353_v41 = vadd.f32 1e-06, %v11195_v57  ;;  %v4354_v25 = vadd.f32 1e-06, %v3908_v11 }
 0x3a3   : > { %7760 = vpow2.f32 %v3954_v63  ;;  %v2773_v48 = vrot.slane %v2772_v10, 1  ;;  %v14193_v53 = vsub.f32 0.0, %v11204_v21  ;;  %v14195_v36 = vsub.f32 0.0, %v11207_v34 }
 0x3a4   : > { %v7755_v18 = vpop.eup %7754  ;;  %v14197_v13 = vsub.f32 0.0, %v11210_v1  ;;  %v14198_v44 = vsub.f32 0.0, %v11217_v0  ;;  %v4361_v51 = vsub.f32 %v14199_v37, %v4345_v45  ;;  %v14200_v27 = vsub.f32 0.0, %v11223_v42 }
 0x3a5   : > { %v4357_v14 = vsub.f32 %v14193_v53, %v14192_v60  ;;  %v4358_v35 = vsub.f32 %v14195_v36, %v14194_v6  ;;  %v3855_v58 = vmul.f32 0.6931472, %v7755_v18  ;;  %v2774_v11 = vadd.f32 %v2773_v48, %v2772_v10 }
 0x3a6   : > { %v4359_v57 = vsub.f32 %v14197_v13, %v14196_v40  ;;  %v4360_v33 = vsub.f32 %v14198_v44, %v4344_v61  ;;  %v4362_v21 = vsub.f32 %v14200_v27, %v4346_v31  ;;  %v14201_v63 = vsub.f32 0.0, %v11231_v16 }
 0x3a7   : > { %v14202_v34 = vsub.f32 0.0, %v11234_v9  ;;  %v4365_v53 = vsub.f32 %v4333_v46, %v4349_v52  ;;  %v4366_v1 = vsub.f32 %v4334_v47, %v4350_v3  ;;  %v3861_v0 = vsel %vm11286_vm2, %v3858_v24, %v3855_v58 }
 0x3a8   : > { %v4363_v4 = vsub.f32 %v14201_v63, %v4347_v8  ;;  %7762 = vrcp.f32 %v2774_v11  ;;  %v4367_v61 = vsub.f32 %v4335_v23, %v4351_v39  ;;  %v4368_v10 = vsub.f32 %v4336_v12, %v4352_v32 }
 0x3a9   : > { %v4364_v60 = vsub.f32 %v14202_v34, %v4348_v22  ;;  %v3877_v45 = vadd.f32 %v3861_v0, %v14203_v62  ;;  %7764 = vlog2.f32 %v2774_v11  ;;  %v4369_v42 = vsub.f32 %v4337_v30, %v4353_v41 }
 0x3aa   : > { %v4370_v31 = vsub.f32 %v4338_v28, %v4354_v25  ;;  %v4404_v16 = vadd.f32 %v11005_v43, %v4356_v38  ;;  %v4405_v8 = vadd.f32 %v11016_v20, %v4357_v14  ;;  %v14204_v9 = vrot.slane %v11005_v43, 1 }
 0x3ab   : > { %v14205_v47 = vrot.slane %v11016_v20, 1  ;;  %v3893_v12 = vsel %vm3637_vm3, %v11133_v17, %v3877_v45  ;;  %v14206_v23 = vrot.slane %v11005_v43, 2  ;;  %v14207_v30 = vrot.slane %v11016_v20, 2  ;;  %v7757_v39 = vpop.eup %7756 }
 0x3ac   : > { %v4406_v46 = vadd.f32 %v14204_v9, %v4358_v35  ;;  %v14208_v52 = vrot.slane %v11005_v43, 3  ;;  %v3925_v28 = vsub.f32 0.0, %v3893_v12  ;;  %v3909_v32 = vadd.f32 %v3893_v12, %v11109_v2  ;;  %v7759_v38 = vpop.eup %7758 }
 0x3ad   : > { %v4407_v55 = vadd.f32 %v14205_v47, %v4359_v57  ;;  %v4408_v24 = vadd.f32 %v14206_v23, %v4360_v33  ;;  %v4409_v22 = vadd.f32 %v14207_v30, %v4361_v51  ;;  %v4323_v41 = vadd.f32 1e-06, %v3893_v12  ;;  %v7761_v13 = vpop.eup %7760 }
 0x3ae   : > { %v4410_v3 = vadd.f32 %v14208_v52, %v4362_v21  ;;  %v14209_v48 = vrot.slane %v11016_v20, 3  ;;  %v2891_v17 = vmul.f32 %v7757_v39, %v11239_v50  ;;  %v14210_v18 = vrot.slane %v11005_v43, 4 }
 0x3af   : > { %v14211_v6 = vrot.slane %v11016_v20, 4  ;;  %v14212_v35 = vrot.slane %v11005_v43, 5  ;;  %v3956_v57 = vmul.f32 1.442695, %v3925_v28  ;;  %v2908_v44 = vmul.f32 0.6931472, %v7759_v38 }
 0x3b0   : > { %v4411_v25 = vadd.f32 %v14209_v48, %v4363_v4  ;;  %v4412_v14 = vadd.f32 %v14210_v18, %v4364_v60  ;;  %v4339_v2 = vsub.f32 0.0, %v4323_v41  ;;  %v14213_v33 = vrot.slane %v11016_v20, 5  ;;  %v2488_v41 = vpop.permute.xlu1 %2487 }
 0x3b1   : > { %v4413_v36 = vadd.f32 %v14211_v6, %v4365_v53  ;;  %v4414_v40 = vadd.f32 %v14212_v35, %v4366_v1  ;;  %v3986_v11 = vrot.slane %v7761_v13, 1  ;;  %v4355_v37 = vadd.f32 1e-06, %v3909_v32 }
 0x3b2   : > { %v4415_v58 = vadd.f32 %v14213_v33, %v4367_v61  ;;  %v14214_v50 = vrot.slane %v11005_v43, 6  ;;  %v14215_v27 = vrot.slane %v11016_v20, 6  ;;  %7766 = vpow2.f32 %v3956_v57  ;;  %v7763_v62 = vpop.eup %7762 }
 0x3b3   : > { %v2939_v63 = vsub.f32 %v11147_v29, %v2908_v44  ;;  %v14216_v4 = vrot.slane %v11005_v43, 7  ;;  %v4436_v60 = vrot.slane %v4406_v46, 7  ;;  %v11374_v53 = vsel %vm13948_vm14, %v3986_v11, %v11296_v59  ;;  %v7765_v47 = vpop.eup %7764 }
 0x3b4   : > { %v4416_v51 = vadd.f32 %v14214_v50, %v4368_v10  ;;  %v4417_v21 = vadd.f32 %v14215_v27, %v4369_v42  ;;  %v4371_v1 = vsub.f32 %v4339_v2, %v4355_v37  ;;  %v4438_v0 = vrot.slane %v4408_v24, 6 }
 0x3b5   : > { %v4418_v34 = vadd.f32 %v14216_v4, %v4370_v31  ;;  %v4440_v61 = vrot.slane %v4410_v3, 5  ;;  %v4004_v10 = vmul.f32 %v11374_v53, %v2891_v17  ;;  %v4437_v45 = vsel %vm13961_vm4, %v4436_v60, %v4404_v16 }
 0x3b6   : > { %v4442_v42 = vrot.slane %v4412_v14, 4  ;;  %v4444_v9 = vrot.slane %v4414_v40, 3  ;;  %v2892_v29 = vmul.f32 %v7763_v62, %v11272_v5  ;;  %v14217_v43 = vrot.slane %v11016_v20, 7  ;;  %v2495_v14 = vpop.permute.xlu0 %2494 }
 0x3b7   : > { %v4439_v46 = vsel %vm13960_vm5, %v4438_v0, %v4437_v45  ;;  %v4446_v59 = vrot.slane %v4416_v51, 2  ;;  %v2910_v12 = vmul.f32 0.6931472, %v7765_v47  ;;  %v4020_v23 = vrot.slane %v4004_v10, 4 }
 0x3b8   : > { %v4419_v31 = vadd.f32 %v14217_v43, %v4371_v1  ;;  %v4441_v24 = vsel %vm13959_vm6, %v4440_v61, %v4439_v46  ;;  %v4448_v30 = vrot.slane %v4418_v34, 1  ;;  %v4450_v3 = vrot.slane %v4407_v55, 7 }
 0x3b9   : > { %v4443_v52 = vsel %vm13958_vm7, %v4442_v42, %v4441_v24  ;;  %v4452_v16 = vrot.slane %v4409_v22, 6  ;;  %v4454_v39 = vrot.slane %v4411_v25, 5  ;;  %v2940_v28 = vsub.f32 %v11184_v19, %v2910_v12 }
 0x3ba   : > { %v4021_v32 = vadd.f32 %v4020_v23, %v4004_v10  ;;  %v4445_v5 = vsel %vm13957_vm9, %v4444_v9, %v4443_v52  ;;  %v4456_v20 = vrot.slane %v4413_v36, 4  ;;  %v4451_v38 = vsel %vm13961_vm4, %v4450_v3, %v4405_v8  ;;  %v14218_v36 = vld [vmem:[#allocation25_spill] sm:$0xff] }
 0x3bb   : > { %v4447_v48 = vsel %vm13954_vm13, %v4446_v59, %v4445_v5  ;;  %v4458_v17 = vrot.slane %v4415_v58, 3  ;;  %v4460_v18 = vrot.slane %v4417_v21, 2  ;;  %v4453_v55 = vsel %vm13960_vm5, %v4452_v16, %v4451_v38 }
 0x3bc   : > { %v4022_v6 = vrot.slane %v4021_v32, 2  ;;  %v11389_v35 = vsel %vm13948_vm14, %v4448_v30, %v4447_v48  ;;  %v4462_v22 = vrot.slane %v4419_v31, 1  ;;  %v4455_v19 = vsel %vm13959_vm6, %v4454_v39, %v4453_v55  ;;  %v7767_v8 = vpop.eup %7766 }
 0x3bd   : > { %v11394_v25 = vadd.f32 %v11389_v35, %v2939_v63  ;;  %v2533_v40 = vadd.f32 %v2488_v41, %v14218_v36  ;;  %v11398_v13 = vadd.f32 %v2488_v41, %v10951_v49  ;;  %v4457_v44 = vsel %vm13958_vm7, %v4456_v20, %v4455_v19 }
 0x3be   : > { %v4023_v57 = vadd.f32 %v4022_v6, %v4021_v32  ;;  %v2535_v2 = vadd.f32 %v2495_v14, %v14218_v36  ;;  %v11403_v33 = vadd.f32 %v2495_v14, %v10951_v49  ;;  %v4000_v58 = vrot.slane %v7767_v8, 1 }
 0x3bf   : > { %v4459_v11 = vsel %vm13957_vm9, %v4458_v17, %v4457_v44  ;;  %v4482_v37 = vrot.slane %v11394_v25, 4  ;;  %v2631_v50 = vrot.slane %v2533_v40, 4  ;;  %v2637_v21 = vrot.slane %v11398_v13, 4  ;;  %v2502_v44 = vpop.permute.xlu1 %2501 }
 0x3c0   : > { %v4024_v51 = vrot.slane %v4023_v57, 1  ;;  %v4461_v27 = vsel %vm13954_vm13, %v4460_v18, %v4459_v11  ;;  %v2643_v63 = vrot.slane %v2535_v2, 4  ;;  %v11411_v4 = vsel %vm13948_vm14, %v4000_v58, %v11302_v26 }
 0x3c1   : > { %v11414_v34 = vsel %vm13948_vm14, %v4462_v22, %v4461_v27  ;;  %v4483_v60 = vmax.f32 %v11394_v25, %v4482_v37  ;;  %v2632_v1 = vmax.f32 %v2533_v40, %v2631_v50  ;;  %v4005_v0 = vmul.f32 %v11411_v4, %v2892_v29 }
 0x3c2   : > { %v4025_v61 = vadd.f32 %v4024_v51, %v4023_v57  ;;  %v11419_v62 = vadd.f32 %v11414_v34, %v2940_v28  ;;  %v2638_v10 = vmax.f32 %v11398_v13, %v2637_v21  ;;  %v2644_v9 = vmax.f32 %v2535_v2, %v2643_v63 }
 0x3c3   : > { %v4484_v45 = vrot.slane %v4483_v60, 2  ;;  %v2633_v42 = vrot.slane %v2632_v1, 2  ;;  %v2649_v26 = vrot.slane %v11403_v33, 4  ;;  %v4026_v47 = vrot.slane %v4005_v0, 4 }
 0x3c4   : > { %v4116_v43 = vmul.f32 0.999999, %v4025_v61  ;;  %v4488_v31 = vrot.slane %v11419_v62, 4  ;;  %v2639_v46 = vrot.slane %v2638_v10, 2  ;;  %v2645_v23 = vrot.slane %v2644_v9, 2 }
 0x3c5   : > { %v4485_v59 = vmax.f32 %v4483_v60, %v4484_v45  ;;  %v2634_v12 = vmax.f32 %v2632_v1, %v2633_v42  ;;  %v2650_v29 = vmax.f32 %v11403_v33, %v2649_v26  ;;  %v4027_v24 = vadd.f32 %v4026_v47, %v4005_v0  ;;  %v2509_v0 = vpop.permute.xlu0 %2508 }
 0x3c6   : > { %v4132_v30 = vadd.f32 5e-07, %v4116_v43  ;;  %v4489_v52 = vmax.f32 %v11419_v62, %v4488_v31  ;;  %v2640_v3 = vmax.f32 %v2638_v10, %v2639_v46  ;;  %v2646_v28 = vmax.f32 %v2644_v9, %v2645_v23 }
 0x3c7   : > { %v4486_v16 = vrot.slane %v4485_v59, 1  ;;  %v2635_v39 = vrot.slane %v2634_v12, 1  ;;  %v2651_v32 = vrot.slane %v2650_v29, 2  ;;  %v4028_v5 = vrot.slane %v4027_v24, 2 }
 0x3c8   : > { %v4148_v20 = vmul.f32 100.0, %v4132_v30  ;;  %v4212_v41 = vsub.f32 1.0, %v4132_v30  ;;  %v4490_v48 = vrot.slane %v4489_v52, 2  ;;  %v2641_v18 = vrot.slane %v2640_v3, 1 }
 0x3c9   : > { %v11426_v38 = vmax.f32 %v4485_v59, %v4486_v16  ;;  %v2636_v17 = vmax.f32 %v2634_v12, %v2635_v39  ;;  %v2647_v14 = vrot.slane %v2646_v28, 1  ;;  %v4029_v6 = vadd.f32 %v4028_v5, %v4027_v24 }
 0x3ca   : > { %7768 = vlog2.f32 %v4148_v20  ;;  %v4228_v55 = vmul.f32 100.0, %v4212_v41  ;;  %v4491_v22 = vmax.f32 %v4489_v52, %v4490_v48  ;;  %v2642_v36 = vmax.f32 %v2640_v3, %v2641_v18  ;;  %v2516_v41 = vpop.permute.xlu1 %2515 }
 0x3cb   : > { %v4578_v19 = vsub.f32 %v11394_v25, %v11426_v38  ;;  %v11430_v8 = vsub.f32 %v2533_v40, %v2636_v17  ;;  %v2648_v57 = vmax.f32 %v2646_v28, %v2647_v14  ;;  %v4030_v58 = vrot.slane %v4029_v6, 1  ;;  %v11441_v40 = vld [vmem:[%s8681_s27 + $0x60] sm:$0xff] }
 0x3cc   : > { %7770 = vlog2.f32 %v4228_v55  ;;  %v4492_v11 = vrot.slane %v4491_v22, 1  ;;  %v2652_v37 = vmax.f32 %v2650_v29, %v2651_v32  ;;  %v11433_v51 = vsub.f32 %v11398_v13, %v2642_v36 }
 0x3cd   : > { %v4594_v50 = vmul.f32 1.442695, %v4578_v19  ;;  %v2735_v27 = vmul.f32 1.442695, %v11430_v8  ;;  %v11436_v21 = vsub.f32 %v2535_v2, %v2648_v57  ;;  %v4031_v63 = vadd.f32 %v4030_v58, %v4029_v6 }
 0x3ce   : > { %v11438_v25 = vmax.f32 %v4491_v22, %v4492_v11  ;;  %v2653_v60 = vrot.slane %v2652_v37, 1  ;;  %v11444_v1 = vadd.f32 %v11441_v40, %v2502_v44  ;;  %v2737_v61 = vmul.f32 1.442695, %v11433_v51 }
 0x3cf   : > { %7772 = vpow2.f32 %v4594_v50  ;;  %v2739_v13 = vmul.f32 1.442695, %v11436_v21  ;;  %v11449_v10 = vadd.f32 %v2502_v44, %v10951_v49  ;;  %v4117_v2 = vmul.f32 0.999999, %v4031_v63 }
 0x3d0   : > { %v4579_v45 = vsub.f32 %v11419_v62, %v11438_v25  ;;  %7774 = vpow2.f32 %v2735_v27  ;;  %v2654_v42 = vmax.f32 %v2652_v37, %v2653_v60  ;;  %v2655_v9 = vrot.slane %v11444_v1, 4 }
 0x3d1   : > { %7776 = vpow2.f32 %v2737_v61  ;;  %v2661_v26 = vrot.slane %v11449_v10, 4  ;;  %v11456_v47 = vadd.f32 %v11441_v40, %v2509_v0  ;;  %v4133_v43 = vadd.f32 5e-07, %v4117_v2 }
 0x3d2   : > { %v4596_v31 = vmul.f32 1.442695, %v4579_v45  ;;  %v11459_v46 = vsub.f32 %v11403_v33, %v2654_v42  ;;  %7778 = vpow2.f32 %v2739_v13  ;;  %v2656_v59 = vmax.f32 %v11444_v1, %v2655_v9 }
 0x3d3   : > { %v2662_v62 = vmax.f32 %v11449_v10, %v2661_v26  ;;  %v11464_v12 = vadd.f32 %v2509_v0, %v10951_v49  ;;  %v2667_v23 = vrot.slane %v11456_v47, 4  ;;  %v4149_v24 = vmul.f32 100.0, %v4133_v43  ;;  %v11490_v0 = vld [vmem:[%s8681_s27 + $0x68] sm:$0xff] }
 0x3d4   : > { %v7769_v29 = vpop.eup %7768  ;;  %v4213_v30 = vsub.f32 1.0, %v4133_v43  ;;  %7780 = vpow2.f32 %v4596_v31  ;;  %v2741_v52 = vmul.f32 1.442695, %v11459_v46  ;;  %v2657_v16 = vrot.slane %v2656_v59, 2 }
 0x3d5   : > { %v4165_v3 = vmul.f32 0.6931472, %v7769_v29  ;;  %v2668_v33 = vmax.f32 %v11456_v47, %v2667_v23  ;;  %7782 = vlog2.f32 %v4149_v24  ;;  %v2663_v32 = vrot.slane %v2662_v62, 2 }
 0x3d6   : > { %v7771_v39 = vpop.eup %7770  ;;  %v4229_v28 = vmul.f32 100.0, %v4213_v30  ;;  %7784 = vpow2.f32 %v2741_v52  ;;  %v2658_v49 = vmax.f32 %v2656_v59, %v2657_v16  ;;  %v2673_v20 = vrot.slane %v11464_v12, 4 }
 0x3d7   : > { %v4245_v5 = vmul.f32 0.6931472, %v7771_v39  ;;  %v2669_v48 = vrot.slane %v2668_v33, 2  ;;  %v11470_v18 = vadd.f32 -4.6051702, %v4165_v3  ;;  %v2664_v19 = vmax.f32 %v2662_v62, %v2663_v32 }
 0x3d8   : > { %7786 = vlog2.f32 %v4229_v28  ;;  %v2659_v6 = vrot.slane %v2658_v49, 1  ;;  %v11478_v36 = vadd.f32 %v11441_v40, %v2516_v41  ;;  %v2674_v37 = vmax.f32 %v11464_v12, %v2673_v20 }
 0x3d9   : > { %v7773_v17 = vpop.eup %7772  ;;  %v11472_v14 = vadd.f32 -4.6051702, %v4245_v5  ;;  %v2670_v60 = vmax.f32 %v2668_v33, %v2669_v48  ;;  %v11493_v61 = vadd.f32 %v11490_v0, %v2516_v41  ;;  %v2665_v31 = vrot.slane %v2664_v19, 1 }
 0x3da   : > { %v11474_v55 = vpop.eup %7774  ;;  %v4878_v22 = vmul.f32 %v7773_v17, %v11228_v54  ;;  %v2660_v11 = vmax.f32 %v2658_v49, %v2659_v6  ;;  %v2679_v59 = vrot.slane %v11478_v36, 4  ;;  %v2675_v16 = vrot.slane %v2674_v37, 2 }
 0x3db   : > { %v11480_v57 = vpop.eup %7776  ;;  %v4990_v44 = vadd.f32 %v11472_v14, %v11470_v18  ;;  %v2775_v58 = vrot.slane %v11474_v55, 4 }
 0x3dc   : > { %v11486_v50 = vpop.eup %7778  ;;  %v4894_v27 = vrot.slane %v4878_v22, 4  ;;  %v2781_v63 = vrot.slane %v11480_v57, 4  ;;  %v11498_v42 = vsub.f32 %v11444_v1, %v2660_v11  ;;  %v2671_v1 = vrot.slane %v2670_v60, 1 }
 0x3dd   : > { %v5006_v13 = vsub.f32 -1.0000005e-06, %v4990_v44  ;;  %v2776_v2 = vadd.f32 %v11474_v55, %v2775_v58  ;;  %v2787_v45 = vrot.slane %v11486_v50, 4 }
 0x3de   : > { %v7781_v9 = vpop.eup %7780  ;;  %v4895_v26 = vadd.f32 %v4894_v27, %v4878_v22  ;;  %v2782_v43 = vadd.f32 %v11480_v57, %v2781_v63  ;;  %v2743_v5 = vmul.f32 1.442695, %v11498_v42 }
 0x3df   : > { %v4879_v62 = vmul.f32 %v7781_v9, %v11252_v7  ;;  %v11504_v23 = vadd.f32 %v5006_v13, %v11426_v38  ;;  %v2777_v29 = vrot.slane %v2776_v2, 2  ;;  %v2788_v24 = vadd.f32 %v11486_v50, %v2787_v45  ;;  %v7783_v30 = vpop.eup %7782 }
 0x3e0   : > { %v4896_v52 = vrot.slane %v4895_v26, 2  ;;  %v2783_v3 = vrot.slane %v2782_v43, 2  ;;  %v11507_v33 = vpop.eup %7784  ;;  %v4167_v39 = vmul.f32 0.6931472, %v7783_v30  ;;  %7788 = vpow2.f32 %v2743_v5 }
 0x3e1   : > { %v4900_v28 = vrot.slane %v4879_v62, 4  ;;  %v2778_v32 = vadd.f32 %v2777_v29, %v2776_v2  ;;  %v2789_v38 = vrot.slane %v2788_v24, 2  ;;  %v2793_v48 = vrot.slane %v11507_v33, 4 }
 0x3e2   : > { %v7787_v49 = vpop.eup %7786  ;;  %v4897_v20 = vadd.f32 %v4896_v52, %v4895_v26  ;;  %v2784_v41 = vadd.f32 %v2783_v3, %v2782_v43  ;;  %v11511_v17 = vadd.f32 -4.6051702, %v4167_v39  ;;  %v2666_v29 = vmax.f32 %v2664_v19, %v2665_v31 }
 0x3e3   : > { %v4247_v6 = vmul.f32 0.6931472, %v7787_v49  ;;  %v4901_v22 = vadd.f32 %v4900_v28, %v4879_v62  ;;  %v2779_v44 = vrot.slane %v2778_v32, 1  ;;  %v2790_v27 = vadd.f32 %v2789_v38, %v2788_v24 }
 0x3e4   : > { %v4898_v58 = vrot.slane %v4897_v20, 1  ;;  %v2785_v11 = vrot.slane %v2784_v41, 1  ;;  %v2794_v63 = vadd.f32 %v11507_v33, %v2793_v48  ;;  %v2672_v24 = vmax.f32 %v2670_v60, %v2671_v1 }
 0x3e5   : > { %v11514_v13 = vadd.f32 -4.6051702, %v4247_v6  ;;  %v4902_v2 = vrot.slane %v4901_v22, 2  ;;  %v2780_v45 = vadd.f32 %v2779_v44, %v2778_v32  ;;  %v2791_v26 = vrot.slane %v2790_v27, 1 }
 0x3e6   : > { %v4899_v9 = vadd.f32 %v4898_v58, %v4897_v20  ;;  %v2795_v43 = vrot.slane %v2794_v63, 2  ;;  %v2786_v62 = vadd.f32 %v2785_v11, %v2784_v41  ;;  %v2676_v39 = vmax.f32 %v2674_v37, %v2675_v16  ;;  %v11536_v11 = vpop.permute.xlu0 %2522 }
 0x3e7   : > { %v4903_v30 = vadd.f32 %v4902_v2, %v4901_v22  ;;  %v4991_v52 = vadd.f32 %v11514_v13, %v11511_v17  ;;  %7790 = vrcp.f32 %v2780_v45  ;;  %v2792_v38 = vadd.f32 %v2791_v26, %v2790_v27  ;;  %v14220_v26 = vld [vmem:[#allocation40_spill] sm:$0xff] }
 0x3e8   : > { %7792 = vlog2.f32 %v4899_v9  ;;  %v2796_v3 = vadd.f32 %v2795_v43, %v2794_v63  ;;  %v2677_v5 = vrot.slane %v2676_v39, 1  ;;  %v2680_v20 = vmax.f32 %v11478_v36, %v2679_v59  ;;  %v14219_v63 = vld [vmem:[#allocation39_spill] sm:$0xff] }
 0x3e9   : > { %v4904_v28 = vrot.slane %v4903_v30, 1  ;;  %v5007_v49 = vsub.f32 -1.0000005e-06, %v4991_v52  ;;  %7794 = vrcp.f32 %v2786_v62  ;;  %v11521_v41 = vsub.f32 %v11449_v10, %v2666_v29 }
 0x3ea   : > { %7796 = vlog2.f32 %v2780_v45  ;;  %v2797_v32 = vrot.slane %v2796_v3, 1  ;;  %v2678_v60 = vmax.f32 %v2676_v39, %v2677_v5  ;;  %v2681_v37 = vrot.slane %v2680_v20, 2  ;;  %v11527_v59 = vpop.eup %7788 }
 0x3eb   : > { %v4905_v19 = vadd.f32 %v4904_v28, %v4903_v30  ;;  %v5023_v31 = vadd.f32 %v5007_v49, %v11438_v25  ;;  %7798 = vlog2.f32 %v2786_v62  ;;  %v11524_v1 = vsub.f32 %v11456_v47, %v2672_v24 }
 0x3ec   : > { %v2798_v48 = vadd.f32 %v2797_v32, %v2796_v3  ;;  %7800 = vrcp.f32 %v2792_v38  ;;  %v2685_v16 = vrot.slane %v11493_v61, 4  ;;  %v2682_v6 = vmax.f32 %v2680_v20, %v2681_v37 }
 0x3ed   : > { %7802 = vlog2.f32 %v4905_v19  ;;  %v11530_v25 = vsub.f32 %v11464_v12, %v2678_v60  ;;  %v2745_v22 = vmul.f32 1.442695, %v11521_v41  ;;  %v2799_v58 = vrot.slane %v11527_v59, 4 }
 0x3ee   : > { %7804 = vrcp.f32 %v2798_v48  ;;  %v2686_v10 = vmax.f32 %v11493_v61, %v2685_v16  ;;  %v2747_v47 = vmul.f32 1.442695, %v11524_v1  ;;  %v5038_v2 = vadd.f32 %v11504_v23, %v14219_v63 }
 0x3ef   : > { %7806 = vlog2.f32 %v2792_v38  ;;  %v2683_v12 = vrot.slane %v2682_v6, 1  ;;  %v5039_v43 = vadd.f32 %v5023_v31, %v14220_v26  ;;  %v2749_v30 = vmul.f32 1.442695, %v11530_v25 }
 0x3f0   : > { %7808 = vlog2.f32 %v2798_v48  ;;  %v2687_v52 = vrot.slane %v2686_v10, 2  ;;  %v11547_v39 = vadd.f32 %v11441_v40, %v11536_v11  ;;  %v11552_v49 = vadd.f32 %v11527_v59, %v2799_v58 }
 0x3f1   : > { %v7791_v44 = vpop.eup %7790  ;;  %7810 = vpow2.f32 %v2745_v22  ;;  %v11555_v20 = vmax.f32 %v2682_v6, %v2683_v12 }
 0x3f2   : > { %v7793_v27 = vpop.eup %7792  ;;  %v2893_v45 = vmul.f32 %v7791_v44, %v11474_v55  ;;  %7812 = vpow2.f32 %v2747_v47  ;;  %v11559_v48 = vmax.f32 %v2686_v10, %v2687_v52 }
 0x3f3   : > { %v7795_v9 = vpop.eup %7794  ;;  %v5055_v29 = vmul.f32 0.6931472, %v7793_v27  ;;  %7814 = vpow2.f32 %v2749_v30 }
 0x3f4   : > { %v7797_v62 = vpop.eup %7796  ;;  %v2894_v3 = vmul.f32 %v7795_v9, %v11480_v57  ;;  %v4006_v24 = vmul.f32 %v11374_v53, %v2893_v45 }
 0x3f5   : > { %v7799_v23 = vpop.eup %7798  ;;  %v11549_v55 = vadd.f32 %v5055_v29, %v5038_v2  ;;  %v2912_v28 = vmul.f32 0.6931472, %v7797_v62 }
 0x3f6   : > { %v7801_v38 = vpop.eup %7800  ;;  %v2914_v32 = vmul.f32 0.6931472, %v7799_v23  ;;  %v4007_v5 = vmul.f32 %v11411_v4, %v2894_v3  ;;  %v4032_v57 = vrot.slane %v4006_v24, 4 }
 0x3f7   : > { %14221 = vst [vmem:[#allocation26_spill] sm:$0xff] %v11549_v55  ;;  %v7803_v19 = vpop.eup %7802  ;;  %v2941_v31 = vsub.f32 %v11430_v8, %v2912_v28  ;;  %v2895_v40 = vmul.f32 %v7801_v38, %v11486_v50 }
 0x3f8   : > { %v7805_v60 = vpop.eup %7804  ;;  %v5057_v37 = vmul.f32 0.6931472, %v7803_v19  ;;  %v2942_v16 = vsub.f32 %v11433_v51, %v2914_v32  ;;  %v4033_v22 = vadd.f32 %v4032_v57, %v4006_v24  ;;  %v4038_v44 = vrot.slane %v4007_v5, 4 }
 0x3f9   : > { %v7807_v58 = vpop.eup %7806  ;;  %v11563_v47 = vadd.f32 %v11389_v35, %v2941_v31  ;;  %v2896_v6 = vmul.f32 %v7805_v60, %v11507_v33  ;;  %v4008_v27 = vmul.f32 %v11374_v53, %v2895_v40 }
 0x3fa   : > { %v7809_v50 = vpop.eup %7808  ;;  %v11568_v2 = vadd.f32 %v5057_v37, %v5039_v43  ;;  %v4034_v10 = vrot.slane %v4033_v22, 2  ;;  %v4039_v45 = vadd.f32 %v4038_v44, %v4007_v5  ;;  %v11571_v12 = vadd.f32 %v11414_v34, %v2942_v16 }
 0x3fb   : > { %v4494_v51 = vrot.slane %v11563_v47, 4  ;;  %v2916_v9 = vmul.f32 0.6931472, %v7807_v58  ;;  %v2918_v29 = vmul.f32 0.6931472, %v7809_v50  ;;  %v4009_v30 = vmul.f32 %v11411_v4, %v2896_v6  ;;  %v11580_v38 = vpop.eup %7810 }
 0x3fc   : > { %14222 = vst [vmem:[#allocation27_spill] sm:$0xff] %v11568_v2  ;;  %v4035_v52 = vadd.f32 %v4034_v10, %v4033_v22  ;;  %v4040_v33 = vrot.slane %v4039_v45, 2  ;;  %v4500_v62 = vrot.slane %v11571_v12, 4  ;;  %v4044_v28 = vrot.slane %v4008_v27, 4  ;;  %v11583_v31 = vpop.eup %7812 }
 0x3fd   : > { %v4495_v43 = vmax.f32 %v11563_v47, %v4494_v51  ;;  %v2943_v24 = vsub.f32 %v11436_v21, %v2916_v9  ;;  %v2944_v23 = vsub.f32 %v11459_v46, %v2918_v29  ;;  %v4050_v19 = vrot.slane %v4009_v30, 4  ;;  %v11591_v58 = vpop.eup %7814 }
 0x3fe   : > { %v4036_v32 = vrot.slane %v4035_v52, 1  ;;  %v4041_v5 = vadd.f32 %v4040_v33, %v4039_v45  ;;  %v4501_v57 = vmax.f32 %v11571_v12, %v4500_v62  ;;  %v4045_v60 = vadd.f32 %v4044_v28, %v4008_v27 }
 0x3ff   : > { %v4496_v40 = vrot.slane %v4495_v43, 2  ;;  %v11586_v37 = vadd.f32 %v11389_v35, %v2943_v24  ;;  %v11589_v16 = vadd.f32 %v11414_v34, %v2944_v23  ;;  %v4051_v44 = vadd.f32 %v4050_v19, %v4009_v30 }
 0x400   : > { %v4037_v21 = vadd.f32 %v4036_v32, %v4035_v52  ;;  %v4042_v46 = vrot.slane %v4041_v5, 1  ;;  %v4502_v22 = vrot.slane %v4501_v57, 2  ;;  %v4046_v50 = vrot.slane %v4045_v60, 2 }
 0x401   : > { %v4497_v6 = vmax.f32 %v4495_v43, %v4496_v40  ;;  %v4506_v10 = vrot.slane %v11586_v37, 4  ;;  %v4512_v45 = vrot.slane %v11589_v16, 4  ;;  %v4052_v29 = vrot.slane %v4051_v44, 2 }
 0x402   : > { %v4043_v51 = vadd.f32 %v4042_v46, %v4041_v5  ;;  %v4118_v27 = vmul.f32 0.999999, %v4037_v21  ;;  %v4503_v9 = vmax.f32 %v4501_v57, %v4502_v22  ;;  %v4047_v62 = vadd.f32 %v4046_v50, %v4045_v60 }
 0x403   : > { %v4498_v33 = vrot.slane %v4497_v6, 1  ;;  %v4507_v24 = vmax.f32 %v11586_v37, %v4506_v10  ;;  %v4513_v52 = vmax.f32 %v11589_v16, %v4512_v45  ;;  %v4053_v32 = vadd.f32 %v4052_v29, %v4051_v44 }
 0x404   : > { %v4119_v23 = vmul.f32 0.999999, %v4043_v51  ;;  %v4134_v30 = vadd.f32 5e-07, %v4118_v27  ;;  %v4504_v28 = vrot.slane %v4503_v9, 1  ;;  %v4048_v19 = vrot.slane %v4047_v62, 1 }
 0x405   : > { %v11597_v43 = vmax.f32 %v4497_v6, %v4498_v33  ;;  %v4508_v40 = vrot.slane %v4507_v24, 2  ;;  %v4514_v3 = vrot.slane %v4513_v52, 2  ;;  %v4054_v22 = vrot.slane %v4053_v32, 1 }
 0x406   : > { %v4135_v8 = vadd.f32 5e-07, %v4119_v23  ;;  %v4150_v5 = vmul.f32 100.0, %v4134_v30  ;;  %v4214_v21 = vsub.f32 1.0, %v4134_v30  ;;  %v11599_v57 = vmax.f32 %v4503_v9, %v4504_v28 }
 0x407   : > { %v4580_v60 = vsub.f32 %v11563_v47, %v11597_v43  ;;  %v4049_v46 = vadd.f32 %v4048_v19, %v4047_v62  ;;  %v4509_v50 = vmax.f32 %v4507_v24, %v4508_v40  ;;  %v4055_v27 = vadd.f32 %v4054_v22, %v4053_v32 }
 0x408   : > { %v4151_v10 = vmul.f32 100.0, %v4135_v8  ;;  %7816 = vlog2.f32 %v4150_v5  ;;  %v4215_v45 = vsub.f32 1.0, %v4135_v8  ;;  %v4230_v44 = vmul.f32 100.0, %v4214_v21 }
 0x409   : > { %v4581_v6 = vsub.f32 %v11571_v12, %v11599_v57  ;;  %v4598_v51 = vmul.f32 1.442695, %v4580_v60  ;;  %v4120_v29 = vmul.f32 0.999999, %v4049_v46  ;;  %v4510_v9 = vrot.slane %v4509_v50, 1 }
 0x40a   : > { %7818 = vlog2.f32 %v4151_v10  ;;  %v4231_v33 = vmul.f32 100.0, %v4215_v45  ;;  %v4515_v23 = vmax.f32 %v4513_v52, %v4514_v3  ;;  %v4121_v47 = vmul.f32 0.999999, %v4055_v27 }
 0x40b   : > { %7820 = vlog2.f32 %v4230_v44  ;;  %v4600_v30 = vmul.f32 1.442695, %v4581_v6  ;;  %v4136_v62 = vadd.f32 5e-07, %v4120_v29  ;;  %v11605_v24 = vmax.f32 %v4509_v50, %v4510_v9 }
 0x40c   : > { %7822 = vlog2.f32 %v4231_v33  ;;  %v4516_v28 = vrot.slane %v4515_v23, 1  ;;  %v14223_v8 = vrot.slane %v11552_v49, 2  ;;  %v4137_v12 = vadd.f32 5e-07, %v4121_v47 }
 0x40d   : > { %7824 = vpow2.f32 %v4598_v51  ;;  %v4152_v32 = vmul.f32 100.0, %v4136_v62  ;;  %v4216_v40 = vsub.f32 1.0, %v4136_v62  ;;  %v4582_v3 = vsub.f32 %v11586_v37, %v11605_v24 }
 0x40e   : > { %v2802_v19 = vadd.f32 %v14223_v8, %v11552_v49  ;;  %7826 = vpow2.f32 %v4600_v30  ;;  %v11610_v5 = vmax.f32 %v4515_v23, %v4516_v28  ;;  %v2805_v52 = vrot.slane %v11580_v38, 4 }
 0x40f   : > { %v4153_v21 = vmul.f32 100.0, %v4137_v12  ;;  %7828 = vlog2.f32 %v4152_v32  ;;  %v4217_v60 = vsub.f32 1.0, %v4137_v12  ;;  %v4232_v46 = vmul.f32 100.0, %v4216_v40 }
 0x410   : > { %v4583_v22 = vsub.f32 %v11589_v16, %v11610_v5  ;;  %v4602_v49 = vmul.f32 1.442695, %v4582_v3  ;;  %v2806_v50 = vadd.f32 %v11580_v38, %v2805_v52  ;;  %v2691_v10 = vrot.slane %v11547_v39, 4 }
 0x411   : > { %7830 = vlog2.f32 %v4153_v21  ;;  %v4233_v45 = vmul.f32 100.0, %v4217_v60  ;;  %v2803_v44 = vrot.slane %v2802_v19, 1  ;;  %v2811_v6 = vrot.slane %v11583_v31, 4 }
 0x412   : > { %v7817_v37 = vpop.eup %7816  ;;  %7832 = vlog2.f32 %v4232_v46  ;;  %v4604_v51 = vmul.f32 1.442695, %v4583_v22  ;;  %v2807_v27 = vrot.slane %v2806_v50, 2  ;;  %v14224_v29 = vrot.slane %v11559_v48, 1 }
 0x413   : > { %7834 = vlog2.f32 %v4233_v45  ;;  %v2817_v16 = vrot.slane %v11591_v58, 4  ;;  %v11626_v9 = vsub.f32 %v11478_v36, %v11555_v20  ;;  %v4169_v30 = vmul.f32 0.6931472, %v7817_v37 }
 0x414   : > { %v2690_v33 = vmax.f32 %v11559_v48, %v14224_v29  ;;  %v7819_v23 = vpop.eup %7818  ;;  %7836 = vpow2.f32 %v4602_v49  ;;  %v2808_v47 = vadd.f32 %v2807_v27, %v2806_v50  ;;  %v2812_v62 = vadd.f32 %v11583_v31, %v2811_v6 }
 0x415   : > { %v7821_v28 = vpop.eup %7820  ;;  %v4171_v8 = vmul.f32 0.6931472, %v7819_v23  ;;  %7838 = vpow2.f32 %v4604_v51  ;;  %v2804_v12 = vadd.f32 %v2803_v44, %v2802_v19  ;;  %v11631_v48 = vadd.f32 %v11490_v0, %v11536_v11 }
 0x416   : > { %v7823_v32 = vpop.eup %7822  ;;  %v4249_v40 = vmul.f32 0.6931472, %v7821_v28  ;;  %v2809_v3 = vrot.slane %v2808_v47, 1  ;;  %v11634_v36 = vsub.f32 %v11493_v61, %v2690_v33  ;;  %v11637_v20 = vmax.f32 %v11547_v39, %v2691_v10 }
 0x417   : > { %v7825_v52 = vpop.eup %7824  ;;  %v4251_v21 = vmul.f32 0.6931472, %v7823_v32  ;;  %7840 = vrcp.f32 %v2804_v12  ;;  %v11640_v60 = vadd.f32 %v11591_v58, %v2817_v16  ;;  %v2751_v19 = vmul.f32 1.442695, %v11626_v9 }
 0x418   : > { %v7827_v46 = vpop.eup %7826  ;;  %v11643_v0 = vadd.f32 -4.6051702, %v4169_v30  ;;  %v11645_v11 = vadd.f32 -4.6051702, %v4249_v40  ;;  %v4880_v22 = vmul.f32 %v7825_v52, %v11228_v54  ;;  %v2813_v61 = vrot.slane %v2812_v62, 2 }
 0x419   : > { %v7829_v49 = vpop.eup %7828  ;;  %v11648_v50 = vadd.f32 -4.6051702, %v4171_v8  ;;  %v11650_v10 = vadd.f32 -4.6051702, %v4251_v21  ;;  %v4881_v45 = vmul.f32 %v7827_v46, %v11252_v7  ;;  %v11653_v44 = vadd.f32 %v2809_v3, %v2808_v47 }
 0x41a   : > { %v4906_v6 = vrot.slane %v4880_v22, 4  ;;  %v4992_v37 = vadd.f32 %v11645_v11, %v11643_v0  ;;  %7842 = vlog2.f32 %v2804_v12  ;;  %v2753_v51 = vmul.f32 1.442695, %v11634_v36 }
 0x41b   : > { %14225 = vst [vmem:[#allocation32_spill] sm:$0xff] %v11648_v50  ;;  %14226 = vst [vmem:[#allocation28_spill] sm:$0xff] %v11650_v10  ;;  %v7831_v27 = vpop.eup %7830  ;;  %v4912_v29 = vrot.slane %v4881_v45, 4  ;;  %v4993_v33 = vadd.f32 %v11650_v10, %v11648_v50  ;;  %7844 = vrcp.f32 %v11653_v44  ;;  %v2819_v16 = vrot.slane %v11640_v60, 2 }
 0x41c   : > { %v7833_v23 = vpop.eup %7832  ;;  %v4907_v30 = vadd.f32 %v4906_v6, %v4880_v22  ;;  %v5008_v47 = vsub.f32 -1.0000005e-06, %v4992_v37  ;;  %v4173_v28 = vmul.f32 0.6931472, %v7829_v49  ;;  %v11662_v8 = vadd.f32 %v2813_v61, %v2812_v62 }
 0x41d   : > { %v7835_v32 = vpop.eup %7834  ;;  %v4913_v40 = vadd.f32 %v4912_v29, %v4881_v45  ;;  %v5009_v12 = vsub.f32 -1.0000005e-06, %v4993_v33  ;;  %v4175_v3 = vmul.f32 0.6931472, %v7831_v27  ;;  %7846 = vpow2.f32 %v2751_v19 }
 0x41e   : > { %v7837_v52 = vpop.eup %7836  ;;  %v4908_v21 = vrot.slane %v4907_v30, 2  ;;  %v11665_v46 = vadd.f32 %v5008_v47, %v11597_v43  ;;  %v4253_v15 = vmul.f32 0.6931472, %v7833_v23  ;;  %7848 = vpow2.f32 %v2753_v51 }
 0x41f   : > { %v7839_v56 = vpop.eup %7838  ;;  %v4914_v50 = vrot.slane %v4913_v40, 2  ;;  %v11668_v22 = vadd.f32 %v5009_v12, %v11599_v57  ;;  %v4255_v62 = vmul.f32 0.6931472, %v7835_v32  ;;  %v4882_v61 = vmul.f32 %v7837_v52, %v11228_v54 }
 0x420   : > { %v4909_v49 = vadd.f32 %v4908_v21, %v4907_v30  ;;  %v11671_v45 = vadd.f32 -4.6051702, %v4173_v28  ;;  %v11673_v19 = vadd.f32 -4.6051702, %v4253_v15  ;;  %v4883_v6 = vmul.f32 %v7839_v56, %v11252_v7 }
 0x421   : > { %v7841_v37 = vpop.eup %7840  ;;  %v4915_v43 = vadd.f32 %v4914_v50, %v4913_v40  ;;  %v11676_v27 = vadd.f32 -4.6051702, %v4175_v3  ;;  %v11678_v51 = vadd.f32 -4.6051702, %v4255_v62  ;;  %v4918_v29 = vrot.slane %v4882_v61, 4 }
 0x422   : > { %14227 = vst [vmem:[#allocation33_spill] sm:$0xff] %v11671_v45  ;;  %v4910_v33 = vrot.slane %v4909_v49, 1  ;;  %v4924_v57 = vrot.slane %v4883_v6, 4  ;;  %v4994_v23 = vadd.f32 %v11673_v19, %v11671_v45  ;;  %v2693_v56 = vrot.slane %v11637_v20, 2 }
 0x423   : > { %14228 = vst [vmem:[#allocation34_spill] sm:$0xff] %v11676_v27  ;;  %v4916_v47 = vrot.slane %v4915_v43, 1  ;;  %v4919_v28 = vadd.f32 %v4918_v29, %v4882_v61  ;;  %v4995_v15 = vadd.f32 %v11678_v51, %v11676_v27  ;;  %v2820_v3 = vadd.f32 %v2819_v16, %v11640_v60 }
 0x424   : > { %v7843_v50 = vpop.eup %7842  ;;  %v4911_v32 = vadd.f32 %v4910_v33, %v4909_v49  ;;  %v4925_v40 = vadd.f32 %v4924_v57, %v4883_v6  ;;  %v5010_v12 = vsub.f32 -1.0000005e-06, %v4994_v23  ;;  %v2815_v45 = vrot.slane %v11662_v8, 1 }
 0x425   : > { %v7845_v52 = vpop.eup %7844  ;;  %v4917_v21 = vadd.f32 %v4916_v47, %v4915_v43  ;;  %v4920_v62 = vrot.slane %v4919_v28, 2  ;;  %v5011_v10 = vsub.f32 -1.0000005e-06, %v4995_v15  ;;  %v2897_v29 = vmul.f32 %v7841_v37, %v11527_v59 }
 0x426   : > { %7850 = vlog2.f32 %v4911_v32  ;;  %v4926_v30 = vrot.slane %v4925_v40, 2  ;;  %v11689_v61 = vadd.f32 %v5010_v12, %v11605_v24  ;;  %v2898_v60 = vmul.f32 %v7845_v52, %v11580_v38 }
 0x427   : > { %v11692_v27 = vpop.eup %7846  ;;  %7852 = vlog2.f32 %v4917_v21  ;;  %v4921_v49 = vadd.f32 %v4920_v62, %v4919_v28  ;;  %v11695_v6 = vadd.f32 %v5011_v10, %v11610_v5  ;;  %v2920_v33 = vmul.f32 0.6931472, %v7843_v50 }
 0x428   : > { %v11698_v16 = vpop.eup %7848  ;;  %v4927_v43 = vadd.f32 %v4926_v30, %v4925_v40  ;;  %7854 = vlog2.f32 %v11653_v44  ;;  %v11702_v24 = vmax.f32 %v11637_v20, %v2693_v56  ;;  %v11706_v59 = vsel %vm6539_vm8, %v11549_v55, -inf }
 0x429   : > { %14229 = vst [vmem:[#allocation38_spill] sm:$0xff] %v11706_v59  ;;  %v4922_v37 = vrot.slane %v4921_v49, 1  ;;  %v4010_v57 = vmul.f32 %v11374_v53, %v2897_v29  ;;  %v4011_v5 = vmul.f32 %v11411_v4, %v2898_v60  ;;  %v2945_v38 = vsub.f32 %v11498_v42, %v2920_v33 }
 0x42a   : > { %v4928_v10 = vrot.slane %v4927_v43, 1  ;;  %v2816_v23 = vadd.f32 %v2815_v45, %v11662_v8  ;;  %v2821_v30 = vrot.slane %v2820_v3, 1  ;;  %v2823_v20 = vrot.slane %v11692_v27, 4 }
 0x42b   : > { %v4923_v47 = vadd.f32 %v4922_v37, %v4921_v49  ;;  %v4056_v44 = vrot.slane %v4010_v57, 4  ;;  %v4062_v28 = vrot.slane %v4011_v5, 4  ;;  %v11714_v56 = vadd.f32 %v11389_v35, %v2945_v38 }
 0x42c   : > { %v4929_v15 = vadd.f32 %v4928_v10, %v4927_v43  ;;  %v2822_v50 = vadd.f32 %v2821_v30, %v2820_v3  ;;  %7856 = vrcp.f32 %v2816_v23  ;;  %v2824_v12 = vadd.f32 %v11692_v27, %v2823_v20 }
 0x42d   : > { %7858 = vlog2.f32 %v4923_v47  ;;  %v4057_v32 = vadd.f32 %v4056_v44, %v4010_v57  ;;  %v4063_v40 = vadd.f32 %v4062_v28, %v4011_v5  ;;  %v5040_v42 = vadd.f32 %v11665_v46, %v14219_v63 }
 0x42e   : > { %7860 = vlog2.f32 %v4929_v15  ;;  %v4518_v8 = vrot.slane %v11714_v56, 4  ;;  %v2829_v45 = vrot.slane %v11698_v16, 4  ;;  %v2825_v62 = vrot.slane %v2824_v12, 2 }
 0x42f   : > { %v4058_v52 = vrot.slane %v4057_v32, 2  ;;  %v4064_v21 = vrot.slane %v4063_v40, 2  ;;  %7862 = vrcp.f32 %v2822_v50  ;;  %v5041_v3 = vadd.f32 %v11668_v22, %v14220_v26 }
 0x430   : > { %v7851_v29 = vpop.eup %7850  ;;  %v4519_v49 = vmax.f32 %v11714_v56, %v4518_v8  ;;  %7864 = vlog2.f32 %v2816_v23  ;;  %v2830_v60 = vadd.f32 %v11698_v16, %v2829_v45  ;;  %v2826_v38 = vadd.f32 %v2825_v62, %v2824_v12 }
 0x431   : > { %v7853_v43 = vpop.eup %7852  ;;  %v5059_v46 = vmul.f32 0.6931472, %v7851_v29  ;;  %v4059_v33 = vadd.f32 %v4058_v52, %v4057_v32  ;;  %v4065_v37 = vadd.f32 %v4064_v21, %v4063_v40  ;;  %7866 = vlog2.f32 %v2822_v50 }
 0x432   : > { %v7855_v57 = vpop.eup %7854  ;;  %v5061_v5 = vmul.f32 0.6931472, %v7853_v43  ;;  %v4520_v10 = vrot.slane %v4519_v49, 2  ;;  %v2831_v30 = vrot.slane %v2830_v60, 2  ;;  %v2827_v15 = vrot.slane %v2826_v38, 1 }
 0x433   : > { %v11725_v47 = vadd.f32 %v5059_v46, %v5040_v42  ;;  %v2922_v44 = vmul.f32 0.6931472, %v7855_v57  ;;  %v4060_v28 = vrot.slane %v4059_v33, 1  ;;  %v4066_v22 = vrot.slane %v4065_v37, 1 }
 0x434   : > { %v11727_v20 = vadd.f32 %v5061_v5, %v5041_v3  ;;  %v4521_v23 = vmax.f32 %v4519_v49, %v4520_v10  ;;  %v11729_v8 = vadd.f32 %v2831_v30, %v2830_v60  ;;  %v11733_v32 = vsel %vm6539_vm8, %v11568_v2, -inf }
 0x435   : > { %14230 = vst [vmem:[#allocation42_spill] sm:$0xff] %v11725_v47  ;;  %14232 = vst [vmem:[#allocation30_spill] sm:$0xff] %v11733_v32  ;;  %v2946_v50 = vsub.f32 %v11521_v41, %v2922_v44  ;;  %v4061_v40 = vadd.f32 %v4060_v28, %v4059_v33  ;;  %v4067_v12 = vadd.f32 %v4066_v22, %v4065_v37 }
 0x436   : > { %14231 = vst [vmem:[#allocation43_spill] sm:$0xff] %v11727_v20  ;;  %v7857_v45 = vpop.eup %7856  ;;  %v5042_v42 = vadd.f32 %v11689_v61, %v14219_v63  ;;  %v5043_v52 = vadd.f32 %v11695_v6, %v14220_v26  ;;  %v4522_v21 = vrot.slane %v4521_v23, 1  ;;  %v11740_v62 = vadd.f32 %v2827_v15, %v2826_v38 }
 0x437   : > { %v7859_v29 = vpop.eup %7858  ;;  %v4122_v3 = vmul.f32 0.999999, %v4061_v40  ;;  %v4123_v49 = vmul.f32 0.999999, %v4067_v12  ;;  %v11743_v60 = vadd.f32 %v11414_v34, %v2946_v50  ;;  %v2899_v41 = vmul.f32 %v7857_v45, %v11583_v31 }
 0x438   : > { %v7861_v43 = vpop.eup %7860  ;;  %v5063_v46 = vmul.f32 0.6931472, %v7859_v29  ;;  %v11746_v33 = vmax.f32 %v4521_v23, %v4522_v21  ;;  %v2833_v61 = vrot.slane %v11729_v8, 1  ;;  %7868 = vrcp.f32 %v11740_v62 }
 0x439   : > { %v7863_v6 = vpop.eup %7862  ;;  %v5065_v37 = vmul.f32 0.6931472, %v7861_v43  ;;  %v4138_v57 = vadd.f32 5e-07, %v4122_v3  ;;  %v4139_v5 = vadd.f32 5e-07, %v4123_v49  ;;  %v4012_v10 = vmul.f32 %v11374_v53, %v2899_v41 }
 0x43a   : > { %v7865_v38 = vpop.eup %7864  ;;  %v11751_v30 = vadd.f32 %v5063_v46, %v5042_v42  ;;  %v4524_v44 = vrot.slane %v11743_v60, 4  ;;  %v4584_v31 = vsub.f32 %v11714_v56, %v11746_v33  ;;  %v2900_v28 = vmul.f32 %v7863_v6, %v11591_v58 }
 0x43b   : > { %v7867_v22 = vpop.eup %7866  ;;  %v11757_v23 = vadd.f32 %v5065_v37, %v5043_v52  ;;  %v4154_v15 = vmul.f32 100.0, %v4138_v57  ;;  %v4155_v50 = vmul.f32 100.0, %v4139_v5  ;;  %v4218_v40 = vsub.f32 1.0, %v4138_v57 }
 0x43c   : > { %14233 = vst [vmem:[#allocation31_spill] sm:$0xff] %v11751_v30  ;;  %v11761_v12 = vsel %vm6539_vm8, %v11751_v30, -inf  ;;  %v4219_v45 = vsub.f32 1.0, %v4139_v5  ;;  %v4525_v42 = vmax.f32 %v11743_v60, %v4524_v44  ;;  %v4606_v21 = vmul.f32 1.442695, %v4584_v31 }
 0x43d   : > { %14234 = vst [vmem:[#allocation29_spill] sm:$0xff] %v11757_v23  ;;  %14235 = vst [vmem:[#allocation36_spill] sm:$0xff] %v11761_v12  ;;  %v11768_v58 = vsel %vm6539_vm8, %v11757_v23, -inf  ;;  %7870 = vlog2.f32 %v4154_v15  ;;  %v4234_v56 = vmul.f32 100.0, %v4218_v40  ;;  %v2924_v41 = vmul.f32 0.6931472, %v7865_v38 }
 0x43e   : > { %14236 = vst [vmem:[#allocation22_spill] sm:$0xff] %v11768_v58  ;;  %7872 = vlog2.f32 %v4155_v50  ;;  %v4235_v3 = vmul.f32 100.0, %v4219_v45  ;;  %v4526_v49 = vrot.slane %v4525_v42, 2  ;;  %v2926_v43 = vmul.f32 0.6931472, %v7867_v22 }
 0x43f   : > { %7874 = vlog2.f32 %v4234_v56  ;;  %v4013_v46 = vmul.f32 %v11411_v4, %v2900_v28  ;;  %v4068_v37 = vrot.slane %v4012_v10, 4  ;;  %v14237_v57 = vrot.slane %v11631_v48, 4 }
 0x440   : > { %7876 = vlog2.f32 %v4235_v3  ;;  %v4527_v6 = vmax.f32 %v4525_v42, %v4526_v49  ;;  %v2947_v44 = vsub.f32 %v11524_v1, %v2924_v41  ;;  %v2948_v31 = vsub.f32 %v11530_v25, %v2926_v43 }
 0x441   : > { %v2698_v5 = vmax.f32 %v11631_v48, %v14237_v57  ;;  %7878 = vpow2.f32 %v4606_v21  ;;  %v4074_v15 = vrot.slane %v4013_v46, 4  ;;  %v4069_v45 = vadd.f32 %v4068_v37, %v4012_v10 }
 0x442   : > { %v7869_v50 = vpop.eup %7868  ;;  %v4528_v40 = vrot.slane %v4527_v6, 1  ;;  %v11779_v22 = vadd.f32 %v11389_v35, %v2947_v44  ;;  %v11782_v28 = vadd.f32 %v11414_v34, %v2948_v31  ;;  %v2834_v21 = vadd.f32 %v2833_v61, %v11729_v8 }
 0x443   : > { %v4075_v38 = vadd.f32 %v4074_v15, %v4013_v46  ;;  %v4070_v56 = vrot.slane %v4069_v45, 2  ;;  %v2699_v3 = vrot.slane %v2698_v5, 2  ;;  %v2695_v10 = vrot.slane %v11702_v24, 1 }
 0x444   : > { %v11784_v42 = vmax.f32 %v4527_v6, %v4528_v40  ;;  %v4530_v25 = vrot.slane %v11779_v22, 4  ;;  %v4536_v49 = vrot.slane %v11782_v28, 4  ;;  %7880 = vrcp.f32 %v2834_v21 }
 0x445   : > { %v4076_v1 = vrot.slane %v4075_v38, 2  ;;  %v4071_v43 = vadd.f32 %v4070_v56, %v4069_v45  ;;  %v2901_v46 = vmul.f32 %v7869_v50, %v11692_v27  ;;  %7882 = vlog2.f32 %v11740_v62 }
 0x446   : > { %v4585_v41 = vsub.f32 %v11743_v60, %v11784_v42  ;;  %v4531_v57 = vmax.f32 %v11779_v22, %v4530_v25  ;;  %v4537_v8 = vmax.f32 %v11782_v28, %v4536_v49  ;;  %v11796_v40 = vmax.f32 %v2698_v5, %v2699_v3 }
 0x447   : > { %v7871_v6 = vpop.eup %7870  ;;  %v4077_v37 = vadd.f32 %v4076_v1, %v4075_v38  ;;  %v4072_v15 = vrot.slane %v4071_v43, 1  ;;  %7884 = vlog2.f32 %v2834_v21 }
 0x448   : > { %v7873_v61 = vpop.eup %7872  ;;  %v4177_v44 = vmul.f32 0.6931472, %v7871_v6  ;;  %v4608_v31 = vmul.f32 1.442695, %v4585_v41  ;;  %v4532_v56 = vrot.slane %v4531_v57, 2  ;;  %v4538_v1 = vrot.slane %v4537_v8, 2 }
 0x449   : > { %v7875_v52 = vpop.eup %7874  ;;  %v4179_v60 = vmul.f32 0.6931472, %v7873_v61  ;;  %v4078_v45 = vrot.slane %v4077_v37, 1  ;;  %v4073_v38 = vadd.f32 %v4072_v15, %v4071_v43  ;;  %v2696_v43 = vmax.f32 %v11702_v24, %v2695_v10 }
 0x44a   : > { %v7877_v27 = vpop.eup %7876  ;;  %v4257_v50 = vmul.f32 0.6931472, %v7875_v52  ;;  %7886 = vpow2.f32 %v4608_v31  ;;  %v11798_v49 = vadd.f32 -4.6051702, %v4177_v44  ;;  %v4533_v6 = vmax.f32 %v4531_v57, %v4532_v56 }
 0x44b   : > { %v7879_v25 = vpop.eup %7878  ;;  %v4259_v62 = vmul.f32 0.6931472, %v7877_v27  ;;  %v4079_v29 = vadd.f32 %v4078_v45, %v4077_v37  ;;  %v11800_v41 = vadd.f32 -4.6051702, %v4179_v60  ;;  %v4124_v61 = vmul.f32 0.999999, %v4073_v38 }
 0x44c   : > { %v11802_v5 = vadd.f32 -4.6051702, %v4257_v50  ;;  %v4884_v3 = vmul.f32 %v7879_v25, %v11228_v54  ;;  %v4534_v52 = vrot.slane %v4533_v6, 1  ;;  %v4014_v37 = vmul.f32 %v11374_v53, %v2901_v46 }
 0x44d   : > { %v11805_v23 = vadd.f32 -4.6051702, %v4259_v62  ;;  %v4125_v21 = vmul.f32 0.999999, %v4079_v29  ;;  %v4140_v15 = vadd.f32 5e-07, %v4124_v61  ;;  %v4539_v45 = vmax.f32 %v4537_v8, %v4538_v1 }
 0x44e   : > { %v4930_v31 = vrot.slane %v4884_v3, 4  ;;  %v4996_v44 = vadd.f32 %v11802_v5, %v11798_v49  ;;  %v2701_v56 = vrot.slane %v11796_v40, 1  ;;  %v7881_v27 = vpop.eup %7880  ;;  %v11814_v25 = vmax.f32 %v4533_v6, %v4534_v52 }
 0x44f   : > { %v4997_v57 = vadd.f32 %v11805_v23, %v11800_v41  ;;  %v4141_v60 = vadd.f32 5e-07, %v4125_v21  ;;  %v4156_v38 = vmul.f32 100.0, %v4140_v15  ;;  %v7883_v24 = vpop.eup %7882  ;;  %v4220_v30 = vsub.f32 1.0, %v4140_v15 }
 0x450   : > { %v4931_v50 = vadd.f32 %v4930_v31, %v4884_v3  ;;  %v5012_v29 = vsub.f32 -1.0000005e-06, %v4996_v44  ;;  %v11817_v61 = vsub.f32 %v11547_v39, %v2696_v43  ;;  %v4540_v21 = vrot.slane %v4539_v45, 1 }
 0x451   : > { %v5013_v10 = vsub.f32 -1.0000005e-06, %v4997_v57  ;;  %v4157_v62 = vmul.f32 100.0, %v4141_v60  ;;  %7888 = vlog2.f32 %v4156_v38  ;;  %v4221_v8 = vsub.f32 1.0, %v4141_v60  ;;  %v7885_v1 = vpop.eup %7884 }
 0x452   : > { %v4932_v46 = vrot.slane %v4931_v50, 2  ;;  %v11820_v2 = vadd.f32 %v5012_v29, %v11746_v33  ;;  %v4236_v6 = vmul.f32 100.0, %v4220_v30  ;;  %v4586_v39 = vsub.f32 %v11779_v22, %v11814_v25 }
 0x453   : > { %v11823_v3 = vadd.f32 %v5013_v10, %v11784_v42  ;;  %7890 = vlog2.f32 %v4157_v62  ;;  %v4237_v44 = vmul.f32 100.0, %v4221_v8  ;;  %v4080_v43 = vrot.slane %v4014_v37, 4 }
 0x454   : > { %v7887_v52 = vpop.eup %7886  ;;  %v4933_v31 = vadd.f32 %v4932_v46, %v4931_v50  ;;  %7892 = vlog2.f32 %v4236_v6  ;;  %v11828_v33 = vmax.f32 %v4539_v45, %v4540_v21  ;;  %v2902_v57 = vmul.f32 %v7881_v27, %v11698_v16 }
 0x455   : > { %v4885_v15 = vmul.f32 %v7887_v52, %v11252_v7  ;;  %7894 = vlog2.f32 %v4237_v44  ;;  %v4610_v42 = vmul.f32 1.442695, %v4586_v39  ;;  %v2928_v29 = vmul.f32 0.6931472, %v7883_v24 }
 0x456   : > { %v4934_v60 = vrot.slane %v4933_v31, 1  ;;  %v4587_v50 = vsub.f32 %v11782_v28, %v11828_v33  ;;  %v2930_v38 = vmul.f32 0.6931472, %v7885_v1  ;;  %v4015_v10 = vmul.f32 %v11411_v4, %v2902_v57 }
 0x457   : > { %v4936_v30 = vrot.slane %v4885_v15, 4  ;;  %7896 = vpow2.f32 %v4610_v42  ;;  %v2949_v62 = vsub.f32 %v11626_v9, %v2928_v29  ;;  %v4081_v46 = vadd.f32 %v4080_v43, %v4014_v37  ;;  %v11843_v9 = vpop.permute.xlu1 %2529  ;;  %v8221_v29 = vld [vmem:[%s8681_s27 + $0x60] sm:$0xff] }
 0x458   : > { %v4935_v22 = vadd.f32 %v4934_v60, %v4933_v31  ;;  %v4612_v8 = vmul.f32 1.442695, %v4587_v50  ;;  %v2950_v16 = vsub.f32 %v11634_v36, %v2930_v38  ;;  %v4086_v27 = vrot.slane %v4015_v10, 4 }
 0x459   : > { %v4937_v45 = vadd.f32 %v4936_v30, %v4885_v15  ;;  %v4082_v6 = vrot.slane %v4081_v46, 2  ;;  %v11837_v24 = vadd.f32 %v11389_v35, %v2949_v62  ;;  %v2702_v28 = vmax.f32 %v11796_v40, %v2701_v56 }
 0x45a   : > { %7898 = vlog2.f32 %v4935_v22  ;;  %v4087_v21 = vadd.f32 %v4086_v27, %v4015_v10  ;;  %v11841_v52 = vadd.f32 %v11414_v34, %v2950_v16  ;;  %v2755_v44 = vmul.f32 1.442695, %v11817_v61 }
 0x45b   : > { %v4938_v1 = vrot.slane %v4937_v45, 2  ;;  %7900 = vpow2.f32 %v4612_v8  ;;  %v7889_v37 = vpop.eup %7888  ;;  %v4083_v31 = vadd.f32 %v4082_v6, %v4081_v46  ;;  %v4542_v36 = vrot.slane %v11837_v24, 4 }
 0x45c   : > { %v4181_v15 = vmul.f32 0.6931472, %v7889_v37  ;;  %v4088_v57 = vrot.slane %v4087_v21, 2  ;;  %v4548_v40 = vrot.slane %v11841_v52, 4  ;;  %v11851_v30 = vadd.f32 %v8221_v29, %v11843_v9 }
 0x45d   : > { %v7891_v39 = vpop.eup %7890  ;;  %v4939_v43 = vadd.f32 %v4938_v1, %v4937_v45  ;;  %v4084_v60 = vrot.slane %v4083_v31, 1  ;;  %v4543_v42 = vmax.f32 %v11837_v24, %v4542_v36  ;;  %v11854_v22 = vsub.f32 %v11631_v48, %v2702_v28 }
 0x45e   : > { %v4183_v56 = vmul.f32 0.6931472, %v7891_v39  ;;  %v7893_v50 = vpop.eup %7892  ;;  %v4089_v10 = vadd.f32 %v4088_v57, %v4087_v21  ;;  %7902 = vpow2.f32 %v2755_v44  ;;  %v11856_v46 = vadd.f32 -4.6051702, %v4181_v15 }
 0x45f   : > { %v4940_v38 = vrot.slane %v4939_v43, 1  ;;  %v7895_v62 = vpop.eup %7894  ;;  %v4261_v45 = vmul.f32 0.6931472, %v7893_v50  ;;  %v4085_v8 = vadd.f32 %v4084_v60, %v4083_v31  ;;  %v4544_v16 = vrot.slane %v4543_v42, 2 }
 0x460   : > { %v4263_v6 = vmul.f32 0.6931472, %v7895_v62  ;;  %v4090_v1 = vrot.slane %v4089_v10, 1  ;;  %v4549_v37 = vmax.f32 %v11841_v52, %v4548_v40  ;;  %v11859_v39 = vadd.f32 -4.6051702, %v4183_v56 }
 0x461   : > { %v4941_v27 = vadd.f32 %v4940_v38, %v4939_v43  ;;  %v7897_v36 = vpop.eup %7896  ;;  %v11861_v29 = vadd.f32 -4.6051702, %v4261_v45  ;;  %v4126_v21 = vmul.f32 0.999999, %v4085_v8  ;;  %v4545_v48 = vmax.f32 %v4543_v42, %v4544_v16 }
 0x462   : > { %14238 = vst [vmem:[#allocation41_spill] sm:$0xff] %v11859_v39  ;;  %v11863_v28 = vadd.f32 -4.6051702, %v4263_v6  ;;  %v4886_v44 = vmul.f32 %v7897_v36, %v11228_v54  ;;  %v4091_v15 = vadd.f32 %v4090_v1, %v4089_v10  ;;  %v11868_v43 = vsel %vm6539_vm8, %v11725_v47, -inf }
 0x463   : > { %7904 = vlog2.f32 %v4941_v27  ;;  %14240 = vst [vmem:[#allocation24_spill] sm:$0xff] %v11868_v43  ;;  %v5044_v57 = vadd.f32 %v11820_v2, %v14219_v63  ;;  %v4998_v40 = vadd.f32 %v11861_v29, %v11856_v46  ;;  %v4142_v56 = vadd.f32 5e-07, %v4126_v21 }
 0x464   : > { %14239 = vst [vmem:[#allocation23_spill] sm:$0xff] %v11863_v28  ;;  %v7899_v31 = vpop.eup %7898  ;;  %v4942_v50 = vrot.slane %v4886_v44, 4  ;;  %v4999_v38 = vadd.f32 %v11863_v28, %v11859_v39  ;;  %v4550_v62 = vrot.slane %v4549_v37, 2  ;;  %v4127_v8 = vmul.f32 0.999999, %v4091_v15 }
 0x465   : > { %v7901_v60 = vpop.eup %7900  ;;  %v5067_v42 = vmul.f32 0.6931472, %v7899_v31  ;;  %v5014_v45 = vsub.f32 -1.0000005e-06, %v4998_v40  ;;  %v2757_v16 = vmul.f32 1.442695, %v11854_v22 }
 0x466   : > { %v4887_v10 = vmul.f32 %v7901_v60, %v11252_v7  ;;  %v4943_v2 = vadd.f32 %v4942_v50, %v4886_v44  ;;  %v5015_v6 = vsub.f32 -1.0000005e-06, %v4999_v38  ;;  %v4546_v1 = vrot.slane %v4545_v48, 1 }
 0x467   : > { %v11878_v27 = vadd.f32 %v5067_v42, %v5044_v57  ;;  %v11881_v21 = vadd.f32 %v5014_v45, %v11814_v25  ;;  %v4143_v31 = vadd.f32 5e-07, %v4127_v8  ;;  %v4158_v47 = vmul.f32 100.0, %v4142_v56 }
 0x468   : > { %v4948_v36 = vrot.slane %v4887_v10, 4  ;;  %v11883_v55 = vpop.eup %7902  ;;  %v4944_v15 = vrot.slane %v4943_v2, 2  ;;  %v11890_v40 = vadd.f32 %v5015_v6, %v11828_v33  ;;  %v4222_v57 = vsub.f32 1.0, %v4142_v56 }
 0x469   : > { %14241 = vst [vmem:[#allocation35_spill] sm:$0xff] %v11878_v27  ;;  %v11887_v60 = vsel %vm6539_vm8, %v11878_v27, -inf  ;;  %v11894_v44 = vsel %vm6539_vm8, %v11727_v20, -inf  ;;  %v4159_v50 = vmul.f32 100.0, %v4143_v31  ;;  %v5045_v38 = vadd.f32 %v11823_v3, %v14220_v26 }
 0x46a   : > { %14242 = vst [vmem:[#allocation37_spill] sm:$0xff] %v11887_v60  ;;  %14243 = vst [vmem:[#allocation25_spill] sm:$0xff] %v11894_v44  ;;  %v4949_v42 = vadd.f32 %v4948_v36, %v4887_v10  ;;  %v4945_v45 = vadd.f32 %v4944_v15, %v4943_v2  ;;  %7906 = vlog2.f32 %v4158_v47  ;;  %v4223_v8 = vsub.f32 1.0, %v4143_v31  ;;  %v8222_v15 = vld [vmem:[%s8681_s27 + $0x68] sm:$0xff] }
 0x46b   : > { %7908 = vlog2.f32 %v4159_v50  ;;  %v4238_v33 = vmul.f32 100.0, %v4222_v57  ;;  %v11900_v6 = vmax.f32 %v4545_v48, %v4546_v1  ;;  %v4551_v32 = vmax.f32 %v4549_v37, %v4550_v62 }
 0x46c   : > { %v4950_v27 = vrot.slane %v4949_v42, 2  ;;  %v4946_v20 = vrot.slane %v4945_v45, 1  ;;  %v4239_v58 = vmul.f32 100.0, %v4223_v8  ;;  %7910 = vpow2.f32 %v2757_v16 }
 0x46d   : > { %v7905_v56 = vpop.eup %7904  ;;  %7912 = vlog2.f32 %v4238_v33  ;;  %v4588_v3 = vsub.f32 %v11837_v24, %v11900_v6  ;;  %v4552_v47 = vrot.slane %v4551_v32, 1  ;;  %v2835_v36 = vrot.slane %v11883_v55, 4 }
 0x46e   : > { %v5069_v25 = vmul.f32 0.6931472, %v7905_v56  ;;  %v4951_v10 = vadd.f32 %v4950_v27, %v4949_v42  ;;  %v4947_v2 = vadd.f32 %v4946_v20, %v4945_v45  ;;  %7914 = vlog2.f32 %v4239_v58 }
 0x46f   : > { %v4614_v1 = vmul.f32 1.442695, %v4588_v3  ;;  %v11909_v57 = vadd.f32 %v8222_v15, %v11843_v9  ;;  %v11911_v37 = vmax.f32 %v4551_v32, %v4552_v47  ;;  %v2836_v62 = vadd.f32 %v11883_v55, %v2835_v36  ;;  %v5104_v36 = vld [vmem:[%s8681_s27 + $0x80] sm:$0xff] }
 0x470   : > { %v11905_v31 = vadd.f32 %v5069_v25, %v5045_v38  ;;  %v4952_v48 = vrot.slane %v4951_v10, 1  ;;  %7916 = vlog2.f32 %v4947_v2  ;;  %v2703_v24 = vrot.slane %v11851_v30, 4 }
 0x471   : > { %7918 = vpow2.f32 %v4614_v1  ;;  %v2709_v16 = vrot.slane %v11909_v57, 4  ;;  %v4589_v9 = vsub.f32 %v11841_v52, %v11911_v37  ;;  %v2837_v32 = vrot.slane %v2836_v62, 2 }
 0x472   : > { %14244 = vst [vmem:[#allocation39_spill] sm:$0xff] %v11905_v31  ;;  %v11917_v20 = vsel %vm6539_vm8, %v11905_v31, -inf  ;;  %v4953_v58 = vadd.f32 %v4952_v48, %v4951_v10  ;;  %v2704_v25 = vmax.f32 %v11851_v30, %v2703_v24 }
 0x473   : > { %14245 = vst [vmem:[#allocation44_spill] sm:$0xff] %v11917_v20  ;;  %v2710_v42 = vmax.f32 %v11909_v57, %v2709_v16  ;;  %v4616_v38 = vmul.f32 1.442695, %v4589_v9  ;;  %v2838_v45 = vadd.f32 %v2837_v32, %v2836_v62 }
 0x474   : > { %7920 = vlog2.f32 %v4953_v58  ;;  %v7907_v50 = vpop.eup %7906  ;;  %v2705_v8 = vrot.slane %v2704_v25, 2  ;;  %v5046_v58 = vadd.f32 %v11881_v21, %v14219_v63 }
 0x475   : > { %v7909_v33 = vpop.eup %7908  ;;  %v4185_v56 = vmul.f32 0.6931472, %v7907_v50  ;;  %v2711_v10 = vrot.slane %v2710_v42, 2  ;;  %7922 = vpow2.f32 %v4616_v38  ;;  %v2839_v47 = vrot.slane %v2838_v45, 1 }
 0x476   : > { %v11926_v3 = vpop.eup %7910  ;;  %v4187_v2 = vmul.f32 0.6931472, %v7909_v33  ;;  %v2706_v52 = vmax.f32 %v2704_v25, %v2705_v8  ;;  %v11933_v33 = vadd.f32 0.54132324, %v5104_v36 }
 0x477   : > { %v7913_v48 = vpop.eup %7912  ;;  %v2841_v1 = vrot.slane %v11926_v3, 4  ;;  %v2712_v15 = vmax.f32 %v2710_v42, %v2711_v10  ;;  %v2840_v16 = vadd.f32 %v2839_v47, %v2838_v45  ;;  %v11935_v25 = vadd.f32 -4.6051702, %v4185_v56 }
 0x478   : > { %v7915_v24 = vpop.eup %7914  ;;  %v4265_v62 = vmul.f32 0.6931472, %v7913_v48  ;;  %v2707_v9 = vrot.slane %v2706_v52, 1  ;;  %v11937_v8 = vadd.f32 -4.6051702, %v4187_v2  ;;  %vm5116_vm12 = vcmp.ne.f32.partialorder %v11933_v33, %v11933_v33 }
 0x479   : > { %v4267_v32 = vmul.f32 0.6931472, %v7915_v24  ;;  %v2842_v50 = vadd.f32 %v11926_v3, %v2841_v1  ;;  %v2713_v27 = vrot.slane %v2712_v15, 1  ;;  %14246 = vst [vmem:[#allocation45_spill] sm:$0xff] %v11935_v25  ;;  %7924 = vrcp.f32 %v2840_v16 }
 0x47a   : > { %v7917_v38 = vpop.eup %7916  ;;  %14247 = vst [vmem:[#allocation46_spill] sm:$0xff] %v11937_v8  ;;  %v11939_v31 = vadd.f32 -4.6051702, %v4265_v62  ;;  %7926 = vlog2.f32 %v2840_v16  ;;  %v2708_v48 = vmax.f32 %v2706_v52, %v2707_v9  ;;  %v5120_v60 = vand.u32 2147483647, %v11933_v33 }
 0x47b   : > { %v7919_v42 = vpop.eup %7918  ;;  %v5071_v10 = vmul.f32 0.6931472, %v7917_v38  ;;  %v11941_v21 = vadd.f32 -4.6051702, %v4267_v32  ;;  %v2843_v45 = vrot.slane %v2842_v50, 2  ;;  %v2714_v62 = vmax.f32 %v2712_v15, %v2713_v27  ;;  %v5105_v27 = vld [vmem:[%s8681_s27 + $0x88] sm:$0xff] }
 0x47c   : > { %14248 = vst [vmem:[#allocation47_spill] sm:$0xff] %v11939_v31  ;;  %v4888_v47 = vmul.f32 %v7919_v42, %v11228_v54  ;;  %v5000_v36 = vadd.f32 %v11939_v31, %v11935_v25  ;;  %v5047_v32 = vadd.f32 %v11890_v40, %v14220_v26  ;;  %v11957_v43 = vsub.f32 %v11851_v30, %v2708_v48 }
 0x47d   : > { %14249 = vst [vmem:[#allocation48_spill] sm:$0xff] %v11941_v21  ;;  %v11946_v56 = vadd.f32 %v5071_v10, %v5046_v58  ;;  %v5001_v2 = vadd.f32 %v11941_v21, %v11937_v8  ;;  %v2844_v24 = vadd.f32 %v2843_v45, %v2842_v50  ;;  %v11965_v45 = vsub.f32 %v11909_v57, %v2714_v62  ;;  %v11973_v57 = vld [vmem:[%s8681_s27 + $0xb0] sm:$0xff]  ;;  %v5180_v62 = vpop.permute.xlu0 %5179 }
 0x47e   : > { %v7921_v1 = vpop.eup %7920  ;;  %v4954_v16 = vrot.slane %v4888_v47, 4  ;;  %v5016_v20 = vsub.f32 -1.0000005e-06, %v5000_v36  ;;  %v11969_v30 = vadd.f32 0.54132324, %v5105_v27 }
 0x47f   : > { %14250 = vst [vmem:[#allocation49_spill] sm:$0xff] %v11946_v56  ;;  %v5073_v38 = vmul.f32 0.6931472, %v7921_v1  ;;  %v5017_v42 = vsub.f32 -1.0000005e-06, %v5001_v2  ;;  %v2845_v44 = vrot.slane %v2844_v24, 1  ;;  %v7923_v52 = vpop.eup %7922 }
 0x480   : > { %v4955_v58 = vadd.f32 %v4954_v16, %v4888_v47  ;;  %v5032_v10 = vadd.f32 %v5016_v20, %v11900_v6  ;;  %v4889_v15 = vmul.f32 %v7923_v52, %v11252_v7  ;;  %v2759_v1 = vmul.f32 1.442695, %v11957_v43  ;;  %v11977_v52 = vld [vmem:[%s8681_s27 + $0xb8] sm:$0xff] }
 0x481   : > { %v11953_v9 = vadd.f32 %v5073_v38, %v5047_v32  ;;  %v11962_v40 = vadd.f32 %v5017_v42, %v11911_v37  ;;  %v2846_v50 = vadd.f32 %v2845_v44, %v2844_v24  ;;  %v2761_v6 = vmul.f32 1.442695, %v11965_v45 }
 0x482   : > { %v4956_v36 = vrot.slane %v4955_v58, 2  ;;  %v4960_v47 = vrot.slane %v4889_v15, 4  ;;  %v5122_v37 = vsub.f32 0.0, %v5120_v60  ;;  %v4292_v60 = vsub.f32 %v11470_v18, %v11472_v14 }
 0x483   : > { %14251 = vst [vmem:[#allocation50_spill] sm:$0xff] %v11953_v9  ;;  %7928 = vrcp.f32 %v2846_v50  ;;  %v7925_v20 = vpop.eup %7924  ;;  %vm5117_vm15 = vcmp.ne.f32.partialorder %v11969_v30, %v11969_v30 }
 0x484   : > { %v4957_v48 = vadd.f32 %v4956_v36, %v4955_v58  ;;  %7930 = vlog2.f32 %v2846_v50  ;;  %v7927_v2 = vpop.eup %7926  ;;  %v4961_v44 = vadd.f32 %v4960_v47, %v4889_v15  ;;  %v2903_v24 = vmul.f32 %v7925_v20, %v11883_v55 }
 0x485   : > { %7932 = vpow2.f32 %v2759_v1  ;;  %v2932_v38 = vmul.f32 0.6931472, %v7927_v2  ;;  %v5121_v58 = vand.u32 2147483647, %v11969_v30  ;;  %v5124_v27 = vmul.f32 1.442695, %v5122_v37 }
 0x486   : > { %v4958_v32 = vrot.slane %v4957_v48, 1  ;;  %7934 = vpow2.f32 %v2761_v6  ;;  %v4962_v16 = vrot.slane %v4961_v44, 2  ;;  %v4016_v42 = vmul.f32 %v11374_v53, %v2903_v24  ;;  %v14252_v2 = vld [vmem:[#allocation28_spill] sm:$0xff] }
 0x487   : > { %v2951_v55 = vsub.f32 %v11817_v61, %v2932_v38  ;;  %v11984_v50 = vadd.f32 %v5180_v62, %v11973_v57  ;;  %v4294_v36 = vsub.f32 %v11643_v0, %v11645_v11  ;;  %7936 = vpow2.f32 %v5124_v27 }
 0x488   : > { %v4959_v15 = vadd.f32 %v4958_v32, %v4957_v48  ;;  %v4963_v1 = vadd.f32 %v4962_v16, %v4961_v44  ;;  %v4092_v47 = vrot.slane %v4016_v42, 4  ;;  %v11992_v20 = vadd.f32 %v5180_v62, %v11977_v52  ;;  %v14253_v44 = vld [vmem:[#allocation32_spill] sm:$0xff] }
 0x489   : > { %v11989_v6 = vadd.f32 %v11389_v35, %v2951_v55  ;;  %v5123_v48 = vsub.f32 0.0, %v5121_v58  ;;  %v5293_v0 = vrot.slane %v11984_v50, 4  ;;  %v12001_v32 = vsel %vm13961_vm4, %v4294_v36, %v4292_v60 }
 0x48a   : > { %7938 = vlog2.f32 %v4959_v15  ;;  %v4964_v18 = vrot.slane %v4963_v1, 1  ;;  %v4093_v14 = vadd.f32 %v4092_v47, %v4016_v42  ;;  %v5048_v42 = vadd.f32 %v5032_v10, %v14219_v63 }
 0x48b   : > { %v4554_v37 = vrot.slane %v11989_v6, 4  ;;  %v5299_v15 = vrot.slane %v11992_v20, 4  ;;  %v5126_v24 = vmul.f32 1.442695, %v5123_v48  ;;  %v5294_v10 = vmax.f32 %v11984_v50, %v5293_v0 }
 0x48c   : > { %v4965_v38 = vadd.f32 %v4964_v18, %v4963_v1  ;;  %v4094_v62 = vrot.slane %v4093_v14, 2 }
 0x48d   : > { %v7929_v11 = vpop.eup %7928  ;;  %v4555_v27 = vmax.f32 %v11989_v6, %v4554_v37  ;;  %v5295_v56 = vrot.slane %v5294_v10, 2 }
 0x48e   : > { %v7931_v16 = vpop.eup %7930  ;;  %v2904_v58 = vmul.f32 %v7929_v11, %v11926_v3  ;;  %7940 = vlog2.f32 %v4965_v38  ;;  %v4095_v61 = vadd.f32 %v4094_v62, %v4093_v14  ;;  %v5049_v3 = vadd.f32 %v11962_v40, %v14220_v26 }
 0x48f   : > { %v12007_v55 = vpop.eup %7932  ;;  %v2934_v47 = vmul.f32 0.6931472, %v7931_v16  ;;  %v4556_v36 = vrot.slane %v4555_v27, 2  ;;  %v5300_v62 = vmax.f32 %v11992_v20, %v5299_v15  ;;  %7942 = vpow2.f32 %v5126_v24 }
 0x490   : > { %v12009_v12 = vpop.eup %7934  ;;  %v4017_v60 = vmul.f32 %v11411_v4, %v2904_v58  ;;  %v2847_v1 = vrot.slane %v12007_v55, 4  ;;  %v4096_v37 = vrot.slane %v4095_v61, 1 }
 0x491   : > { %v2952_v18 = vsub.f32 %v11854_v22, %v2934_v47  ;;  %v2853_v11 = vrot.slane %v12009_v12, 4  ;;  %v4557_v14 = vmax.f32 %v4555_v27, %v4556_v36  ;;  %v12020_v16 = vpop.eup %7936  ;;  %v5301_v25 = vrot.slane %v5300_v62, 2 }
 0x492   : > { %v4098_v38 = vrot.slane %v4017_v60, 4  ;;  %v2848_v48 = vadd.f32 %v12007_v55, %v2847_v1  ;;  %v4097_v58 = vadd.f32 %v4096_v37, %v4095_v61 }
 0x493   : > { %v12023_v59 = vadd.f32 %v11414_v34, %v2952_v18  ;;  %v2854_v0 = vadd.f32 %v12009_v12, %v2853_v11  ;;  %v4558_v47 = vrot.slane %v4557_v14, 1  ;;  %v5128_v18 = vadd.f32 1.0, %v12020_v16 }
 0x494   : > { %v7939_v40 = vpop.eup %7938  ;;  %v4099_v22 = vadd.f32 %v4098_v38, %v4017_v60  ;;  %v2849_v9 = vrot.slane %v2848_v48, 2  ;;  %v4128_v27 = vmul.f32 0.999999, %v4097_v58 }
 0x495   : > { %v5075_v8 = vmul.f32 0.6931472, %v7939_v40  ;;  %v4560_v36 = vrot.slane %v12023_v59, 4  ;;  %v2855_v1 = vrot.slane %v2854_v0, 2  ;;  %v12027_v21 = vmax.f32 %v4557_v14, %v4558_v47 }
 0x496   : > { %v4100_v15 = vrot.slane %v4099_v22, 2  ;;  %v2850_v61 = vadd.f32 %v2849_v9, %v2848_v48  ;;  %v4144_v11 = vadd.f32 5e-07, %v4128_v27  ;;  %v5296_v47 = vmax.f32 %v5294_v10, %v5295_v56  ;;  %v14258_v10 = vld [vmem:[#allocation33_spill] sm:$0xff] }
 0x497   : > { %v12030_v37 = vadd.f32 %v5075_v8, %v5048_v42  ;;  %v4561_v24 = vmax.f32 %v12023_v59, %v4560_v36  ;;  %v2856_v60 = vadd.f32 %v2855_v1, %v2854_v0  ;;  %v4590_v40 = vsub.f32 %v11989_v6, %v12027_v21  ;;  %v5187_v36 = vpop.permute.xlu1 %5186 }
 0x498   : > { %v4101_v38 = vadd.f32 %v4100_v15, %v4099_v22  ;;  %v2851_v58 = vrot.slane %v2850_v61, 1  ;;  %v7941_v31 = vpop.eup %7940  ;;  %v4160_v39 = vmul.f32 100.0, %v4144_v11  ;;  %v4224_v28 = vsub.f32 1.0, %v4144_v11 }
 0x499   : > { %14254 = vst [vmem:[#allocation28_spill] sm:$0xff] %v12030_v37  ;;  %v4562_v14 = vrot.slane %v4561_v24, 2  ;;  %v5077_v9 = vmul.f32 0.6931472, %v7941_v31  ;;  %v4618_v26 = vmul.f32 1.442695, %v4590_v40  ;;  %7944 = vlog2.f32 %v5128_v18  ;;  %v12037_v1 = vpop.eup %7942 }
 0x49a   : > { %v4102_v48 = vrot.slane %v4101_v38, 1  ;;  %7946 = vlog2.f32 %v4160_v39  ;;  %v4240_v8 = vmul.f32 100.0, %v4224_v28  ;;  %v2857_v27 = vrot.slane %v2856_v60, 1 }
 0x49b   : > { %v4563_v42 = vmax.f32 %v4561_v24, %v4562_v14  ;;  %v12035_v0 = vadd.f32 %v5077_v9, %v5049_v3  ;;  %7948 = vpow2.f32 %v4618_v26  ;;  %v2852_v6 = vadd.f32 %v2851_v58, %v2850_v61  ;;  %v14259_v61 = vld [vmem:[#allocation34_spill] sm:$0xff] }
 0x49c   : > { %v4103_v22 = vadd.f32 %v4102_v48, %v4101_v38  ;;  %7950 = vlog2.f32 %v4240_v8  ;;  %v2858_v11 = vadd.f32 %v2857_v27, %v2856_v60  ;;  %v5302_v56 = vmax.f32 %v5300_v62, %v5301_v25 }
 0x49d   : > { %14255 = vst [vmem:[#allocation32_spill] sm:$0xff] %v12035_v0  ;;  %v4564_v15 = vrot.slane %v4563_v42, 1  ;;  %v14256_v31 = vsub.f32 %v11511_v17, %v11514_v13  ;;  %v14257_v39 = vsub.f32 %v14253_v44, %v14252_v2  ;;  %v4296_v3 = vsub.f32 %v14258_v10, %v11673_v19 }
 0x49e   : > { %v4129_v26 = vmul.f32 0.999999, %v4103_v22  ;;  %7952 = vrcp.f32 %v2852_v6  ;;  %v4297_v18 = vsub.f32 %v14259_v61, %v11678_v51  ;;  %v12053_v25 = vadd.f32 %v5187_v36, %v11973_v57 }
 0x49f   : > { %v5740_v28 = vsel %vm13961_vm4, %v14257_v39, %v14256_v31  ;;  %v12050_v24 = vmax.f32 %v4563_v42, %v4564_v15  ;;  %7954 = vrcp.f32 %v2858_v11  ;;  %v5131_v13 = vmul.f32 -0.5, %v12020_v16  ;;  %v12067_v42 = vpop.permute.xlu0 %5172 }
 0x4a0   : > { %v4145_v17 = vadd.f32 5e-07, %v4129_v26  ;;  %7956 = vlog2.f32 %v2852_v6  ;;  %v5297_v2 = vrot.slane %v5296_v47, 1  ;;  %v5303_v19 = vrot.slane %v5302_v56, 1 }
 0x4a1   : > { %v4591_v44 = vsub.f32 %v12023_v59, %v12050_v24  ;;  %7958 = vlog2.f32 %v2858_v11  ;;  %v12060_v62 = vsel %vm13960_vm5, %v4296_v3, %v12001_v32  ;;  %v12063_v38 = vsel %vm13960_vm5, %v4297_v18, %v5740_v28 }
 0x4a2   : > { %v4161_v51 = vmul.f32 100.0, %v4145_v17  ;;  %v4225_v60 = vsub.f32 1.0, %v4145_v17  ;;  %v5114_v58 = vmax.f32 %v11933_v33, 0.0  ;;  %v5305_v14 = vrot.slane %v12053_v25, 4 }
 0x4a3   : > { %v4620_v40 = vmul.f32 1.442695, %v4591_v44  ;;  %v7945_v9 = vpop.eup %7944  ;;  %v5132_v59 = vadd.f32 1.0, %v5131_v13  ;;  %v5298_v8 = vmax.f32 %v5296_v47, %v5297_v2  ;;  %v5115_v32 = vmax.f32 %v11969_v30, 0.0 }
 0x4a4   : > { %7960 = vlog2.f32 %v4161_v51  ;;  %v4241_v48 = vmul.f32 100.0, %v4225_v60  ;;  %v7947_v27 = vpop.eup %7946  ;;  %v5134_v22 = vand.u32 2147483647, %v12020_v16  ;;  %v12071_v6 = vmax.f32 %v5302_v56, %v5303_v19 }
 0x4a5   : > { %7962 = vpow2.f32 %v4620_v40  ;;  %v7949_v15 = vpop.eup %7948  ;;  %v4189_v11 = vmul.f32 0.6931472, %v7947_v27  ;;  %v5137_v31 = vadd.f32 1.0, %v12037_v1  ;;  %v12075_v39 = vadd.f32 %v5187_v36, %v11977_v52 }
 0x4a6   : > { %7964 = vlog2.f32 %v4241_v48  ;;  %v7951_v28 = vpop.eup %7950  ;;  %v4890_v47 = vmul.f32 %v7949_v15, %v11228_v54  ;;  %v5140_v10 = vmul.f32 -0.5, %v12037_v1  ;;  %v12080_v3 = vmax.f32 %v12053_v25, %v5305_v14 }
 0x4a7   : > { %v12084_v56 = vadd.f32 %v12067_v42, %v11973_v57  ;;  %v4269_v61 = vmul.f32 0.6931472, %v7951_v28  ;;  %v12087_v18 = vmul.f32 %v12020_v16, %v5132_v59  ;;  %v5143_v36 = vand.u32 2147483647, %v12037_v1 }
 0x4a8   : > { %v7953_v26 = vpop.eup %7952  ;;  %v5379_v17 = vsub.f32 %v11984_v50, %v5298_v8  ;;  %v4966_v2 = vrot.slane %v4890_v47, 4  ;;  %v12092_v19 = vmul.f32 0.6931472, %v7945_v9  ;;  %vm12094_vm10 = vcmp.lt.f32.partialorder %v5134_v22, 0.0004427343 }
 0x4a9   : > { %v7955_v13 = vpop.eup %7954  ;;  %v2905_v44 = vmul.f32 %v7953_v26, %v12007_v55  ;;  %v5380_v60 = vsub.f32 %v11992_v20, %v12071_v6  ;;  %v12100_v16 = vadd.f32 -4.6051702, %v4189_v11  ;;  %v12102_v14 = vadd.f32 -4.6051702, %v4269_v61 }
 0x4aa   : > { %v7957_v40 = vpop.eup %7956  ;;  %v2906_v50 = vmul.f32 %v7955_v13, %v12009_v12  ;;  %7966 = vlog2.f32 %v5137_v31  ;;  %v4967_v59 = vadd.f32 %v4966_v2, %v4890_v47  ;;  %v5141_v8 = vadd.f32 1.0, %v5140_v10 }
 0x4ab   : > { %v7959_v48 = vpop.eup %7958  ;;  %v2936_v55 = vmul.f32 0.6931472, %v7957_v40  ;;  %v4018_v9 = vmul.f32 %v11374_v53, %v2905_v44  ;;  %v5002_v27 = vadd.f32 %v12102_v14, %v12100_v16  ;;  %v5397_v6 = vmul.f32 1.442695, %v5379_v17 }
 0x4ac   : > { %v2938_v22 = vmul.f32 0.6931472, %v7959_v48  ;;  %v4019_v20 = vmul.f32 %v11411_v4, %v2906_v50  ;;  %v4968_v15 = vrot.slane %v4967_v59, 2  ;;  %v5307_v12 = vrot.slane %v12080_v3, 2 }
 0x4ad   : > { %v2953_v11 = vsub.f32 %v11957_v43, %v2936_v55  ;;  %v4104_v28 = vrot.slane %v4018_v9, 4  ;;  %v5018_v26 = vsub.f32 -1.0000005e-06, %v5002_v27  ;;  %v5311_v53 = vrot.slane %v12075_v39, 4 }
 0x4ae   : > { %v7961_v31 = vpop.eup %7960  ;;  %v2954_v47 = vsub.f32 %v11965_v45, %v2938_v22  ;;  %v4110_v61 = vrot.slane %v4019_v20, 4  ;;  %v4969_v2 = vadd.f32 %v4968_v15, %v4967_v59  ;;  %7968 = vpow2.f32 %v5397_v6 }
 0x4af   : > { %v7963_v10 = vpop.eup %7962  ;;  %v4191_v13 = vmul.f32 0.6931472, %v7961_v31  ;;  %v4105_v44 = vadd.f32 %v4104_v28, %v4018_v9  ;;  %v12114_v4 = vadd.f32 %v11389_v35, %v2953_v11  ;;  %v5034_v40 = vadd.f32 %v5018_v26, %v12027_v21 }
 0x4b0   : > { %v7965_v17 = vpop.eup %7964  ;;  %v4891_v43 = vmul.f32 %v7963_v10, %v11252_v7  ;;  %v4111_v50 = vadd.f32 %v4110_v61, %v4019_v20  ;;  %v12119_v48 = vadd.f32 %v11414_v34, %v2954_v47  ;;  %v4970_v55 = vrot.slane %v4969_v2, 1 }
 0x4b1   : > { %v4271_v45 = vmul.f32 0.6931472, %v7965_v17  ;;  %v4106_v27 = vrot.slane %v4105_v44, 2  ;;  %v12121_v22 = vadd.f32 -4.6051702, %v4191_v13  ;;  %v4566_v35 = vrot.slane %v12114_v4, 4 }
 0x4b2   : > { %v4972_v59 = vrot.slane %v4891_v43, 4  ;;  %v4112_v9 = vrot.slane %v4111_v50, 2  ;;  %v4971_v11 = vadd.f32 %v4970_v55, %v4969_v2  ;;  %v4572_v21 = vrot.slane %v12119_v48, 4 }
 0x4b3   : > { %v12124_v15 = vadd.f32 -4.6051702, %v4271_v45  ;;  %v4107_v28 = vadd.f32 %v4106_v27, %v4105_v44  ;;  %v4567_v26 = vmax.f32 %v12114_v4, %v4566_v35  ;;  %v5136_v6 = vsel %vm12094_vm10, %v12087_v18, %v12092_v19 }
 0x4b4   : > { %v7967_v20 = vpop.eup %7966  ;;  %v4973_v31 = vadd.f32 %v4972_v59, %v4891_v43  ;;  %v4113_v34 = vadd.f32 %v4112_v9, %v4111_v50  ;;  %7970 = vlog2.f32 %v4971_v11  ;;  %v5399_v10 = vmul.f32 1.442695, %v5380_v60 }
 0x4b5   : > { %v5003_v47 = vadd.f32 %v12124_v15, %v12121_v22  ;;  %v4108_v61 = vrot.slane %v4107_v28, 1  ;;  %v4568_v44 = vrot.slane %v4567_v26, 2  ;;  %v4573_v17 = vmax.f32 %v12119_v48, %v4572_v21 }
 0x4b6   : > { %v4974_v13 = vrot.slane %v4973_v31, 2  ;;  %v4114_v2 = vrot.slane %v4113_v34, 1  ;;  %v5308_v45 = vmax.f32 %v12080_v3, %v5307_v12  ;;  %v5312_v55 = vmax.f32 %v12075_v39, %v5311_v53 }
 0x4b7   : > { %v5019_v43 = vsub.f32 -1.0000005e-06, %v5003_v47  ;;  %v4109_v50 = vadd.f32 %v4108_v61, %v4107_v28  ;;  %v4569_v18 = vmax.f32 %v4567_v26, %v4568_v44  ;;  %v4574_v19 = vrot.slane %v4573_v17, 2 }
 0x4b8   : > { %v4975_v27 = vadd.f32 %v4974_v13, %v4973_v31  ;;  %v4115_v51 = vadd.f32 %v4114_v2, %v4113_v34  ;;  %v5142_v60 = vmul.f32 %v12037_v1, %v5141_v8  ;;  %vm12143_vm11 = vcmp.lt.f32.partialorder %v5143_v36, 0.0004427343  ;;  %v12147_v28 = vpop.eup %7968 }
 0x4b9   : > { %v12138_v59 = vadd.f32 %v5019_v43, %v12050_v24  ;;  %v4130_v9 = vmul.f32 0.999999, %v4109_v50  ;;  %v4570_v12 = vrot.slane %v4569_v18, 1  ;;  %v4575_v53 = vmax.f32 %v4573_v17, %v4574_v19 }
 0x4ba   : > { %v4976_v11 = vrot.slane %v4975_v27, 1  ;;  %v4131_v3 = vmul.f32 0.999999, %v4115_v51  ;;  %7972 = vpow2.f32 %v5399_v10  ;;  %v5309_v31 = vrot.slane %v5308_v45, 1 }
 0x4bb   : > { %v4146_v21 = vadd.f32 5e-07, %v4130_v9  ;;  %v5313_v24 = vrot.slane %v5312_v55, 2  ;;  %v12149_v47 = vmax.f32 %v4569_v18, %v4570_v12  ;;  %v4576_v8 = vrot.slane %v4575_v53, 1 }
 0x4bc   : > { %v4977_v34 = vadd.f32 %v4976_v11, %v4975_v27  ;;  %v4147_v26 = vadd.f32 5e-07, %v4131_v3  ;;  %v5050_v1 = vadd.f32 %v5034_v40, %v14219_v63  ;;  %v5139_v13 = vmul.f32 0.6931472, %v7967_v20 }
 0x4bd   : > { %v4162_v36 = vmul.f32 100.0, %v4146_v21  ;;  %v4226_v61 = vsub.f32 1.0, %v4146_v21  ;;  %v12152_v17 = vmax.f32 %v4575_v53, %v4576_v8  ;;  %v4592_v50 = vsub.f32 %v12114_v4, %v12149_v47 }
 0x4be   : > { %7974 = vlog2.f32 %v4977_v34  ;;  %v4163_v2 = vmul.f32 100.0, %v4147_v26  ;;  %v4227_v44 = vsub.f32 1.0, %v4147_v26  ;;  %v7971_v43 = vpop.eup %7970  ;;  %v5437_v27 = vrot.slane %v12147_v28, 4 }
 0x4bf   : > { %7976 = vlog2.f32 %v4162_v36  ;;  %v4242_v10 = vmul.f32 100.0, %v4226_v61  ;;  %v5079_v51 = vmul.f32 0.6931472, %v7971_v43  ;;  %v4593_v40 = vsub.f32 %v12119_v48, %v12152_v17 }
 0x4c0   : > { %7978 = vlog2.f32 %v4163_v2  ;;  %v4243_v18 = vmul.f32 100.0, %v4227_v44  ;;  %v4622_v20 = vmul.f32 1.442695, %v4592_v50  ;;  %v5145_v19 = vsel %vm12143_vm11, %v5142_v60, %v5139_v13  ;;  %v14267_v13 = vld [vmem:[#allocation41_spill] sm:$0xff] }
 0x4c1   : > { %7980 = vlog2.f32 %v4242_v10  ;;  %v5281_v9 = vrot.slane %v12084_v56, 4  ;;  %v12162_v11 = vadd.f32 %v5079_v51, %v5050_v1  ;;  %v4624_v3 = vmul.f32 1.442695, %v4593_v40  ;;  %v14265_v1 = vld [vmem:[#allocation40_spill] sm:$0xff] }
 0x4c2   : > { %7982 = vlog2.f32 %v4243_v18  ;;  %v12166_v4 = vadd.f32 %v12067_v42, %v11977_v52  ;;  %v4298_v12 = vsub.f32 %v11798_v49, %v11802_v5  ;;  %v4299_v48 = vsub.f32 %v11800_v41, %v11805_v23 }
 0x4c3   : > { %14264 = vst [vmem:[#allocation33_spill] sm:$0xff] %v12162_v11  ;;  %7984 = vpow2.f32 %v4622_v20  ;;  %v5146_v60 = vadd.f32 %v5136_v6, %v5114_v58  ;;  %v5147_v35 = vadd.f32 %v5145_v19, %v5115_v32  ;;  %v5438_v53 = vadd.f32 %v12147_v28, %v5437_v27 }
 0x4c4   : > { %7986 = vpow2.f32 %v4624_v3  ;;  %v5314_v21 = vmax.f32 %v5312_v55, %v5313_v24  ;;  %v12177_v34 = vpop.eup %7972  ;;  %v5310_v23 = vmax.f32 %v5308_v45, %v5309_v31  ;;  %v5282_v49 = vmax.f32 %v12084_v56, %v5281_v9 }
 0x4c5   : > { %v5287_v5 = vrot.slane %v12166_v4, 4  ;;  %v5735_v58 = vsel %vm13959_vm6, %v4298_v12, %v12060_v62  ;;  %v5742_v42 = vsel %vm13959_vm6, %v4299_v48, %v12063_v38  ;;  %v4300_v32 = vsub.f32 %v11856_v46, %v11861_v29  ;;  %v14266_v29 = vld [vmem:[#allocation23_spill] sm:$0xff] }
 0x4c6   : > { %v5315_v41 = vrot.slane %v5314_v21, 1  ;;  %v5283_v6 = vrot.slane %v5282_v49, 2  ;;  %v12192_v24 = vsel %vm5116_vm12, %v11933_v33, %v5146_v60  ;;  %v12195_v45 = vsel %vm5117_vm15, %v11969_v30, %v5147_v35 }
 0x4c7   : > { %v5439_v31 = vrot.slane %v5438_v53, 2  ;;  %v5443_v26 = vrot.slane %v12177_v34, 4  ;;  %v5051_v62 = vadd.f32 %v12138_v59, %v14265_v1  ;;  %v5381_v38 = vsub.f32 %v12053_v25, %v5310_v23 }
 0x4c8   : > { %v7975_v55 = vpop.eup %7974  ;;  %v5284_v61 = vmax.f32 %v5282_v49, %v5283_v6  ;;  %v4301_v2 = vsub.f32 %v14267_v13, %v14266_v29  ;;  %v5316_v44 = vmax.f32 %v5314_v21, %v5315_v41  ;;  %v5288_v30 = vmax.f32 %v12166_v4, %v5287_v5 }
 0x4c9   : > { %v7977_v8 = vpop.eup %7976  ;;  %v5081_v36 = vmul.f32 0.6931472, %v7975_v55  ;;  %v5736_v10 = vsel %vm13958_vm7, %v4300_v32, %v5735_v58  ;;  %v5571_v25 = vcombine.low %v12192_v24, %v12195_v45  ;;  %v5440_v40 = vadd.f32 %v5439_v31, %v5438_v53 }
 0x4ca   : > { %v7979_v46 = vpop.eup %7978  ;;  %v4193_v33 = vmul.f32 0.6931472, %v7977_v8  ;;  %v5285_v51 = vrot.slane %v5284_v61, 1  ;;  %v5444_v20 = vadd.f32 %v12177_v34, %v5443_v26  ;;  %v5401_v3 = vmul.f32 1.442695, %v5381_v38 }
 0x4cb   : > { %v7981_v43 = vpop.eup %7980  ;;  %v12205_v50 = vadd.f32 %v5081_v36, %v5051_v62  ;;  %v4195_v27 = vmul.f32 0.6931472, %v7979_v46  ;;  %v5289_v48 = vrot.slane %v5288_v30, 2  ;;  %v5382_v49 = vsub.f32 %v12075_v39, %v5316_v44 }
 0x4cc   : > { %v7983_v59 = vpop.eup %7982  ;;  %v4273_v18 = vmul.f32 0.6931472, %v7981_v43  ;;  %v5286_v12 = vmax.f32 %v5284_v61, %v5285_v51  ;;  %v12210_v35 = vadd.f32 -4.6051702, %v4193_v33  ;;  %v5441_v55 = vrot.slane %v5440_v40, 1 }
 0x4cd   : > { %14268 = vst [vmem:[#allocation34_spill] sm:$0xff] %v12205_v50  ;;  %v7985_v19 = vpop.eup %7984  ;;  %v4275_v9 = vmul.f32 0.6931472, %v7983_v59  ;;  %v12216_v41 = vadd.f32 -4.6051702, %v4195_v27  ;;  %v5290_v58 = vmax.f32 %v5288_v30, %v5289_v48  ;;  %7988 = vpow2.f32 %v5401_v3  ;;  %v14269_v27 = vld [vmem:[#allocation19_spill] sm:$0xff] }
 0x4ce   : > { %v7987_v60 = vpop.eup %7986  ;;  %v12212_v21 = vadd.f32 -4.6051702, %v4273_v18  ;;  %v4892_v23 = vmul.f32 %v7985_v19, %v11228_v54  ;;  %v5377_v31 = vsub.f32 %v12084_v56, %v5286_v12  ;;  %v5445_v36 = vrot.slane %v5444_v20, 2  ;;  %v5194_v18 = vpop.permute.xlu1 %5193  ;;  %v14270_v19 = vld [vmem:[#allocation47_spill] sm:$0xff]  ;;  %v14272_v12 = vld [vmem:[#allocation48_spill] sm:$0xff]  ;;  %v14273_v48 = vld [vmem:[#allocation46_spill] sm:$0xff] }
 0x4cf   : > { %v12218_v5 = vadd.f32 -4.6051702, %v4275_v9  ;;  %v4893_v53 = vmul.f32 %v7987_v60, %v11252_v7  ;;  %v5291_v39 = vrot.slane %v5290_v58, 1  ;;  %v5403_v46 = vmul.f32 1.442695, %v5382_v49  ;;  %v14271_v9 = vld [vmem:[#allocation45_spill] sm:$0xff] }
 0x4d0   : > { %v4978_v32 = vrot.slane %v4892_v23, 4  ;;  %v5004_v6 = vadd.f32 %v12212_v21, %v12210_v35  ;;  %v5393_v38 = vmul.f32 1.442695, %v5377_v31  ;;  %v5743_v13 = vsel %vm13958_vm7, %v4301_v2, %v5742_v42 }
 0x4d1   : > { %v4984_v26 = vrot.slane %v4893_v53, 4  ;;  %v5005_v54 = vadd.f32 %v12218_v5, %v12216_v41  ;;  %v5292_v29 = vmax.f32 %v5290_v58, %v5291_v39  ;;  %v5442_v56 = vadd.f32 %v5441_v55, %v5440_v40  ;;  %v14274_v58 = vld [vmem:[#allocation49_spill] sm:$0xff] }
 0x4d2   : > { %v4979_v8 = vadd.f32 %v4978_v32, %v4892_v23  ;;  %v5020_v62 = vsub.f32 -1.0000005e-06, %v5004_v6  ;;  %v5579_v51 = vrot.slane %v5571_v25, %v14269_v27  ;;  %v4302_v3 = vsub.f32 %v14271_v9, %v14270_v19  ;;  %v5201_v19 = vpop.permute.xlu0 %5200 }
 0x4d3   : > { %v4985_v61 = vadd.f32 %v4984_v26, %v4893_v53  ;;  %v5021_v7 = vsub.f32 -1.0000005e-06, %v5005_v54  ;;  %v5378_v59 = vsub.f32 %v12166_v4, %v5292_v29  ;;  %v4303_v42 = vsub.f32 %v14273_v48, %v14272_v12  ;;  %v14277_v12 = vld [vmem:[#allocation21_spill] sm:$0xff] }
 0x4d4   : > { %v4980_v33 = vrot.slane %v4979_v8, 2  ;;  %v12228_v44 = vadd.f32 %v5020_v62, %v12149_v47  ;;  %7990 = vpow2.f32 %v5393_v38  ;;  %v5446_v60 = vadd.f32 %v5445_v36, %v5444_v20 }
 0x4d5   : > { %v4986_v30 = vrot.slane %v4985_v61, 2  ;;  %v12231_v43 = vadd.f32 %v5021_v7, %v12152_v17  ;;  %7992 = vpow2.f32 %v5403_v46  ;;  %v5395_v40 = vmul.f32 1.442695, %v5378_v59 }
 0x4d6   : > { %v4981_v2 = vadd.f32 %v4980_v33, %v4979_v8  ;;  %v5737_v17 = vsel %vm13957_vm9, %v4302_v3, %v5736_v10  ;;  %7994 = vrcp.f32 %v5442_v56  ;;  %v12241_v25 = vadd.f32 %v5194_v18, %v11973_v57  ;;  %v14275_v8 = vld [vmem:[#allocation50_spill] sm:$0xff] }
 0x4d7   : > { %v4987_v47 = vadd.f32 %v4986_v30, %v4985_v61  ;;  %v5587_v49 = vcombine.high %v5579_v51, %v5579_v51  ;;  %7996 = vpow2.f32 %v5395_v40  ;;  %v12244_v53 = vadd.f32 %v5194_v18, %v11977_v52  ;;  %v12252_v55 = vpop.eup %7988 }
 0x4d8   : > { %v4982_v23 = vrot.slane %v4981_v2, 1  ;;  %v12248_v32 = vsel %vm6539_vm8, %v14274_v58, -inf  ;;  %v5744_v20 = vsel %vm13957_vm9, %v4303_v42, %v5743_v13  ;;  %v5150_v10 = vmul.f32 100.0, %v12192_v24 }
 0x4d9   : > { %v4988_v4 = vrot.slane %v4987_v47, 1  ;;  %v5447_v26 = vrot.slane %v5446_v60, 1  ;;  %v5317_v54 = vrot.slane %v12241_v25, 4  ;;  %v5323_v39 = vrot.slane %v12244_v53, 4 }
 0x4da   : > { %v4983_v6 = vadd.f32 %v4982_v23, %v4981_v2  ;;  %v12258_v62 = vsel %vm6539_vm8, %v14275_v8, -inf  ;;  %v12262_v36 = vsel %vm6539_vm8, %v12030_v37, -inf  ;;  %v5151_v38 = vmul.f32 100.0, %v12195_v45 }
 0x4db   : > { %v4989_v31 = vadd.f32 %v4988_v4, %v4987_v47  ;;  %v12266_v61 = vrot.slane %v5587_v49, %v14269_v27  ;;  %v5318_v7 = vmax.f32 %v12241_v25, %v5317_v54  ;;  %v5324_v46 = vmax.f32 %v12244_v53, %v5323_v39 }
 0x4dc   : > { %7998 = vlog2.f32 %v4983_v6  ;;  %v4304_v29 = vsub.f32 %v12100_v16, %v12102_v14  ;;  %v4305_v13 = vsub.f32 %v12121_v22, %v12124_v15  ;;  %v12275_v33 = vrot.slane %v5579_v51, %v14269_v27  ;;  %v14276_v15 = vld [vmem:[#allocation20_spill] sm:$0xff] }
 0x4dd   : > { %8000 = vlog2.f32 %v4989_v31  ;;  %v5449_v56 = vrot.slane %v12252_v55, 4  ;;  %v5448_v30 = vadd.f32 %v5447_v26, %v5446_v60  ;;  %v5319_v59 = vrot.slane %v5318_v7, 2 }
 0x4de   : > { %8002 = vlog2.f32 %v5150_v10  ;;  %v5325_v18 = vrot.slane %v5324_v46, 2  ;;  %v12278_v9 = vpop.eup %7990  ;;  %v12282_v3 = vsel %vm6539_vm8, %v12035_v0, -inf  ;;  %v5738_v16 = vsel %vm13954_vm13, %v4304_v29, %v5737_v17 }
 0x4df   : > { %v5745_v14 = vsel %vm13954_vm13, %v4305_v13, %v5744_v20  ;;  %8004 = vlog2.f32 %v5151_v38  ;;  %v12286_v22 = vpop.eup %7992  ;;  %v5632_v51 = vrot.slane %v12266_v61, %v14276_v15  ;;  %v5636_v48 = vrot.slane %v12266_v61, %v14277_v12 }
 0x4e0   : > { %v5320_v42 = vmax.f32 %v5318_v7, %v5319_v59  ;;  %v5326_v2 = vmax.f32 %v5324_v46, %v5325_v18  ;;  %v7995_v47 = vpop.eup %7994  ;;  %v12294_v60 = vcombine.high %v12275_v33, %v12275_v33  ;;  %v5450_v40 = vadd.f32 %v12252_v55, %v5449_v56 }
 0x4e1   : > { %v12298_v17 = vadd.f32 %v5201_v19, %v11973_v57  ;;  %v12301_v23 = vadd.f32 %v5201_v19, %v11977_v52  ;;  %v12303_v4 = vpop.eup %7996  ;;  %8006 = vrcp.f32 %v5448_v30  ;;  %v5425_v49 = vrot.slane %v12278_v9, 4 }
 0x4e2   : > { %v5321_v20 = vrot.slane %v5320_v42, 1  ;;  %v5327_v6 = vrot.slane %v5326_v2, 1  ;;  %v4306_v10 = vsub.f32 %v12210_v35, %v12212_v21  ;;  %v4307_v31 = vsub.f32 %v12216_v41, %v12218_v5 }
 0x4e3   : > { %v5052_v26 = vadd.f32 %v12228_v44, %v14219_v63  ;;  %v5455_v54 = vrot.slane %v12286_v22, 4  ;;  %v5431_v39 = vrot.slane %v12303_v4, 4  ;;  %v5329_v46 = vrot.slane %v12298_v17, 4 }
 0x4e4   : > { %v5322_v38 = vmax.f32 %v5320_v42, %v5321_v20  ;;  %v5328_v7 = vmax.f32 %v5326_v2, %v5327_v6  ;;  %v5053_v13 = vadd.f32 %v12231_v43, %v14265_v1  ;;  %v12318_v35 = vmul.f32 %v7995_v47, %v12147_v28  ;;  %v5208_v28 = vpop.permute.xlu1 %5207 }
 0x4e5   : > { %v5451_v21 = vrot.slane %v5450_v40, 2  ;;  %v5335_v41 = vrot.slane %v12301_v23, 4  ;;  %v5426_v44 = vadd.f32 %v12278_v9, %v5425_v49  ;;  %v5456_v18 = vadd.f32 %v12286_v22, %v5455_v54 }
 0x4e6   : > { %v7999_v29 = vpop.eup %7998  ;;  %14278 = vst [vmem:[#allocation40_spill] sm:$0xff] %v12318_v35  ;;  %v5383_v56 = vsub.f32 %v12241_v25, %v5322_v38  ;;  %v5384_v30 = vsub.f32 %v12244_v53, %v5328_v7  ;;  %v5330_v19 = vmax.f32 %v12298_v17, %v5329_v46  ;;  %v5432_v2 = vadd.f32 %v12303_v4, %v5431_v39 }
 0x4e7   : > { %v8001_v5 = vpop.eup %8000  ;;  %v5083_v63 = vmul.f32 0.6931472, %v7999_v29  ;;  %v5336_v1 = vmax.f32 %v12301_v23, %v5335_v41  ;;  %v5452_v53 = vadd.f32 %v5451_v21, %v5450_v40  ;;  %v12337_v38 = vsel %vm13948_vm14, %v4306_v10, %v5738_v16  ;;  %v5215_v41 = vpop.permute.xlu0 %5214 }
 0x4e8   : > { %v5085_v59 = vmul.f32 0.6931472, %v8001_v5  ;;  %v12327_v43 = vpop.eup %8002  ;;  %v5405_v47 = vmul.f32 1.442695, %v5383_v56  ;;  %v5407_v49 = vmul.f32 1.442695, %v5384_v30  ;;  %v12345_v39 = vsel %vm13948_vm14, %v4307_v31, %v5745_v14 }
 0x4e9   : > { %v12329_v42 = vadd.f32 %v5083_v63, %v5052_v26  ;;  %v12332_v20 = vpop.eup %8004  ;;  %v5331_v6 = vrot.slane %v5330_v19, 2  ;;  %v5337_v54 = vrot.slane %v5336_v1, 2  ;;  %v5427_v46 = vrot.slane %v5426_v44, 2 }
 0x4ea   : > { %v12334_v25 = vadd.f32 %v5085_v59, %v5053_v13  ;;  %v12342_v26 = vadd.f32 %v5208_v28, %v11973_v57  ;;  %8008 = vpow2.f32 %v5405_v47  ;;  %v12348_v21 = vmul.f32 %v5632_v51, %v12318_v35 }
 0x4eb   : > { %14279 = vst [vmem:[#allocation23_spill] sm:$0xff] %v12329_v42  ;;  %v5332_v29 = vmax.f32 %v5330_v19, %v5331_v6  ;;  %v5338_v13 = vmax.f32 %v5336_v1, %v5337_v54  ;;  %v8007_v40 = vpop.eup %8006  ;;  %v5457_v16 = vrot.slane %v5456_v18, 2  ;;  %v5433_v10 = vrot.slane %v5432_v2, 2 }
 0x4ec   : > { %14280 = vst [vmem:[#allocation41_spill] sm:$0xff] %v12334_v25  ;;  %8010 = vpow2.f32 %v5407_v49  ;;  %v5453_v5 = vrot.slane %v5452_v53, 1  ;;  %v12351_v30 = vadd.f32 %v5208_v28, %v11977_v52  ;;  %v5428_v59 = vadd.f32 %v5427_v46, %v5426_v44 }
 0x4ed   : > { %v5333_v63 = vrot.slane %v5332_v29, 1  ;;  %v5339_v56 = vrot.slane %v5338_v13, 1  ;;  %v5341_v14 = vrot.slane %v12342_v26, 4  ;;  %v12355_v31 = vadd.f32 %v5215_v41, %v11973_v57 }
 0x4ee   : > { %v12358_v19 = vadd.f32 %v5215_v41, %v11977_v52  ;;  %v12361_v51 = vmul.f32 %v8007_v40, %v12177_v34  ;;  %v5347_v49 = vrot.slane %v12351_v30, 4  ;;  %v5458_v6 = vadd.f32 %v5457_v16, %v5456_v18 }
 0x4ef   : > { %v5334_v1 = vmax.f32 %v5332_v29, %v5333_v63  ;;  %v5340_v47 = vmax.f32 %v5338_v13, %v5339_v56  ;;  %v5434_v54 = vadd.f32 %v5433_v10, %v5432_v2  ;;  %v5342_v28 = vmax.f32 %v12342_v26, %v5341_v14 }
 0x4f0   : > { %14281 = vst [vmem:[#allocation47_spill] sm:$0xff] %v12361_v51  ;;  %v5353_v44 = vrot.slane %v12355_v31, 4  ;;  %v5348_v52 = vmax.f32 %v12351_v30, %v5347_v49  ;;  %v5359_v41 = vrot.slane %v12358_v19, 4  ;;  %v5454_v34 = vadd.f32 %v5453_v5, %v5452_v53 }
 0x4f1   : > { %v5385_v46 = vsub.f32 %v12298_v17, %v5334_v1  ;;  %v5386_v57 = vsub.f32 %v12301_v23, %v5340_v47  ;;  %v5429_v40 = vrot.slane %v5428_v59, 1  ;;  %v5343_v29 = vrot.slane %v5342_v28, 2 }
 0x4f2   : > { %v5354_v13 = vmax.f32 %v12355_v31, %v5353_v44  ;;  %v5349_v2 = vrot.slane %v5348_v52, 2  ;;  %v5360_v16 = vmax.f32 %v12358_v19, %v5359_v41  ;;  %v5704_v17 = vmul.f32 %v5636_v48, %v12361_v51 }
 0x4f3   : > { %v5409_v63 = vmul.f32 1.442695, %v5385_v46  ;;  %v5411_v18 = vmul.f32 1.442695, %v5386_v57  ;;  %v5435_v23 = vrot.slane %v5434_v54, 1  ;;  %v5344_v10 = vmax.f32 %v5342_v28, %v5343_v29 }
 0x4f4   : > { %v5355_v56 = vrot.slane %v5354_v13, 2  ;;  %v12376_v14 = vpop.eup %8008  ;;  %v5459_v53 = vrot.slane %v5458_v6, 1  ;;  %v5350_v5 = vmax.f32 %v5348_v52, %v5349_v2  ;;  %v5361_v1 = vrot.slane %v5360_v16, 2 }
 0x4f5   : > { %8012 = vpow2.f32 %v5409_v63  ;;  %v5430_v49 = vadd.f32 %v5429_v40, %v5428_v59  ;;  %v5461_v44 = vrot.slane %v12376_v14, 4  ;;  %v5345_v46 = vrot.slane %v5344_v10, 1 }
 0x4f6   : > { %v12378_v47 = vpop.eup %8010  ;;  %8014 = vpow2.f32 %v5411_v18  ;;  %v5351_v48 = vrot.slane %v5350_v5, 1  ;;  %v5356_v41 = vmax.f32 %v5354_v13, %v5355_v56  ;;  %v5436_v28 = vadd.f32 %v5435_v23, %v5434_v54 }
 0x4f7   : > { %8016 = vrcp.f32 %v5454_v34  ;;  %v5467_v57 = vrot.slane %v12378_v47, 4  ;;  %v5462_v29 = vadd.f32 %v12376_v14, %v5461_v44  ;;  %v5346_v7 = vmax.f32 %v5344_v10, %v5345_v46  ;;  %v5222_v10 = vpop.permute.xlu1 %5221 }
 0x4f8   : > { %v5362_v51 = vmax.f32 %v5360_v16, %v5361_v1  ;;  %v5460_v63 = vadd.f32 %v5459_v53, %v5458_v6  ;;  %v5352_v2 = vmax.f32 %v5350_v5, %v5351_v48  ;;  %v5357_v35 = vrot.slane %v5356_v41, 1 }
 0x4f9   : > { %v5468_v52 = vadd.f32 %v12378_v47, %v5467_v57  ;;  %8018 = vrcp.f32 %v5430_v49  ;;  %v5463_v59 = vrot.slane %v5462_v29, 2  ;;  %v5387_v40 = vsub.f32 %v12342_v26, %v5346_v7 }
 0x4fa   : > { %v5363_v18 = vrot.slane %v5362_v51, 1  ;;  %v5572_v13 = vcombine.high %v12192_v24, %v12195_v45  ;;  %v5388_v54 = vsub.f32 %v12351_v30, %v5352_v2  ;;  %v5358_v23 = vmax.f32 %v5356_v41, %v5357_v35  ;;  %v8223_v45 = vld [vmem:[%s8681_s27 + $0xb0] sm:$0xff]  ;;  %v8224_v41 = vld [vmem:[%s8681_s27 + $0xb8] sm:$0xff] }
 0x4fb   : > { %v5469_v34 = vrot.slane %v5468_v52, 2  ;;  %v5751_v6 = vmul.f32 %v12337_v38, %v12348_v21  ;;  %8020 = vrcp.f32 %v5436_v28  ;;  %v5413_v16 = vmul.f32 1.442695, %v5387_v40 }
 0x4fc   : > { %v5364_v56 = vmax.f32 %v5362_v51, %v5363_v18  ;;  %v5752_v53 = vmul.f32 %v12345_v39, %v5704_v17  ;;  %8022 = vrcp.f32 %v5460_v63  ;;  %v5415_v7 = vmul.f32 1.442695, %v5388_v54 }
 0x4fd   : > { %v5389_v26 = vsub.f32 %v12355_v31, %v5358_v23  ;;  %v5464_v5 = vadd.f32 %v5463_v59, %v5462_v29  ;;  %8024 = vpow2.f32 %v5413_v16  ;;  %v12394_v35 = vadd.f32 %v8223_v45, %v5222_v10 }
 0x4fe   : > { %v5390_v24 = vsub.f32 %v12358_v19, %v5364_v56  ;;  %v5470_v21 = vadd.f32 %v5469_v34, %v5468_v52  ;;  %v5586_v1 = vrot.slane %v5572_v13, %v14269_v27  ;;  %8026 = vpow2.f32 %v5415_v7 }
 0x4ff   : > { %v12396_v30 = vpop.eup %8012  ;;  %v5417_v51 = vmul.f32 1.442695, %v5389_v26  ;;  %v5640_v31 = vrot.slane %v12294_v60, %v14276_v15  ;;  %v5628_v49 = vrot.slane %v12275_v33, %v14277_v12  ;;  %v12408_v57 = vcombine.high %v12266_v61, %v12266_v61 }
 0x500   : > { %v12399_v17 = vpop.eup %8014  ;;  %v5473_v19 = vrot.slane %v12396_v30, 4  ;;  %v5419_v44 = vmul.f32 1.442695, %v5390_v24  ;;  %v12412_v28 = vadd.f32 %v8224_v41, %v5222_v10  ;;  %v5777_v29 = vrot.slane %v5751_v6, 4 }
 0x501   : > { %v8017_v46 = vpop.eup %8016  ;;  %v5479_v48 = vrot.slane %v12399_v17, 4  ;;  %8028 = vpow2.f32 %v5417_v51  ;;  %v5783_v63 = vrot.slane %v5752_v53, 4  ;;  %v5465_v52 = vrot.slane %v5464_v5, 1 }
 0x502   : > { %v5365_v2 = vrot.slane %v12394_v35, 4  ;;  %v5644_v59 = vrot.slane %v12294_v60, %v14277_v12  ;;  %v5471_v40 = vrot.slane %v5470_v21, 1  ;;  %v5588_v18 = vcombine.high %v5586_v1, %v5586_v1 }
 0x503   : > { %v5371_v34 = vrot.slane %v12412_v28, 4  ;;  %v8019_v61 = vpop.eup %8018  ;;  %v12419_v13 = vmul.f32 %v8017_v46, %v12252_v55  ;;  %v5474_v54 = vadd.f32 %v12396_v30, %v5473_v19  ;;  %8030 = vpow2.f32 %v5419_v44 }
 0x504   : > { %v5366_v23 = vmax.f32 %v12394_v35, %v5365_v2  ;;  %v5480_v60 = vadd.f32 %v12399_v17, %v5479_v48  ;;  %v12429_v26 = vadd.f32 %v5777_v29, %v5751_v6  ;;  %v12431_v55 = vadd.f32 %v5783_v63, %v5752_v53 }
 0x505   : > { %14282 = vst [vmem:[#allocation45_spill] sm:$0xff] %v12419_v13  ;;  %v5372_v56 = vmax.f32 %v12412_v28, %v5371_v34  ;;  %v8021_v7 = vpop.eup %8020  ;;  %v5466_v24 = vadd.f32 %v5465_v52, %v5464_v5  ;;  %v12434_v19 = vmul.f32 %v8019_v61, %v12278_v9  ;;  %v5472_v44 = vadd.f32 %v5471_v40, %v5470_v21 }
 0x506   : > { %v5367_v45 = vrot.slane %v5366_v23, 2  ;;  %v8023_v51 = vpop.eup %8022  ;;  %v12437_v46 = vrot.slane %v5586_v1, %v14269_v27  ;;  %v5705_v48 = vmul.f32 %v5640_v31, %v12419_v13  ;;  %v5475_v34 = vrot.slane %v5474_v54, 2 }
 0x507   : > { %14283 = vst [vmem:[#allocation48_spill] sm:$0xff] %v12434_v19  ;;  %v5373_v41 = vrot.slane %v5372_v56, 2  ;;  %v12439_v2 = vpop.eup %8024  ;;  %v12443_v6 = vrot.slane %v5588_v18, %v14269_v27  ;;  %v12448_v29 = vmul.f32 %v8021_v7, %v12303_v4  ;;  %v5481_v9 = vrot.slane %v5480_v60, 2 }
 0x508   : > { %v5368_v53 = vmax.f32 %v5366_v23, %v5367_v45  ;;  %v12445_v5 = vpop.eup %8026  ;;  %v5485_v21 = vrot.slane %v12439_v2, 4  ;;  %v12452_v63 = vmul.f32 %v8023_v51, %v12286_v22  ;;  %8032 = vrcp.f32 %v5466_v24 }
 0x509   : > { %14284 = vst [vmem:[#allocation46_spill] sm:$0xff] %v12448_v29  ;;  %v5374_v1 = vmax.f32 %v5372_v56, %v5373_v41  ;;  %v5491_v31 = vrot.slane %v12445_v5, 4  ;;  %v14286_v18 = vrot.slane %v12275_v33, %v14276_v15  ;;  %8034 = vrcp.f32 %v5472_v44 }
 0x50a   : > { %14285 = vst [vmem:[#allocation21_spill] sm:$0xff] %v12452_v63  ;;  %v5369_v52 = vrot.slane %v5368_v53, 1  ;;  %v5486_v4 = vadd.f32 %v12439_v2, %v5485_v21  ;;  %v5476_v7 = vadd.f32 %v5475_v34, %v5474_v54  ;;  %v5702_v45 = vmul.f32 %v5628_v49, %v12448_v29 }
 0x50b   : > { %v12455_v40 = vpop.eup %8028  ;;  %v5701_v61 = vmul.f32 %v14286_v18, %v12434_v19  ;;  %v5375_v23 = vrot.slane %v5374_v1, 1  ;;  %v5492_v56 = vadd.f32 %v12445_v5, %v5491_v31  ;;  %v5482_v51 = vadd.f32 %v5481_v9, %v5480_v60 }
 0x50c   : > { %v5497_v22 = vrot.slane %v12455_v40, 4  ;;  %v5370_v24 = vmax.f32 %v5368_v53, %v5369_v52  ;;  %v5487_v41 = vrot.slane %v5486_v4, 2  ;;  %v5753_v54 = vmul.f32 %v12337_v38, %v5705_v48 }
 0x50d   : > { %v5376_v16 = vmax.f32 %v5374_v1, %v5375_v23  ;;  %v12465_v10 = vpop.eup %8030  ;;  %v5749_v33 = vmul.f32 %v12337_v38, %v5701_v61  ;;  %v5493_v18 = vrot.slane %v5492_v56, 2  ;;  %v5750_v34 = vmul.f32 %v12345_v39, %v5702_v45 }
 0x50e   : > { %v5498_v44 = vadd.f32 %v12455_v40, %v5497_v22  ;;  %v5391_v21 = vsub.f32 %v12394_v35, %v5370_v24  ;;  %v5503_v53 = vrot.slane %v12465_v10, 4  ;;  %v5706_v60 = vmul.f32 %v5644_v59, %v12452_v63 }
 0x50f   : > { %v5392_v49 = vsub.f32 %v12412_v28, %v5376_v16  ;;  %v5477_v9 = vrot.slane %v5476_v7, 1  ;;  %v5483_v52 = vrot.slane %v5482_v51, 1  ;;  %v5488_v61 = vadd.f32 %v5487_v41, %v5486_v4 }
 0x510   : > { %v5499_v1 = vrot.slane %v5498_v44, 2  ;;  %v5421_v31 = vmul.f32 1.442695, %v5391_v21  ;;  %v5504_v23 = vadd.f32 %v12465_v10, %v5503_v53  ;;  %v5754_v35 = vmul.f32 %v12345_v39, %v5706_v60 }
 0x511   : > { %v5423_v22 = vmul.f32 1.442695, %v5392_v49  ;;  %v5765_v24 = vrot.slane %v5749_v33, 4  ;;  %v5494_v48 = vadd.f32 %v5493_v18, %v5492_v56  ;;  %v5771_v45 = vrot.slane %v5750_v34, 4 }
 0x512   : > { %8036 = vpow2.f32 %v5421_v31  ;;  %v5500_v29 = vadd.f32 %v5499_v1, %v5498_v44  ;;  %v5505_v13 = vrot.slane %v5504_v23, 2  ;;  %v8033_v28 = vpop.eup %8032  ;;  %v5478_v41 = vadd.f32 %v5477_v9, %v5476_v7 }
 0x513   : > { %8038 = vpow2.f32 %v5423_v22  ;;  %v8035_v21 = vpop.eup %8034  ;;  %v5484_v49 = vadd.f32 %v5483_v52, %v5482_v51  ;;  %v5489_v56 = vrot.slane %v5488_v61, 1  ;;  %v5789_v60 = vrot.slane %v5753_v54, 4 }
 0x514   : > { %v5506_v18 = vadd.f32 %v5505_v13, %v5504_v23  ;;  %v5795_v44 = vrot.slane %v5754_v35, 4  ;;  %v12483_v1 = vadd.f32 %v5765_v24, %v5749_v33  ;;  %v5495_v31 = vrot.slane %v5494_v48, 1  ;;  %v12545_v33 = vld [vmem:[%s8681_s27 + $0x98] sm:$0xff] }
 0x515   : > { %v12485_v22 = vadd.f32 %v5771_v45, %v5750_v34  ;;  %v5501_v59 = vrot.slane %v5500_v29, 1  ;;  %v5153_v7 = vmul.f32 0.6931472, %v12327_v43  ;;  %v12491_v9 = vmul.f32 %v8033_v28, %v12376_v14 }
 0x516   : > { %v12494_v51 = vmul.f32 %v8035_v21, %v12378_v47  ;;  %8040 = vrcp.f32 %v5478_v41  ;;  %v5507_v13 = vrot.slane %v5506_v18, 1  ;;  %v5490_v34 = vadd.f32 %v5489_v56, %v5488_v61  ;;  %v12505_v47 = vld [vmem:[%s8681_s27 + $0x90] sm:$0xff] }
 0x517   : > { %14287 = vst [vmem:[#allocation51_spill] sm:$0xff] %v12491_v9  ;;  %8042 = vrcp.f32 %v5484_v49  ;;  %v5155_v52 = vmul.f32 0.6931472, %v12332_v20  ;;  %v12499_v23 = vadd.f32 %v5789_v60, %v5753_v54  ;;  %v12501_v43 = vadd.f32 %v5795_v44, %v5754_v35  ;;  %v5164_v60 = vpop.permute.xlu0 %5163 }
 0x518   : > { %14288 = vst [vmem:[#allocation52_spill] sm:$0xff] %v12494_v51  ;;  %v5496_v24 = vadd.f32 %v5495_v31, %v5494_v48  ;;  %v5502_v28 = vadd.f32 %v5501_v59, %v5500_v29  ;;  %v12508_v41 = vadd.f32 -4.6051702, %v5153_v7  ;;  %v12512_v61 = vcombine.high %v12437_v46, %v12437_v46  ;;  %v5108_v29 = vld [vmem:[%s8681_s27 + $0xa0] sm:$0xff]  ;;  %v5109_v59 = vld [vmem:[%s8681_s27 + $0xa8] sm:$0xff]  ;;  %s6906_s27 = sshll.u32 %s404_s15, 4  ;;  %s13663_s27 = int_to_ptr.vmem [resolvable:$true] %s6906_s27 }
 0x519   : > { %v14290_v20 = vrot.slane %v12408_v57, %v14276_v15  ;;  %v14291_v35 = vrot.slane %v12408_v57, %v14277_v12  ;;  %v5508_v49 = vadd.f32 %v5507_v13, %v5506_v18  ;;  %v12528_v56 = vcombine.high %v12443_v6, %v12443_v6  ;;  %s8313_s17 = scalar_lea.vmem %s13663_s27, 32  ;;  %p8320_p2 = scmp.lt.s32.totalorder %s13663_s27, %s8318_s0 }
 0x51a   : > { %14289 = vst [vmem:[#allocation53_spill] sm:$0xff] %v12508_v41  ;;  %8044 = vrcp.f32 %v5490_v34  ;;  %v12533_v7 = vadd.f32 -4.6051702, %v5155_v52  ;;  %v12547_v34 = vadd.f32 %v5164_v60, %v5108_v29  ;;  %v12549_v52 = vadd.f32 %v5164_v60, %v5109_v59  ;;  %p8314_p3 = scmp.ne.s32.totalorder %s13663_s27, %s8313_s17  ;;  %p8321_p7 = scmp.lt.s32.totalorder %s8319_s18, %s8313_s17 }
 0x51b   : > { %v5707_v54 = vmul.f32 %v14290_v20, %v12491_v9  ;;  %v5708_v48 = vmul.f32 %v14291_v35, %v12494_v51  ;;  %8046 = vrcp.f32 %v5496_v24 }
 0x51c   : > { %v12514_v21 = vpop.eup %8036  ;;  %14292 = vst [vmem:[#allocation54_spill] sm:$0xff] %v12533_v7  ;;  %8048 = vrcp.f32 %v5502_v28  ;;  %v5245_v29 = vrot.slane %v12549_v52, 4  ;;  %p8315_p10 = pnand %p8314_p3, %p14531_p5  ;;  %p8322_p4 = por %p8321_p7, %p8320_p2 }
 0x51d   : > { %v12530_v44 = vpop.eup %8038  ;;  %v5509_v31 = vrot.slane %v12514_v21, 4  ;;  %v12537_v57 = vmul.f32 %v12337_v38, %v5707_v54  ;;  %v12540_v18 = vmul.f32 %v12345_v39, %v5708_v48  ;;  %8050 = vrcp.f32 %v5508_v49 }
 0x51e   : > { %v5515_v13 = vrot.slane %v12530_v44, 4  ;;  %v5246_v59 = vmax.f32 %v12549_v52, %v5245_v29  ;;  %p8316_p12 = pneg %p8315_p10 }
 0x51f   : > { %v5510_v35 = vadd.f32 %v12514_v21, %v5509_v31  ;;  %v5239_v31 = vrot.slane %v12547_v34, 4  ;;  %v14314_v29 = vrot.slane %v12540_v18, 4 }
 0x520   : > { %v5516_v20 = vadd.f32 %v12530_v44, %v5515_v13  ;;  %v8041_v16 = vpop.eup %8040  ;;  %p8323_p8 = pnand %p8322_p4, %p8316_p12 }
 0x521   : > { %v5511_v48 = vrot.slane %v5510_v35, 2  ;;  %v8043_v54 = vpop.eup %8042  ;;  %v5240_v28 = vmax.f32 %v12547_v34, %v5239_v31  ;;  %v12571_v9 = vmul.f32 %v8041_v16, %v12396_v30 }
 0x522   : > { %v5517_v49 = vrot.slane %v5516_v20, 2 }
 0x523   : > { %v5512_v45 = vadd.f32 %v5511_v48, %v5510_v35  ;;  %14293 = vst [vmem:[#allocation55_spill] sm:$0xff] %v12571_v9  ;;  %v5241_v63 = vrot.slane %v5240_v28, 2  ;;  %v12575_v35 = vmul.f32 %v8043_v54, %v12399_v17  ;;  %v14295_v54 = vrot.slane %v12437_v46, %v14276_v15 }
 0x524   : > { %v5518_v53 = vadd.f32 %v5517_v49, %v5516_v20  ;;  %v5247_v20 = vrot.slane %v5246_v59, 2  ;;  %v8045_v49 = vpop.eup %8044 }
 0x525   : > { %v5513_v60 = vrot.slane %v5512_v45, 1  ;;  %14294 = vst [vmem:[#allocation56_spill] sm:$0xff] %v12575_v35  ;;  %v5242_v14 = vmax.f32 %v5240_v28, %v5241_v63  ;;  %v8047_v30 = vpop.eup %8046  ;;  %v5709_v31 = vmul.f32 %v14295_v54, %v12571_v9  ;;  %v14296_v63 = vrot.slane %v12437_v46, %v14277_v12 }
 0x526   : > { %v5519_v48 = vrot.slane %v5518_v53, 1  ;;  %v5248_v19 = vmax.f32 %v5246_v59, %v5247_v20  ;;  %v8049_v17 = vpop.eup %8048  ;;  %v12599_v13 = vmul.f32 %v8047_v30, %v12445_v5  ;;  %v14305_v30 = vrot.slane %v12443_v6, %v14276_v15 }
 0x527   : > { %v5514_v4 = vadd.f32 %v5513_v60, %v5512_v45  ;;  %v5243_v60 = vrot.slane %v5242_v14, 1  ;;  %v8051_v51 = vpop.eup %8050  ;;  %v12596_v45 = vmul.f32 %v8045_v49, %v12439_v2  ;;  %v12602_v46 = vmul.f32 %v8049_v17, %v12455_v40 }
 0x528   : > { %v5520_v16 = vadd.f32 %v5519_v48, %v5518_v53  ;;  %v5710_v53 = vmul.f32 %v14296_v63, %v12575_v35  ;;  %v5249_v59 = vrot.slane %v5248_v19, 1  ;;  %14298 = vst [vmem:[#allocation58_spill] sm:$0xff] %v12599_v13  ;;  %v5757_v63 = vmul.f32 %v12337_v38, %v5709_v31 }
 0x529   : > { %8052 = vrcp.f32 %v5514_v4  ;;  %v5244_v4 = vmax.f32 %v5242_v14, %v5243_v60  ;;  %14297 = vst [vmem:[#allocation57_spill] sm:$0xff] %v12596_v45  ;;  %14299 = vst [vmem:[#allocation59_spill] sm:$0xff] %v12602_v46  ;;  %v12606_v28 = vmul.f32 %v8051_v51, %v12465_v10  ;;  %v14303_v10 = vrot.slane %v12483_v1, 2 }
 0x52a   : > { %8054 = vrcp.f32 %v5520_v16  ;;  %v5250_v16 = vmax.f32 %v5248_v19, %v5249_v59  ;;  %v5758_v2 = vmul.f32 %v12345_v39, %v5710_v53  ;;  %v5711_v17 = vmul.f32 %v14305_v30, %v12596_v45 }
 0x52b   : > { %14300 = vst [vmem:[#allocation60_spill] sm:$0xff] %v12606_v28  ;;  %v12610_v54 = vsub.f32 %v12547_v34, %v5244_v4  ;;  %v5768_v51 = vadd.f32 %v14303_v10, %v12483_v1  ;;  %v14304_v34 = vrot.slane %v12485_v22, 2  ;;  %v14307_v53 = vrot.slane %v12512_v61, %v14276_v15 }
 0x52c   : > { %v12616_v40 = vsub.f32 %v12549_v52, %v5250_v16  ;;  %v14306_v52 = vrot.slane %v12443_v6, %v14277_v12  ;;  %v5759_v6 = vmul.f32 %v12337_v38, %v5711_v17  ;;  %v5819_v5 = vrot.slane %v5758_v2, 4 }
 0x52d   : > { %14301 = vst [vmem:[#allocation61_spill] sm:$0xff] %v12610_v54  ;;  %v5253_v31 = vmul.f32 1.442695, %v12610_v54  ;;  %v5774_v49 = vadd.f32 %v14304_v34, %v12485_v22  ;;  %v5713_v59 = vmul.f32 %v14307_v53, %v12602_v46  ;;  %v14308_v22 = vrot.slane %v12512_v61, %v14277_v12 }
 0x52e   : > { %14302 = vst [vmem:[#allocation62_spill] sm:$0xff] %v12616_v40  ;;  %v5712_v60 = vmul.f32 %v14306_v52, %v12599_v13  ;;  %v5255_v1 = vmul.f32 1.442695, %v12616_v40  ;;  %v5769_v17 = vrot.slane %v5768_v51, 1  ;;  %v5813_v53 = vrot.slane %v5757_v63, 4 }
 0x52f   : > { %v5714_v4 = vmul.f32 %v14308_v22, %v12606_v28  ;;  %8056 = vpow2.f32 %v5253_v31  ;;  %v5761_v30 = vmul.f32 %v12337_v38, %v5713_v59  ;;  %v14311_v61 = vrot.slane %v12528_v56, %v14276_v15 }
 0x530   : > { %8058 = vpow2.f32 %v5255_v1  ;;  %v5760_v34 = vmul.f32 %v12345_v39, %v5712_v60  ;;  %v5775_v1 = vrot.slane %v5774_v49, 1  ;;  %v5825_v19 = vrot.slane %v5759_v6, 4 }
 0x531   : > { %v5762_v22 = vmul.f32 %v12345_v39, %v5714_v4  ;;  %v14312_v31 = vrot.slane %v12528_v56, %v14277_v12  ;;  %v12673_v24 = vadd.f32 %v5769_v17, %v5768_v51  ;;  %v5791_v12 = vrot.slane %v12499_v23, 2 }
 0x532   : > { %v5831_v14 = vrot.slane %v5760_v34, 4  ;;  %v5814_v56 = vadd.f32 %v5813_v53, %v5757_v63 }
 0x533   : > { %v8053_v52 = vpop.eup %8052  ;;  %v5843_v20 = vrot.slane %v5762_v22, 4 }
 0x534   : > { %v8055_v16 = vpop.eup %8054  ;;  %v12653_v10 = vmul.f32 %v8053_v52, %v12514_v21  ;;  %v5837_v21 = vrot.slane %v5761_v30, 4  ;;  %v5808_v52 = vadd.f32 %v14314_v29, %v12540_v18  ;;  %v5832_v28 = vadd.f32 %v5831_v14, %v5760_v34 }
 0x535   : > { %v12657_v60 = vmul.f32 %v8055_v16, %v12530_v44  ;;  %v14313_v16 = vrot.slane %v12537_v57, 4  ;;  %v14316_v34 = vrot.slane %v12431_v55, 2 }
 0x536   : > { %14309 = vst [vmem:[#allocation63_spill] sm:$0xff] %v12653_v10  ;;  %v5715_v4 = vmul.f32 %v14311_v61, %v12653_v10  ;;  %v12675_v61 = vadd.f32 %v5775_v1, %v5774_v49  ;;  %v5844_v49 = vadd.f32 %v5843_v20, %v5762_v22  ;;  %v5809_v63 = vrot.slane %v5808_v52, 2 }
 0x537   : > { %14310 = vst [vmem:[#allocation64_spill] sm:$0xff] %v12657_v60  ;;  %v5716_v44 = vmul.f32 %v14312_v31, %v12657_v60  ;;  %v5802_v59 = vadd.f32 %v14313_v16, %v12537_v57  ;;  %v5820_v31 = vadd.f32 %v5819_v5, %v5758_v2  ;;  %v5826_v60 = vadd.f32 %v5825_v19, %v5759_v6 }
 0x538   : > { %v5763_v48 = vmul.f32 %v12337_v38, %v5715_v4  ;;  %v5838_v57 = vadd.f32 %v5837_v21, %v5761_v30  ;;  %v5797_v38 = vrot.slane %v12501_v43, 2  ;;  %v5815_v5 = vrot.slane %v5814_v56, 2 }
 0x539   : > { %v5764_v10 = vmul.f32 %v12345_v39, %v5716_v44  ;;  %v12682_v46 = vpop.eup %8056  ;;  %v5803_v51 = vrot.slane %v5802_v59, 2  ;;  %v14315_v39 = vrot.slane %v12429_v26, 2  ;;  %v5821_v19 = vrot.slane %v5820_v31, 2 }
 0x53a   : > { %v5849_v16 = vrot.slane %v5763_v48, 4  ;;  %v12685_v1 = vpop.eup %8058  ;;  %v5257_v18 = vrot.slane %v12682_v46, 4  ;;  %v5786_v20 = vadd.f32 %v14316_v34, %v12431_v55  ;;  %v5827_v30 = vrot.slane %v5826_v60, 2 }
 0x53b   : > { %v5855_v17 = vrot.slane %v5764_v10, 4  ;;  %v5780_v29 = vadd.f32 %v14315_v39, %v12429_v26  ;;  %v5263_v14 = vrot.slane %v12685_v1, 4  ;;  %v5833_v53 = vrot.slane %v5832_v28, 2 }
 0x53c   : > { %v5850_v2 = vadd.f32 %v5849_v16, %v5763_v48  ;;  %v5839_v22 = vrot.slane %v5838_v57, 2  ;;  %v5792_v4 = vadd.f32 %v5791_v12, %v12499_v23  ;;  %v5798_v21 = vadd.f32 %v5797_v38, %v12501_v43 }
 0x53d   : > { %v5856_v6 = vadd.f32 %v5855_v17, %v5764_v10  ;;  %v5804_v44 = vadd.f32 %v5803_v51, %v5802_v59  ;;  %v5845_v26 = vrot.slane %v5844_v49, 2  ;;  %v5258_v48 = vadd.f32 %v12682_v46, %v5257_v18 }
 0x53e   : > { %v5810_v16 = vadd.f32 %v5809_v63, %v5808_v52  ;;  %v5851_v39 = vrot.slane %v5850_v2, 2  ;;  %v5264_v10 = vadd.f32 %v12685_v1, %v5263_v14  ;;  %v5781_v17 = vrot.slane %v5780_v29, 1 }
 0x53f   : > { %v5857_v13 = vrot.slane %v5856_v6, 2  ;;  %v5816_v45 = vadd.f32 %v5815_v5, %v5814_v56  ;;  %v5822_v35 = vadd.f32 %v5821_v19, %v5820_v31  ;;  %v5787_v55 = vrot.slane %v5786_v20, 1 }
 0x540   : > { %v5828_v34 = vadd.f32 %v5827_v30, %v5826_v60  ;;  %v5834_v9 = vadd.f32 %v5833_v53, %v5832_v28  ;;  %v5840_v27 = vadd.f32 %v5839_v22, %v5838_v57  ;;  %v5793_v0 = vrot.slane %v5792_v4, 1 }
 0x541   : > { %v5799_v23 = vrot.slane %v5798_v21, 1  ;;  %v5805_v12 = vrot.slane %v5804_v44, 1  ;;  %v5846_v43 = vadd.f32 %v5845_v26, %v5844_v49  ;;  %v5259_v59 = vrot.slane %v5258_v48, 2 }
 0x542   : > { %v5811_v38 = vrot.slane %v5810_v16, 1  ;;  %v5852_v51 = vadd.f32 %v5851_v39, %v5850_v2  ;;  %v5858_v18 = vadd.f32 %v5857_v13, %v5856_v6  ;;  %v5265_v52 = vrot.slane %v5264_v10, 2 }
 0x543   : > { %v5782_v63 = vadd.f32 %v5781_v17, %v5780_v29  ;;  %v5817_v37 = vrot.slane %v5816_v45, 1  ;;  %v5823_v8 = vrot.slane %v5822_v35, 1  ;;  %v5788_v14 = vadd.f32 %v5787_v55, %v5786_v20 }
 0x544   : > { %v5829_v58 = vrot.slane %v5828_v34, 1  ;;  %v5835_v56 = vrot.slane %v5834_v9, 1  ;;  %v5841_v31 = vrot.slane %v5840_v27, 1  ;;  %v5794_v5 = vadd.f32 %v5793_v0, %v5792_v4 }
 0x545   : > { %v5800_v60 = vadd.f32 %v5799_v23, %v5798_v21  ;;  %v5806_v28 = vadd.f32 %v5805_v12, %v5804_v44  ;;  %v5847_v57 = vrot.slane %v5846_v43, 1  ;;  %v5260_v19 = vadd.f32 %v5259_v59, %v5258_v48 }
 0x546   : > { %v5812_v30 = vadd.f32 %v5811_v38, %v5810_v16  ;;  %v5853_v53 = vrot.slane %v5852_v51, 1  ;;  %v5859_v49 = vrot.slane %v5858_v18, 1  ;;  %v5266_v22 = vadd.f32 %v5265_v52, %v5264_v10 }
 0x547   : > { %v5818_v26 = vadd.f32 %v5817_v37, %v5816_v45  ;;  %v5824_v2 = vadd.f32 %v5823_v8, %v5822_v35  ;;  %v12701_v13 = vadd.f32 %v12673_v24, %v12505_v47  ;;  %v5830_v29 = vadd.f32 %v5829_v58, %v5828_v34 }
 0x548   : > { %v5836_v6 = vadd.f32 %v5835_v56, %v5834_v9  ;;  %v5842_v20 = vadd.f32 %v5841_v31, %v5840_v27  ;;  %v12705_v0 = vadd.f32 %v12675_v61, %v12545_v33  ;;  %v5848_v4 = vadd.f32 %v5847_v57, %v5846_v43 }
 0x549   : > { %14317 = vst [vmem:[#allocation65_spill] sm:$0xff] %v12701_v13  ;;  %v14319_v21 = vrot.slane %v12505_v47, 1  ;;  %v14321_v48 = vrot.slane %v12545_v33, 1  ;;  %v14323_v8 = vrot.slane %v12505_v47, 2  ;;  %v5261_v58 = vrot.slane %v5260_v19, 1 }
 0x54a   : > { %14318 = vst [vmem:[#allocation66_spill] sm:$0xff] %v12705_v0  ;;  %v5854_v9 = vadd.f32 %v5853_v53, %v5852_v51  ;;  %v5860_v27 = vadd.f32 %v5859_v49, %v5858_v18  ;;  %v14325_v35 = vrot.slane %v12545_v33, 2  ;;  %v5267_v61 = vrot.slane %v5266_v22, 1 }
 0x54b   : > { %v12709_v44 = vadd.f32 %v14319_v21, %v5782_v63  ;;  %v12713_v37 = vadd.f32 %v14321_v48, %v5788_v14  ;;  %v12717_v24 = vadd.f32 %v14323_v8, %v5794_v5  ;;  %v14327_v16 = vrot.slane %v12505_v47, 3 }
 0x54c   : > { %v12721_v45 = vadd.f32 %v14325_v35, %v5800_v60  ;;  %v14329_v10 = vrot.slane %v12545_v33, 3  ;;  %v14331_v55 = vrot.slane %v12505_v47, 4  ;;  %v14333_v23 = vrot.slane %v12545_v33, 4  ;;  %v14349_v35 = vld [vmem:[#allocation38_spill] sm:$0xff] }
 0x54d   : > { %14320 = vst [vmem:[#allocation67_spill] sm:$0xff] %v12709_v44  ;;  %14322 = vst [vmem:[#allocation68_spill] sm:$0xff] %v12713_v37  ;;  %v12725_v39 = vadd.f32 %v14327_v16, %v5806_v28  ;;  %v14335_v43 = vrot.slane %v12505_v47, 5  ;;  %v14337_v38 = vrot.slane %v12545_v33, 5  ;;  %v14339_v18 = vrot.slane %v12505_v47, 6 }
 0x54e   : > { %14324 = vst [vmem:[#allocation69_spill] sm:$0xff] %v12717_v24  ;;  %14326 = vst [vmem:[#allocation70_spill] sm:$0xff] %v12721_v45  ;;  %v12729_v17 = vadd.f32 %v14329_v10, %v5812_v30  ;;  %v12733_v34 = vadd.f32 %v14331_v55, %v5818_v26  ;;  %v12737_v12 = vadd.f32 %v14333_v23, %v5824_v2  ;;  %v14341_v63 = vrot.slane %v12545_v33, 6 }
 0x54f   : > { %14328 = vst [vmem:[#allocation71_spill] sm:$0xff] %v12725_v39  ;;  %v12741_v59 = vadd.f32 %v14335_v43, %v5830_v29  ;;  %v12745_v51 = vadd.f32 %v14337_v38, %v5836_v6  ;;  %v12749_v52 = vadd.f32 %v14339_v18, %v5842_v20  ;;  %v12756_v56 = vsub.f32 0.0, %v12701_v13  ;;  %v14352_v38 = vld [vmem:[#allocation24_spill] sm:$0xff]  ;;  %v14353_v18 = vld [vmem:[#allocation37_spill] sm:$0xff] }
 0x550   : > { %14330 = vst [vmem:[#allocation72_spill] sm:$0xff] %v12729_v17  ;;  %14332 = vst [vmem:[#allocation73_spill] sm:$0xff] %v12733_v34  ;;  %v12753_v14 = vadd.f32 %v14341_v63, %v5848_v4  ;;  %v12759_v31 = vsub.f32 0.0, %v12705_v0  ;;  %v12762_v5 = vsub.f32 0.0, %v12709_v44  ;;  %v5262_v60 = vadd.f32 %v5261_v58, %v5260_v19 }
 0x551   : > { %14334 = vst [vmem:[#allocation74_spill] sm:$0xff] %v12737_v12  ;;  %14336 = vst [vmem:[#allocation75_spill] sm:$0xff] %v12741_v59  ;;  %v14343_v28 = vrot.slane %v12505_v47, 7  ;;  %v14345_v30 = vrot.slane %v12545_v33, 7  ;;  %v12773_v49 = vsub.f32 0.0, %v12713_v37  ;;  %v5268_v26 = vadd.f32 %v5267_v61, %v5266_v22  ;;  %v14350_v61 = vld [vmem:[#allocation36_spill] sm:$0xff] }
 0x552   : > { %14338 = vst [vmem:[#allocation76_spill] sm:$0xff] %v12745_v51  ;;  %14340 = vst [vmem:[#allocation77_spill] sm:$0xff] %v12749_v52  ;;  %v12776_v2 = vsub.f32 0.0, %v12717_v24  ;;  %v12779_v29 = vsub.f32 0.0, %v12721_v45  ;;  %v12782_v19 = vsub.f32 0.0, %v12725_v39  ;;  %8060 = vrcp.f32 %v5262_v60 }
 0x553   : > { %14342 = vst [vmem:[#allocation78_spill] sm:$0xff] %v12753_v14  ;;  %v12766_v57 = vadd.f32 %v14343_v28, %v5854_v9  ;;  %v12770_v53 = vadd.f32 %v14345_v30, %v5860_v27  ;;  %v12785_v47 = vsub.f32 0.0, %v12729_v17  ;;  %v12788_v33 = vsub.f32 0.0, %v12733_v34 }
 0x554   : > { %v12791_v6 = vsub.f32 0.0, %v12737_v12  ;;  %8062 = vrcp.f32 %v5268_v26  ;;  %v12794_v22 = vsub.f32 0.0, %v12741_v59  ;;  %v12797_v20 = vsub.f32 0.0, %v12745_v51 }
 0x555   : > { %14344 = vst [vmem:[#allocation79_spill] sm:$0xff] %v12766_v57  ;;  %14346 = vst [vmem:[#allocation80_spill] sm:$0xff] %v12770_v53  ;;  %v12800_v4 = vsub.f32 0.0, %v12749_v52  ;;  %8064 = vlog2.f32 %v5262_v60  ;;  %v12803_v21 = vsub.f32 0.0, %v12753_v14  ;;  %v12806_v48 = vsub.f32 0.0, %v12766_v57 }
 0x556   : > { %v12809_v8 = vsub.f32 0.0, %v12770_v53  ;;  %v5973_v9 = vand.u32 2147483647, %v12756_v56  ;;  %v5974_v27 = vand.u32 2147483647, %v12759_v31  ;;  %v14351_v16 = vmax.f32 %v14349_v35, %v14350_v61 }
 0x557   : > { %14347 = vst [vmem:[#allocation81_spill] sm:$0xff] %v12806_v48  ;;  %v5975_v23 = vand.u32 2147483647, %v12762_v5  ;;  %v5976_v43 = vand.u32 2147483647, %v12773_v49  ;;  %v14354_v63 = vmax.f32 %v14352_v38, %v14353_v18  ;;  %8066 = vlog2.f32 %v5268_v26 }
 0x558   : > { %14348 = vst [vmem:[#allocation82_spill] sm:$0xff] %v12809_v8  ;;  %v12818_v10 = vmax.f32 %v14351_v16, %v12248_v32  ;;  %v5977_v35 = vand.u32 2147483647, %v12776_v2  ;;  %v5978_v32 = vand.u32 2147483647, %v12779_v29  ;;  %v5989_v38 = vsub.f32 0.0, %v5973_v9 }
 0x559   : > { %v12827_v60 = vmax.f32 %v14354_v63, %v12262_v36  ;;  %v5979_v61 = vand.u32 2147483647, %v12782_v19  ;;  %v5980_v16 = vand.u32 2147483647, %v12785_v47  ;;  %v5981_v55 = vand.u32 2147483647, %v12788_v33 }
 0x55a   : > { %v5982_v58 = vand.u32 2147483647, %v12791_v6  ;;  %v5983_v36 = vand.u32 2147483647, %v12794_v22  ;;  %v5990_v18 = vsub.f32 0.0, %v5974_v27  ;;  %v5991_v28 = vsub.f32 0.0, %v5975_v23 }
 0x55b   : > { %v5984_v63 = vand.u32 2147483647, %v12797_v20  ;;  %v5985_v30 = vand.u32 2147483647, %v12800_v4  ;;  %v5992_v40 = vsub.f32 0.0, %v5976_v43  ;;  %v5993_v41 = vsub.f32 0.0, %v5977_v35 }
 0x55c   : > { %v5986_v15 = vand.u32 2147483647, %v12803_v21  ;;  %v5987_v7 = vand.u32 2147483647, %v12806_v48  ;;  %v12843_v53 = vpop.eup %8060  ;;  %v5988_v57 = vand.u32 2147483647, %v12809_v8  ;;  %vm5941_vm7 = vcmp.ne.f32.partialorder %v12756_v56, %v12756_v56 }
 0x55d   : > { %v5994_v14 = vsub.f32 0.0, %v5978_v32  ;;  %v5995_v9 = vsub.f32 0.0, %v5979_v61  ;;  %v5996_v27 = vsub.f32 0.0, %v5980_v16  ;;  %v5997_v51 = vsub.f32 0.0, %v5981_v55 }
 0x55e   : > { %v12846_v52 = vpop.eup %8062  ;;  %v6005_v59 = vmul.f32 1.442695, %v5989_v38  ;;  %v6007_v23 = vmul.f32 1.442695, %v5990_v18  ;;  %v6550_v43 = vsel %vm6539_vm8, %v12162_v11, -inf  ;;  %v5998_v12 = vsub.f32 0.0, %v5982_v58 }
 0x55f   : > { %v8065_v26 = vpop.eup %8064  ;;  %v6009_v34 = vmul.f32 1.442695, %v5991_v28  ;;  %v6011_v17 = vmul.f32 1.442695, %v5992_v40  ;;  %v6551_v35 = vmax.f32 %v12818_v10, %v6550_v43  ;;  %v5999_v39 = vsub.f32 0.0, %v5983_v36 }
 0x560   : > { %v6000_v45 = vsub.f32 0.0, %v5984_v63  ;;  %8068 = vpow2.f32 %v6005_v59  ;;  %v6013_v32 = vmul.f32 1.442695, %v5993_v41  ;;  %v6001_v61 = vsub.f32 0.0, %v5985_v30  ;;  %v14355_v41 = vld [vmem:[#allocation30_spill] sm:$0xff] }
 0x561   : > { %v6002_v16 = vsub.f32 0.0, %v5986_v15  ;;  %8070 = vpow2.f32 %v6007_v23  ;;  %v6015_v24 = vmul.f32 1.442695, %v5994_v14  ;;  %v6003_v55 = vsub.f32 0.0, %v5987_v7  ;;  %v8067_v37 = vpop.eup %8066  ;;  %v14356_v59 = vld [vmem:[#allocation22_spill] sm:$0xff]  ;;  %v14358_v7 = vld [vmem:[#allocation25_spill] sm:$0xff] }
 0x562   : > { %8072 = vpow2.f32 %v6009_v34  ;;  %v6017_v38 = vmul.f32 1.442695, %v5995_v9  ;;  %v6019_v18 = vmul.f32 1.442695, %v5996_v27  ;;  %v6021_v11 = vmul.f32 1.442695, %v5997_v51 }
 0x563   : > { %8074 = vpow2.f32 %v6011_v17  ;;  %v6023_v58 = vmul.f32 1.442695, %v5998_v12  ;;  %v6552_v40 = vsel %vm6539_vm8, %v12329_v42, -inf  ;;  %v14357_v15 = vmax.f32 %v14355_v41, %v14356_v59  ;;  %v14359_v34 = vld [vmem:[#allocation44_spill] sm:$0xff] }
 0x564   : > { %8076 = vpow2.f32 %v6013_v32  ;;  %v6553_v10 = vmax.f32 %v12827_v60, %v6552_v40  ;;  %v14360_v14 = vmax.f32 %v14358_v7, %v14359_v34  ;;  %v6025_v17 = vmul.f32 1.442695, %v5999_v39  ;;  %v14433_v40 = vld [vmem:[#allocation68_spill] sm:$0xff] }
 0x565   : > { %v6562_v28 = vmax.f32 %v14357_v15, %v12258_v62  ;;  %8078 = vpow2.f32 %v6015_v24  ;;  %v6565_v12 = vsel %vm6539_vm8, %v12205_v50, -inf  ;;  %v6567_v51 = vsel %vm6539_vm8, %v12334_v25, -inf }
 0x566   : > { %v6564_v30 = vmax.f32 %v14360_v14, %v12282_v3  ;;  %8080 = vpow2.f32 %v6017_v38  ;;  %v12866_v60 = vmax.f32 %v6551_v35, %v6553_v10  ;;  %v6004_v9 = vsub.f32 0.0, %v5988_v57 }
 0x567   : > { %v6566_v36 = vmax.f32 %v6562_v28, %v6565_v12  ;;  %8082 = vpow2.f32 %v6019_v18  ;;  %v6027_v27 = vmul.f32 1.442695, %v6000_v45  ;;  %v6029_v24 = vmul.f32 1.442695, %v6001_v61 }
 0x568   : > { %14361 = vst [vmem:[#allocation38_spill] sm:$0xff] %v12866_v60  ;;  %v6568_v63 = vmax.f32 %v6564_v30, %v6567_v51  ;;  %8084 = vpow2.f32 %v6021_v11  ;;  %v6031_v35 = vmul.f32 1.442695, %v6002_v16  ;;  %v6033_v57 = vmul.f32 1.442695, %v6003_v55 }
 0x569   : > { %8086 = vpow2.f32 %v6023_v58  ;;  %v6035_v18 = vmul.f32 1.442695, %v6004_v9  ;;  %v12882_v41 = vmul.f32 0.6931472, %v8065_v26  ;;  %v12902_v12 = vmul.f32 %v12846_v52, %v12685_v1 }
 0x56a   : > { %v12870_v39 = vmax.f32 %v6566_v36, %v6568_v63  ;;  %v8069_v32 = vpop.eup %8068  ;;  %8088 = vpow2.f32 %v6025_v17  ;;  %v12898_v17 = vmul.f32 %v12843_v53, %v12682_v46  ;;  %v12907_v63 = vmul.f32 0.6931472, %v8067_v37 }
 0x56b   : > { %v12876_v45 = vpop.eup %8070  ;;  %8090 = vpow2.f32 %v6027_v27  ;;  %14363 = vst [vmem:[#allocation24_spill] sm:$0xff] %v12882_v41  ;;  %v6037_v58 = vadd.f32 1.0, %v8069_v32  ;;  %v6040_v55 = vmul.f32 -0.5, %v8069_v32  ;;  %14365 = vst [vmem:[#allocation30_spill] sm:$0xff] %v12902_v12  ;;  %vm5945_vm4 = vcmp.ne.f32.partialorder %v12776_v2, %v12776_v2 }
 0x56c   : > { %14362 = vst [vmem:[#allocation36_spill] sm:$0xff] %v12870_v39  ;;  %v12880_v10 = vpop.eup %8072  ;;  %8092 = vpow2.f32 %v6029_v24  ;;  %v6046_v15 = vadd.f32 1.0, %v12876_v45  ;;  %v6049_v28 = vmul.f32 -0.5, %v12876_v45  ;;  %14364 = vst [vmem:[#allocation37_spill] sm:$0xff] %v12898_v17  ;;  %vm5952_vm5 = vcmp.ne.f32.partialorder %v12797_v20, %v12797_v20 }
 0x56d   : > { %v12885_v59 = vpop.eup %8074  ;;  %8094 = vpow2.f32 %v6031_v35  ;;  %v6055_v26 = vadd.f32 1.0, %v12880_v10  ;;  %14366 = vst [vmem:[#allocation22_spill] sm:$0xff] %v12907_v63  ;;  %v6058_v27 = vmul.f32 -0.5, %v12880_v10  ;;  %v6041_v46 = vadd.f32 1.0, %v6040_v55 }
 0x56e   : > { %v12889_v7 = vpop.eup %8076  ;;  %8096 = vpow2.f32 %v6033_v57  ;;  %v6064_v51 = vadd.f32 1.0, %v12885_v59  ;;  %v6050_v53 = vadd.f32 1.0, %v6049_v28  ;;  %v6043_v35 = vand.u32 2147483647, %v8069_v32 }
 0x56f   : > { %v12894_v30 = vpop.eup %8078  ;;  %8098 = vpow2.f32 %v6035_v18  ;;  %v6073_v1 = vadd.f32 1.0, %v12889_v7  ;;  %v6067_v37 = vmul.f32 -0.5, %v12885_v59  ;;  %v6076_v57 = vmul.f32 -0.5, %v12889_v7 }
 0x570   : > { %v12905_v36 = vpop.eup %8080  ;;  %8100 = vlog2.f32 %v6037_v58  ;;  %v6052_v58 = vand.u32 2147483647, %v12876_v45  ;;  %v6061_v9 = vand.u32 2147483647, %v12880_v10  ;;  %v6082_v55 = vadd.f32 1.0, %v12894_v30 }
 0x571   : > { %v12912_v24 = vpop.eup %8082  ;;  %8102 = vlog2.f32 %v6046_v15  ;;  %v6059_v28 = vadd.f32 1.0, %v6058_v27  ;;  %v6070_v14 = vand.u32 2147483647, %v12885_v59  ;;  %v12930_v16 = vmul.f32 %v8069_v32, %v6041_v46 }
 0x572   : > { %v12915_v52 = vpop.eup %8084  ;;  %8104 = vlog2.f32 %v6055_v26  ;;  %v6085_v26 = vmul.f32 -0.5, %v12894_v30  ;;  %v12933_v61 = vmul.f32 %v12876_v45, %v6050_v53  ;;  %vm12938_vm0 = vcmp.lt.f32.partialorder %v6043_v35, 0.0004427343 }
 0x573   : > { %v12919_v18 = vpop.eup %8086  ;;  %8106 = vlog2.f32 %v6064_v51  ;;  %v6091_v51 = vadd.f32 1.0, %v12905_v36  ;;  %v6068_v27 = vadd.f32 1.0, %v6067_v37  ;;  %v6079_v38 = vand.u32 2147483647, %v12889_v7 }
 0x574   : > { %v12924_v15 = vpop.eup %8088  ;;  %8108 = vlog2.f32 %v6073_v1  ;;  %v6077_v1 = vadd.f32 1.0, %v6076_v57  ;;  %v6094_v43 = vmul.f32 -0.5, %v12905_v36  ;;  %v6088_v45 = vand.u32 2147483647, %v12894_v30 }
 0x575   : > { %v12928_v34 = vpop.eup %8090  ;;  %8110 = vlog2.f32 %v6082_v55  ;;  %v6100_v46 = vadd.f32 1.0, %v12912_v24  ;;  %v6103_v53 = vmul.f32 -0.5, %v12912_v24  ;;  %vm12951_vm1 = vcmp.lt.f32.partialorder %v6052_v58, 0.0004427343 }
 0x576   : > { %v12936_v11 = vpop.eup %8092  ;;  %8112 = vlog2.f32 %v6091_v51  ;;  %v12956_v37 = vmul.f32 %v12880_v10, %v6059_v28  ;;  %vm12958_vm2 = vcmp.lt.f32.partialorder %v6061_v9, 0.0004427343  ;;  %vm12962_vm3 = vcmp.lt.f32.partialorder %v6070_v14, 0.0004427343 }
 0x577   : > { %v12944_v32 = vpop.eup %8094  ;;  %v6086_v51 = vadd.f32 1.0, %v6085_v26  ;;  %v6095_v62 = vadd.f32 1.0, %v6094_v43  ;;  %8114 = vlog2.f32 %v6100_v46  ;;  %v6109_v58 = vadd.f32 1.0, %v12915_v52  ;;  %v14413_v46 = vld [vmem:[#allocation81_spill] sm:$0xff] }
 0x578   : > { %v12949_v55 = vpop.eup %8096  ;;  %v6112_v25 = vmul.f32 -0.5, %v12915_v52  ;;  %v12971_v10 = vmul.f32 %v12885_v59, %v6068_v27  ;;  %v12974_v9 = vmul.f32 %v12889_v7, %v6077_v1  ;;  %v6097_v14 = vand.u32 2147483647, %v12905_v36 }
 0x579   : > { %v12966_v3 = vpop.eup %8098  ;;  %v6118_v28 = vadd.f32 1.0, %v12919_v18  ;;  %vm12980_vm8 = vcmp.lt.f32.partialorder %v6079_v38, 0.0004427343  ;;  %vm12984_vm10 = vcmp.lt.f32.partialorder %v6088_v45, 0.0004427343  ;;  %v6104_v59 = vadd.f32 1.0, %v6103_v53 }
 0x57a   : > { %v8101_v42 = vpop.eup %8100  ;;  %v6106_v27 = vand.u32 2147483647, %v12912_v24  ;;  %8116 = vlog2.f32 %v6109_v58  ;;  %v12990_v1 = vmul.f32 %v12894_v30, %v6086_v51  ;;  %v6113_v39 = vadd.f32 1.0, %v6112_v25 }
 0x57b   : > { %v8103_v26 = vpop.eup %8102  ;;  %v12978_v50 = vmul.f32 0.6931472, %v8101_v42  ;;  %8118 = vlog2.f32 %v6118_v28  ;;  %v6121_v42 = vmul.f32 -0.5, %v12919_v18  ;;  %v12998_v45 = vmul.f32 %v12905_v36, %v6095_v62 }
 0x57c   : > { %v8105_v7 = vpop.eup %8104  ;;  %v12993_v63 = vmul.f32 0.6931472, %v8103_v26  ;;  %v6115_v53 = vand.u32 2147483647, %v12915_v52  ;;  %vm13003_vm11 = vcmp.lt.f32.partialorder %v6097_v14, 0.0004427343  ;;  %v13014_v36 = vmul.f32 %v12912_v24, %v6104_v59 }
 0x57d   : > { %v8107_v38 = vpop.eup %8106  ;;  %v12995_v41 = vmul.f32 0.6931472, %v8105_v7  ;;  %v6122_v25 = vadd.f32 1.0, %v6121_v42  ;;  %v6124_v51 = vand.u32 2147483647, %v12919_v18  ;;  %v6127_v28 = vadd.f32 1.0, %v12924_v15 }
 0x57e   : > { %v8109_v54 = vpop.eup %8108  ;;  %v13001_v58 = vmul.f32 0.6931472, %v8107_v38  ;;  %vm13016_vm12 = vcmp.lt.f32.partialorder %v6106_v27, 0.0004427343  ;;  %v6130_v14 = vmul.f32 -0.5, %v12924_v15  ;;  %v13026_v60 = vmul.f32 %v12915_v52, %v6113_v39 }
 0x57f   : > { %v8111_v26 = vpop.eup %8110  ;;  %v13021_v42 = vmul.f32 0.6931472, %v8109_v54  ;;  %8120 = vlog2.f32 %v6127_v28  ;;  %vm13040_vm15 = vcmp.lt.f32.partialorder %v6115_v53, 0.0004427343  ;;  %v6136_v52 = vadd.f32 1.0, %v12928_v34 }
 0x580   : > { %v13023_v38 = vmul.f32 0.6931472, %v8111_v26  ;;  %v8113_v12 = vpop.eup %8112  ;;  %v13046_v27 = vmul.f32 %v12919_v18, %v6122_v25  ;;  %vm13048_vm14 = vcmp.lt.f32.partialorder %v6124_v51, 0.0004427343  ;;  %v6131_v26 = vadd.f32 1.0, %v6130_v14 }
 0x581   : > { %v6133_v59 = vand.u32 2147483647, %v12924_v15  ;;  %v6139_v24 = vmul.f32 -0.5, %v12928_v34  ;;  %v8115_v62 = vpop.eup %8114  ;;  %v13054_v54 = vmul.f32 0.6931472, %v8113_v12  ;;  %8122 = vlog2.f32 %v6136_v52 }
 0x582   : > { %v6142_v53 = vand.u32 2147483647, %v12928_v34  ;;  %v6145_v17 = vadd.f32 1.0, %v12936_v11  ;;  %v13066_v51 = vmul.f32 0.6931472, %v8115_v62  ;;  %v6148_v52 = vmul.f32 -0.5, %v12936_v11 }
 0x583   : > { %v6140_v14 = vadd.f32 1.0, %v6139_v24  ;;  %v6151_v44 = vand.u32 2147483647, %v12936_v11  ;;  %v6154_v0 = vadd.f32 1.0, %v12944_v32  ;;  %v13074_v18 = vmul.f32 %v12924_v15, %v6131_v26 }
 0x584   : > { %v8117_v12 = vpop.eup %8116  ;;  %8124 = vlog2.f32 %v6145_v17  ;;  %vm13076_vm13 = vcmp.lt.f32.partialorder %v6133_v59, 0.0004427343  ;;  %v6157_v62 = vmul.f32 -0.5, %v12944_v32  ;;  %v6099_v17 = vsel %vm13003_vm11, %v12998_v45, %v13054_v54 }
 0x585   : > { %v8119_v13 = vpop.eup %8118  ;;  %v13071_v8 = vmul.f32 0.6931472, %v8117_v12  ;;  %vm13085_vm9 = vcmp.lt.f32.partialorder %v6142_v53, 0.0004427343  ;;  %8126 = vlog2.f32 %v6154_v0  ;;  %v6108_v15 = vsel %vm13016_vm12, %v13014_v36, %v13066_v51 }
 0x586   : > { %v6120_v24 = vmul.f32 0.6931472, %v8119_v13  ;;  %v6149_v59 = vadd.f32 1.0, %v6148_v52  ;;  %v6158_v26 = vadd.f32 1.0, %v6157_v62  ;;  %v6163_v12 = vadd.f32 1.0, %v12949_v55 }
 0x587   : > { %v6141_v13 = vmul.f32 %v12928_v34, %v6140_v14  ;;  %vm13099_vm6 = vcmp.lt.f32.partialorder %v6151_v44, 0.0004427343  ;;  %v6160_v0 = vand.u32 2147483647, %v12944_v32  ;;  %v6166_v30 = vmul.f32 -0.5, %v12949_v55 }
 0x588   : > { %v6117_v44 = vsel %vm13040_vm15, %v13026_v60, %v13071_v8  ;;  %8128 = vlog2.f32 %v6163_v12  ;;  %v6169_v34 = vand.u32 2147483647, %v12949_v55  ;;  %v6172_v7 = vadd.f32 1.0, %v12966_v3 }
 0x589   : > { %v8121_v36 = vpop.eup %8120  ;;  %v6126_v54 = vsel %vm13048_vm14, %v13046_v27, %v6120_v24  ;;  %v6167_v8 = vadd.f32 1.0, %v6166_v30  ;;  %v6175_v60 = vmul.f32 -0.5, %v12966_v3  ;;  %vm5950_vm11 = vcmp.ne.f32.partialorder %v12791_v6, %v12791_v6 }
 0x58a   : > { %v6129_v39 = vmul.f32 0.6931472, %v8121_v36  ;;  %v6150_v53 = vmul.f32 %v12936_v11, %v6149_v59  ;;  %v6159_v51 = vmul.f32 %v12944_v32, %v6158_v26  ;;  %8130 = vlog2.f32 %v6172_v7 }
 0x58b   : > { %v6178_v14 = vand.u32 2147483647, %v12966_v3  ;;  %v8123_v52 = vpop.eup %8122  ;;  %vm5951_vm14 = vcmp.ne.f32.partialorder %v12794_v22, %v12794_v22  ;;  %vm13140_vm12 = vcmp.lt.f32.partialorder %v6160_v0, 0.0004427343  ;;  %v6176_v11 = vadd.f32 1.0, %v6175_v60 }
 0x58c   : > { %v14395_v32 = vmax.f32 %v12756_v56, 0.0  ;;  %v14396_v28 = vsel %vm12938_vm0, %v12930_v16, %v12978_v50  ;;  %v14397_v24 = vmax.f32 %v12759_v31, 0.0  ;;  %v14398_v59 = vsel %vm12951_vm1, %v12933_v61, %v12993_v63 }
 0x58d   : > { %v6135_v12 = vsel %vm13076_vm13, %v13074_v18, %v6129_v39  ;;  %v6138_v0 = vmul.f32 0.6931472, %v8123_v52  ;;  %v6168_v30 = vmul.f32 %v12949_v55, %v6167_v8  ;;  %vm13162_vm15 = vcmp.lt.f32.partialorder %v6169_v34, 0.0004427343  ;;  %v14439_v34 = vld [vmem:[#allocation73_spill] sm:$0xff] }
 0x58e   : > { %v6181_v62 = vadd.f32 %v14396_v28, %v14395_v32  ;;  %v6182_v26 = vadd.f32 %v14398_v59, %v14397_v24  ;;  %v14401_v50 = vmax.f32 %v12762_v5, 0.0  ;;  %v14402_v16 = vsel %vm12958_vm2, %v12956_v37, %v12995_v41  ;;  %v8125_v63 = vpop.eup %8124 }
 0x58f   : > { %vm5954_vm0 = vcmp.ne.f32.partialorder %v12803_v21, %v12803_v21  ;;  %v6177_v48 = vmul.f32 %v12966_v3, %v6176_v11  ;;  %v14403_v55 = vmax.f32 %v12773_v49, 0.0  ;;  %v14404_v35 = vsel %vm12962_vm3, %v12971_v10, %v13001_v58  ;;  %v8127_v39 = vpop.eup %8126 }
 0x590   : > { %v6183_v61 = vadd.f32 %v14402_v16, %v14401_v50  ;;  %v14405_v57 = vmax.f32 %v12776_v2, 0.0  ;;  %v14406_v41 = vsel %vm12980_vm8, %v12974_v9, %v13021_v42  ;;  %v14407_v36 = vmax.f32 %v12779_v29, 0.0  ;;  %v14430_v50 = vld [vmem:[#allocation66_spill] sm:$0xff] }
 0x591   : > { %v6184_v18 = vadd.f32 %v14404_v35, %v14403_v55  ;;  %v14408_v3 = vsel %vm12984_vm10, %v12990_v1, %v13023_v38  ;;  %v6144_v10 = vsel %vm13085_vm9, %v6141_v13, %v6138_v0  ;;  %v6147_v58 = vmul.f32 0.6931472, %v8125_v63  ;;  %v14434_v35 = vld [vmem:[#allocation69_spill] sm:$0xff] }
 0x592   : > { %v6185_v37 = vadd.f32 %v14406_v41, %v14405_v57  ;;  %v6186_v23 = vadd.f32 %v14408_v3, %v14407_v36  ;;  %vm13199_vm13 = vcmp.lt.f32.partialorder %v6178_v14, 0.0004427343  ;;  %v14411_v43 = vmax.f32 %v12782_v19, 0.0  ;;  %v8129_v28 = vpop.eup %8128  ;;  %v14435_v41 = vld [vmem:[#allocation70_spill] sm:$0xff]  ;;  %v14436_v36 = vld [vmem:[#allocation71_spill] sm:$0xff] }
 0x593   : > { %v14412_v42 = vmax.f32 %v12785_v47, 0.0  ;;  %vm5955_vm1 = vcmp.ne.f32.partialorder %v14413_v46, %v14413_v46  ;;  %v14414_v1 = vmax.f32 %v12788_v33, 0.0  ;;  %v14415_v25 = vmax.f32 %v12791_v6, 0.0 }
 0x594   : > { %v6187_v9 = vadd.f32 %v6099_v17, %v14411_v43  ;;  %v14416_v8 = vmax.f32 %v12794_v22, 0.0  ;;  %v14417_v14 = vmax.f32 %v12797_v20, 0.0  ;;  %v6153_v17 = vsel %vm13099_vm6, %v6150_v53, %v6147_v58  ;;  %v8131_v59 = vpop.eup %8130 }
 0x595   : > { %v6188_v7 = vadd.f32 %v6108_v15, %v14412_v42  ;;  %v6189_v38 = vadd.f32 %v6117_v44, %v14414_v1  ;;  %v6190_v13 = vadd.f32 %v6126_v54, %v14415_v25  ;;  %v6156_v15 = vmul.f32 0.6931472, %v8127_v39  ;;  %v14419_v54 = vld [vmem:[#allocation82_spill] sm:$0xff]  ;;  %v14442_v1 = vld [vmem:[#allocation76_spill] sm:$0xff]  ;;  %v14443_v25 = vld [vmem:[#allocation77_spill] sm:$0xff] }
 0x596   : > { %v6191_v60 = vadd.f32 %v6135_v12, %v14416_v8  ;;  %v6192_v52 = vadd.f32 %v6144_v10, %v14417_v14  ;;  %v13223_v11 = vsel %vm5941_vm7, %v12756_v56, %v6181_v62  ;;  %vm14418_vm9 = vcmp.ne.f32.partialorder %v12759_v31, %v12759_v31  ;;  %v14445_v14 = vld [vmem:[#allocation79_spill] sm:$0xff] }
 0x597   : > { %v13229_v44 = vsel %vm14418_vm9, %v12759_v31, %v6182_v26  ;;  %vm5956_vm2 = vcmp.ne.f32.partialorder %v14419_v54, %v14419_v54  ;;  %v14420_v32 = vmax.f32 %v12800_v4, 0.0  ;;  %vm14421_vm6 = vcmp.ne.f32.partialorder %v12762_v5, %v12762_v5 }
 0x598   : > { %v13239_v53 = vsel %vm14421_vm6, %v12762_v5, %v6183_v61  ;;  %vm14422_vm7 = vcmp.ne.f32.partialorder %v12773_v49, %v12773_v49  ;;  %v13251_v31 = vsel %vm5945_vm4, %v12776_v2, %v6185_v37  ;;  %v6162_v62 = vsel %vm13140_vm12, %v6159_v51, %v6156_v15 }
 0x599   : > { %v6193_v45 = vadd.f32 %v6153_v17, %v14420_v32  ;;  %v13245_v56 = vsel %vm14422_vm7, %v12773_v49, %v6184_v18  ;;  %vm14423_vm3 = vcmp.ne.f32.partialorder %v12779_v29, %v12779_v29  ;;  %vm14424_vm8 = vcmp.ne.f32.partialorder %v12782_v19, %v12782_v19 }
 0x59a   : > { %v13259_v5 = vsel %vm14423_vm3, %v12779_v29, %v6186_v23  ;;  %v13265_v49 = vsel %vm14424_vm8, %v12782_v19, %v6187_v9  ;;  %vm14425_vm4 = vcmp.ne.f32.partialorder %v12785_v47, %v12785_v47  ;;  %v6165_v27 = vmul.f32 0.6931472, %v8129_v28  ;;  %v14440_v9 = vld [vmem:[#allocation74_spill] sm:$0xff] }
 0x59b   : > { %v13271_v2 = vsel %vm14425_vm4, %v12785_v47, %v6188_v7  ;;  %v14426_v51 = vmax.f32 %v12803_v21, 0.0  ;;  %vm14427_vm10 = vcmp.ne.f32.partialorder %v12788_v33, %v12788_v33  ;;  %v13285_v19 = vsel %vm5950_vm11, %v12791_v6, %v6190_v13  ;;  %v14429_v6 = vld [vmem:[#allocation65_spill] sm:$0xff]  ;;  %v14441_v7 = vld [vmem:[#allocation75_spill] sm:$0xff]  ;;  %v14444_v13 = vld [vmem:[#allocation78_spill] sm:$0xff] }
 0x59c   : > { %v13279_v29 = vsel %vm14427_vm10, %v12788_v33, %v6189_v38  ;;  %v13291_v47 = vsel %vm5951_vm14, %v12794_v22, %v6191_v60  ;;  %v13297_v26 = vsel %vm5952_vm5, %v12797_v20, %v6192_v52  ;;  %vm14428_vm12 = vcmp.ne.f32.partialorder %v12800_v4, %v12800_v4  ;;  %v14431_v20 = vld [vmem:[#allocation67_spill] sm:$0xff] }
 0x59d   : > { %v6194_v24 = vadd.f32 %v6162_v62, %v14426_v51  ;;  %v13303_v33 = vsel %vm14428_vm12, %v12800_v4, %v6193_v45  ;;  %v13307_v12 = vadd.f32 %v13223_v11, %v14429_v6  ;;  %v6171_v22 = vsel %vm13162_vm15, %v6168_v30, %v6165_v27 }
 0x59e   : > { %v6174_v0 = vmul.f32 0.6931472, %v8131_v59  ;;  %v13313_v16 = vadd.f32 %v13229_v44, %v14430_v50  ;;  %v13317_v61 = vadd.f32 %v13239_v53, %v14431_v20  ;;  %v14432_v63 = vmax.f32 %v14413_v46, 0.0 }
 0x59f   : > { %v13325_v55 = vsel %vm5954_vm0, %v12803_v21, %v6194_v24  ;;  %v13329_v30 = vadd.f32 %v13245_v56, %v14433_v40  ;;  %v13333_v18 = vadd.f32 %v13251_v31, %v14434_v35  ;;  %v13339_v37 = vadd.f32 %v13259_v5, %v14435_v41  ;;  %v14437_v21 = vld [vmem:[#allocation72_spill] sm:$0xff] }
 0x5a0   : > { %v6195_v4 = vadd.f32 %v6171_v22, %v14432_v63  ;;  %v6180_v57 = vsel %vm13199_vm13, %v6177_v48, %v6174_v0  ;;  %v13343_v3 = vadd.f32 %v13265_v49, %v14436_v36  ;;  %v13347_v23 = vadd.f32 %v13271_v2, %v14437_v21  ;;  %v14446_v40 = vld [vmem:[#allocation80_spill] sm:$0xff] }
 0x5a1   : > { %v14438_v10 = vmax.f32 %v14419_v54, 0.0  ;;  %v13359_v43 = vadd.f32 %v13279_v29, %v14439_v34  ;;  %v13363_v42 = vadd.f32 %v13285_v19, %v14440_v9  ;;  %v13367_v39 = vadd.f32 %v13291_v47, %v14441_v7 }
 0x5a2   : > { %v13355_v48 = vsel %vm5955_vm1, %v14413_v46, %v6195_v4  ;;  %v13371_v38 = vadd.f32 %v13297_v26, %v14442_v1  ;;  %v13375_v46 = vadd.f32 %v13303_v33, %v14443_v25  ;;  %v13379_v8 = vadd.f32 %v13325_v55, %v14444_v13 }
 0x5a3   : > { %v6196_v58 = vadd.f32 %v6180_v57, %v14438_v10  ;;  %v13387_v52 = vadd.f32 %v13355_v48, %v14445_v14  ;;  %v6229_v17 = vsub.f32 0.0, %v13223_v11  ;;  %v6230_v15 = vsub.f32 0.0, %v13229_v44 }
 0x5a4   : > { %v6231_v32 = vsub.f32 0.0, %v13239_v53  ;;  %v6232_v45 = vsub.f32 0.0, %v13245_v56  ;;  %v6233_v28 = vsub.f32 0.0, %v13251_v31  ;;  %v6234_v62 = vsub.f32 0.0, %v13259_v5 }
 0x5a5   : > { %v6212_v60 = vsel %vm5956_vm2, %v14419_v54, %v6196_v58  ;;  %v6235_v27 = vsub.f32 0.0, %v13265_v49  ;;  %v6236_v54 = vsub.f32 0.0, %v13271_v2  ;;  %v6237_v51 = vsub.f32 0.0, %v13279_v29 }
 0x5a6   : > { %v6238_v24 = vsub.f32 0.0, %v13285_v19  ;;  %v6239_v59 = vsub.f32 0.0, %v13291_v47  ;;  %v6240_v6 = vsub.f32 0.0, %v13297_v26  ;;  %v6241_v22 = vsub.f32 0.0, %v13303_v33 }
 0x5a7   : > { %v6242_v0 = vsub.f32 0.0, %v13325_v55  ;;  %v6243_v50 = vsub.f32 0.0, %v13355_v48  ;;  %v6244_v20 = vsub.f32 0.0, %v6212_v60  ;;  %v6245_v63 = vmul.f32 1.442695, %v6229_v17 }
 0x5a8   : > { %v6247_v4 = vmul.f32 1.442695, %v6230_v15  ;;  %v13405_v35 = vadd.f32 %v6212_v60, %v14446_v40  ;;  %v6249_v57 = vmul.f32 1.442695, %v6231_v32  ;;  %v6251_v41 = vmul.f32 1.442695, %v6232_v45 }
 0x5a9   : > { %v6253_v36 = vmul.f32 1.442695, %v6233_v28  ;;  %8132 = vpow2.f32 %v6245_v63  ;;  %v6255_v21 = vmul.f32 1.442695, %v6234_v62  ;;  %v6257_v10 = vmul.f32 1.442695, %v6235_v27 }
 0x5aa   : > { %v6259_v58 = vmul.f32 1.442695, %v6236_v54  ;;  %8134 = vpow2.f32 %v6247_v4  ;;  %v6261_v34 = vmul.f32 1.442695, %v6237_v51  ;;  %v6263_v9 = vmul.f32 1.442695, %v6238_v24 }
 0x5ab   : > { %v6265_v7 = vmul.f32 1.442695, %v6239_v59  ;;  %8136 = vpow2.f32 %v6249_v57  ;;  %v6267_v1 = vmul.f32 1.442695, %v6240_v6  ;;  %v6269_v25 = vmul.f32 1.442695, %v6241_v22 }
 0x5ac   : > { %v6271_v13 = vmul.f32 1.442695, %v6242_v0  ;;  %8138 = vpow2.f32 %v6251_v41  ;;  %v6273_v14 = vmul.f32 1.442695, %v6243_v50  ;;  %v6275_v17 = vmul.f32 1.442695, %v6244_v20 }
 0x5ad   : > { %v13408_v15 = vadd.f32 1e-06, %v13223_v11  ;;  %8140 = vpow2.f32 %v6253_v36  ;;  %v13411_v32 = vadd.f32 1e-06, %v13229_v44  ;;  %v13414_v45 = vadd.f32 1e-06, %v13239_v53 }
 0x5ae   : > { %v13417_v28 = vadd.f32 1e-06, %v13245_v56  ;;  %8142 = vpow2.f32 %v6255_v21  ;;  %v13420_v62 = vadd.f32 1e-06, %v13251_v31  ;;  %v13423_v27 = vadd.f32 1e-06, %v13259_v5 }
 0x5af   : > { %v13426_v11 = vadd.f32 1e-06, %v13265_v49  ;;  %8144 = vpow2.f32 %v6257_v10  ;;  %v13429_v44 = vadd.f32 1e-06, %v13271_v2  ;;  %v13432_v53 = vadd.f32 1e-06, %v13279_v29 }
 0x5b0   : > { %v13435_v56 = vadd.f32 1e-06, %v13285_v19  ;;  %8146 = vpow2.f32 %v6259_v58  ;;  %v13438_v31 = vadd.f32 1e-06, %v13291_v47  ;;  %v13441_v5 = vadd.f32 1e-06, %v13297_v26 }
 0x5b1   : > { %v13444_v49 = vadd.f32 1e-06, %v13303_v33  ;;  %8148 = vpow2.f32 %v6261_v34  ;;  %v13447_v2 = vadd.f32 1e-06, %v13325_v55  ;;  %v13450_v29 = vadd.f32 1e-06, %v13355_v48 }
 0x5b2   : > { %v13452_v54 = vadd.f32 1e-06, %v6212_v60  ;;  %8150 = vpow2.f32 %v6263_v9  ;;  %v6377_v19 = vsub.f32 0.0, %v13408_v15  ;;  %v6378_v47 = vsub.f32 0.0, %v13411_v32 }
 0x5b3   : > { %v6379_v26 = vsub.f32 0.0, %v13414_v45  ;;  %v8133_v51 = vpop.eup %8132  ;;  %8152 = vpow2.f32 %v6265_v7  ;;  %v6380_v33 = vsub.f32 0.0, %v13417_v28  ;;  %v6381_v24 = vsub.f32 0.0, %v13420_v62 }
 0x5b4   : > { %v6382_v55 = vsub.f32 0.0, %v13423_v27  ;;  %v8135_v59 = vpop.eup %8134  ;;  %8154 = vpow2.f32 %v6267_v1  ;;  %v6383_v48 = vsub.f32 0.0, %v13426_v11  ;;  %v6384_v60 = vsub.f32 0.0, %v13429_v44 }
 0x5b5   : > { %v6385_v6 = vsub.f32 0.0, %v13432_v53  ;;  %v8137_v22 = vpop.eup %8136  ;;  %8156 = vpow2.f32 %v6269_v25  ;;  %v6386_v0 = vsub.f32 0.0, %v13435_v56  ;;  %v6387_v50 = vsub.f32 0.0, %v13438_v31  ;;  %v14466_v31 = vld [vmem:[#allocation53_spill] sm:$0xff] }
 0x5b6   : > { %v6388_v20 = vsub.f32 0.0, %v13441_v5  ;;  %v8139_v63 = vpop.eup %8138  ;;  %8158 = vpow2.f32 %v6271_v13  ;;  %v6293_v4 = vrot.slane %v8137_v22, 7  ;;  %v6389_v40 = vsub.f32 0.0, %v13444_v49 }
 0x5b7   : > { %v8141_v41 = vpop.eup %8140  ;;  %8160 = vpow2.f32 %v6273_v14  ;;  %v6307_v36 = vrot.slane %v8139_v63, 7  ;;  %vm14447_vm5 = vcmask 1041409   ;;  %v6393_v7 = vadd.f32 1e-06, %v13307_v12 }
 0x5b8   : > { %v8143_v58 = vpop.eup %8142  ;;  %8162 = vpow2.f32 %v6275_v17  ;;  %v6294_v34 = vsel %vm14447_vm5, %v6293_v4, %v8133_v51  ;;  %v6295_v9 = vrot.slane %v8141_v41, 6  ;;  %vm14448_vm11 = vmmov %vm14447_vm5  ;;  %v6394_v22 = vadd.f32 1e-06, %v13313_v16 }
 0x5b9   : > { %v8145_v1 = vpop.eup %8144  ;;  %v6308_v25 = vsel %vm14448_vm11, %v6307_v36, %v8135_v59  ;;  %v6309_v13 = vrot.slane %v8143_v58, 6  ;;  %v6395_v14 = vadd.f32 1e-06, %v13317_v61  ;;  %vm14449_vm15 = vcmask 1042434   ;;  %vm14484_vm10 = vmmov %vm14447_vm5 }
 0x5ba   : > { %v8147_v63 = vpop.eup %8146  ;;  %v6296_v21 = vsel %vm14449_vm15, %v6295_v9, %v6294_v34  ;;  %v6297_v57 = vrot.slane %v8145_v1, 5  ;;  %v6396_v10 = vadd.f32 1e-06, %v13329_v30  ;;  %v6397_v17 = vadd.f32 1e-06, %v13333_v18  ;;  %vm14450_vm14 = vmmov %vm14449_vm15 }
 0x5bb   : > { %v8149_v51 = vpop.eup %8148  ;;  %v6310_v4 = vsel %vm14450_vm14, %v6309_v13, %v6308_v25  ;;  %v6311_v12 = vrot.slane %v8147_v63, 5  ;;  %v6398_v41 = vadd.f32 1e-06, %v13339_v37  ;;  %v6399_v59 = vadd.f32 1e-06, %v13343_v3  ;;  %vm14485_vm12 = vmmov %vm14450_vm14 }
 0x5bc   : > { %v8151_v36 = vpop.eup %8150  ;;  %vm14451_vm0 = vcmask 1043459   ;;  %v6299_v61 = vrot.slane %v8149_v51, 4  ;;  %v6400_v58 = vadd.f32 1e-06, %v13347_v23  ;;  %v6401_v34 = vadd.f32 1e-06, %v13359_v43  ;;  %vm14488_vm15 = vmmov %vm14484_vm10 }
 0x5bd   : > { %v6298_v16 = vsel %vm14451_vm0, %v6297_v57, %v6296_v21  ;;  %v8153_v9 = vpop.eup %8152  ;;  %vm14452_vm13 = vmmov %vm14451_vm0  ;;  %v6313_v18 = vrot.slane %v8151_v36, 4  ;;  %v6402_v1 = vadd.f32 1e-06, %v13363_v42  ;;  %v6403_v25 = vadd.f32 1e-06, %v13367_v39 }
 0x5be   : > { %v6312_v30 = vsel %vm14452_vm13, %v6311_v12, %v6310_v4  ;;  %v8155_v13 = vpop.eup %8154  ;;  %vm14453_vm1 = vcmask 1044484   ;;  %v6301_v3 = vrot.slane %v8153_v9, 3  ;;  %v6404_v63 = vadd.f32 1e-06, %v13371_v38  ;;  %vm14486_vm5 = vmmov %vm14451_vm0 }
 0x5bf   : > { %v6300_v37 = vsel %vm14453_vm1, %v6299_v61, %v6298_v16  ;;  %v6405_v57 = vadd.f32 1e-06, %v13375_v46  ;;  %v8157_v21 = vpop.eup %8156  ;;  %vm14454_vm9 = vmmov %vm14453_vm1  ;;  %v6315_v43 = vrot.slane %v8155_v13, 3  ;;  %v6406_v51 = vadd.f32 1e-06, %v13379_v8 }
 0x5c0   : > { %v6314_v23 = vsel %vm14454_vm9, %v6313_v18, %v6312_v30  ;;  %v6407_v4 = vadd.f32 1e-06, %v13387_v52  ;;  %v8159_v12 = vpop.eup %8158  ;;  %vm14455_vm2 = vcmask 1045509   ;;  %v6303_v39 = vrot.slane %v8157_v21, 2  ;;  %vm14487_vm11 = vmmov %vm14453_vm1 }
 0x5c1   : > { %v6302_v42 = vsel %vm14455_vm2, %v6301_v3, %v6300_v37  ;;  %v6408_v36 = vadd.f32 1e-06, %v13405_v35  ;;  %v6409_v16 = vsub.f32 %v6377_v19, %v6393_v7  ;;  %v8161_v38 = vpop.eup %8160  ;;  %vm14456_vm6 = vmmov %vm14455_vm2  ;;  %v6317_v61 = vrot.slane %v8159_v12, 2 }
 0x5c2   : > { %v6316_v46 = vsel %vm14456_vm6, %v6315_v43, %v6314_v23  ;;  %v6410_v9 = vsub.f32 %v6378_v47, %v6394_v22  ;;  %v6411_v8 = vsub.f32 %v6379_v26, %v6395_v14  ;;  %v8163_v52 = vpop.eup %8162  ;;  %vm14457_vm7 = vcmask 1046534   ;;  %vm14489_vm14 = vmmov %vm14455_vm2 }
 0x5c3   : > { %v6304_v30 = vsel %vm14457_vm7, %v6303_v39, %v6302_v42  ;;  %v6305_v18 = vrot.slane %v8161_v38, 1  ;;  %v6412_v35 = vsub.f32 %v6380_v33, %v6396_v10  ;;  %v6413_v15 = vsub.f32 %v6381_v24, %v6397_v17  ;;  %vm14458_vm3 = vmmov %vm14457_vm7  ;;  %v14461_v24 = vld [vmem:[#allocation37_spill] sm:$0xff]  ;;  %v14467_v17 = vld [vmem:[#allocation54_spill] sm:$0xff] }
 0x5c4   : > { %v6318_v19 = vsel %vm14458_vm3, %v6317_v61, %v6316_v46  ;;  %v6319_v7 = vrot.slane %v8163_v52, 1  ;;  %v6414_v32 = vsub.f32 %v6382_v55, %v6398_v41  ;;  %v6415_v45 = vsub.f32 %v6383_v48, %v6399_v59  ;;  %v14462_v55 = vld [vmem:[#allocation30_spill] sm:$0xff]  ;;  %vm14490_vm0 = vmmov %vm14485_vm12 }
 0x5c5   : > { %vm14459_vm8 = vcmask 1047559   ;;  %v6416_v26 = vsub.f32 %v6384_v60, %v6400_v58  ;;  %v6417_v28 = vsub.f32 %v6385_v6, %v6401_v34  ;;  %v6418_v62 = vsub.f32 %v6386_v0, %v6402_v1  ;;  %vm14491_vm13 = vmmov %vm14458_vm3 }
 0x5c6   : > { %v6306_v47 = vsel %vm14459_vm8, %v6305_v18, %v6304_v30  ;;  %vm14460_vm4 = vmmov %vm14459_vm8  ;;  %v6419_v27 = vsub.f32 %v6387_v50, %v6403_v25  ;;  %v6420_v11 = vsub.f32 %v6388_v20, %v6404_v63  ;;  %v6421_v44 = vsub.f32 %v6389_v40, %v6405_v57 }
 0x5c7   : > { %v6320_v33 = vsel %vm14460_vm4, %v6319_v7, %v6318_v19  ;;  %v6323_v10 = vmul.f32 %v6306_v47, %v14461_v24  ;;  %v14463_v53 = vsub.f32 0.0, %v13447_v2  ;;  %v14464_v56 = vsub.f32 0.0, %v13450_v29  ;;  %v14482_v19 = vld [vmem:[#allocation20_spill] sm:$0xff]  ;;  %v14483_v7 = vld [vmem:[#allocation38_spill] sm:$0xff]  ;;  %vm14492_vm1 = vmmov %vm14486_vm5 }
 0x5c8   : > { %v6324_v48 = vmul.f32 %v6320_v33, %v14462_v55  ;;  %v14465_v22 = vsub.f32 0.0, %v13452_v54  ;;  %v6457_v50 = vadd.f32 %v14466_v31, %v6409_v16  ;;  %v6458_v5 = vadd.f32 %v14467_v17, %v6410_v9  ;;  %vm14493_vm9 = vmmov %vm14460_vm4 }
 0x5c9   : > { %v6422_v60 = vsub.f32 %v14463_v53, %v6406_v51  ;;  %v6423_v6 = vsub.f32 %v14464_v56, %v6407_v4  ;;  %v6325_v0 = vrot.slane %v6323_v10, 4  ;;  %v14468_v41 = vrot.slane %v14466_v31, 1  ;;  %vm14494_vm2 = vmmov %vm14487_vm11 }
 0x5ca   : > { %v6424_v14 = vsub.f32 %v14465_v22, %v6408_v36  ;;  %v6331_v20 = vrot.slane %v6324_v48, 4  ;;  %v14469_v49 = vrot.slane %v14467_v17, 1  ;;  %v14470_v2 = vrot.slane %v14466_v31, 2  ;;  %vm14500_vm7 = vmmov %vm14458_vm3 }
 0x5cb   : > { %v6459_v59 = vadd.f32 %v14468_v41, %v6411_v8  ;;  %v6326_v29 = vadd.f32 %v6325_v0, %v6323_v10  ;;  %v14471_v34 = vrot.slane %v14467_v17, 2  ;;  %v14472_v54 = vrot.slane %v14466_v31, 3  ;;  %vm14502_vm3 = vmmov %vm14460_vm4 }
 0x5cc   : > { %v6460_v40 = vadd.f32 %v14469_v49, %v6412_v35  ;;  %v6461_v58 = vadd.f32 %v14470_v2, %v6413_v15  ;;  %v14473_v13 = vrot.slane %v14467_v17, 3  ;;  %v6332_v3 = vadd.f32 %v6331_v20, %v6324_v48  ;;  %vm14519_vm8 = vmmov %vm14484_vm10 }
 0x5cd   : > { %v6462_v1 = vadd.f32 %v14471_v34, %v6414_v32  ;;  %v6463_v25 = vadd.f32 %v14472_v54, %v6415_v45  ;;  %v14474_v63 = vrot.slane %v14466_v31, 4  ;;  %v14475_v21 = vrot.slane %v14467_v17, 4  ;;  %v14496_v34 = vld [vmem:[#allocation24_spill] sm:$0xff]  ;;  %vm14520_vm4 = vmmov %vm14519_vm8 }
 0x5ce   : > { %v6464_v37 = vadd.f32 %v14473_v13, %v6416_v26  ;;  %v14476_v43 = vrot.slane %v14466_v31, 5  ;;  %v6327_v4 = vrot.slane %v6326_v29, 2  ;;  %v14477_v12 = vrot.slane %v14467_v17, 5  ;;  %v14499_v13 = vld [vmem:[#allocation62_spill] sm:$0xff] }
 0x5cf   : > { %v6465_v57 = vadd.f32 %v14474_v63, %v6417_v28  ;;  %v6466_v23 = vadd.f32 %v14475_v21, %v6418_v62  ;;  %v14478_v39 = vrot.slane %v14466_v31, 6  ;;  %v14479_v16 = vrot.slane %v14467_v17, 6 }
 0x5d0   : > { %v6467_v51 = vadd.f32 %v14476_v43, %v6419_v27  ;;  %v6468_v42 = vadd.f32 %v14477_v12, %v6420_v11  ;;  %v6333_v46 = vrot.slane %v6332_v3, 2  ;;  %v14480_v61 = vrot.slane %v14466_v31, 7 }
 0x5d1   : > { %v6469_v36 = vadd.f32 %v14478_v39, %v6421_v44  ;;  %v6470_v38 = vadd.f32 %v14479_v16, %v6422_v60  ;;  %v14481_v8 = vrot.slane %v14467_v17, 7  ;;  %v6489_v30 = vrot.slane %v6459_v59, 7 }
 0x5d2   : > { %v6471_v9 = vadd.f32 %v14480_v61, %v6423_v6  ;;  %v6328_v18 = vadd.f32 %v6327_v4, %v6326_v29  ;;  %v6491_v35 = vrot.slane %v6461_v58, 6  ;;  %v6493_v15 = vrot.slane %v6463_v25, 5  ;;  %v14495_v29 = vld [vmem:[#allocation61_spill] sm:$0xff]  ;;  %v14498_v25 = vld [vmem:[#allocation22_spill] sm:$0xff] }
 0x5d3   : > { %v6472_v52 = vadd.f32 %v14481_v8, %v6424_v14  ;;  %v13566_v32 = vrot.slane %v14483_v7, %v14482_v19  ;;  %v6334_v45 = vadd.f32 %v6333_v46, %v6332_v3  ;;  %v6490_v47 = vsel %vm14484_vm10, %v6489_v30, %v6457_v50  ;;  %v14504_v61 = vld [vmem:[#allocation42_spill] sm:$0xff]  ;;  %v14505_v30 = vld [vmem:[#allocation27_spill] sm:$0xff]  ;;  %vm14521_vm10 = vmmov %vm14490_vm0 }
 0x5d4   : > { %v6495_v26 = vrot.slane %v6465_v57, 4  ;;  %v6497_v28 = vrot.slane %v6467_v51, 3  ;;  %v6329_v62 = vrot.slane %v6328_v18, 1  ;;  %v6492_v33 = vsel %vm14485_vm12, %v6491_v35, %v6490_v47  ;;  %v14501_v57 = vld [vmem:[#allocation36_spill] sm:$0xff]  ;;  %vm14522_vm12 = vmmov %vm14490_vm0 }
 0x5d5   : > { %v6499_v24 = vrot.slane %v6469_v36, 2  ;;  %v6503_v10 = vrot.slane %v6460_v40, 7  ;;  %v6335_v27 = vrot.slane %v6334_v45, 1  ;;  %v6494_v11 = vsel %vm14486_vm5, %v6493_v15, %v6492_v33  ;;  %v14503_v36 = vld [vmem:[#allocation26_spill] sm:$0xff]  ;;  %v14506_v15 = vld [vmem:[#allocation43_spill] sm:$0xff]  ;;  %vm14524_vm5 = vmmov %vm14492_vm1 }
 0x5d6   : > { %v6501_v55 = vrot.slane %v6471_v9, 1  ;;  %v6505_v48 = vrot.slane %v6462_v1, 6  ;;  %v6330_v44 = vadd.f32 %v6329_v62, %v6328_v18  ;;  %v6496_v53 = vsel %vm14487_vm11, %v6495_v26, %v6494_v11  ;;  %v14509_v33 = vld [vmem:[#allocation35_spill] sm:$0xff] }
 0x5d7   : > { %v6504_v60 = vsel %vm14488_vm15, %v6503_v10, %v6458_v5  ;;  %v6507_v56 = vrot.slane %v6464_v37, 5  ;;  %v6336_v6 = vadd.f32 %v6335_v27, %v6334_v45  ;;  %v6498_v0 = vsel %vm14489_vm14, %v6497_v28, %v6496_v53  ;;  %v14507_v45 = vld [vmem:[#allocation31_spill] sm:$0xff]  ;;  %v14508_v28 = vld [vmem:[#allocation29_spill] sm:$0xff]  ;;  %vm14528_vm15 = vmmov %vm14492_vm1 }
 0x5d8   : > { %v6506_v22 = vsel %vm14490_vm0, %v6505_v48, %v6504_v60  ;;  %v6509_v14 = vrot.slane %v6466_v23, 4  ;;  %v6337_v31 = vmul.f32 0.999999, %v6330_v44  ;;  %v6500_v50 = vsel %vm14491_vm13, %v6499_v24, %v6498_v0  ;;  %v14510_v11 = vld [vmem:[#allocation39_spill] sm:$0xff]  ;;  %vm14529_vm14 = vmmov %vm14494_vm2 }
 0x5d9   : > { %v6508_v17 = vsel %vm14492_vm1, %v6507_v56, %v6506_v22  ;;  %v6511_v20 = vrot.slane %v6468_v42, 3  ;;  %v6338_v41 = vmul.f32 0.999999, %v6336_v6  ;;  %v6502_v59 = vsel %vm14493_vm9, %v6501_v55, %v6500_v50  ;;  %v14511_v6 = vld [vmem:[#allocation49_spill] sm:$0xff]  ;;  %vm14530_vm0 = vmmov %vm14494_vm2 }
 0x5da   : > { %v6510_v49 = vsel %vm14494_vm2, %v6509_v14, %v6508_v17  ;;  %v6513_v40 = vrot.slane %v6470_v38, 2  ;;  %v6339_v5 = vadd.f32 5e-07, %v6337_v31  ;;  %v6515_v58 = vrot.slane %v6472_v52, 1  ;;  %v14512_v14 = vld [vmem:[#allocation50_spill] sm:$0xff] }
 0x5db   : > { %v6512_v2 = vsel %vm14456_vm6, %v6511_v20, %v6510_v49  ;;  %v14497_v1 = vsub.f32 %v14495_v29, %v14496_v34  ;;  %v5280_v37 = vsub.f32 %v14499_v13, %v14498_v25  ;;  %v6340_v3 = vadd.f32 5e-07, %v6338_v41  ;;  %v14513_v49 = vld [vmem:[#allocation28_spill] sm:$0xff]  ;;  %v14515_v34 = vld [vmem:[#allocation33_spill] sm:$0xff] }
 0x5dc   : > { %v6514_v63 = vsel %vm14500_vm7, %v6513_v40, %v6512_v2  ;;  %v13590_v21 = vrot.slane %v14501_v57, %v14482_v19  ;;  %v6341_v23 = vmul.f32 100.0, %v6339_v5  ;;  %v6349_v43 = vsub.f32 1.0, %v6339_v5  ;;  %v14514_v5 = vld [vmem:[#allocation32_spill] sm:$0xff] }
 0x5dd   : > { %v13583_v54 = vadd.f32 %v6502_v59, %v14497_v1  ;;  %v6516_v51 = vsel %vm14502_vm3, %v6515_v58, %v6514_v63  ;;  %v6342_v12 = vmul.f32 100.0, %v6340_v3  ;;  %v6350_v42 = vsub.f32 1.0, %v6340_v3  ;;  %v14516_v3 = vld [vmem:[#allocation34_spill] sm:$0xff] }
 0x5de   : > { %v13594_v39 = vadd.f32 %v6516_v51, %v5280_v37  ;;  %v6578_v16 = vsub.f32 %v14503_v36, %v13566_v32  ;;  %8164 = vlog2.f32 %v6341_v23  ;;  %v6351_v38 = vmul.f32 100.0, %v6349_v43 }
 0x5df   : > { %v6521_v4 = vrot.slane %v13583_v54, 4  ;;  %v6580_v9 = vsub.f32 %v14504_v61, %v13566_v32  ;;  %8166 = vlog2.f32 %v6342_v12  ;;  %v6352_v8 = vmul.f32 100.0, %v6350_v42  ;;  %v14517_v12 = vld [vmem:[#allocation23_spill] sm:$0xff] }
 0x5e0   : > { %v6527_v52 = vrot.slane %v13594_v39, 4  ;;  %v6579_v18 = vsub.f32 %v14505_v30, %v13590_v21  ;;  %8168 = vlog2.f32 %v6351_v38  ;;  %v6581_v19 = vsub.f32 %v14506_v15, %v13590_v21  ;;  %v14518_v38 = vld [vmem:[#allocation41_spill] sm:$0xff] }
 0x5e1   : > { %v6522_v46 = vmax.f32 %v13583_v54, %v6521_v4  ;;  %v6582_v47 = vsub.f32 %v14507_v45, %v13566_v32  ;;  %8170 = vlog2.f32 %v6352_v8  ;;  %v6583_v62 = vsub.f32 %v14508_v28, %v13590_v21 }
 0x5e2   : > { %v6528_v26 = vmax.f32 %v13594_v39, %v6527_v52  ;;  %v6584_v24 = vsub.f32 %v14509_v33, %v13566_v32  ;;  %v6594_v10 = vmul.f32 1.442695, %v6578_v16  ;;  %v6585_v55 = vsub.f32 %v14510_v11, %v13590_v21 }
 0x5e3   : > { %v6523_v35 = vrot.slane %v6522_v46, 2  ;;  %v6596_v48 = vmul.f32 1.442695, %v6579_v18  ;;  %v6598_v44 = vmul.f32 1.442695, %v6580_v9  ;;  %v6586_v0 = vsub.f32 %v14511_v6, %v13566_v32 }
 0x5e4   : > { %v6529_v27 = vrot.slane %v6528_v26, 2  ;;  %8172 = vpow2.f32 %v6594_v10  ;;  %v6600_v60 = vmul.f32 1.442695, %v6581_v19  ;;  %v6602_v56 = vmul.f32 1.442695, %v6582_v47 }
 0x5e5   : > { %v6524_v53 = vmax.f32 %v6522_v46, %v6523_v35  ;;  %8174 = vpow2.f32 %v6596_v48  ;;  %v6604_v22 = vmul.f32 1.442695, %v6583_v62  ;;  %v6587_v31 = vsub.f32 %v14512_v14, %v13590_v21 }
 0x5e6   : > { %8176 = vpow2.f32 %v6598_v44  ;;  %v6606_v50 = vmul.f32 1.442695, %v6584_v24  ;;  %v6530_v17 = vmax.f32 %v6528_v26, %v6529_v27  ;;  %v6608_v20 = vmul.f32 1.442695, %v6585_v55 }
 0x5e7   : > { %8178 = vpow2.f32 %v6600_v60  ;;  %v6525_v59 = vrot.slane %v6524_v53, 1  ;;  %v6588_v40 = vsub.f32 %v14513_v49, %v13566_v32  ;;  %v6589_v2 = vsub.f32 %v14514_v5, %v13590_v21 }
 0x5e8   : > { %v8165_v41 = vpop.eup %8164  ;;  %8180 = vpow2.f32 %v6602_v56  ;;  %v6590_v1 = vsub.f32 %v14515_v34, %v13566_v32  ;;  %v6610_v25 = vmul.f32 1.442695, %v6586_v0  ;;  %v6591_v63 = vsub.f32 %v14516_v3, %v13590_v21 }
 0x5e9   : > { %v8167_v58 = vpop.eup %8166  ;;  %v6344_v29 = vmul.f32 0.6931472, %v8165_v41  ;;  %8182 = vpow2.f32 %v6604_v22  ;;  %v6612_v23 = vmul.f32 1.442695, %v6587_v31  ;;  %v6531_v4 = vrot.slane %v6530_v17, 1 }
 0x5ea   : > { %v8169_v13 = vpop.eup %8168  ;;  %v6346_v37 = vmul.f32 0.6931472, %v8167_v58  ;;  %8184 = vpow2.f32 %v6606_v50  ;;  %v6592_v42 = vsub.f32 %v14517_v12, %v13566_v32  ;;  %v13629_v16 = vmax.f32 %v6524_v53, %v6525_v59 }
 0x5eb   : > { %v8171_v43 = vpop.eup %8170  ;;  %v6354_v51 = vmul.f32 0.6931472, %v8169_v13  ;;  %8186 = vpow2.f32 %v6608_v20  ;;  %v6593_v46 = vsub.f32 %v14518_v38, %v13590_v21  ;;  %v6614_v61 = vmul.f32 1.442695, %v6588_v40  ;;  %v14523_v40 = vld [vmem:[#allocation19_spill] sm:$0xff] }
 0x5ec   : > { %v6356_v36 = vmul.f32 0.6931472, %v8171_v43  ;;  %v7140_v9 = vadd.f32 -4.6051702, %v6344_v29  ;;  %8188 = vpow2.f32 %v6610_v25  ;;  %v6616_v52 = vmul.f32 1.442695, %v6589_v2 }
 0x5ed   : > { %v7142_v8 = vadd.f32 -4.6051702, %v6354_v51  ;;  %v7141_v18 = vadd.f32 -4.6051702, %v6346_v37  ;;  %8190 = vpow2.f32 %v6612_v23  ;;  %v6618_v15 = vmul.f32 1.442695, %v6590_v1 }
 0x5ee   : > { %v8173_v30 = vpop.eup %8172  ;;  %v7143_v35 = vadd.f32 -4.6051702, %v6356_v36  ;;  %v13633_v45 = vmax.f32 %v6530_v17, %v6531_v4  ;;  %v6620_v32 = vmul.f32 1.442695, %v6591_v63  ;;  %8192 = vpow2.f32 %v6614_v61 }
 0x5ef   : > { %v8175_v19 = vpop.eup %8174  ;;  %v6830_v47 = vadd.f32 %v7142_v8, %v7140_v9  ;;  %v6359_v26 = vsub.f32 %v7140_v9, %v7142_v8  ;;  %v6622_v62 = vmul.f32 1.442695, %v6592_v42  ;;  %8194 = vpow2.f32 %v6616_v52 }
 0x5f0   : > { %v8177_v28 = vpop.eup %8176  ;;  %v6831_v21 = vadd.f32 %v7143_v35, %v7141_v18  ;;  %v6360_v33 = vsub.f32 %v7141_v18, %v7143_v35  ;;  %v6624_v10 = vmul.f32 1.442695, %v6593_v46  ;;  %8196 = vpow2.f32 %v6618_v15 }
 0x5f1   : > { %v8179_v24 = vpop.eup %8178  ;;  %v6642_v27 = vrot.slane %v8177_v28, 7  ;;  %v6832_v11 = vsub.f32 -1.0000005e-06, %v6830_v47  ;;  %8198 = vpow2.f32 %v6620_v32  ;;  %v14525_v29 = vlaneseq }
 0x5f2   : > { %v8181_v55 = vpop.eup %8180  ;;  %v6656_v48 = vrot.slane %v8179_v24, 7  ;;  %v6833_v44 = vsub.f32 -1.0000005e-06, %v6831_v21  ;;  %v6846_v53 = vcombine.low %v6359_v26, %v6360_v33  ;;  %8200 = vpow2.f32 %v6622_v62 }
 0x5f3   : > { %v8183_v60 = vpop.eup %8182  ;;  %v6643_v56 = vsel %vm14519_vm8, %v6642_v27, %v8173_v30  ;;  %v6644_v6 = vrot.slane %v8181_v55, 6  ;;  %v13637_v0 = vadd.f32 %v6832_v11, %v13629_v16  ;;  %8202 = vpow2.f32 %v6624_v10 }
 0x5f4   : > { %v8185_v22 = vpop.eup %8184  ;;  %v6657_v14 = vsel %vm14520_vm4, %v6656_v48, %v8175_v19  ;;  %v6658_v31 = vrot.slane %v8183_v60, 6  ;;  %v13641_v50 = vadd.f32 %v6833_v44, %v13633_v45  ;;  %v6853_v5 = vrot.slane %v6846_v53, %v14523_v40 }
 0x5f5   : > { %v8187_v17 = vpop.eup %8186  ;;  %v6645_v20 = vsel %vm14521_vm10, %v6644_v6, %v6643_v56  ;;  %v6646_v41 = vrot.slane %v8185_v22, 5  ;;  %vm13650_vm11 = vcmp.lt.s32.totalorder %v14525_v29, 256 }
 0x5f6   : > { %v6659_v59 = vsel %vm14522_vm12, %v6658_v31, %v6657_v14  ;;  %v6660_v49 = vrot.slane %v8187_v17, 5  ;;  %v8189_v2 = vpop.eup %8188  ;;  %v6860_v37 = vrot.slane %v6853_v5, %v14523_v40 }
 0x5f7   : > { %v6647_v58 = vsel %vm14524_vm5, %v6646_v41, %v6645_v20  ;;  %v8191_v1 = vpop.eup %8190  ;;  %v6648_v25 = vrot.slane %v8189_v2, 4 }
 0x5f8   : > { %v6661_v13 = vsel %vm14528_vm15, %v6660_v49, %v6659_v59  ;;  %v6662_v3 = vrot.slane %v8191_v1, 4  ;;  %v8193_v63 = vpop.eup %8192  ;;  %6866 = vst.msk [vmem:[%s404_s15] sm:$0x3] %vm13650_vm11, %v6860_v37 }
 0x5f9   : > { %v6649_v23 = vsel %vm14529_vm14, %v6648_v25, %v6647_v58  ;;  %v8195_v43 = vpop.eup %8194  ;;  %v6650_v51 = vrot.slane %v8193_v63, 3 }
 0x5fa   : > { %v6663_v4 = vsel %vm14530_vm0, %v6662_v3, %v6661_v13 }
 0x5fb   : > { %8326 = shalt.err (!%p8323_p8)
}
 0x5fc   : > { %s8327_s25 = scalar_lea.hbm %s13661_s14, 32  ;;  %s8331_s22 = scalar_lea.hbm %s13803_s8, 64 }
 0x5fd   : > { %p8328_p13 = scmp.ne.s32.totalorder %s13661_s14, %s8327_s25  ;;  %p8332_p9 = scmp.lt.u32.totalorder %s13661_s14, %s13803_s8 }
 0x5fe   : > { %p8333_p6 = scmp.lt.u32.totalorder %s8331_s22, %s8327_s25  ;;  %p8335_p3 = scmp.lt.u32.totalorder %s8327_s25, %s13661_s14 }
 0x5ff   : > { %p8329_p0 = pnand %p8328_p13, %p14531_p5 }
 0x600   : > { %p8334_p1 = por %p8333_p6, %p8332_p9 }
 0x601   : > { %p8330_p11 = pneg %p8329_p0 }
 0x602   : > { %p8336_p10 = por %p8335_p3, %p8334_p1 }
 0x604   : > { %p8337_p12 = pnand %p8336_p10, %p8330_p11 }
 0x606   : > { %8340 = shalt.err (!%p8337_p12)
}
 0x607   : > { %7166 = dma.vmem_to_hbm [thread:$0]  (%p14531_p5), %s13663_s27, 32, %s13661_s14, %s6887_s11   ;;  %v8197_v12 = vpop.eup %8196  ;;  %v6533_v42 = vsub.f32 %v13583_v54, %v13629_v16  ;;  %v6664_v36 = vrot.slane %v8195_v43, 3  ;;  %v6534_v46 = vsub.f32 %v13594_v39, %v13633_v45  ;;  %vm14532_vm13 = vmmov %vm14456_vm6  ;;  %v14538_v45 = vld [vmem:[#allocation48_spill] sm:$0xff]  ;;  %v14540_v21 = vld [vmem:[#allocation45_spill] sm:$0xff] }
 0x608   : > { %v8199_v38 = vpop.eup %8198  ;;  %v6651_v61 = vsel %vm14532_vm13, %v6650_v51, %v6649_v23  ;;  %v6652_v9 = vrot.slane %v8197_v12, 2  ;;  %vm14533_vm1 = vmmov %vm14456_vm6  ;;  %v14539_v28 = vld [vmem:[#allocation40_spill] sm:$0xff]  ;;  %v14541_v24 = vld [vmem:[#allocation46_spill] sm:$0xff]  ;;  %s411_s27 = scalar_lea.vmem [#allocation9], %s8671_s23  ;;  %s13749_s17 = scalar_lea.hbm %s13804_s9, %s7154_s26 }
 0x609   : > { %v8201_v8 = vpop.eup %8200  ;;  %v6665_v52 = vsel %vm14533_vm1, %v6664_v36, %v6663_v4  ;;  %v6666_v30 = vrot.slane %v8199_v38, 2  ;;  %vm14534_vm9 = vmmov %vm14500_vm7  ;;  %v6535_v19 = vmul.f32 1.442695, %v6533_v42  ;;  %v6537_v16 = vmul.f32 1.442695, %v6534_v46  ;;  %v14542_v27 = vld [vmem:[#allocation47_spill] sm:$0xff] }
 0x60a   : > { %v8203_v18 = vpop.eup %8202  ;;  %v6653_v35 = vsel %vm14534_vm9, %v6652_v9, %v6651_v61  ;;  %v6654_v15 = vrot.slane %v8201_v8, 1  ;;  %vm14535_vm2 = vmmov %vm14500_vm7  ;;  %v14543_v55 = vld [vmem:[#allocation21_spill] sm:$0xff]  ;;  %v14544_v44 = vld [vmem:[#allocation51_spill] sm:$0xff]  ;;  %s6920_s6 = sshll.u32 %s411_s27, 4  ;;  %s6892_s23 = scalar_lea.sflag [#allocation10], %s8668_s16  ;;  %s13751_s6 = int_to_ptr.vmem [resolvable:$true] %s6920_s6 }
 0x60b   : > { %v6667_v32 = vsel %vm14535_vm2, %v6666_v30, %v6665_v52  ;;  %v6668_v54 = vrot.slane %v8203_v18, 1  ;;  %vm14536_vm6 = vmmov %vm14502_vm3  ;;  %8204 = vpow2.f32 %v6535_v19  ;;  %v14545_v60 = vld [vmem:[#allocation52_spill] sm:$0xff]  ;;  %v14546_v6 = vld [vmem:[#allocation55_spill] sm:$0xff]  ;;  %s8341_s28 = scalar_lea.vmem %s13751_s6, 32  ;;  %s8430_s13 = smov [#allocation9]  }
 0x60c   : > { %v6655_v47 = vsel %vm14536_vm6, %v6654_v15, %v6653_v35  ;;  %vm14537_vm7 = vmmov %vm14502_vm3  ;;  %8206 = vpow2.f32 %v6537_v16  ;;  %v14547_v35 = vld [vmem:[#allocation56_spill] sm:$0xff]  ;;  %v14548_v19 = vld [vmem:[#allocation57_spill] sm:$0xff]  ;;  %p8342_p2 = scmp.ne.s32.totalorder %s13751_s6, %s8341_s28  ;;  %s8345_s0 = sshll.u32 %s8430_s13, 4  ;;  %s8346_s0 = int_to_ptr.vmem [resolvable:$false] %s8345_s0 }
 0x60d   : > { %v6669_v39 = vsel %vm14537_vm7, %v6668_v54, %v6667_v32  ;;  %v6672_v26 = vmul.f32 %v6655_v47, %v14538_v45  ;;  %v6674_v62 = vmul.f32 %v6655_v47, %v14539_v28  ;;  %v6676_v33 = vmul.f32 %v6655_v47, %v14540_v21  ;;  %vm14554_vm3 = vmmov %vm14520_vm4  ;;  %s8347_s18 = scalar_lea.vmem %s8346_s0, 64  ;;  %p8348_p8 = scmp.lt.s32.totalorder %s13751_s6, %s8346_s0 }
 0x60e   : > { %v6673_v10 = vmul.f32 %v6669_v39, %v14541_v24  ;;  %v6675_v11 = vmul.f32 %v6669_v39, %v14542_v27  ;;  %v6677_v48 = vmul.f32 %v6669_v39, %v14543_v55  ;;  %v6678_v53 = vmul.f32 %v6655_v47, %v14544_v44  ;;  %vm14555_vm8 = vmmov %vm14554_vm3  ;;  %p8343_p7 = pnand %p8342_p2, %p14531_p5  ;;  %p8349_p13 = scmp.lt.s32.totalorder %s8347_s18, %s8341_s28 }
 0x60f   : > { %v6679_v56 = vmul.f32 %v6669_v39, %v14545_v60  ;;  %v6680_v22 = vmul.f32 %v6655_v47, %v14546_v6  ;;  %v6688_v14 = vrot.slane %v6672_v26, 4  ;;  %v6700_v17 = vrot.slane %v6674_v62, 4  ;;  %vm14556_vm4 = vmmov %vm14521_vm10 }
 0x610   : > { %v6694_v31 = vrot.slane %v6673_v10, 4  ;;  %v6706_v20 = vrot.slane %v6675_v11, 4  ;;  %v6712_v41 = vrot.slane %v6676_v33, 4  ;;  %v6718_v59 = vrot.slane %v6677_v48, 4  ;;  %vm14557_vm10 = vmmov %vm14556_vm4  ;;  %p8344_p4 = pneg %p8343_p7  ;;  %p8350_p0 = por %p8349_p13, %p8348_p8 }
 0x611   : > { %v6724_v49 = vrot.slane %v6678_v53, 4  ;;  %v6689_v5 = vadd.f32 %v6688_v14, %v6672_v26  ;;  %v6701_v58 = vadd.f32 %v6700_v17, %v6674_v62  ;;  %v6730_v29 = vrot.slane %v6679_v56, 4  ;;  %v14549_v26 = vld [vmem:[#allocation58_spill] sm:$0xff]  ;;  %v14550_v62 = vld [vmem:[#allocation59_spill] sm:$0xff]  ;;  %vm14558_vm12 = vmmov %vm14524_vm5 }
 0x612   : > { %v6695_v2 = vadd.f32 %v6694_v31, %v6673_v10  ;;  %v6707_v1 = vadd.f32 %v6706_v20, %v6675_v11  ;;  %v6713_v25 = vadd.f32 %v6712_v41, %v6676_v33  ;;  %v6719_v13 = vadd.f32 %v6718_v59, %v6677_v48  ;;  %v14551_v33 = vld [vmem:[#allocation60_spill] sm:$0xff]  ;;  %v14552_v10 = vld [vmem:[#allocation63_spill] sm:$0xff]  ;;  %vm14559_vm15 = vmmov %vm14530_vm0  ;;  %p8351_p11 = pnand %p8350_p0, %p8344_p4 }
 0x613   : > { %v6725_v37 = vadd.f32 %v6724_v49, %v6678_v53  ;;  %v6690_v3 = vrot.slane %v6689_v5, 2  ;;  %v6702_v23 = vrot.slane %v6701_v58, 2  ;;  %v6731_v43 = vadd.f32 %v6730_v29, %v6679_v56  ;;  %v14553_v11 = vld [vmem:[#allocation64_spill] sm:$0xff]  ;;  %vm14560_vm14 = vmmov %vm14530_vm0 }
 0x614   : > { %v6696_v63 = vrot.slane %v6695_v2, 2  ;;  %v6708_v51 = vrot.slane %v6707_v1, 2  ;;  %v6714_v4 = vrot.slane %v6713_v25, 2  ;;  %v6720_v12 = vrot.slane %v6719_v13, 2  ;;  %vm14561_vm0 = vmmov %vm14533_vm1 }
 0x615   : > { %v6726_v42 = vrot.slane %v6725_v37, 2  ;;  %v6691_v36 = vadd.f32 %v6690_v3, %v6689_v5  ;;  %v6703_v46 = vadd.f32 %v6702_v23, %v6701_v58  ;;  %v6732_v61 = vrot.slane %v6731_v43, 2  ;;  %v13710_v18 = vpop.eup %8204  ;;  %vm14562_vm13 = vmmov %vm14561_vm0 }
 0x616   : > { %v6697_v38 = vadd.f32 %v6696_v63, %v6695_v2  ;;  %v6709_v9 = vadd.f32 %v6708_v51, %v6707_v1  ;;  %v6715_v8 = vadd.f32 %v6714_v4, %v6713_v25  ;;  %v6721_v52 = vadd.f32 %v6720_v12, %v6719_v13  ;;  %v13714_v45 = vpop.eup %8206  ;;  %vm14563_vm1 = vmmov %vm14535_vm2 }
 0x617   : > { %v6727_v30 = vadd.f32 %v6726_v42, %v6725_v37  ;;  %v6681_v15 = vmul.f32 %v6669_v39, %v14547_v35  ;;  %v6682_v32 = vmul.f32 %v6655_v47, %v14548_v19  ;;  %v6692_v54 = vrot.slane %v6691_v36, 1  ;;  %vm14564_vm9 = vmmov %vm14563_vm1 }
 0x618   : > { %v6698_v16 = vrot.slane %v6697_v38, 1  ;;  %v6683_v28 = vmul.f32 %v6669_v39, %v14549_v26  ;;  %v6684_v21 = vmul.f32 %v6655_v47, %v14550_v62  ;;  %v6685_v24 = vmul.f32 %v6669_v39, %v14551_v33  ;;  %vm14565_vm2 = vmmov %vm14536_vm6 }
 0x619   : > { %v6686_v27 = vmul.f32 %v6655_v47, %v14552_v10  ;;  %v6687_v55 = vmul.f32 %v6669_v39, %v14553_v11  ;;  %v6704_v48 = vrot.slane %v6703_v46, 1  ;;  %v6710_v44 = vrot.slane %v6709_v9, 1  ;;  %vm14566_vm6 = vmmov %vm14565_vm2 }
 0x61a   : > { %v6733_v53 = vadd.f32 %v6732_v61, %v6731_v43  ;;  %v6693_v60 = vadd.f32 %v6692_v54, %v6691_v36  ;;  %v6716_v56 = vrot.slane %v6715_v8, 1  ;;  %v6722_v6 = vrot.slane %v6721_v52, 1 }
 0x61b   : > { %v6728_v14 = vrot.slane %v6727_v30, 1  ;;  %v6699_v31 = vadd.f32 %v6698_v16, %v6697_v38  ;;  %v6736_v17 = vrot.slane %v6680_v22, 4  ;;  %v6742_v20 = vrot.slane %v6681_v15, 4 }
 0x61c   : > { %v6748_v41 = vrot.slane %v6682_v32, 4  ;;  %v6754_v59 = vrot.slane %v6683_v28, 4  ;;  %v6760_v49 = vrot.slane %v6684_v21, 4  ;;  %v6766_v5 = vrot.slane %v6685_v24, 4 }
 0x61d   : > { %v6772_v2 = vrot.slane %v6686_v27, 4  ;;  %v6737_v58 = vadd.f32 %v6736_v17, %v6680_v22  ;;  %v6743_v29 = vadd.f32 %v6742_v20, %v6681_v15  ;;  %v6778_v1 = vrot.slane %v6687_v55, 4 }
 0x61e   : > { %v6749_v47 = vadd.f32 %v6748_v41, %v6682_v32  ;;  %v6755_v39 = vadd.f32 %v6754_v59, %v6683_v28  ;;  %v6761_v25 = vadd.f32 %v6760_v49, %v6684_v21  ;;  %v6767_v13 = vadd.f32 %v6766_v5, %v6685_v24 }
 0x61f   : > { %v6773_v37 = vadd.f32 %v6772_v2, %v6686_v27  ;;  %v6738_v3 = vrot.slane %v6737_v58, 2  ;;  %v6744_v63 = vrot.slane %v6743_v29, 2  ;;  %v6779_v43 = vadd.f32 %v6778_v1, %v6687_v55 }
 0x620   : > { %v6750_v23 = vrot.slane %v6749_v47, 2  ;;  %v6756_v51 = vrot.slane %v6755_v39, 2  ;;  %v6762_v4 = vrot.slane %v6761_v25, 2  ;;  %v6768_v12 = vrot.slane %v6767_v13, 2 }
 0x621   : > { %v6774_v42 = vrot.slane %v6773_v37, 2  ;;  %v6739_v36 = vadd.f32 %v6738_v3, %v6737_v58  ;;  %v6745_v38 = vadd.f32 %v6744_v63, %v6743_v29  ;;  %v6780_v35 = vrot.slane %v6779_v43, 2 }
 0x622   : > { %v6751_v61 = vadd.f32 %v6750_v23, %v6749_v47  ;;  %v6734_v22 = vrot.slane %v6733_v53, 1  ;;  %v6757_v15 = vadd.f32 %v6756_v51, %v6755_v39  ;;  %v6763_v19 = vadd.f32 %v6762_v4, %v6761_v25 }
 0x623   : > { %v6769_v32 = vadd.f32 %v6768_v12, %v6767_v13  ;;  %v6705_v54 = vadd.f32 %v6704_v48, %v6703_v46  ;;  %v6711_v16 = vadd.f32 %v6710_v44, %v6709_v9  ;;  %v6775_v26 = vadd.f32 %v6774_v42, %v6773_v37 }
 0x624   : > { %v6781_v28 = vadd.f32 %v6780_v35, %v6779_v43  ;;  %v6717_v62 = vadd.f32 %v6716_v56, %v6715_v8  ;;  %v6723_v21 = vadd.f32 %v6722_v6, %v6721_v52  ;;  %v6740_v33 = vrot.slane %v6739_v36, 1 }
 0x625   : > { %v6746_v24 = vrot.slane %v6745_v38, 1  ;;  %v6752_v10 = vrot.slane %v6751_v61, 1  ;;  %v6758_v27 = vrot.slane %v6757_v15, 1  ;;  %v6729_v11 = vadd.f32 %v6728_v14, %v6727_v30 }
 0x626   : > { %v6735_v55 = vadd.f32 %v6734_v22, %v6733_v53  ;;  %v6764_v17 = vrot.slane %v6763_v19, 1  ;;  %v6770_v20 = vrot.slane %v6769_v32, 1  ;;  %v6776_v41 = vrot.slane %v6775_v26, 1 }
 0x627   : > { %v6782_v59 = vrot.slane %v6781_v28, 1  ;;  %v6800_v49 = vsel %vm14554_vm3, %v6705_v54, %v6693_v60  ;;  %v6807_v5 = vsel %vm14555_vm8, %v6711_v16, %v6699_v31  ;;  %v6741_v46 = vadd.f32 %v6740_v33, %v6739_v36 }
 0x628   : > { %v6747_v9 = vadd.f32 %v6746_v24, %v6745_v38  ;;  %v6801_v48 = vsel %vm14556_vm4, %v6717_v62, %v6800_v49  ;;  %v6808_v8 = vsel %vm14557_vm10, %v6723_v21, %v6807_v5  ;;  %v6753_v52 = vadd.f32 %v6752_v10, %v6751_v61 }
 0x629   : > { %v6759_v44 = vadd.f32 %v6758_v27, %v6757_v15  ;;  %v6802_v56 = vsel %vm14558_vm12, %v6729_v11, %v6801_v48  ;;  %v6809_v30 = vsel %vm14524_vm5, %v6735_v55, %v6808_v8  ;;  %v6765_v53 = vadd.f32 %v6764_v17, %v6763_v19 }
 0x62a   : > { %v6771_v6 = vadd.f32 %v6770_v20, %v6769_v32  ;;  %v6803_v14 = vsel %vm14559_vm15, %v6741_v46, %v6802_v56  ;;  %v6810_v60 = vsel %vm14560_vm14, %v6747_v9, %v6809_v30  ;;  %v6777_v2 = vadd.f32 %v6776_v41, %v6775_v26 }
 0x62b   : > { %v6783_v31 = vadd.f32 %v6782_v59, %v6781_v28  ;;  %v6804_v58 = vsel %vm14561_vm0, %v6753_v52, %v6803_v14  ;;  %v6811_v29 = vsel %vm14562_vm13, %v6759_v44, %v6810_v60  ;;  %v6837_v19 = vadd.f32 %v13641_v50, %v14501_v57 }
 0x62c   : > { %v6805_v47 = vsel %vm14563_vm1, %v6765_v53, %v6804_v58  ;;  %v6812_v1 = vsel %vm14564_vm9, %v6771_v6, %v6811_v29 }
 0x62d   : > { %v6806_v39 = vsel %vm14565_vm2, %v6777_v2, %v6805_v47  ;;  %v6813_v25 = vsel %vm14566_vm6, %v6783_v31, %v6812_v1 }
 0x62e   : > { %v6816_v13 = vmul.f32 %v13710_v18, %v6806_v39  ;;  %v6817_v37 = vmul.f32 %v13714_v45, %v6813_v25  ;;  %v6836_v45 = vadd.f32 %v13637_v0, %v14483_v7 }
 0x630   : > { %v6818_v3 = vrot.slane %v6816_v13, 4  ;;  %v6824_v63 = vrot.slane %v6817_v37, 4 }
 0x632   : > { %v6819_v23 = vadd.f32 %v6818_v3, %v6816_v13  ;;  %v6825_v43 = vadd.f32 %v6824_v63, %v6817_v37 }
 0x634   : > { %v6820_v51 = vrot.slane %v6819_v23, 2  ;;  %v6826_v4 = vrot.slane %v6825_v43, 2 }
 0x636   : > { %v6821_v12 = vadd.f32 %v6820_v51, %v6819_v23  ;;  %v6827_v42 = vadd.f32 %v6826_v4, %v6825_v43 }
 0x638   : > { %v6822_v36 = vrot.slane %v6821_v12, 1  ;;  %v6828_v38 = vrot.slane %v6827_v42, 1 }
 0x63a   : > { %v6823_v61 = vadd.f32 %v6822_v36, %v6821_v12  ;;  %v6829_v35 = vadd.f32 %v6828_v38, %v6827_v42 }
 0x63c   : > { %8208 = vlog2.f32 %v6823_v61 }
 0x63d   : > { %8210 = vlog2.f32 %v6829_v35 }
 0x646   : > { %v8209_v22 = vpop.eup %8208 }
 0x647   : > { %v8211_v18 = vpop.eup %8210  ;;  %v6839_v15 = vmul.f32 0.6931472, %v8209_v22 }
 0x648   : > { %v6841_v32 = vmul.f32 0.6931472, %v8211_v18 }
 0x649   : > { %v6842_v54 = vadd.f32 %v6839_v15, %v6836_v45 }
 0x64a   : > { %v6843_v16 = vadd.f32 %v6841_v32, %v6837_v19 }
 0x64c   : > { %v6869_v26 = vcombine.low %v6842_v54, %v6843_v16 }
 0x64e   : > { %v6876_v28 = vrot.slane %v6869_v26, %v14523_v40 }
 0x650   : > { %v6883_v62 = vrot.slane %v6876_v28, %v14523_v40 }
 0x652   : > { %6885 = vst.msk [vmem:[%s411_s27] sm:$0x3] %vm13650_vm11, %v6883_v62 }
 0x653   : > { %8354 = shalt.err (!%p8351_p11)
}
 0x654   : > { %s8355_s16 = scalar_lea.hbm %s13749_s17, 32  ;;  %s8359_s24 = scalar_lea.hbm %s13804_s9, 64 }
 0x655   : > { %p8356_p9 = scmp.ne.s32.totalorder %s13749_s17, %s8355_s16  ;;  %p8360_p3 = scmp.lt.u32.totalorder %s13749_s17, %s13804_s9 }
 0x656   : > { %p8361_p10 = scmp.lt.u32.totalorder %s8359_s24, %s8355_s16  ;;  %p8363_p2 = scmp.lt.u32.totalorder %s8355_s16, %s13749_s17 }
 0x657   : > { %p8357_p6 = pnand %p8356_p9, %p14531_p5 }
 0x658   : > { %p8362_p12 = por %p8361_p10, %p8360_p3 }
 0x659   : > { %p8358_p1 = pneg %p8357_p6 }
 0x65a   : > { %p8364_p7 = por %p8363_p2, %p8362_p12 }
 0x65c   : > { %p8365_p4 = pnand %p8364_p7, %p8358_p1 }
 0x65e   : > { %8368 = shalt.err (!%p8365_p4)
}
 0x65f   : > { %7167 = dma.vmem_to_hbm [thread:$0]  (%p14531_p5), %s13751_s6, 32, %s13749_s17, %s6892_s23  }
 0x660 PF: > { %s6932_s15 = sand.u32 1, %s8407_s30   ;;  %p14567_p8 = scmp.ne.s32.totalorder %s13969_s21, 0 }
 0x661   : > { %p14568_p13 = scmp.ge.s32.totalorder %s8419_s12, 2  ;;  %s6933_s19 = scalar_lea.sflag [#allocation4], %s6932_s15 }
 0x663   : > { %p7182_p0 = pnand %p14568_p13, %p14567_p8 }
 0x665   : > { %8398 = dma.done.wait (!%p7182_p0), %s6933_s19, 32  }
 0x666   : > { %8400 = vsyncadd (!%p7182_p0), %s6933_s19, 4294967264  ;;  %s6942_s27 = scalar_lea.sflag [#allocation10], %s6932_s15 }
 0x667   : > { %8402 = dma.done.wait (!%p7182_p0), %s6942_s27, 32  }
 0x668   : > { %8404 = vsyncadd (!%p7182_p0), %s6942_s27, 4294967264  ;;  %s14569_s12 = sld [smem:[#allocation17_spill]]  ;;  %s14570_s20 = sld [smem:[#allocation16_spill]] }
 0x669   : > { %s14571_s11 = sld [smem:[#allocation18_spill]]  ;;  %s14572_s30 = smov %s8411_s10 }
 0x66e   : > { %p29_p5 = scmp.ge.s32.totalorder %s14569_s12, 4   ;;  %s14573_s10 = smov %s14570_s20 }
 0x670   :  { %31 = sbr.rel (!%p29_p5) target bundleno = 12 (0xc), region = 132 }
 0x677   :  { %6947 = vsyncpa [#allocation3], 1 }
 0x678   :  { %6949 = vsyncpa [#allocation3 + $0x1], 1 }
 0x679   :  { %6950 = vsyncpa [#allocation6], 1 }
 0x67a   :  { %6952 = vsyncpa [#allocation6 + $0x1], 1 }
 0x67b   :  { %6953 = vsyncpa [#allocation4], 1 }
 0x67c   :  { %6955 = vsyncpa [#allocation4 + $0x1], 1 }
 0x67d   :  { %6956 = vsyncpa [#allocation10], 1 }
 0x67e   :  { %6958 = vsyncpa [#allocation10 + $0x1], 1 }

</bundles_post_ra>
